<compile_context>
chip_gen: v6e
topology: v6e:2x2x1
jax: 0.10.0
libtpu: 0.0.40
codegen_flags: <defaults>
</compile_context>

<pallas_src>
import functools

import jax
import jax.numpy as jnp
from jax.experimental import pallas as pl
from jax.experimental.pallas import tpu as pltpu

LANE = 128  # lane-padding width for the output MLP


# --------------------------- fused DKT kernel --------------------------------
def _dkt_fused_kernel(xin_ref, linw_ref, linb_ref,
                      e0wih_ref, e0whh_ref, e0b_ref,
                      erw_ref, erb_ref,
                      wdec_ref, bdec_ref,
                      w1_ref, b1_ref, w2_ref, b2_ref, wf_ref, bf_ref,
                      o_ref, h_scr, c_scr, g0_scr,
                      *, seq_len, batch_pad, layer_num, hidden_dim):
    H = hidden_dim
    L = layer_num
    B = batch_pad
    TB = seq_len * B

    # -------- Prologue: non-recurrent work hoisted into big matmuls --------
    # self.lin for all encoder steps AND the decoder step in one matmul.
    proj = (jnp.dot(xin_ref[...].astype(jnp.bfloat16), linw_ref[...],
                    preferred_element_type=jnp.float32) + linb_ref[...])
    enc_proj = proj[:TB]          # (T*Bp, 256) encoder inputs, all steps
    dec_proj = proj[TB:]          # (Bp, 256)  decoder input (single step)

    # Encoder layer-0 input->gate contribution for ALL time steps at once.
    g0_scr[...] = (jnp.dot(enc_proj.astype(jnp.bfloat16), e0wih_ref[...],
                           preferred_element_type=jnp.float32) + e0b_ref[...])

    def gates_to_hc(gates, c):
        i_g = jax.nn.sigmoid(gates[:, 0:H])          # PyTorch gate order i,f,g,o
        f_g = jax.nn.sigmoid(gates[:, H:2 * H])
        g_g = jnp.tanh(gates[:, 2 * H:3 * H])
        o_g = jax.nn.sigmoid(gates[:, 3 * H:4 * H])
        c_new = f_g * c + i_g * g_g
        h_new = o_g * jnp.tanh(c_new)
        return h_new, c_new

    def fused_cell(inp, h, c, w_bf16, b_f32):
        # fused [x_t, h] @ [W_ih; W_hh]: one MXU matmul per cell
        xh = jnp.concatenate(
            [inp.astype(jnp.bfloat16), h.astype(jnp.bfloat16)], axis=-1)
        gates = jnp.dot(xh, w_bf16, preferred_element_type=jnp.float32) + b_f32
        return gates_to_hc(gates, c)

    # h0 = c0 = 0 (matches the reference)
    h_scr[...] = jnp.zeros_like(h_scr)
    c_scr[...] = jnp.zeros_like(c_scr)

    # -------- Encoder: time recurrence in-kernel; only H->4H matmuls left --------
    # TODO(synk): nn.LSTM inter-layer dropout (p=0.3) is identity at inference
    # and is omitted (no stochastic eval-mode equivalent).
    @pl.loop(0, seq_len)
    def _(t):
        row = pl.multiple_of(t * B, B)          # B is a multiple of 8 -> aligned
        gates0 = (g0_scr[pl.ds(row, B), :]
                  + jnp.dot(h_scr[0].astype(jnp.bfloat16), e0whh_ref[...],
                            preferred_element_type=jnp.float32))
        h_new, c_new = gates_to_hc(gates0, c_scr[0])
        h_scr[0] = h_new
        c_scr[0] = c_new
        inp = h_new
        for l in range(1, L):                   # static layer unroll
            h_new, c_new = fused_cell(inp, h_scr[l], c_scr[l],
                                      erw_ref[l - 1], erb_ref[l - 1])
            h_scr[l] = h_new
            c_scr[l] = c_new
            inp = h_new

    # -------- Decoder: single step, initial state = encoder (hn, cn) --------
    inp = dec_proj
    for l in range(L):
        h_new, _ = fused_cell(inp, h_scr[l], c_scr[l], wdec_ref[l], bdec_ref[l])
        inp = h_new

    # -------- Output MLP, lane-padded to 128 (lane-dense store) --------
    # TODO(synk): nn.Dropout(0.2) inside self.out is identity at inference.
    z = jnp.dot(inp.astype(jnp.bfloat16), w1_ref[...],
                preferred_element_type=jnp.float32) + b1_ref[...]
    z = jnp.maximum(z, 0.0)
    z = jnp.dot(z.astype(jnp.bfloat16), w2_ref[...],
                preferred_element_type=jnp.float32) + b2_ref[...]
    z = jnp.maximum(z, 0.0)
    y = jnp.dot(z.astype(jnp.bfloat16), wf_ref[...],
                preferred_element_type=jnp.float32) + bf_ref[...]
    o_ref[...] = jax.nn.sigmoid(y).astype(o_ref.dtype)


# --------------------------- parameter creation ------------------------------
def init_params(key, n_question, p_num, embed_l, embed_p, input_dim,
                hidden_dim, layer_num):
    assert hidden_dim == 256, "self.out expects 256 inputs -> hidden_dim must be 256"
    keys = iter(jax.random.split(key, 64))

    def xavier(shape):                      # shape = (fan_in, fan_out)
        bound = (6.0 / (shape[0] + shape[1])) ** 0.5
        return jax.random.uniform(next(keys), shape, jnp.float32, -bound, bound)

    def uni(shape, bound):
        return jax.random.uniform(next(keys), shape, jnp.float32, -bound, bound)

    H = hidden_dim
    p = {}
    # Embeddings (padding_idx=0 -> zero row)
    p["q_embed"] = jax.random.normal(next(keys), (n_question, embed_l),
                                     jnp.float32).at[0].set(0.0)
    p["p_embed"] = jax.random.normal(next(keys), (p_num, embed_p),
                                     jnp.float32).at[0].set(0.0)

    in_lin = input_dim + embed_p + embed_l
    p["lin_w"] = xavier((in_lin, 256)).astype(jnp.bfloat16)   # stored (in, out)
    p["lin_b"] = jnp.zeros((1, 256), jnp.float32)

    k = 1.0 / (H ** 0.5)

    # ----- Encoder: layer 0 split (W_ih hoisted), layers >=1 fused -----
    p["enc0_wih"] = uni((256, 4 * H), k).astype(jnp.bfloat16)    # transposed W_ih
    p["enc0_whh"] = uni((H, 4 * H), k).astype(jnp.bfloat16)      # transposed W_hh
    p["enc0_b"] = (uni((4 * H,), k) + uni((4 * H,), k)).reshape(1, 4 * H)

    ws, bs = [], []
    for _ in range(1, layer_num):
        w_ih = uni((H, 4 * H), k)
        w_hh = uni((H, 4 * H), k)
        ws.append(jnp.concatenate([w_ih, w_hh], axis=0))          # (2H, 4H) fused
        bs.append(uni((4 * H,), k) + uni((4 * H,), k))
    if not ws:                               # keep shapes valid for layer_num == 1
        ws.append(jnp.zeros((2 * H, 4 * H), jnp.float32))
        bs.append(jnp.zeros((4 * H,), jnp.float32))
    p["encr_w"] = jnp.stack(ws).astype(jnp.bfloat16)              # (L-1, 2H, 4H)
    p["encr_b"] = jnp.stack(bs).reshape(-1, 1, 4 * H)

    # ----- Decoder: fused [W_ih; W_hh] per layer (single step) -----
    ws, bs = [], []
    for l in range(layer_num):
        d = 256 if l == 0 else H             # == H since hidden_dim == 256
        w_ih = uni((d, 4 * H), k)
        w_hh = uni((H, 4 * H), k)
        ws.append(jnp.concatenate([w_ih, w_hh], axis=0))
        bs.append(uni((4 * H,), k) + uni((4 * H,), k))
    p["dec_w"] = jnp.stack(ws).astype(jnp.bfloat16)               # (L, 2H, 4H)
    p["dec_b"] = jnp.stack(bs).reshape(layer_num, 1, 4 * H)

    # Output MLP, lane-padded to 128 (zero padding keeps math identical:
    # padded columns are relu(0)=0 and padded weight rows are 0).
    out1_w = uni((256, 64), 1.0 / (256 ** 0.5))
    out1_b = uni((64,), 1.0 / (256 ** 0.5))
    out2_w = uni((64, 10), 1.0 / (64 ** 0.5))
    out2_b = uni((10,), 1.0 / (64 ** 0.5))
    final_w = uni((10, 1), 1.0 / (10 ** 0.5))
    final_b = uni((1,), 1.0 / (10 ** 0.5))

    p["out1_w"] = jnp.zeros((256, LANE), jnp.float32).at[:, :64].set(out1_w).astype(jnp.bfloat16)
    p["out1_b"] = jnp.zeros((1, LANE), jnp.float32).at[0, :64].set(out1_b)
    p["out2_w"] = jnp.zeros((LANE, LANE), jnp.float32).at[:64, :10].set(out2_w).astype(jnp.bfloat16)
    p["out2_b"] = jnp.zeros((1, LANE), jnp.float32).at[0, :10].set(out2_b)
    p["final_w"] = jnp.zeros((LANE, LANE), jnp.float32).at[:10, :1].set(final_w).astype(jnp.bfloat16)
    p["final_b"] = jnp.zeros((1, LANE), jnp.float32).at[0, :1].set(final_b)
    return p


# ------------------------------ DKT forward ----------------------------------
def dkt_forward(params, x, targets, layer_num, hidden_dim):
    T, B, _ = x.shape
    H = hidden_dim
    B_pad = max(8, ((B + 7) // 8) * 8)       # sublane-aligned batch

    # Embedding lookups + concat (glue, plain JAX)
    q_idx = x[:, :, 4].astype(jnp.int32)
    p_idx = x[:, :, 0].astype(jnp.int32)
    q_embed_data = jnp.take(params["q_embed"], q_idx, axis=0)   # (T, B, embed_l)
    p_embed_data = jnp.take(params["p_embed"], p_idx, axis=0)   # (T, B, embed_p)
    rnn_input = jnp.concatenate([q_embed_data, p_embed_data, x], axis=2)

    tq = targets[:, 4].astype(jnp.int32)
    tp = targets[:, 0].astype(jnp.int32)
    rnn_input2 = jnp.concatenate([jnp.take(params["p_embed"], tp, axis=0),
                                  jnp.take(params["q_embed"], tq, axis=0),
                                  targets], axis=1)             # (B, in_lin)

    in_lin = rnn_input.shape[-1]
    pad = B_pad - B
    enc_flat = jnp.pad(rnn_input, ((0, 0), (0, pad), (0, 0))).reshape(T * B_pad, in_lin)
    dec_flat = jnp.pad(rnn_input2, ((0, pad), (0, 0)))
    xin = jnp.concatenate([enc_flat, dec_flat], axis=0)         # ((T+1)*Bp, in_lin)

    kernel = functools.partial(_dkt_fused_kernel, seq_len=T, batch_pad=B_pad,
                               layer_num=layer_num, hidden_dim=H)

    # Advisory cost estimate
    flops = (2 * B_pad * (T + 1) * layer_num * (2 * H) * (4 * H)     # LSTM gate GEMMs
             + 2 * B_pad * (T + 1) * in_lin * 256                    # lin projection
             + 2 * B_pad * (256 * LANE + LANE * LANE + LANE * LANE)) # output MLP
    trans = B_pad * (T + 1) * layer_num * 5 * H + B_pad * LANE
    nbytes = sum(int(a.size) * a.dtype.itemsize for a in
                 (xin, params["lin_w"], params["enc0_wih"], params["enc0_whh"],
                  params["encr_w"], params["dec_w"], params["out1_w"],
                  params["out2_w"], params["final_w"])) + B_pad * LANE * 4

    out = pl.pallas_call(
        kernel,
        out_shape=jax.ShapeDtypeStruct((B_pad, LANE), jnp.float32),
        scratch_shapes=[pltpu.VMEM((layer_num, B_pad, H), jnp.float32),   # h state
                        pltpu.VMEM((layer_num, B_pad, H), jnp.float32),   # c state
                        pltpu.VMEM((T * B_pad, 4 * H), jnp.float32)],     # layer0 gates
        compiler_params=pltpu.CompilerParams(vmem_limit_bytes=32 * 1024 * 1024),
        cost_estimate=pl.CostEstimate(flops=int(flops),
                                      transcendentals=int(trans),
                                      bytes_accessed=int(nbytes)),
    )(xin,
      params["lin_w"], params["lin_b"],
      params["enc0_wih"], params["enc0_whh"], params["enc0_b"],
      params["encr_w"], params["encr_b"],
      params["dec_w"], params["dec_b"],
      params["out1_w"], params["out1_b"],
      params["out2_w"], params["out2_b"],
      params["final_w"], params["final_b"])

    return out[:B, 0]                        # matches PyTorch res.squeeze() -> (B,)


# ---------------------------------- main --------------------------------------
if __name__ == "__main__":
    key = jax.random.PRNGKey(0)

    n_question, p_num = 20, 15
    embed_l, embed_p = 10, 10
    input_dim = 12
    hidden_dim = 256          # required: self.out's first Linear expects 256 inputs
    layer_num = 2
    seq_len, batch = 8, 2

    kp, kx, kt, kqi, kpi, kqt, kpt = jax.random.split(key, 7)
    params = init_params(kp, n_question, p_num, embed_l, embed_p,
                         input_dim, hidden_dim, layer_num)

    x = jax.random.normal(kx, (seq_len, batch, input_dim), jnp.float32)
    q_ids = jax.random.randint(kqi, (seq_len, batch), 0, n_question).astype(jnp.float32)
    p_ids = jax.random.randint(kpi, (seq_len, batch), 0, p_num).astype(jnp.float32)
    x = x.at[:, :, 4].set(q_ids).at[:, :, 0].set(p_ids)

    targets = jax.random.normal(kt, (batch, input_dim), jnp.float32)
    targets = targets.at[:, 4].set(
        jax.random.randint(kqt, (batch,), 0, n_question).astype(jnp.float32))
    targets = targets.at[:, 0].set(
        jax.random.randint(kpt, (batch,), 0, p_num).astype(jnp.float32))

    res = dkt_forward(params, x, targets, layer_num, hidden_dim)
    jax.block_until_ready(res)
    assert res.shape == (batch,), res.shape
    assert bool(jnp.all(jnp.isfinite(res)))
    print("KERNEL_OK")
</pallas_src>

<mosaic_0001>
module attributes {stable_mosaic.version = 11 : i64} {
  func.func @_dkt_fused_kernel(%arg0: memref<72x32xf32, #tpu.memory_space<vmem>>, %arg1: memref<32x256xbf16, #tpu.memory_space<vmem>>, %arg2: memref<1x256xf32, #tpu.memory_space<vmem>>, %arg3: memref<256x1024xbf16, #tpu.memory_space<vmem>>, %arg4: memref<256x1024xbf16, #tpu.memory_space<vmem>>, %arg5: memref<1x1024xf32, #tpu.memory_space<vmem>>, %arg6: memref<1x512x1024xbf16, #tpu.memory_space<vmem>>, %arg7: memref<1x1x1024xf32, #tpu.memory_space<vmem>>, %arg8: memref<2x512x1024xbf16, #tpu.memory_space<vmem>>, %arg9: memref<2x1x1024xf32, #tpu.memory_space<vmem>>, %arg10: memref<256x128xbf16, #tpu.memory_space<vmem>>, %arg11: memref<1x128xf32, #tpu.memory_space<vmem>>, %arg12: memref<128x128xbf16, #tpu.memory_space<vmem>>, %arg13: memref<1x128xf32, #tpu.memory_space<vmem>>, %arg14: memref<128x128xbf16, #tpu.memory_space<vmem>>, %arg15: memref<1x128xf32, #tpu.memory_space<vmem>>, %arg16: memref<8x128xf32, #tpu.memory_space<vmem>>, %arg17: memref<2x8x256xf32, #tpu.memory_space<vmem>>, %arg18: memref<2x8x256xf32, #tpu.memory_space<vmem>>, %arg19: memref<64x1024xf32, #tpu.memory_space<vmem>>) attributes {dimension_semantics = [], scalar_prefetch = 0 : i64, scratch_operands = 3 : i64, tpu.core_type = #tpu.core_type<tc>} {
    %c0 = arith.constant 0 : index
    %c0_0 = arith.constant 0 : index
    %0 = vector.load %arg0[%c0, %c0_0] : memref<72x32xf32, #tpu.memory_space<vmem>>, vector<72x32xf32>
    %1 = arith.truncf %0 : vector<72x32xf32> to vector<72x32xbf16>
    %c0_1 = arith.constant 0 : index
    %c0_2 = arith.constant 0 : index
    %2 = vector.load %arg1[%c0_1, %c0_2] : memref<32x256xbf16, #tpu.memory_space<vmem>>, vector<32x256xbf16>
    %cst = arith.constant dense<0.000000e+00> : vector<72x256xf32>
    %3 = tpu.matmul %1, %2, %cst {dimension_numbers = #tpu.dot_dimension_numbers<[1], [0], [0], [1], [0, 0, 1, 1], [], []>} : vector<72x32xbf16>, vector<32x256xbf16>, vector<72x256xf32> -> vector<72x256xf32>
    %c0_3 = arith.constant 0 : index
    %c0_4 = arith.constant 0 : index
    %4 = vector.load %arg2[%c0_3, %c0_4] : memref<1x256xf32, #tpu.memory_space<vmem>>, vector<1x256xf32>
    %5 = vector.broadcast %4 : vector<1x256xf32> to vector<72x256xf32>
    %6 = arith.addf %3, %5 : vector<72x256xf32>
    %7 = vector.extract_strided_slice %6 {offsets = [0, 0], sizes = [64, 256], strides = [1, 1]} : vector<72x256xf32> to vector<64x256xf32>
    %8 = vector.extract_strided_slice %6 {offsets = [64, 0], sizes = [8, 256], strides = [1, 1]} : vector<72x256xf32> to vector<8x256xf32>
    %9 = arith.truncf %7 : vector<64x256xf32> to vector<64x256xbf16>
    %c0_5 = arith.constant 0 : index
    %c0_6 = arith.constant 0 : index
    %10 = vector.load %arg3[%c0_5, %c0_6] : memref<256x1024xbf16, #tpu.memory_space<vmem>>, vector<256x1024xbf16>
    %cst_7 = arith.constant dense<0.000000e+00> : vector<64x1024xf32>
    %11 = tpu.matmul %9, %10, %cst_7 {dimension_numbers = #tpu.dot_dimension_numbers<[1], [0], [0], [1], [0, 0, 1, 1], [], []>} : vector<64x256xbf16>, vector<256x1024xbf16>, vector<64x1024xf32> -> vector<64x1024xf32>
    %c0_8 = arith.constant 0 : index
    %c0_9 = arith.constant 0 : index
    %12 = vector.load %arg5[%c0_8, %c0_9] : memref<1x1024xf32, #tpu.memory_space<vmem>>, vector<1x1024xf32>
    %13 = vector.broadcast %12 : vector<1x1024xf32> to vector<64x1024xf32>
    %14 = arith.addf %11, %13 : vector<64x1024xf32>
    %c0_10 = arith.constant 0 : index
    %c0_11 = arith.constant 0 : index
    %15 = vector.load %arg19[%c0_10, %c0_11] : memref<64x1024xf32, #tpu.memory_space<vmem>>, vector<64x1024xf32>
    tpu.vector_store %arg19[%c0_10, %c0_11], %14 {strides = array<i32>} : memref<64x1024xf32, #tpu.memory_space<vmem>>, vector<64x1024xf32>,
    %cst_12 = arith.constant 0.000000e+00 : f32
    %16 = vector.broadcast %cst_12 : f32 to vector<2x8x256xf32>
    %c0_13 = arith.constant 0 : index
    %c0_14 = arith.constant 0 : index
    %c0_15 = arith.constant 0 : index
    %17 = vector.load %arg17[%c0_13, %c0_14, %c0_15] : memref<2x8x256xf32, #tpu.memory_space<vmem>>, vector<2x8x256xf32>
    tpu.vector_store %arg17[%c0_13, %c0_14, %c0_15], %16 {strides = array<i32>} : memref<2x8x256xf32, #tpu.memory_space<vmem>>, vector<2x8x256xf32>,
    %cst_16 = arith.constant 0.000000e+00 : f32
    %18 = vector.broadcast %cst_16 : f32 to vector<2x8x256xf32>
    %c0_17 = arith.constant 0 : index
    %c0_18 = arith.constant 0 : index
    %c0_19 = arith.constant 0 : index
    %19 = vector.load %arg18[%c0_17, %c0_18, %c0_19] : memref<2x8x256xf32, #tpu.memory_space<vmem>>, vector<2x8x256xf32>
    tpu.vector_store %arg18[%c0_17, %c0_18, %c0_19], %18 {strides = array<i32>} : memref<2x8x256xf32, #tpu.memory_space<vmem>>, vector<2x8x256xf32>,
    %c0_i32 = arith.constant 0 : i32
    %c8_i32 = arith.constant 8 : i32
    %20 = arith.addi %c0_i32, %c8_i32 : i32
    %c1_i32 = arith.constant 1 : i32
    scf.for %arg20 = %c0_i32 to %20 step %c1_i32  : i32 {
      %c1_i32_72 = arith.constant 1 : i32
      %127 = arith.muli %arg20, %c1_i32_72 : i32
      %c0_i32_73 = arith.constant 0 : i32
      %128 = arith.addi %c0_i32_73, %127 : i32
      %c8_i32_74 = arith.constant 8 : i32
      %129 = arith.muli %128, %c8_i32_74 : i32
      %130 = tpu.assume_multiple %129, 8 : i32
      %131 = arith.index_cast %130 : i32 to index
      %c0_75 = arith.constant 0 : index
      %132 = vector.load %arg19[%131, %c0_75] : memref<64x1024xf32, #tpu.memory_space<vmem>>, vector<8x1024xf32>
      %c0_76 = arith.constant 0 : index
      %c0_77 = arith.constant 0 : index
      %c0_78 = arith.constant 0 : index
      %133 = vector.load %arg17[%c0_76, %c0_77, %c0_78] : memref<2x8x256xf32, #tpu.memory_space<vmem>>, vector<1x8x256xf32>
      %134 = vector.shape_cast %133 : vector<1x8x256xf32> to vector<8x256xf32>
      %135 = arith.truncf %134 : vector<8x256xf32> to vector<8x256xbf16>
      %c0_79 = arith.constant 0 : index
      %c0_80 = arith.constant 0 : index
      %136 = vector.load %arg4[%c0_79, %c0_80] : memref<256x1024xbf16, #tpu.memory_space<vmem>>, vector<256x1024xbf16>
      %cst_81 = arith.constant dense<0.000000e+00> : vector<8x1024xf32>
      %137 = tpu.matmul %135, %136, %cst_81 {dimension_numbers = #tpu.dot_dimension_numbers<[1], [0], [0], [1], [0, 0, 1, 1], [], []>} : vector<8x256xbf16>, vector<256x1024xbf16>, vector<8x1024xf32> -> vector<8x1024xf32>
      %138 = arith.addf %132, %137 : vector<8x1024xf32>
      %c0_82 = arith.constant 0 : index
      %c0_83 = arith.constant 0 : index
      %c0_84 = arith.constant 0 : index
      %139 = vector.load %arg18[%c0_82, %c0_83, %c0_84] : memref<2x8x256xf32, #tpu.memory_space<vmem>>, vector<1x8x256xf32>
      %140 = vector.shape_cast %139 : vector<1x8x256xf32> to vector<8x256xf32>
      %141 = vector.extract_strided_slice %138 {offsets = [0, 0], sizes = [8, 256], strides = [1, 1]} : vector<8x1024xf32> to vector<8x256xf32>
      %142 = arith.negf %141 : vector<8x256xf32>
      %143 = math.exp %142 : vector<8x256xf32>
      %cst_85 = arith.constant 1.000000e+00 : f32
      %144 = vector.broadcast %cst_85 : f32 to vector<8x256xf32>
      %145 = arith.addf %144, %143 : vector<8x256xf32>
      %146 = arith.divf %144, %145 : vector<8x256xf32>
      %147 = vector.extract_strided_slice %138 {offsets = [0, 256], sizes = [8, 256], strides = [1, 1]} : vector<8x1024xf32> to vector<8x256xf32>
      %148 = arith.negf %147 : vector<8x256xf32>
      %149 = math.exp %148 : vector<8x256xf32>
      %cst_86 = arith.constant 1.000000e+00 : f32
      %150 = vector.broadcast %cst_86 : f32 to vector<8x256xf32>
      %151 = arith.addf %150, %149 : vector<8x256xf32>
      %152 = arith.divf %150, %151 : vector<8x256xf32>
      %153 = vector.extract_strided_slice %138 {offsets = [0, 512], sizes = [8, 256], strides = [1, 1]} : vector<8x1024xf32> to vector<8x256xf32>
      %154 = math.tanh %153 : vector<8x256xf32>
      %155 = vector.extract_strided_slice %138 {offsets = [0, 768], sizes = [8, 256], strides = [1, 1]} : vector<8x1024xf32> to vector<8x256xf32>
      %156 = arith.negf %155 : vector<8x256xf32>
      %157 = math.exp %156 : vector<8x256xf32>
      %cst_87 = arith.constant 1.000000e+00 : f32
      %158 = vector.broadcast %cst_87 : f32 to vector<8x256xf32>
      %159 = arith.addf %158, %157 : vector<8x256xf32>
      %160 = arith.divf %158, %159 : vector<8x256xf32>
      %161 = arith.mulf %152, %140 : vector<8x256xf32>
      %162 = arith.mulf %146, %154 : vector<8x256xf32>
      %163 = arith.addf %161, %162 : vector<8x256xf32>
      %164 = math.tanh %163 : vector<8x256xf32>
      %165 = arith.mulf %160, %164 : vector<8x256xf32>
      %c0_88 = arith.constant 0 : index
      %c0_89 = arith.constant 0 : index
      %c0_90 = arith.constant 0 : index
      %166 = vector.load %arg17[%c0_88, %c0_89, %c0_90] : memref<2x8x256xf32, #tpu.memory_space<vmem>>, vector<1x8x256xf32>
      %167 = vector.shape_cast %166 : vector<1x8x256xf32> to vector<8x256xf32>
      %168 = vector.shape_cast %165 : vector<8x256xf32> to vector<1x8x256xf32>
      tpu.vector_store %arg17[%c0_88, %c0_89, %c0_90], %168 {strides = array<i32>} : memref<2x8x256xf32, #tpu.memory_space<vmem>>, vector<1x8x256xf32>,
      %c0_91 = arith.constant 0 : index
      %c0_92 = arith.constant 0 : index
      %c0_93 = arith.constant 0 : index
      %169 = vector.load %arg18[%c0_91, %c0_92, %c0_93] : memref<2x8x256xf32, #tpu.memory_space<vmem>>, vector<1x8x256xf32>
      %170 = vector.shape_cast %169 : vector<1x8x256xf32> to vector<8x256xf32>
      %171 = vector.shape_cast %163 : vector<8x256xf32> to vector<1x8x256xf32>
      tpu.vector_store %arg18[%c0_91, %c0_92, %c0_93], %171 {strides = array<i32>} : memref<2x8x256xf32, #tpu.memory_space<vmem>>, vector<1x8x256xf32>,
      %c1_94 = arith.constant 1 : index
      %c0_95 = arith.constant 0 : index
      %c0_96 = arith.constant 0 : index
      %172 = vector.load %arg17[%c1_94, %c0_95, %c0_96] : memref<2x8x256xf32, #tpu.memory_space<vmem>>, vector<1x8x256xf32>
      %173 = vector.shape_cast %172 : vector<1x8x256xf32> to vector<8x256xf32>
      %c1_97 = arith.constant 1 : index
      %c0_98 = arith.constant 0 : index
      %c0_99 = arith.constant 0 : index
      %174 = vector.load %arg18[%c1_97, %c0_98, %c0_99] : memref<2x8x256xf32, #tpu.memory_space<vmem>>, vector<1x8x256xf32>
      %175 = vector.shape_cast %174 : vector<1x8x256xf32> to vector<8x256xf32>
      %c0_100 = arith.constant 0 : index
      %c0_101 = arith.constant 0 : index
      %c0_102 = arith.constant 0 : index
      %176 = vector.load %arg6[%c0_100, %c0_101, %c0_102] : memref<1x512x1024xbf16, #tpu.memory_space<vmem>>, vector<1x512x1024xbf16>
      %177 = vector.shape_cast %176 : vector<1x512x1024xbf16> to vector<512x1024xbf16>
      %c0_103 = arith.constant 0 : index
      %c0_104 = arith.constant 0 : index
      %c0_105 = arith.constant 0 : index
      %178 = vector.load %arg7[%c0_103, %c0_104, %c0_105] : memref<1x1x1024xf32, #tpu.memory_space<vmem>>, vector<1x1x1024xf32>
      %179 = vector.shape_cast %178 : vector<1x1x1024xf32> to vector<1x1024xf32>
      %180 = arith.truncf %165 : vector<8x256xf32> to vector<8x256xbf16>
      %181 = arith.truncf %173 : vector<8x256xf32> to vector<8x256xbf16>
      %182 = tpu.concatenate %180, %181 in 1 : vector<8x256xbf16>, vector<8x256xbf16> -> vector<8x512xbf16>
      %cst_106 = arith.constant dense<0.000000e+00> : vector<8x1024xf32>
      %183 = tpu.matmul %182, %177, %cst_106 {dimension_numbers = #tpu.dot_dimension_numbers<[1], [0], [0], [1], [0, 0, 1, 1], [], []>} : vector<8x512xbf16>, vector<512x1024xbf16>, vector<8x1024xf32> -> vector<8x1024xf32>
      %184 = vector.broadcast %179 : vector<1x1024xf32> to vector<8x1024xf32>
      %185 = arith.addf %183, %184 : vector<8x1024xf32>
      %186 = vector.extract_strided_slice %185 {offsets = [0, 0], sizes = [8, 256], strides = [1, 1]} : vector<8x1024xf32> to vector<8x256xf32>
      %187 = arith.negf %186 : vector<8x256xf32>
      %188 = math.exp %187 : vector<8x256xf32>
      %cst_107 = arith.constant 1.000000e+00 : f32
      %189 = vector.broadcast %cst_107 : f32 to vector<8x256xf32>
      %190 = arith.addf %189, %188 : vector<8x256xf32>
      %191 = arith.divf %189, %190 : vector<8x256xf32>
      %192 = vector.extract_strided_slice %185 {offsets = [0, 256], sizes = [8, 256], strides = [1, 1]} : vector<8x1024xf32> to vector<8x256xf32>
      %193 = arith.negf %192 : vector<8x256xf32>
      %194 = math.exp %193 : vector<8x256xf32>
      %cst_108 = arith.constant 1.000000e+00 : f32
      %195 = vector.broadcast %cst_108 : f32 to vector<8x256xf32>
      %196 = arith.addf %195, %194 : vector<8x256xf32>
      %197 = arith.divf %195, %196 : vector<8x256xf32>
      %198 = vector.extract_strided_slice %185 {offsets = [0, 512], sizes = [8, 256], strides = [1, 1]} : vector<8x1024xf32> to vector<8x256xf32>
      %199 = math.tanh %198 : vector<8x256xf32>
      %200 = vector.extract_strided_slice %185 {offsets = [0, 768], sizes = [8, 256], strides = [1, 1]} : vector<8x1024xf32> to vector<8x256xf32>
      %201 = arith.negf %200 : vector<8x256xf32>
      %202 = math.exp %201 : vector<8x256xf32>
      %cst_109 = arith.constant 1.000000e+00 : f32
      %203 = vector.broadcast %cst_109 : f32 to vector<8x256xf32>
      %204 = arith.addf %203, %202 : vector<8x256xf32>
      %205 = arith.divf %203, %204 : vector<8x256xf32>
      %206 = arith.mulf %197, %175 : vector<8x256xf32>
      %207 = arith.mulf %191, %199 : vector<8x256xf32>
      %208 = arith.addf %206, %207 : vector<8x256xf32>
      %209 = math.tanh %208 : vector<8x256xf32>
      %210 = arith.mulf %205, %209 : vector<8x256xf32>
      %c1_110 = arith.constant 1 : index
      %c0_111 = arith.constant 0 : index
      %c0_112 = arith.constant 0 : index
      %211 = vector.load %arg17[%c1_110, %c0_111, %c0_112] : memref<2x8x256xf32, #tpu.memory_space<vmem>>, vector<1x8x256xf32>
      %212 = vector.shape_cast %211 : vector<1x8x256xf32> to vector<8x256xf32>
      %213 = vector.shape_cast %210 : vector<8x256xf32> to vector<1x8x256xf32>
      tpu.vector_store %arg17[%c1_110, %c0_111, %c0_112], %213 {strides = array<i32>} : memref<2x8x256xf32, #tpu.memory_space<vmem>>, vector<1x8x256xf32>,
      %c1_113 = arith.constant 1 : index
      %c0_114 = arith.constant 0 : index
      %c0_115 = arith.constant 0 : index
      %214 = vector.load %arg18[%c1_113, %c0_114, %c0_115] : memref<2x8x256xf32, #tpu.memory_space<vmem>>, vector<1x8x256xf32>
      %215 = vector.shape_cast %214 : vector<1x8x256xf32> to vector<8x256xf32>
      %216 = vector.shape_cast %208 : vector<8x256xf32> to vector<1x8x256xf32>
      tpu.vector_store %arg18[%c1_113, %c0_114, %c0_115], %216 {strides = array<i32>} : memref<2x8x256xf32, #tpu.memory_space<vmem>>, vector<1x8x256xf32>,
    }
    %c8_i32_20 = arith.constant 8 : i32
    %c0_21 = arith.constant 0 : index
    %c0_22 = arith.constant 0 : index
    %c0_23 = arith.constant 0 : index
    %21 = vector.load %arg17[%c0_21, %c0_22, %c0_23] : memref<2x8x256xf32, #tpu.memory_space<vmem>>, vector<1x8x256xf32>
    %22 = vector.shape_cast %21 : vector<1x8x256xf32> to vector<8x256xf32>
    %c0_24 = arith.constant 0 : index
    %c0_25 = arith.constant 0 : index
    %c0_26 = arith.constant 0 : index
    %23 = vector.load %arg18[%c0_24, %c0_25, %c0_26] : memref<2x8x256xf32, #tpu.memory_space<vmem>>, vector<1x8x256xf32>
    %24 = vector.shape_cast %23 : vector<1x8x256xf32> to vector<8x256xf32>
    %c0_27 = arith.constant 0 : index
    %c0_28 = arith.constant 0 : index
    %c0_29 = arith.constant 0 : index
    %25 = vector.load %arg8[%c0_27, %c0_28, %c0_29] : memref<2x512x1024xbf16, #tpu.memory_space<vmem>>, vector<1x512x1024xbf16>
    %26 = vector.shape_cast %25 : vector<1x512x1024xbf16> to vector<512x1024xbf16>
    %c0_30 = arith.constant 0 : index
    %c0_31 = arith.constant 0 : index
    %c0_32 = arith.constant 0 : index
    %27 = vector.load %arg9[%c0_30, %c0_31, %c0_32] : memref<2x1x1024xf32, #tpu.memory_space<vmem>>, vector<1x1x1024xf32>
    %28 = vector.shape_cast %27 : vector<1x1x1024xf32> to vector<1x1024xf32>
    %29 = arith.truncf %8 : vector<8x256xf32> to vector<8x256xbf16>
    %30 = arith.truncf %22 : vector<8x256xf32> to vector<8x256xbf16>
    %31 = tpu.concatenate %29, %30 in 1 : vector<8x256xbf16>, vector<8x256xbf16> -> vector<8x512xbf16>
    %cst_33 = arith.constant dense<0.000000e+00> : vector<8x1024xf32>
    %32 = tpu.matmul %31, %26, %cst_33 {dimension_numbers = #tpu.dot_dimension_numbers<[1], [0], [0], [1], [0, 0, 1, 1], [], []>} : vector<8x512xbf16>, vector<512x1024xbf16>, vector<8x1024xf32> -> vector<8x1024xf32>
    %33 = vector.broadcast %28 : vector<1x1024xf32> to vector<8x1024xf32>
    %34 = arith.addf %32, %33 : vector<8x1024xf32>
    %35 = vector.extract_strided_slice %34 {offsets = [0, 0], sizes = [8, 256], strides = [1, 1]} : vector<8x1024xf32> to vector<8x256xf32>
    %36 = arith.negf %35 : vector<8x256xf32>
    %37 = math.exp %36 : vector<8x256xf32>
    %cst_34 = arith.constant 1.000000e+00 : f32
    %38 = vector.broadcast %cst_34 : f32 to vector<8x256xf32>
    %39 = arith.addf %38, %37 : vector<8x256xf32>
    %40 = arith.divf %38, %39 : vector<8x256xf32>
    %41 = vector.extract_strided_slice %34 {offsets = [0, 256], sizes = [8, 256], strides = [1, 1]} : vector<8x1024xf32> to vector<8x256xf32>
    %42 = arith.negf %41 : vector<8x256xf32>
    %43 = math.exp %42 : vector<8x256xf32>
    %cst_35 = arith.constant 1.000000e+00 : f32
    %44 = vector.broadcast %cst_35 : f32 to vector<8x256xf32>
    %45 = arith.addf %44, %43 : vector<8x256xf32>
    %46 = arith.divf %44, %45 : vector<8x256xf32>
    %47 = vector.extract_strided_slice %34 {offsets = [0, 512], sizes = [8, 256], strides = [1, 1]} : vector<8x1024xf32> to vector<8x256xf32>
    %48 = math.tanh %47 : vector<8x256xf32>
    %49 = vector.extract_strided_slice %34 {offsets = [0, 768], sizes = [8, 256], strides = [1, 1]} : vector<8x1024xf32> to vector<8x256xf32>
    %50 = arith.negf %49 : vector<8x256xf32>
    %51 = math.exp %50 : vector<8x256xf32>
    %cst_36 = arith.constant 1.000000e+00 : f32
    %52 = vector.broadcast %cst_36 : f32 to vector<8x256xf32>
    %53 = arith.addf %52, %51 : vector<8x256xf32>
    %54 = arith.divf %52, %53 : vector<8x256xf32>
    %55 = arith.mulf %46, %24 : vector<8x256xf32>
    %56 = arith.mulf %40, %48 : vector<8x256xf32>
    %57 = arith.addf %55, %56 : vector<8x256xf32>
    %58 = math.tanh %57 : vector<8x256xf32>
    %59 = arith.mulf %54, %58 : vector<8x256xf32>
    %c1 = arith.constant 1 : index
    %c0_37 = arith.constant 0 : index
    %c0_38 = arith.constant 0 : index
    %60 = vector.load %arg17[%c1, %c0_37, %c0_38] : memref<2x8x256xf32, #tpu.memory_space<vmem>>, vector<1x8x256xf32>
    %61 = vector.shape_cast %60 : vector<1x8x256xf32> to vector<8x256xf32>
    %c1_39 = arith.constant 1 : index
    %c0_40 = arith.constant 0 : index
    %c0_41 = arith.constant 0 : index
    %62 = vector.load %arg18[%c1_39, %c0_40, %c0_41] : memref<2x8x256xf32, #tpu.memory_space<vmem>>, vector<1x8x256xf32>
    %63 = vector.shape_cast %62 : vector<1x8x256xf32> to vector<8x256xf32>
    %c1_42 = arith.constant 1 : index
    %c0_43 = arith.constant 0 : index
    %c0_44 = arith.constant 0 : index
    %64 = vector.load %arg8[%c1_42, %c0_43, %c0_44] : memref<2x512x1024xbf16, #tpu.memory_space<vmem>>, vector<1x512x1024xbf16>
    %65 = vector.shape_cast %64 : vector<1x512x1024xbf16> to vector<512x1024xbf16>
    %c1_45 = arith.constant 1 : index
    %c0_46 = arith.constant 0 : index
    %c0_47 = arith.constant 0 : index
    %66 = vector.load %arg9[%c1_45, %c0_46, %c0_47] : memref<2x1x1024xf32, #tpu.memory_space<vmem>>, vector<1x1x1024xf32>
    %67 = vector.shape_cast %66 : vector<1x1x1024xf32> to vector<1x1024xf32>
    %68 = arith.truncf %59 : vector<8x256xf32> to vector<8x256xbf16>
    %69 = arith.truncf %61 : vector<8x256xf32> to vector<8x256xbf16>
    %70 = tpu.concatenate %68, %69 in 1 : vector<8x256xbf16>, vector<8x256xbf16> -> vector<8x512xbf16>
    %cst_48 = arith.constant dense<0.000000e+00> : vector<8x1024xf32>
    %71 = tpu.matmul %70, %65, %cst_48 {dimension_numbers = #tpu.dot_dimension_numbers<[1], [0], [0], [1], [0, 0, 1, 1], [], []>} : vector<8x512xbf16>, vector<512x1024xbf16>, vector<8x1024xf32> -> vector<8x1024xf32>
    %72 = vector.broadcast %67 : vector<1x1024xf32> to vector<8x1024xf32>
    %73 = arith.addf %71, %72 : vector<8x1024xf32>
    %74 = vector.extract_strided_slice %73 {offsets = [0, 0], sizes = [8, 256], strides = [1, 1]} : vector<8x1024xf32> to vector<8x256xf32>
    %75 = arith.negf %74 : vector<8x256xf32>
    %76 = math.exp %75 : vector<8x256xf32>
    %cst_49 = arith.constant 1.000000e+00 : f32
    %77 = vector.broadcast %cst_49 : f32 to vector<8x256xf32>
    %78 = arith.addf %77, %76 : vector<8x256xf32>
    %79 = arith.divf %77, %78 : vector<8x256xf32>
    %80 = vector.extract_strided_slice %73 {offsets = [0, 256], sizes = [8, 256], strides = [1, 1]} : vector<8x1024xf32> to vector<8x256xf32>
    %81 = arith.negf %80 : vector<8x256xf32>
    %82 = math.exp %81 : vector<8x256xf32>
    %cst_50 = arith.constant 1.000000e+00 : f32
    %83 = vector.broadcast %cst_50 : f32 to vector<8x256xf32>
    %84 = arith.addf %83, %82 : vector<8x256xf32>
    %85 = arith.divf %83, %84 : vector<8x256xf32>
    %86 = vector.extract_strided_slice %73 {offsets = [0, 512], sizes = [8, 256], strides = [1, 1]} : vector<8x1024xf32> to vector<8x256xf32>
    %87 = math.tanh %86 : vector<8x256xf32>
    %88 = vector.extract_strided_slice %73 {offsets = [0, 768], sizes = [8, 256], strides = [1, 1]} : vector<8x1024xf32> to vector<8x256xf32>
    %89 = arith.negf %88 : vector<8x256xf32>
    %90 = math.exp %89 : vector<8x256xf32>
    %cst_51 = arith.constant 1.000000e+00 : f32
    %91 = vector.broadcast %cst_51 : f32 to vector<8x256xf32>
    %92 = arith.addf %91, %90 : vector<8x256xf32>
    %93 = arith.divf %91, %92 : vector<8x256xf32>
    %94 = arith.mulf %85, %63 : vector<8x256xf32>
    %95 = arith.mulf %79, %87 : vector<8x256xf32>
    %96 = arith.addf %94, %95 : vector<8x256xf32>
    %97 = math.tanh %96 : vector<8x256xf32>
    %98 = arith.mulf %93, %97 : vector<8x256xf32>
    %99 = arith.truncf %98 : vector<8x256xf32> to vector<8x256xbf16>
    %c0_52 = arith.constant 0 : index
    %c0_53 = arith.constant 0 : index
    %100 = vector.load %arg10[%c0_52, %c0_53] : memref<256x128xbf16, #tpu.memory_space<vmem>>, vector<256x128xbf16>
    %cst_54 = arith.constant dense<0.000000e+00> : vector<8x128xf32>
    %101 = tpu.matmul %99, %100, %cst_54 {dimension_numbers = #tpu.dot_dimension_numbers<[1], [0], [0], [1], [0, 0, 1, 1], [], []>} : vector<8x256xbf16>, vector<256x128xbf16>, vector<8x128xf32> -> vector<8x128xf32>
    %c0_55 = arith.constant 0 : index
    %c0_56 = arith.constant 0 : index
    %102 = vector.load %arg11[%c0_55, %c0_56] : memref<1x128xf32, #tpu.memory_space<vmem>>, vector<1x128xf32>
    %103 = vector.broadcast %102 : vector<1x128xf32> to vector<8x128xf32>
    %104 = arith.addf %101, %103 : vector<8x128xf32>
    %cst_57 = arith.constant 0.000000e+00 : f32
    %105 = vector.broadcast %cst_57 : f32 to vector<8x128xf32>
    %106 = arith.maximumf %104, %105 : vector<8x128xf32>
    %107 = arith.truncf %106 : vector<8x128xf32> to vector<8x128xbf16>
    %c0_58 = arith.constant 0 : index
    %c0_59 = arith.constant 0 : index
    %108 = vector.load %arg12[%c0_58, %c0_59] : memref<128x128xbf16, #tpu.memory_space<vmem>>, vector<128x128xbf16>
    %cst_60 = arith.constant dense<0.000000e+00> : vector<8x128xf32>
    %109 = tpu.matmul %107, %108, %cst_60 {dimension_numbers = #tpu.dot_dimension_numbers<[1], [0], [0], [1], [0, 0, 1, 1], [], []>} : vector<8x128xbf16>, vector<128x128xbf16>, vector<8x128xf32> -> vector<8x128xf32>
    %c0_61 = arith.constant 0 : index
    %c0_62 = arith.constant 0 : index
    %110 = vector.load %arg13[%c0_61, %c0_62] : memref<1x128xf32, #tpu.memory_space<vmem>>, vector<1x128xf32>
    %111 = vector.broadcast %110 : vector<1x128xf32> to vector<8x128xf32>
    %112 = arith.addf %109, %111 : vector<8x128xf32>
    %cst_63 = arith.constant 0.000000e+00 : f32
    %113 = vector.broadcast %cst_63 : f32 to vector<8x128xf32>
    %114 = arith.maximumf %112, %113 : vector<8x128xf32>
    %115 = arith.truncf %114 : vector<8x128xf32> to vector<8x128xbf16>
    %c0_64 = arith.constant 0 : index
    %c0_65 = arith.constant 0 : index
    %116 = vector.load %arg14[%c0_64, %c0_65] : memref<128x128xbf16, #tpu.memory_space<vmem>>, vector<128x128xbf16>
    %cst_66 = arith.constant dense<0.000000e+00> : vector<8x128xf32>
    %117 = tpu.matmul %115, %116, %cst_66 {dimension_numbers = #tpu.dot_dimension_numbers<[1], [0], [0], [1], [0, 0, 1, 1], [], []>} : vector<8x128xbf16>, vector<128x128xbf16>, vector<8x128xf32> -> vector<8x128xf32>
    %c0_67 = arith.constant 0 : index
    %c0_68 = arith.constant 0 : index
    %118 = vector.load %arg15[%c0_67, %c0_68] : memref<1x128xf32, #tpu.memory_space<vmem>>, vector<1x128xf32>
    %119 = vector.broadcast %118 : vector<1x128xf32> to vector<8x128xf32>
    %120 = arith.addf %117, %119 : vector<8x128xf32>
    %121 = arith.negf %120 : vector<8x128xf32>
    %122 = math.exp %121 : vector<8x128xf32>
    %cst_69 = arith.constant 1.000000e+00 : f32
    %123 = vector.broadcast %cst_69 : f32 to vector<8x128xf32>
    %124 = arith.addf %123, %122 : vector<8x128xf32>
    %125 = arith.divf %123, %124 : vector<8x128xf32>
    %c0_70 = arith.constant 0 : index
    %c0_71 = arith.constant 0 : index
    %126 = vector.load %arg16[%c0_70, %c0_71] : memref<8x128xf32, #tpu.memory_space<vmem>>, vector<8x128xf32>
    tpu.vector_store %arg16[%c0_70, %c0_71], %125 {strides = array<i32>} : memref<8x128xf32, #tpu.memory_space<vmem>>, vector<8x128xf32>,
    return
  }
}

</mosaic_0001>

<bundles_post_ra>
// kernel: tpu_custom_call.1
= control target key start
LH: loop header
LB: loop body
LE: loop exit
PB: predicated region body
PF: predicated region fallthrough
CT: control target
= control target key end

     0   :  { %s11348_s0 = inlined_call_operand.vmem [shape: f32[72,32], index: 0, kind: input, shape index: {}]   ;;  %s11349_s1 = inlined_call_operand.hbm [shape: bf16[32,256], index: 1, kind: input, shape index: {}]   ;;  %s11350_s2 = inlined_call_operand.hbm [shape: f32[1,256], index: 2, kind: input, shape index: {}]   ;;  %s11351_s3 = inlined_call_operand.hbm [shape: bf16[256,1024], index: 3, kind: input, shape index: {}]   ;;  %s11352_s4 = inlined_call_operand.hbm [shape: bf16[256,1024], index: 4, kind: input, shape index: {}]   ;;  %s11353_s5 = inlined_call_operand.hbm [shape: f32[1,1024], index: 5, kind: input, shape index: {}]   ;;  %s11354_s6 = inlined_call_operand.hbm [shape: bf16[1,512,1024], index: 6, kind: input, shape index: {}]   ;;  %s11355_s7 = inlined_call_operand.hbm [shape: f32[1,1,1024], index: 7, kind: input, shape index: {}]   ;;  %s11356_s8 = inlined_call_operand.hbm [shape: bf16[2,512,1024], index: 8, kind: input, shape index: {}]   ;;  %s11357_s9 = inlined_call_operand.hbm [shape: f32[2,1,1024], index: 9, kind: input, shape index: {}]   ;;  %s11358_s10 = inlined_call_operand.hbm [shape: bf16[256,128], index: 10, kind: input, shape index: {}]   ;;  %s11359_s11 = inlined_call_operand.hbm [shape: f32[1,128], index: 11, kind: input, shape index: {}]   ;;  %s11360_s12 = inlined_call_operand.hbm [shape: bf16[128,128], index: 12, kind: input, shape index: {}]   ;;  %s11361_s13 = inlined_call_operand.hbm [shape: f32[1,128], index: 13, kind: input, shape index: {}]   ;;  %s11362_s14 = inlined_call_operand.hbm [shape: bf16[128,128], index: 14, kind: input, shape index: {}]   ;;  %s11363_s15 = inlined_call_operand.hbm [shape: f32[1,128], index: 15, kind: input, shape index: {}]   ;;  %s11364_s16 = inlined_call_operand.hbm [shape: f32[8,128], index: 16, kind: output, shape index: {}]  }
   0x1   :  { %11366 = sst [smem:[#allocation39_spill]] %s11348_s0 }
   0x2   :  { %21 = vsyncpa [#allocation6], 0 }
   0x3   :  { %22 = vsyncpa [#allocation9], 0 }
   0x4   :  { %23 = vsyncpa [#allocation12], 0 }
   0x5   :  { %24 = vsyncpa [#allocation15], 0 }
   0x6   :  { %25 = vsyncpa [#allocation18], 0 }
   0x7   :  { %26 = vsyncpa [#allocation21], 0 }
   0x8   :  { %27 = vsyncpa [#allocation24], 0 }
   0x9   :  { %28 = vsyncpa [#allocation27], 0 }
   0xa   :  { %29 = vsyncpa [#allocation7], 0  ;;  %s10654_s21 = smov [#allocation8]  }
   0xb   :  { %s50_s22 = sshll.u32 %s10654_s21, 4  ;;  %s51_s22 = int_to_ptr.vmem [resolvable:$true] %s50_s22 }
   0xc   :  { %s10316_s23 = scalar_lea.vmem %s51_s22, 32  ;;  %p10321_p1 = scmp.lt.s32.totalorder %s51_s22, %s51_s22 }
   0xd   :  { %p10317_p0 = scmp.ne.s32.totalorder %s51_s22, %s10316_s23  ;;  %p10322_p2 = scmp.lt.s32.totalorder %s10316_s23, %s10316_s23 }
   0xf   :  { %p10323_p3 = por %p10322_p2, %p10321_p1 }
  0x11   :  { %p10324_p4 = pnand %p10323_p3, %p10317_p0 }
  0x13   :  { %10327 = shalt.err (!%p10324_p4)
}
  0x14   :  { %53 = dma.hbm_to_vmem [thread:$0]  %s11350_s2, 32, %s51_s22, [#allocation9]  }
  0x15   :  { %s10655_s26 = smov [#allocation11]   ;;  %s10656_s28 = smov [#allocation14]  }
  0x16   :  { %s71_s27 = sshll.u32 %s10655_s26, 4  ;;  %s93_s29 = sshll.u32 %s10656_s28, 4  ;;  %s72_s27 = int_to_ptr.vmem [resolvable:$true] %s71_s27  ;;  %s94_s29 = int_to_ptr.vmem [resolvable:$true] %s93_s29 }
  0x17   :  { %s10336_s30 = scalar_lea.vmem %s72_s27, 16384  ;;  %p10341_p6 = scmp.lt.s32.totalorder %s72_s27, %s72_s27 }
  0x18   :  { %p10337_p5 = scmp.ne.s32.totalorder %s72_s27, %s10336_s30  ;;  %p10342_p7 = scmp.lt.s32.totalorder %s10336_s30, %s10336_s30 }
  0x1a   :  { %p10343_p8 = por %p10342_p7, %p10341_p6 }
  0x1c   :  { %p10344_p9 = pnand %p10343_p8, %p10337_p5 }
  0x1e   :  { %10347 = shalt.err (!%p10344_p9)
}
  0x1f   :  { %s10657_s0 = smov 512   ;;  %s10658_s17 = smov 32  }
  0x20   :  { %77 = dma.hbm_to_vmem [thread:$0]  %s11352_s4, 16384, %s72_s27, [#allocation12], %s10657_s0, %s10657_s0, %s10658_s17  }
  0x21   :  { %s10356_s2 = scalar_lea.vmem %s94_s29, 32768  ;;  %p10361_p11 = scmp.lt.s32.totalorder %s94_s29, %s94_s29 }
  0x22   :  { %p10357_p10 = scmp.ne.s32.totalorder %s94_s29, %s10356_s2  ;;  %p10362_p12 = scmp.lt.s32.totalorder %s10356_s2, %s10356_s2 }
  0x24   :  { %p10363_p13 = por %p10362_p12, %p10361_p11 }
  0x26   :  { %p10364_p0 = pnand %p10363_p13, %p10357_p10 }
  0x28   :  { %10367 = shalt.err (!%p10364_p0)
}
  0x29   :  { %99 = dma.hbm_to_vmem [thread:$0]  %s11354_s6, 32768, %s94_s29, [#allocation15], %s10657_s0, %s10657_s0, %s10658_s17  }
  0x2a   :  { %s10659_s22 = smov [#allocation17]   ;;  %s10660_s24 = smov [#allocation20]  }
  0x2b   :  { %s115_s23 = sshll.u32 %s10659_s22, 4  ;;  %s139_s4 = sshll.u32 %s10660_s24, 4  ;;  %s116_s23 = int_to_ptr.vmem [resolvable:$true] %s115_s23  ;;  %s140_s4 = int_to_ptr.vmem [resolvable:$true] %s139_s4 }
  0x2c   :  { %s10376_s25 = scalar_lea.vmem %s116_s23, 65536  ;;  %p10381_p2 = scmp.lt.s32.totalorder %s116_s23, %s116_s23 }
  0x2d   :  { %p10377_p1 = scmp.ne.s32.totalorder %s116_s23, %s10376_s25  ;;  %p10382_p3 = scmp.lt.s32.totalorder %s10376_s25, %s10376_s25 }
  0x2f   :  { %p10383_p4 = por %p10382_p3, %p10381_p2 }
  0x31   :  { %p10384_p5 = pnand %p10383_p4, %p10377_p1 }
  0x33   :  { %10387 = shalt.err (!%p10384_p5)
}
  0x34   :  { %121 = dma.hbm_to_vmem [thread:$0]  %s11356_s8, 65536, %s116_s23, [#allocation18], %s10657_s0, %s10657_s0, %s10658_s17  }
  0x35   :  { %s10396_s6 = scalar_lea.vmem %s140_s4, 2048  ;;  %p10401_p7 = scmp.lt.s32.totalorder %s140_s4, %s140_s4 }
  0x36   :  { %p10397_p6 = scmp.ne.s32.totalorder %s140_s4, %s10396_s6  ;;  %p10402_p8 = scmp.lt.s32.totalorder %s10396_s6, %s10396_s6 }
  0x38   :  { %p10403_p9 = por %p10402_p8, %p10401_p7 }
  0x3a   :  { %p10404_p10 = pnand %p10403_p9, %p10397_p6 }
  0x3c   :  { %10407 = shalt.err (!%p10404_p10)
}
  0x3d   :  { %s10661_s28 = smov 64   ;;  %s10662_s29 = smov 4  }
  0x3e   :  { %145 = dma.hbm_to_vmem [thread:$0]  %s11358_s10, 2048, %s140_s4, [#allocation21], %s10661_s28, %s10661_s28, %s10662_s29  }
  0x3f   :  { %s10663_s19 = smov [#allocation23]   ;;  %s10664_s20 = smov [#allocation26]  }
  0x40   :  { %s161_s2 = sshll.u32 %s10663_s19, 4  ;;  %s183_s21 = sshll.u32 %s10664_s20, 4  ;;  %s162_s2 = int_to_ptr.vmem [resolvable:$true] %s161_s2  ;;  %s184_s21 = int_to_ptr.vmem [resolvable:$true] %s183_s21 }
  0x41   :  { %s10416_s8 = scalar_lea.vmem %s162_s2, 1024  ;;  %p10421_p12 = scmp.lt.s32.totalorder %s162_s2, %s162_s2 }
  0x42   :  { %p10417_p11 = scmp.ne.s32.totalorder %s162_s2, %s10416_s8  ;;  %p10422_p13 = scmp.lt.s32.totalorder %s10416_s8, %s10416_s8 }
  0x44   :  { %p10423_p0 = por %p10422_p13, %p10421_p12 }
  0x46   :  { %p10424_p1 = pnand %p10423_p0, %p10417_p11 }
  0x48   :  { %10427 = shalt.err (!%p10424_p1)
}
  0x49   :  { %167 = dma.hbm_to_vmem [thread:$0]  %s11360_s12, 1024, %s162_s2, [#allocation24], %s10661_s28, %s10661_s28, %s10662_s29  }
  0x4a   :  { %s10436_s24 = scalar_lea.vmem %s184_s21, 1024  ;;  %p10441_p3 = scmp.lt.s32.totalorder %s184_s21, %s184_s21 }
  0x4b   :  { %p10437_p2 = scmp.ne.s32.totalorder %s184_s21, %s10436_s24  ;;  %p10442_p4 = scmp.lt.s32.totalorder %s10436_s24, %s10436_s24 }
  0x4d   :  { %p10443_p5 = por %p10442_p4, %p10441_p3 }
  0x4f   :  { %p10444_p6 = pnand %p10443_p5, %p10437_p2 }
  0x51   :  { %10447 = shalt.err (!%p10444_p6)
}
  0x52   :  { %189 = dma.hbm_to_vmem [thread:$0]  %s11362_s14, 1024, %s184_s21, [#allocation27], %s10661_s28, %s10661_s28, %s10662_s29  }
  0x53   :  { %s10665_s25 = smov [#allocation5]  }
  0x54   :  { %s37_s26 = sshll.u32 %s10665_s25, 4  ;;  %s38_s26 = int_to_ptr.vmem [resolvable:$true] %s37_s26 }
  0x55   :  { %s10456_s27 = scalar_lea.vmem %s38_s26, 512  ;;  %p10461_p8 = scmp.lt.s32.totalorder %s38_s26, %s38_s26 }
  0x56   :  { %p10457_p7 = scmp.ne.s32.totalorder %s38_s26, %s10456_s27  ;;  %p10462_p9 = scmp.lt.s32.totalorder %s10456_s27, %s10456_s27 }
  0x58   :  { %p10463_p10 = por %p10462_p9, %p10461_p8 }
  0x5a   :  { %p10464_p11 = pnand %p10463_p10, %p10457_p7 }
  0x5c   :  { %10467 = shalt.err (!%p10464_p11)
}
  0x5d   :  { %s10666_s12 = smov 128   ;;  %s10667_s6 = smov 8  }
  0x5e   :  { %43 = dma.hbm_to_vmem [thread:$0]  %s11349_s1, 512, %s38_s26, [#allocation6], %s10666_s12, %s10666_s12, %s10667_s6  }
  0x5f   :  { %s10668_s14 = smov [#allocation10]   ;;  %s10669_s29 = smov [#allocation13]  }
  0x60   :  { %s59_s28 = sshll.u32 %s10668_s14, 4  ;;  %s84_s19 = sshll.u32 %s10669_s29, 4  ;;  %s60_s28 = int_to_ptr.vmem [resolvable:$true] %s59_s28  ;;  %s85_s19 = int_to_ptr.vmem [resolvable:$true] %s84_s19 }
  0x61   :  { %s10476_s2 = scalar_lea.vmem %s60_s28, 16384  ;;  %p10481_p13 = scmp.lt.s32.totalorder %s60_s28, %s60_s28 }
  0x62   :  { %p10477_p12 = scmp.ne.s32.totalorder %s60_s28, %s10476_s2  ;;  %p10482_p0 = scmp.lt.s32.totalorder %s10476_s2, %s10476_s2 }
  0x64   :  { %p10483_p1 = por %p10482_p0, %p10481_p13 }
  0x66   :  { %p10484_p2 = pnand %p10483_p1, %p10477_p12 }
  0x68   :  { %10487 = shalt.err (!%p10484_p2)
}
  0x69   :  { %65 = dma.hbm_to_vmem [thread:$0]  %s11351_s3, 16384, %s60_s28, [#allocation9], %s10657_s0, %s10657_s0, %s10658_s17  }
  0x6a   :  { %s10496_s1 = scalar_lea.vmem %s85_s19, 128  ;;  %p10501_p4 = scmp.lt.s32.totalorder %s85_s19, %s85_s19 }
  0x6b   :  { %p10497_p3 = scmp.ne.s32.totalorder %s85_s19, %s10496_s1  ;;  %p10502_p5 = scmp.lt.s32.totalorder %s10496_s1, %s10496_s1 }
  0x6d   :  { %p10503_p6 = por %p10502_p5, %p10501_p4 }
  0x6f   :  { %p10504_p7 = pnand %p10503_p6, %p10497_p3 }
  0x71   :  { %10507 = shalt.err (!%p10504_p7)
}
  0x72   :  { %87 = dma.hbm_to_vmem [thread:$0]  %s11353_s5, 128, %s85_s19, [#allocation12]  }
  0x73   :  { %s10670_s23 = smov [#allocation16]   ;;  %s10671_s10 = smov [#allocation19]  }
  0x74   :  { %s106_s24 = sshll.u32 %s10670_s23, 4  ;;  %s127_s4 = sshll.u32 %s10671_s10, 4  ;;  %s107_s24 = int_to_ptr.vmem [resolvable:$true] %s106_s24  ;;  %s128_s4 = int_to_ptr.vmem [resolvable:$true] %s127_s4 }
  0x75   :  { %s10516_s25 = scalar_lea.vmem %s107_s24, 128  ;;  %p10521_p9 = scmp.lt.s32.totalorder %s107_s24, %s107_s24 }
  0x76   :  { %p10517_p8 = scmp.ne.s32.totalorder %s107_s24, %s10516_s25  ;;  %p10522_p10 = scmp.lt.s32.totalorder %s10516_s25, %s10516_s25 }
  0x78   :  { %p10523_p11 = por %p10522_p10, %p10521_p9 }
  0x7a   :  { %p10524_p12 = pnand %p10523_p11, %p10517_p8 }
  0x7c   :  { %10527 = shalt.err (!%p10524_p12)
}
  0x7d   :  { %109 = dma.hbm_to_vmem [thread:$0]  %s11355_s7, 128, %s107_s24, [#allocation15]  }
  0x7e   :  { %s10536_s17 = scalar_lea.vmem %s128_s4, 256  ;;  %p10541_p0 = scmp.lt.s32.totalorder %s128_s4, %s128_s4 }
  0x7f   :  { %p10537_p13 = scmp.ne.s32.totalorder %s128_s4, %s10536_s17  ;;  %p10542_p1 = scmp.lt.s32.totalorder %s10536_s17, %s10536_s17 }
  0x81   :  { %p10543_p2 = por %p10542_p1, %p10541_p0 }
  0x83   :  { %p10544_p3 = pnand %p10543_p2, %p10537_p13 }
  0x85   :  { %10547 = shalt.err (!%p10544_p3)
}
  0x86   :  { %133 = dma.hbm_to_vmem [thread:$0]  %s11357_s9, 256, %s128_s4, [#allocation18], %s10666_s12, %s10666_s12, %s10667_s6  }
  0x87   :  { %s10672_s27 = smov [#allocation22]   ;;  %s10673_s18 = smov [#allocation25]  }
  0x88   :  { %s152_s30 = sshll.u32 %s10672_s27, 4  ;;  %s174_s14 = sshll.u32 %s10673_s18, 4  ;;  %s153_s30 = int_to_ptr.vmem [resolvable:$true] %s152_s30  ;;  %s175_s14 = int_to_ptr.vmem [resolvable:$true] %s174_s14 }
  0x89   :  { %s10556_s7 = scalar_lea.vmem %s153_s30, 16  ;;  %s10560_s28 = scalar_lea.vmem %s153_s30, 32 }
  0x8a   :  { %p10557_p4 = scmp.ne.s32.totalorder %s153_s30, %s10556_s7  ;;  %p10561_p5 = scmp.lt.s32.totalorder %s153_s30, %s153_s30 }
  0x8b   :  { %p10562_p6 = scmp.lt.s32.totalorder %s10560_s28, %s10556_s7 }
  0x8d   :  { %p10563_p7 = por %p10562_p6, %p10561_p5 }
  0x8f   :  { %p10564_p8 = pnand %p10563_p7, %p10557_p4 }
  0x91   :  { %10567 = shalt.err (!%p10564_p8)
}
  0x92   :  { %155 = dma.hbm_to_vmem [thread:$0]  %s11359_s11, 16, %s153_s30, [#allocation21]  }
  0x93   :  { %s10576_s2 = scalar_lea.vmem %s175_s14, 16  ;;  %s10580_s9 = scalar_lea.vmem %s175_s14, 32 }
  0x94   :  { %p10577_p9 = scmp.ne.s32.totalorder %s175_s14, %s10576_s2  ;;  %p10581_p10 = scmp.lt.s32.totalorder %s175_s14, %s175_s14 }
  0x95   :  { %p10582_p11 = scmp.lt.s32.totalorder %s10580_s9, %s10576_s2 }
  0x97   :  { %p10583_p12 = por %p10582_p11, %p10581_p10 }
  0x99   :  { %p10584_p13 = pnand %p10583_p12, %p10577_p9 }
  0x9b   :  { %10587 = shalt.err (!%p10584_p13)
}
  0x9c   :  { %177 = dma.hbm_to_vmem [thread:$0]  %s11361_s13, 16, %s175_s14, [#allocation24]  }
  0x9d   :  { %s10674_s20 = smov [#allocation28]  }
  0x9e   :  { %s196_s21 = sshll.u32 %s10674_s20, 4  ;;  %s197_s21 = int_to_ptr.vmem [resolvable:$true] %s196_s21 }
  0x9f   :  { %s10596_s1 = scalar_lea.vmem %s197_s21, 16  ;;  %s10600_s8 = scalar_lea.vmem %s197_s21, 32 }
  0xa0   :  { %p10597_p0 = scmp.ne.s32.totalorder %s197_s21, %s10596_s1  ;;  %p10601_p1 = scmp.lt.s32.totalorder %s197_s21, %s197_s21 }
  0xa1   :  { %p10602_p2 = scmp.lt.s32.totalorder %s10600_s8, %s10596_s1 }
  0xa3   :  { %p10603_p3 = por %p10602_p2, %p10601_p1 }
  0xa5   :  { %p10604_p4 = pnand %p10603_p3, %p10597_p0 }
  0xa7   :  { %10607 = shalt.err (!%p10604_p4)
}
  0xa8   :  { %199 = dma.hbm_to_vmem [thread:$0]  %s11363_s15, 16, %s197_s21, [#allocation27]  }
  0xa9   :  { %10632 = dma.done.wait [#allocation6], 512  }
  0xaa   :  { %10633 = vsyncadd [#allocation6], 4294966784 }
  0xab   :  { %10634 = dma.done.wait [#allocation9], 16416  }
  0xac   :  { %10635 = vsyncadd [#allocation9], 4294950880 }
  0xad   :  { %10636 = dma.done.wait [#allocation12], 16512  }
  0xae   :  { %10637 = vsyncadd [#allocation12], 4294950784 }
  0xaf   :  { %10638 = dma.done.wait [#allocation15], 32896  }
  0xb0   :  { %10639 = vsyncadd [#allocation15], 4294934400 }
  0xb1   :  { %10640 = dma.done.wait [#allocation18], 65792  }
  0xb2   :  { %10641 = vsyncadd [#allocation18], 4294901504 }
  0xb3   :  { %10642 = dma.done.wait [#allocation21], 2064  }
  0xb4   :  { %10643 = vsyncadd [#allocation21], 4294965232 }
  0xb5   :  { %10644 = dma.done.wait [#allocation24], 1040  }
  0xb6   :  { %10645 = vsyncadd [#allocation24], 4294966256 }
  0xb7   :  { %10646 = dma.done.wait [#allocation27], 1040  }
  0xb8   :  { %10647 = vsyncadd [#allocation27], 4294966256  ;;  %v10675_v0 = vmov 0.0   ;;  %v10676_v1 = vmov 0   ;;  %v10138_v2 = vld [vmem:[#allocation5 + $0x14] ss:$8 sps:$4 sm:$0xff]  }
  0xb9   :  { %1567 = vst [vmem:[#allocation2 + $0x10] sm:$0xff] %v10675_v0  ;;  %1568 = vst [vmem:[#allocation2] sm:$0xff] %v10675_v0  ;;  %344 = vmatprep.mubr.bf16.mxu0 %v10676_v1  ;;  %v10140_v3 = vld [vmem:[#allocation5 + $0x10] ss:$8 sps:$4 sm:$0xff]   ;;  %324 = vmatprep.subr.bf16.mxu0 %v10138_v2  ;;  %v10141_v4 = vld [vmem:[#allocation5 + $0x4] ss:$8 sps:$4 sm:$0xff]  }
  0xba   :  { %1569 = vst [vmem:[#allocation2 + $0x18] sm:$0xff] %v10675_v0  ;;  %1570 = vst [vmem:[#allocation2 + $0x8] sm:$0xff] %v10675_v0  ;;  %325 = vmatpush1.bf16.msra.mxu0 %v10140_v3  ;;  %v10143_v5 = vld [vmem:[#allocation5] ss:$8 sps:$4 sm:$0xff]   ;;  %s11367_s23 = sld [smem:[#allocation39_spill]]  ;;  %vm296_vm0 = vcmask 261120  }
  0xbb   :  { %1571 = vst [vmem:[#allocation3] sm:$0xff] %v10675_v0  ;;  %1572 = vst [vmem:[#allocation3 + $0x18] sm:$0xff] %v10675_v0  ;;  %326 = vmatprep.subr.bf16.mxu0 %v10141_v4  ;;  %v457_v8 = vld [vmem:[#allocation10 + $0x1c0] sm:$0xff]  ;;  %v458_v12 = vld [vmem:[#allocation10 + $0x1c8] sm:$0xff]  ;;  %s11072_s19 = smov 0  }
  0xbc   :  { %1573 = vst [vmem:[#allocation3 + $0x8] sm:$0xff] %v10675_v0  ;;  %1574 = vst [vmem:[#allocation3 + $0x10] sm:$0xff] %v10675_v0  ;;  %v461_v9 = vld [vmem:[#allocation10 + $0x1e0] sm:$0xff]  ;;  %v462_v13 = vld [vmem:[#allocation10 + $0x1e8] sm:$0xff] }
  0xbd   :  { %v8994_v11 = vcombine.high %v457_v8, %v461_v9  ;;  %v8993_v14 = vcombine.low %v457_v8, %v461_v9  ;;  %v449_v15 = vld [vmem:[#allocation10 + $0x180] sm:$0xff]  ;;  %v8995_v16 = vcombine.low %v458_v12, %v462_v13  ;;  %v8996_v17 = vcombine.high %v458_v12, %v462_v13  ;;  %v450_v19 = vld [vmem:[#allocation10 + $0x188] sm:$0xff] }
  0xbe   :  { %327 = vmatpush1.bf16.msra.mxu0 %v10143_v5  ;;  %v453_v18 = vld [vmem:[#allocation10 + $0x1a0] sm:$0xff]  ;;  %v454_v20 = vld [vmem:[#allocation10 + $0x1a8] sm:$0xff] }
  0xbf   :  { %1211 = vmatprep.subr.bf16.mxu1 %v8994_v11  ;;  %v8986_v21 = vcombine.high %v449_v15, %v453_v18  ;;  %v8988_v22 = vcombine.high %v450_v19, %v454_v20  ;;  %v441_v23 = vld [vmem:[#allocation10 + $0x140] sm:$0xff]  ;;  %1284 = vmatprep.subr.bf16.mxu0 %v8996_v17  ;;  %v8985_v25 = vcombine.low %v449_v15, %v453_v18  ;;  %v442_v26 = vld [vmem:[#allocation10 + $0x148] sm:$0xff] }
  0xc0   :  { %v246_v6 = vld [vmem:[%s11367_s23] sm:$0xff]  ;;  %v247_v7 = vld [vmem:[%s11367_s23 + $0x8] sm:$0xff]  ;;  %1212 = vmatpush1.bf16.msra.mxu1 %v8993_v14  ;;  %v248_v28 = vld [vmem:[%s11367_s23 + $0x10] sm:$0xff]  ;;  %v8987_v31 = vcombine.low %v450_v19, %v454_v20 }
  0xc1   :  { %v255_v10 = vpack.c.bf16 %v247_v7, %v246_v6  ;;  %v445_v24 = vld [vmem:[#allocation10 + $0x160] sm:$0xff]  ;;  %v446_v27 = vld [vmem:[#allocation10 + $0x168] sm:$0xff]  ;;  %1213 = vmatprep.subr.bf16.mxu1 %v8986_v21  ;;  %v249_v30 = vld [vmem:[%s11367_s23 + $0x18] sm:$0xff] }
  0xc2   :  { %v8978_v29 = vcombine.high %v441_v23, %v445_v24  ;;  %v433_v32 = vld [vmem:[#allocation10 + $0x100] sm:$0xff]  ;;  %v8980_v34 = vcombine.high %v442_v26, %v446_v27  ;;  %v8977_v35 = vcombine.low %v441_v23, %v445_v24  ;;  %v434_v36 = vld [vmem:[#allocation10 + $0x108] sm:$0xff]  ;;  %v256_v38 = vpack.c.bf16 %v249_v30, %v248_v28  ;;  %v253_v6 = vld [vmem:[%s11367_s23 + $0x38] sm:$0xff] }
  0xc3   :  { %8932 = vmatmul.mubr.msk.bf16.vlgmr.msra.gmra.mxu0 %vm296_vm0, %v255_v10  ;;  %v437_v33 = vld [vmem:[#allocation10 + $0x120] sm:$0xff]  ;;  %v438_v37 = vld [vmem:[#allocation10 + $0x128] sm:$0xff]  ;;  %v8979_v40 = vcombine.low %v442_v26, %v446_v27 }
  0xc4   :  { %354 = vmatprep.mubr.bf16.mxu0 %v10676_v1  ;;  %1285 = vmatpush1.bf16.msra.mxu0 %v8995_v16  ;;  %v8970_v39 = vcombine.high %v433_v32, %v437_v33  ;;  %v425_v41 = vld [vmem:[#allocation10 + $0xc0] sm:$0xff]  ;;  %v8972_v43 = vcombine.high %v434_v36, %v438_v37  ;;  %v8969_v44 = vcombine.low %v433_v32, %v437_v33  ;;  %v426_v45 = vld [vmem:[#allocation10 + $0xc8] sm:$0xff] }
  0xc5   :  { %1286 = vmatprep.subr.bf16.mxu0 %v8988_v22  ;;  %1214 = vmatpush1.bf16.msra.mxu1 %v8985_v25  ;;  %v429_v42 = vld [vmem:[#allocation10 + $0xe0] sm:$0xff]  ;;  %v430_v46 = vld [vmem:[#allocation10 + $0xe8] sm:$0xff]  ;;  %v8971_v50 = vcombine.low %v434_v36, %v438_v37 }
  0xc6   :  { %1215 = vmatprep.subr.bf16.mxu1 %v8978_v29  ;;  %v250_v47 = vld [vmem:[%s11367_s23 + $0x20] sm:$0xff]  ;;  %v8962_v48 = vcombine.high %v425_v41, %v429_v42  ;;  %v251_v49 = vld [vmem:[%s11367_s23 + $0x28] sm:$0xff]  ;;  %v8964_v53 = vcombine.high %v426_v45, %v430_v46  ;;  %v8961_v54 = vcombine.low %v425_v41, %v429_v42  ;;  %v8963_v59 = vcombine.low %v426_v45, %v430_v46  ;;  %v252_v4 = vld [vmem:[%s11367_s23 + $0x30] sm:$0xff] }
  0xc7   :  { %v417_v51 = vld [vmem:[#allocation10 + $0x80] sm:$0xff]  ;;  %v418_v55 = vld [vmem:[#allocation10 + $0x88] sm:$0xff]  ;;  %v257_v57 = vpack.c.bf16 %v251_v49, %v250_v47  ;;  %v258_v14 = vpack.c.bf16 %v253_v6, %v252_v4 }
  0xc8   :  { %1287 = vmatpush1.bf16.msra.mxu0 %v8987_v31  ;;  %v421_v52 = vld [vmem:[#allocation10 + $0xa0] sm:$0xff]  ;;  %v422_v56 = vld [vmem:[#allocation10 + $0xa8] sm:$0xff] }
  0xc9   :  { %1288 = vmatprep.subr.bf16.mxu0 %v8980_v34  ;;  %1216 = vmatpush1.bf16.msra.mxu1 %v8977_v35  ;;  %v8954_v58 = vcombine.high %v417_v51, %v421_v52  ;;  %v409_v60 = vld [vmem:[#allocation10 + $0x40] sm:$0xff]  ;;  %v8956_v62 = vcombine.high %v418_v55, %v422_v56  ;;  %v8953_v63 = vcombine.low %v417_v51, %v421_v52  ;;  %v410_v2 = vld [vmem:[#allocation10 + $0x48] sm:$0xff] }
  0xca   :  { %1217 = vmatprep.subr.bf16.mxu1 %v8970_v39  ;;  %v413_v61 = vld [vmem:[#allocation10 + $0x60] sm:$0xff]  ;;  %v414_v3 = vld [vmem:[#allocation10 + $0x68] sm:$0xff]  ;;  %v8955_v7 = vcombine.low %v418_v55, %v422_v56 }
  0xcb   :  { %8933 = vmatmul.mubr.msk.bf16.gmra.mxu0 %vm296_vm0, %v256_v38  ;;  %v8946_v5 = vcombine.high %v409_v60, %v413_v61  ;;  %v401_v8 = vld [vmem:[#allocation10] sm:$0xff]  ;;  %v8948_v10 = vcombine.high %v410_v2, %v414_v3  ;;  %v8945_v11 = vcombine.low %v409_v60, %v413_v61  ;;  %v402_v12 = vld [vmem:[#allocation10 + $0x8] sm:$0xff]  ;;  %v8947_v16 = vcombine.low %v410_v2, %v414_v3 }
  0xcc   :  { %364 = vmatprep.mubr.bf16.mxu0 %v10676_v1  ;;  %1289 = vmatpush1.bf16.msra.mxu0 %v8979_v40  ;;  %v405_v9 = vld [vmem:[#allocation10 + $0x20] sm:$0xff]  ;;  %v406_v13 = vld [vmem:[#allocation10 + $0x28] sm:$0xff] }
  0xcd   :  { %1290 = vmatprep.subr.bf16.mxu0 %v8972_v43  ;;  %1218 = vmatpush1.bf16.msra.mxu1 %v8969_v44  ;;  %v8938_v15 = vcombine.high %v401_v8, %v405_v9  ;;  %v521_v17 = vld [vmem:[#allocation10 + $0x3c0] sm:$0xff]  ;;  %v8940_v19 = vcombine.high %v402_v12, %v406_v13  ;;  %v8937_v20 = vcombine.low %v401_v8, %v405_v9  ;;  %v522_v21 = vld [vmem:[#allocation10 + $0x3c8] sm:$0xff] }
  0xce   :  { %1219 = vmatprep.subr.bf16.mxu1 %v8962_v48  ;;  %v525_v18 = vld [vmem:[#allocation10 + $0x3e0] sm:$0xff]  ;;  %v526_v22 = vld [vmem:[#allocation10 + $0x3e8] sm:$0xff]  ;;  %v8939_v24 = vcombine.low %v402_v12, %v406_v13 }
  0xcf   :  { %v9058_v23 = vcombine.high %v521_v17, %v525_v18  ;;  %v513_v25 = vld [vmem:[#allocation10 + $0x380] sm:$0xff]  ;;  %v9060_v28 = vcombine.high %v522_v21, %v526_v22  ;;  %v9057_v29 = vcombine.low %v521_v17, %v525_v18  ;;  %v514_v30 = vld [vmem:[#allocation10 + $0x388] sm:$0xff]  ;;  %v9059_v34 = vcombine.low %v522_v21, %v526_v22 }
  0xd0   :  { %1291 = vmatpush1.bf16.msra.mxu0 %v8971_v50  ;;  %v517_v26 = vld [vmem:[#allocation10 + $0x3a0] sm:$0xff]  ;;  %v518_v31 = vld [vmem:[#allocation10 + $0x3a8] sm:$0xff] }
  0xd1   :  { %1292 = vmatprep.subr.bf16.mxu0 %v8964_v53  ;;  %1220 = vmatpush1.bf16.msra.mxu1 %v8961_v54  ;;  %v254_v27 = vld [vmem:[%s11367_s23 + $0x40] sm:$0xff]  ;;  %v9050_v32 = vcombine.high %v513_v25, %v517_v26  ;;  %v9052_v37 = vcombine.high %v514_v30, %v518_v31  ;;  %v506_v38 = vld [vmem:[#allocation10 + $0x348] sm:$0xff]  ;;  %v9051_v41 = vcombine.low %v514_v30, %v518_v31  ;;  %v266_v31 = vlaneseq }
  0xd2   :  { %1221 = vmatprep.subr.bf16.mxu1 %v8954_v58  ;;  %v259_v33 = vpack.c.bf16 %v254_v27, %v254_v27  ;;  %v505_v35 = vld [vmem:[#allocation10 + $0x340] sm:$0xff]  ;;  %v510_v39 = vld [vmem:[#allocation10 + $0x368] sm:$0xff]  ;;  %v464_v27 = vld [vmem:[#allocation10 + $0x1f8] sm:$0xff] }
  0xd3   :  { %8934 = vmatmul.mubr.msk.bf16.gmra.mxu0 %vm296_vm0, %v257_v57  ;;  %v509_v36 = vld [vmem:[#allocation10 + $0x360] sm:$0xff]  ;;  %v9044_v44 = vcombine.high %v506_v38, %v510_v39  ;;  %v498_v46 = vld [vmem:[#allocation10 + $0x308] sm:$0xff]  ;;  %v9043_v49 = vcombine.low %v506_v38, %v510_v39 }
  0xd4   :  { %374 = vmatprep.mubr.bf16.mxu0 %v10676_v1  ;;  %1293 = vmatpush1.bf16.msra.mxu0 %v8963_v59  ;;  %v9042_v40 = vcombine.high %v505_v35, %v509_v36  ;;  %v497_v42 = vld [vmem:[#allocation10 + $0x300] sm:$0xff]  ;;  %v9041_v45 = vcombine.low %v505_v35, %v509_v36  ;;  %v502_v47 = vld [vmem:[#allocation10 + $0x328] sm:$0xff]  ;;  %v264_v36 = vld [vmem:[#allocation8] sm:$0x3] }
  0xd5   :  { %1294 = vmatprep.subr.bf16.mxu0 %v8956_v62  ;;  %1222 = vmatpush1.bf16.msra.mxu1 %v8953_v63  ;;  %v501_v43 = vld [vmem:[#allocation10 + $0x320] sm:$0xff]  ;;  %v9036_v52 = vcombine.high %v498_v46, %v502_v47  ;;  %v490_v54 = vld [vmem:[#allocation10 + $0x2c8] sm:$0xff]  ;;  %v9035_v57 = vcombine.low %v498_v46, %v502_v47  ;;  %v452_v46 = vld [vmem:[#allocation10 + $0x198] sm:$0xff] }
  0xd6   :  { %1223 = vmatprep.subr.bf16.mxu1 %v8946_v5  ;;  %v9034_v48 = vcombine.high %v497_v42, %v501_v43  ;;  %v489_v50 = vld [vmem:[#allocation10 + $0x2c0] sm:$0xff]  ;;  %v9033_v53 = vcombine.low %v497_v42, %v501_v43  ;;  %v494_v55 = vld [vmem:[#allocation10 + $0x2e8] sm:$0xff]  ;;  %v451_v42 = vld [vmem:[#allocation10 + $0x190] sm:$0xff] }
  0xd7   :  { %v493_v51 = vld [vmem:[#allocation10 + $0x2e0] sm:$0xff]  ;;  %v9028_v60 = vcombine.high %v490_v54, %v494_v55  ;;  %v482_v62 = vld [vmem:[#allocation10 + $0x288] sm:$0xff]  ;;  %v9027_v3 = vcombine.low %v490_v54, %v494_v55  ;;  %v456_v47 = vld [vmem:[#allocation10 + $0x1b8] sm:$0xff] }
  0xd8   :  { %1295 = vmatpush1.bf16.msra.mxu0 %v8955_v7  ;;  %v9026_v56 = vcombine.high %v489_v50, %v493_v51  ;;  %v481_v58 = vld [vmem:[#allocation10 + $0x280] sm:$0xff]  ;;  %v9025_v61 = vcombine.low %v489_v50, %v493_v51  ;;  %v486_v63 = vld [vmem:[#allocation10 + $0x2a8] sm:$0xff]  ;;  %v8992_v54 = vcombine.high %v452_v46, %v456_v47  ;;  %v443_v55 = vld [vmem:[#allocation10 + $0x150] sm:$0xff] }
  0xd9   :  { %1296 = vmatprep.subr.bf16.mxu0 %v8948_v10  ;;  %1224 = vmatpush1.bf16.msra.mxu1 %v8945_v11  ;;  %v485_v59 = vld [vmem:[#allocation10 + $0x2a0] sm:$0xff]  ;;  %v9020_v4 = vcombine.high %v482_v62, %v486_v63  ;;  %v9019_v5 = vcombine.low %v482_v62, %v486_v63  ;;  %v474_v9 = vld [vmem:[#allocation10 + $0x248] sm:$0xff] }
  0xda   :  { %1225 = vmatprep.subr.bf16.mxu1 %v8938_v15  ;;  %v9018_v2 = vcombine.high %v481_v58, %v485_v59  ;;  %v9017_v6 = vcombine.low %v481_v58, %v485_v59  ;;  %v473_v7 = vld [vmem:[#allocation10 + $0x240] sm:$0xff]  ;;  %v478_v11 = vld [vmem:[#allocation10 + $0x268] sm:$0xff]  ;;  %v448_v58 = vld [vmem:[#allocation10 + $0x178] sm:$0xff] }
  0xdb   :  { %8935 = vmatmul.mubr.msk.bf16.gmra.mxu0 %vm296_vm0, %v258_v14  ;;  %v477_v8 = vld [vmem:[#allocation10 + $0x260] sm:$0xff]  ;;  %v9011_v12 = vcombine.low %v474_v9, %v478_v11  ;;  %v9012_v13 = vcombine.high %v474_v9, %v478_v11  ;;  %v466_v17 = vld [vmem:[#allocation10 + $0x208] sm:$0xff]  ;;  %v436_v9 = vld [vmem:[#allocation10 + $0x118] sm:$0xff] }
  0xdc   :  { %1297 = vmatpush1.bf16.msra.mxu0 %v8947_v16  ;;  %384 = vmatprep.mubr.bf16.mxu0 %v10676_v1  ;;  %v9049_v1 = vcombine.low %v513_v25, %v517_v26  ;;  %v9010_v10 = vcombine.high %v473_v7, %v477_v8  ;;  %v9009_v14 = vcombine.low %v473_v7, %v477_v8  ;;  %v465_v15 = vld [vmem:[#allocation10 + $0x200] sm:$0xff]  ;;  %v460_v25 = vld [vmem:[#allocation10 + $0x1d8] sm:$0xff]  ;;  %v439_v8 = vld [vmem:[#allocation10 + $0x130] sm:$0xff] }
  0xdd   :  { %1298 = vmatprep.subr.bf16.mxu0 %v8940_v19  ;;  %1226 = vmatpush1.bf16.msra.mxu1 %v8937_v20  ;;  %v469_v16 = vld [vmem:[#allocation10 + $0x220] sm:$0xff]  ;;  %v470_v19 = vld [vmem:[#allocation10 + $0x228] sm:$0xff]  ;;  %v9000_v30 = vcombine.high %v460_v25, %v464_v27 }
  0xde   :  { %1227 = vmatprep.subr.bf16.mxu1 %v9058_v23  ;;  %v9002_v18 = vcombine.high %v465_v15, %v469_v16  ;;  %v9003_v20 = vcombine.low %v466_v17, %v470_v19  ;;  %v9004_v21 = vcombine.high %v466_v17, %v470_v19  ;;  %v9001_v22 = vcombine.low %v465_v15, %v469_v16  ;;  %v459_v23 = vld [vmem:[#allocation10 + $0x1d0] sm:$0xff] }
  0xdf   :  { %v427_v19 = vld [vmem:[#allocation10 + $0xd0] sm:$0xff] }
  0xe0   :  { %1299 = vmatpush1.bf16.msra.mxu0 %v8939_v24  ;;  %v463_v24 = vld [vmem:[#allocation10 + $0x1f0] sm:$0xff] }
  0xe1   :  { %1300 = vmatprep.subr.bf16.mxu0 %v9060_v28  ;;  %1228 = vmatpush2.bf16.msra.mxu1 %v9057_v29  ;;  %v8998_v26 = vcombine.high %v459_v23, %v463_v24  ;;  %v8997_v28 = vcombine.low %v459_v23, %v463_v24  ;;  %v8999_v29 = vcombine.low %v460_v25, %v464_v27 }
  0xe2   :  { %1229 = vmatprep.subr.bf16.mxu1 %v9050_v32  ;;  %v10872_v32 = vshrl.u32 %v266_v31, 7 }
  0xe3   :  { %8936 = vmatmul.mubr.msk.bf16.gmra.mxu0 %vm296_vm0, %v259_v33 }
  0xe4   :  { %1301 = vmatpush2.bf16.msra.mxu0 %v9059_v34  ;;  %v10875_v33 = vsub.s32 1, %v10872_v32  ;;  %v10878_v34 = vsub.s32 0, %v10872_v32 }
  0xe5   :  { %1302 = vmatprep.subr.bf16.mxu0 %v9052_v37  ;;  %1230 = vmatpush2.bf16.msra.mxu1 %v9049_v1 }
  0xe6   :  { %1231 = vmatprep.subr.bf16.mxu1 %v9042_v40  ;;  %v10881_v1 = vrot.slane %v264_v36, %v10875_v33  ;;  %v10884_v38 = vrot.slane %v264_v36, %v10878_v34 }
  0xe8   :  { %1303 = vmatpush2.bf16.msra.mxu0 %v9051_v41 }
  0xe9   :  { %1304 = vmatprep.subr.bf16.mxu0 %v9044_v44  ;;  %1232 = vmatpush2.bf16.msra.mxu1 %v9041_v45  ;;  %v455_v45 = vld [vmem:[#allocation10 + $0x1b0] sm:$0xff] }
  0xea   :  { %1233 = vmatprep.subr.bf16.mxu1 %v9034_v48 }
  0xec   :  { %1305 = vmatpush2.bf16.msra.mxu0 %v9043_v49 }
  0xed   :  { %1306 = vmatprep.subr.bf16.mxu0 %v9036_v52  ;;  %1234 = vmatpush2.bf16.msra.mxu1 %v9033_v53  ;;  %v8990_v53 = vcombine.high %v451_v42, %v455_v45 }
  0xee   :  { %1235 = vmatprep.subr.bf16.mxu1 %v9026_v56  ;;  %v447_v56 = vld [vmem:[#allocation10 + $0x170] sm:$0xff] }
  0xf0   :  { %1307 = vmatpush2.bf16.msra.mxu0 %v9035_v57  ;;  %v444_v57 = vld [vmem:[#allocation10 + $0x158] sm:$0xff] }
  0xf1   :  { %1308 = vmatprep.subr.bf16.mxu0 %v9028_v60  ;;  %1236 = vmatpush2.bf16.msra.mxu1 %v9025_v61  ;;  %v8989_v61 = vcombine.low %v451_v42, %v455_v45  ;;  %v8983_v15 = vcombine.low %v444_v57, %v448_v58 }
  0xf2   :  { %1237 = vmatprep.subr.bf16.mxu1 %v9018_v2  ;;  %v8991_v2 = vcombine.low %v452_v46, %v456_v47 }
  0xf4   :  { %1309 = vmatpush2.bf16.msra.mxu0 %v9027_v3 }
  0xf5   :  { %1310 = vmatprep.subr.bf16.mxu0 %v9020_v4  ;;  %1238 = vmatpush2.bf16.msra.mxu1 %v9017_v6  ;;  %v8982_v4 = vcombine.high %v443_v55, %v447_v56  ;;  %v435_v6 = vld [vmem:[#allocation10 + $0x110] sm:$0xff] }
  0xf6   :  { %1239 = vmatprep.subr.bf16.mxu1 %v9010_v10  ;;  %v440_v10 = vld [vmem:[#allocation10 + $0x138] sm:$0xff]  ;;  %v8974_v17 = vcombine.high %v435_v6, %v439_v8  ;;  %v8973_v25 = vcombine.low %v435_v6, %v439_v8  ;;  %v407_v6 = vld [vmem:[#allocation10 + $0x30] sm:$0xff] }
  0xf7   :  { %v408_v8 = vld [vmem:[#allocation10 + $0x38] sm:$0xff] }
  0xf8   :  { %1311 = vmatpush2.bf16.msra.mxu0 %v9019_v5  ;;  %v8984_v5 = vcombine.high %v444_v57, %v448_v58 }
  0xf9   :  { %1312 = vmatprep.subr.bf16.mxu0 %v9012_v13  ;;  %1240 = vmatpush2.bf16.msra.mxu1 %v9009_v14  ;;  %v8981_v14 = vcombine.low %v443_v55, %v447_v56 }
  0xfa   :  { %1241 = vmatprep.subr.bf16.mxu1 %v9002_v18  ;;  %v8976_v18 = vcombine.high %v436_v9, %v440_v10 }
  0xfc   :  { %1313 = vmatpush2.bf16.msra.mxu0 %v9011_v12 }
  0xfd   :  { %1314 = vmatprep.subr.bf16.mxu0 %v9004_v21  ;;  %1242 = vmatpush2.bf16.msra.mxu1 %v9001_v22  ;;  %v428_v21 = vld [vmem:[#allocation10 + $0xd8] sm:$0xff] }
  0xfe   :  { %1357 = vmatprep.subr.bf16.mxu1 %v8998_v26  ;;  %v432_v22 = vld [vmem:[#allocation10 + $0xf8] sm:$0xff] }
  0xff   :  { %v8968_v31 = vcombine.high %v428_v21, %v432_v22  ;;  %v8967_v45 = vcombine.low %v428_v21, %v432_v22  ;;  %v528_v21 = vld [vmem:[#allocation10 + $0x3f8] sm:$0xff] }
 0x100   :  { %1315 = vmatpush2.bf16.msra.mxu0 %v9003_v20  ;;  %v431_v20 = vld [vmem:[#allocation10 + $0xf0] sm:$0xff] }
 0x101   :  { %1430 = vmatprep.subr.bf16.mxu0 %v9000_v30  ;;  %v8966_v30 = vcombine.high %v427_v19, %v431_v20 }
 0x183   :  { %v346_v35 = vpop.f32.mrf.mxu0 }
 0x184   :  { %v347_v48 = vadd.f32 %v346_v35, %v10884_v38  ;;  %v419_v35 = vld [vmem:[#allocation10 + $0x90] sm:$0xff] }
 0x185   :  { %v348_v37 = vpop.f32.mrf.mxu0 }
 0x186   :  { %v349_v43 = vadd.f32 %v348_v37, %v10881_v1  ;;  %v423_v37 = vld [vmem:[#allocation10 + $0xb0] sm:$0xff] }
 0x187   :  { %v350_v39 = vpop.f32.mrf.mxu0  ;;  %v8958_v47 = vcombine.high %v419_v35, %v423_v37  ;;  %v8957_v57 = vcombine.low %v419_v35, %v423_v37 }
 0x188   :  { %v351_v40 = vadd.f32 %v350_v39, %v10884_v38  ;;  %v420_v39 = vld [vmem:[#allocation10 + $0x98] sm:$0xff] }
 0x189   :  { %v352_v41 = vpop.f32.mrf.mxu0 }
 0x18a   :  { %v353_v44 = vadd.f32 %v352_v41, %v10881_v1  ;;  %v10892_v51 = vpack.c.bf16 %v351_v40, %v347_v48  ;;  %v424_v40 = vld [vmem:[#allocation10 + $0xb8] sm:$0xff] }
 0x18b   :  { %v356_v49 = vpop.f32.mrf.mxu0  ;;  %v8960_v48 = vcombine.high %v420_v39, %v424_v40 }
 0x18c   :  { %v10890_v50 = vpack.c.bf16 %v353_v44, %v349_v43  ;;  %v357_v59 = vadd.f32 %v356_v49, %v10884_v38  ;;  %v8965_v44 = vcombine.low %v427_v19, %v431_v20  ;;  %v411_v49 = vld [vmem:[#allocation10 + $0x50] sm:$0xff]  ;;  %v524_v20 = vld [vmem:[#allocation10 + $0x3d8] sm:$0xff] }
 0x18d   :  { %v358_v52 = vpop.f32.mrf.mxu0  ;;  %v527_v19 = vld [vmem:[#allocation10 + $0x3f0] sm:$0xff]  ;;  %v9063_v35 = vcombine.low %v524_v20, %v528_v21 }
 0x18e   :  { %1243 = vmatprep.mubr.bf16.mxu1 %v10890_v50  ;;  %1316 = vmatprep.mubr.bf16.mxu0 %v10890_v50  ;;  %v359_v62 = vadd.f32 %v358_v52, %v10881_v1  ;;  %v415_v52 = vld [vmem:[#allocation10 + $0x70] sm:$0xff] }
 0x18f   :  { %v360_v60 = vpop.f32.mrf.mxu0  ;;  %1244 = vmatmul.mubr.bf16.vlgmr.msra.gmra.mxu1 %v10892_v51  ;;  %1317 = vmatmul.mubr.bf16.vlgmr.msra.gmra.mxu0 %v10892_v51 }
 0x190   :  { %v361_v63 = vadd.f32 %v360_v60, %v10884_v38  ;;  %1358 = vmatpush1.bf16.msra.mxu1 %v8997_v28  ;;  %1431 = vmatpush1.bf16.msra.mxu0 %v8999_v29  ;;  %v8975_v28 = vcombine.low %v436_v9, %v440_v10  ;;  %v8959_v60 = vcombine.low %v420_v39, %v424_v40  ;;  %v507_v39 = vld [vmem:[#allocation10 + $0x350] sm:$0xff] }
 0x191   :  { %v362_v3 = vpop.f32.mrf.mxu0  ;;  %1359 = vmatprep.subr.bf16.mxu1 %v8990_v53  ;;  %1432 = vmatprep.subr.bf16.mxu0 %v8992_v54  ;;  %v412_v53 = vld [vmem:[#allocation10 + $0x58] sm:$0xff]  ;;  %v511_v40 = vld [vmem:[#allocation10 + $0x370] sm:$0xff] }
 0x192   :  { %v363_v7 = vadd.f32 %v362_v3, %v10881_v1  ;;  %v10902_v11 = vpack.c.bf16 %v361_v63, %v357_v59  ;;  %v416_v54 = vld [vmem:[#allocation10 + $0x78] sm:$0xff]  ;;  %v403_v3 = vld [vmem:[#allocation10 + $0x10] sm:$0xff] }
 0x193   :  { %v366_v12 = vpop.f32.mrf.mxu0  ;;  %v8952_v63 = vcombine.high %v412_v53, %v416_v54 }
 0x194   :  { %v10904_v13 = vpack.c.bf16 %v363_v7, %v359_v62  ;;  %1360 = vmatpush1.bf16.msra.mxu1 %v8989_v61  ;;  %1433 = vmatpush1.bf16.msra.mxu0 %v8991_v2  ;;  %v367_v23 = vadd.f32 %v366_v12, %v10884_v38  ;;  %v8950_v62 = vcombine.high %v411_v49, %v415_v52  ;;  %v404_v7 = vld [vmem:[#allocation10 + $0x18] sm:$0xff] }
 0x195   :  { %v368_v16 = vpop.f32.mrf.mxu0  ;;  %1361 = vmatprep.subr.bf16.mxu1 %v8982_v4  ;;  %1434 = vmatprep.subr.bf16.mxu0 %v8984_v5  ;;  %v8949_v5 = vcombine.low %v411_v49, %v415_v52  ;;  %v8951_v12 = vcombine.low %v412_v53, %v416_v54  ;;  %v503_v49 = vld [vmem:[#allocation10 + $0x330] sm:$0xff]  ;;  %v500_v52 = vld [vmem:[#allocation10 + $0x318] sm:$0xff]  ;;  %v9045_v54 = vcombine.low %v507_v39, %v511_v40 }
 0x196   :  { %1253 = vmatprep.mubr.bf16.mxu1 %v10904_v13  ;;  %1326 = vmatprep.mubr.bf16.mxu0 %v10904_v13  ;;  %v369_v26 = vadd.f32 %v368_v16, %v10881_v1  ;;  %v504_v53 = vld [vmem:[#allocation10 + $0x338] sm:$0xff] }
 0x197   :  { %v370_v24 = vpop.f32.mrf.mxu0  ;;  %1254 = vmatmul.mubr.bf16.gmra.mxu1 %v10902_v11  ;;  %1327 = vmatmul.mubr.bf16.gmra.mxu0 %v10902_v11 }
 0x198   :  { %v371_v27 = vadd.f32 %v370_v24, %v10884_v38  ;;  %1362 = vmatpush1.bf16.msra.mxu1 %v8981_v14  ;;  %1435 = vmatpush1.bf16.msra.mxu0 %v8983_v15  ;;  %v523_v15 = vld [vmem:[#allocation10 + $0x3d0] sm:$0xff]  ;;  %v8943_v24 = vcombine.low %v404_v7, %v408_v8 }
 0x199   :  { %v372_v29 = vpop.f32.mrf.mxu0  ;;  %1363 = vmatprep.subr.bf16.mxu1 %v8974_v17  ;;  %1436 = vmatprep.subr.bf16.mxu0 %v8976_v18  ;;  %v8942_v17 = vcombine.high %v403_v3, %v407_v6  ;;  %v8944_v18 = vcombine.high %v404_v7, %v408_v8  ;;  %v484_v7 = vld [vmem:[#allocation10 + $0x298] sm:$0xff] }
 0x19a   :  { %v373_v36 = vadd.f32 %v372_v29, %v10881_v1  ;;  %v10914_v41 = vpack.c.bf16 %v371_v27, %v367_v23  ;;  %v8941_v23 = vcombine.low %v403_v3, %v407_v6  ;;  %v515_v27 = vld [vmem:[#allocation10 + $0x390] sm:$0xff]  ;;  %v516_v29 = vld [vmem:[#allocation10 + $0x398] sm:$0xff] }
 0x19b   :  { %v376_v42 = vpop.f32.mrf.mxu0  ;;  %v487_v6 = vld [vmem:[#allocation10 + $0x2b0] sm:$0xff]  ;;  %v488_v8 = vld [vmem:[#allocation10 + $0x2b8] sm:$0xff] }
 0x19c   :  { %v10916_v43 = vpack.c.bf16 %v373_v36, %v369_v26  ;;  %1364 = vmatpush1.bf16.msra.mxu1 %v8973_v25  ;;  %1437 = vmatpush1.bf16.msra.mxu0 %v8975_v28  ;;  %v377_v55 = vadd.f32 %v376_v42, %v10884_v38  ;;  %v9062_v25 = vcombine.high %v523_v15, %v527_v19  ;;  %v512_v42 = vld [vmem:[#allocation10 + $0x378] sm:$0xff] }
 0x19d   :  { %v378_v46 = vpop.f32.mrf.mxu0  ;;  %1365 = vmatprep.subr.bf16.mxu1 %v8966_v30  ;;  %1438 = vmatprep.subr.bf16.mxu0 %v8968_v31  ;;  %v9064_v26 = vcombine.high %v524_v20, %v528_v21  ;;  %v520_v30 = vld [vmem:[#allocation10 + $0x3b8] sm:$0xff]  ;;  %v9061_v31 = vcombine.low %v523_v15, %v527_v19 }
 0x19e   :  { %1263 = vmatprep.mubr.bf16.mxu1 %v10916_v43  ;;  %1336 = vmatprep.mubr.bf16.mxu0 %v10916_v43  ;;  %v379_v58 = vadd.f32 %v378_v46, %v10881_v1  ;;  %v9056_v37 = vcombine.high %v516_v29, %v520_v30  ;;  %v9046_v46 = vcombine.high %v507_v39, %v511_v40  ;;  %v476_v19 = vld [vmem:[#allocation10 + $0x258] sm:$0xff] }
 0x19f   :  { %v380_v56 = vpop.f32.mrf.mxu0  ;;  %1264 = vmatmul.mubr.bf16.gmra.mxu1 %v10914_v41  ;;  %1337 = vmatmul.mubr.bf16.gmra.mxu0 %v10914_v41  ;;  %v480_v20 = vld [vmem:[#allocation10 + $0x278] sm:$0xff] }
 0x1a0   :  { %v381_v59 = vadd.f32 %v380_v56, %v10884_v38  ;;  %1366 = vmatpush1.bf16.msra.mxu1 %v8965_v44  ;;  %1439 = vmatpush1.bf16.msra.mxu0 %v8967_v45  ;;  %v9055_v45 = vcombine.low %v516_v29, %v520_v30  ;;  %v9015_v29 = vcombine.low %v476_v19, %v480_v20 }
 0x1a1   :  { %v382_v61 = vpop.f32.mrf.mxu0  ;;  %1367 = vmatprep.subr.bf16.mxu1 %v8958_v47  ;;  %1440 = vmatprep.subr.bf16.mxu0 %v8960_v48  ;;  %v499_v48 = vld [vmem:[#allocation10 + $0x310] sm:$0xff] }
 0x1a2   :  { %v383_v2 = vadd.f32 %v382_v61, %v10881_v1  ;;  %v10926_v4 = vpack.c.bf16 %v381_v59, %v377_v55  ;;  %v9038_v56 = vcombine.high %v499_v48, %v503_v49  ;;  %v495_v59 = vld [vmem:[#allocation10 + $0x2f0] sm:$0xff]  ;;  %v496_v61 = vld [vmem:[#allocation10 + $0x2f8] sm:$0xff] }
 0x1a3   :  { %v386_v9 = vpop.f32.mrf.mxu0 }
 0x1a4   :  { %v10928_v10 = vpack.c.bf16 %v383_v2, %v379_v58  ;;  %1368 = vmatpush1.bf16.msra.mxu1 %v8957_v57  ;;  %1441 = vmatpush1.bf16.msra.mxu0 %v8959_v60  ;;  %v10931_v14 = vadd.f32 %v386_v9, %v10884_v38  ;;  %v9040_v57 = vcombine.high %v500_v52, %v504_v53  ;;  %v491_v58 = vld [vmem:[#allocation10 + $0x2d0] sm:$0xff]  ;;  %v492_v60 = vld [vmem:[#allocation10 + $0x2d8] sm:$0xff] }
 0x1a5   :  { %1369 = vmatprep.subr.bf16.mxu1 %v8950_v62  ;;  %1442 = vmatprep.subr.bf16.mxu0 %v8952_v63  ;;  %v388_v16 = vpop.f32.mrf.mxu0  ;;  %v9037_v62 = vcombine.low %v499_v48, %v503_v49  ;;  %v9039_v63 = vcombine.low %v500_v52, %v504_v53  ;;  %v9030_v2 = vcombine.high %v491_v58, %v495_v59 }
 0x1a6   :  { %1273 = vmatprep.mubr.bf16.mxu1 %v10928_v10  ;;  %1346 = vmatprep.mubr.bf16.mxu0 %v10928_v10  ;;  %v10936_v22 = vadd.f32 %v388_v16, %v10881_v1  ;;  %v519_v1 = vld [vmem:[#allocation10 + $0x3b0] sm:$0xff]  ;;  %v9032_v3 = vcombine.high %v492_v60, %v496_v61  ;;  %v9029_v9 = vcombine.low %v491_v58, %v495_v59 }
 0x1a7   :  { %1274 = vmatmul.mubr.bf16.gmra.mxu1 %v10926_v4  ;;  %1347 = vmatmul.mubr.bf16.gmra.mxu0 %v10926_v4  ;;  %v390_v38 = vpop.f32.mrf.mxu0  ;;  %v9054_v36 = vcombine.high %v515_v27, %v519_v1  ;;  %v9053_v44 = vcombine.low %v515_v27, %v519_v1  ;;  %v9024_v16 = vcombine.high %v484_v7, %v488_v8  ;;  %v468_v27 = vld [vmem:[#allocation10 + $0x218] sm:$0xff] }
 0x1a8   :  { %1370 = vmatpush1.bf16.msra.mxu1 %v8949_v5  ;;  %1443 = vmatpush1.bf16.msra.mxu0 %v8951_v12  ;;  %v483_v5 = vld [vmem:[#allocation10 + $0x290] sm:$0xff]  ;;  %v9031_v12 = vcombine.low %v492_v60, %v496_v61  ;;  %v9023_v38 = vcombine.low %v484_v7, %v488_v8 }
 0x1a9   :  { %1389 = vmatprep.mubr.bf16.mxu1 %v10890_v50  ;;  %1462 = vmatprep.mubr.bf16.mxu0 %v10890_v50  ;;  %v391_v28 = vpop.f32.mrf.mxu0  ;;  %v508_v50 = vld [vmem:[#allocation10 + $0x358] sm:$0xff]  ;;  %v9022_v15 = vcombine.high %v483_v5, %v487_v6  ;;  %v9021_v21 = vcombine.low %v483_v5, %v487_v6 }
 0x1aa   :  { %1371 = vmatprep.subr.bf16.mxu1 %v8942_v17  ;;  %1444 = vmatprep.subr.bf16.mxu0 %v8944_v18  ;;  %v9048_v47 = vcombine.high %v508_v50, %v512_v42  ;;  %v9047_v55 = vcombine.low %v508_v50, %v512_v42  ;;  %v475_v17 = vld [vmem:[#allocation10 + $0x250] sm:$0xff]  ;;  %v472_v28 = vld [vmem:[#allocation10 + $0x238] sm:$0xff] }
 0x1ab   :  { %v479_v18 = vld [vmem:[#allocation10 + $0x270] sm:$0xff] }
 0x1ac   :  { %1372 = vmatpush1.bf16.msra.mxu1 %v8941_v23  ;;  %1445 = vmatpush1.bf16.msra.mxu0 %v8943_v24  ;;  %v9014_v23 = vcombine.high %v475_v17, %v479_v18  ;;  %v9016_v24 = vcombine.high %v476_v19, %v480_v20  ;;  %v9013_v1 = vcombine.low %v475_v17, %v479_v18 }
 0x1ad   :  { %1373 = vmatprep.subr.bf16.mxu1 %v9062_v25  ;;  %1446 = vmatprep.subr.bf16.mxu0 %v9064_v26  ;;  %v467_v25 = vld [vmem:[#allocation10 + $0x210] sm:$0xff] }
 0x1ae   :  { %v471_v26 = vld [vmem:[#allocation10 + $0x230] sm:$0xff] }
 0x1af   :  { %v9006_v30 = vcombine.high %v467_v25, %v471_v26 }
 0x1b0   :  { %1374 = vmatpush2.bf16.msra.mxu1 %v9061_v31  ;;  %1447 = vmatpush2.bf16.msra.mxu0 %v9063_v35  ;;  %v9008_v31 = vcombine.high %v468_v27, %v472_v28  ;;  %v9005_v35 = vcombine.low %v467_v25, %v471_v26 }
 0x1b1   :  { %1375 = vmatprep.subr.bf16.mxu1 %v9054_v36  ;;  %1448 = vmatprep.subr.bf16.mxu0 %v9056_v37  ;;  %v9007_v36 = vcombine.low %v468_v27, %v472_v28 }
 0x1b4   :  { %1376 = vmatpush2.bf16.msra.mxu1 %v9053_v44  ;;  %1449 = vmatpush2.bf16.msra.mxu0 %v9055_v45 }
 0x1b5   :  { %1377 = vmatprep.subr.bf16.mxu1 %v9046_v46  ;;  %1450 = vmatprep.subr.bf16.mxu0 %v9048_v47 }
 0x1b8   :  { %1378 = vmatpush2.bf16.msra.mxu1 %v9045_v54  ;;  %1451 = vmatpush2.bf16.msra.mxu0 %v9047_v55 }
 0x1b9   :  { %1379 = vmatprep.subr.bf16.mxu1 %v9038_v56  ;;  %1452 = vmatprep.subr.bf16.mxu0 %v9040_v57 }
 0x1bc   :  { %1380 = vmatpush2.bf16.msra.mxu1 %v9037_v62  ;;  %1453 = vmatpush2.bf16.msra.mxu0 %v9039_v63 }
 0x1bd   :  { %1381 = vmatprep.subr.bf16.mxu1 %v9030_v2  ;;  %1454 = vmatprep.subr.bf16.mxu0 %v9032_v3 }
 0x1c0   :  { %1382 = vmatpush2.bf16.msra.mxu1 %v9029_v9  ;;  %1455 = vmatpush2.bf16.msra.mxu0 %v9031_v12 }
 0x1c1   :  { %1383 = vmatprep.subr.bf16.mxu1 %v9022_v15  ;;  %1456 = vmatprep.subr.bf16.mxu0 %v9024_v16 }
 0x1c4   :  { %1384 = vmatpush2.bf16.msra.mxu1 %v9021_v21  ;;  %1457 = vmatpush2.bf16.msra.mxu0 %v9023_v38 }
 0x1c5   :  { %1385 = vmatprep.subr.bf16.mxu1 %v9014_v23  ;;  %1458 = vmatprep.subr.bf16.mxu0 %v9016_v24 }
 0x1c8   :  { %1386 = vmatpush2.bf16.msra.mxu1 %v9013_v1  ;;  %1459 = vmatpush2.bf16.msra.mxu0 %v9015_v29 }
 0x1c9   :  { %1387 = vmatprep.subr.bf16.mxu1 %v9006_v30  ;;  %1460 = vmatprep.subr.bf16.mxu0 %v9008_v31 }
 0x1cc   :  { %1388 = vmatpush2.bf16.msra.mxu1 %v9005_v35  ;;  %1461 = vmatpush2.bf16.msra.mxu0 %v9007_v36 }
 0x1cf   :  { %1390 = vmatmul.mubr.bf16.vlgmr.msra.gmra.mxu1 %v10892_v51  ;;  %1463 = vmatmul.mubr.bf16.vlgmr.msra.gmra.mxu0 %v10892_v51  ;;  %v10957_v51 = vsub.s32 2, %v10872_v32 }
 0x1d0   :  { %1399 = vmatprep.mubr.bf16.mxu1 %v10904_v13  ;;  %1472 = vmatprep.mubr.bf16.mxu0 %v10904_v13  ;;  %v10962_v13 = vsub.s32 3, %v10872_v32 }
 0x1d7   :  { %1400 = vmatmul.mubr.bf16.gmra.mxu1 %v10902_v11  ;;  %1473 = vmatmul.mubr.bf16.gmra.mxu0 %v10902_v11  ;;  %v10959_v11 = vld [vmem:[#allocation13] sm:$0xff] }
 0x1d8   :  { %1409 = vmatprep.mubr.bf16.mxu1 %v10916_v43  ;;  %1482 = vmatprep.mubr.bf16.mxu0 %v10916_v43  ;;  %v10966_v43 = vrot.slane %v10959_v11, %v10878_v34 }
 0x1df   :  { %1410 = vmatmul.mubr.bf16.gmra.mxu1 %v10914_v41  ;;  %1483 = vmatmul.mubr.bf16.gmra.mxu0 %v10914_v41  ;;  %v10970_v41 = vrot.slane %v10959_v11, %v10957_v51 }
 0x1e0   :  { %1419 = vmatprep.mubr.bf16.mxu1 %v10928_v10  ;;  %1492 = vmatprep.mubr.bf16.mxu0 %v10928_v10  ;;  %v10974_v10 = vrot.slane %v10959_v11, %v10875_v33 }
 0x1e7   :  { %1420 = vmatmul.mubr.bf16.gmra.mxu1 %v10926_v4  ;;  %1493 = vmatmul.mubr.bf16.gmra.mxu0 %v10926_v4  ;;  %v10978_v4 = vrot.slane %v10959_v11, %v10962_v13 }
 0x24f   :  { %v1245_v37 = vpop.f32.mrf.mxu1  ;;  %v1318_v39 = vpop.f32.mrf.mxu0 }
 0x250   :  { %v1246_v40 = vadd.f32 %v1245_v37, %v10966_v43  ;;  %v1319_v50 = vadd.f32 %v1318_v39, %v10970_v41 }
 0x251   :  { %v1247_v42 = vpop.f32.mrf.mxu1  ;;  %v1320_v44 = vpop.f32.mrf.mxu0 }
 0x252   :  { %1503 = vst [vmem:[#allocation4] sm:$0xff] %v1246_v40  ;;  %1505 = vst [vmem:[#allocation4 + $0x10] sm:$0xff] %v1319_v50  ;;  %v1248_v45 = vadd.f32 %v1247_v42, %v10974_v10  ;;  %v1321_v46 = vadd.f32 %v1320_v44, %v10978_v4 }
 0x253   :  { %v1249_v47 = vpop.f32.mrf.mxu1  ;;  %v1322_v48 = vpop.f32.mrf.mxu0 }
 0x254   :  { %1504 = vst [vmem:[#allocation4 + $0x8] sm:$0xff] %v1248_v45  ;;  %1506 = vst [vmem:[#allocation4 + $0x18] sm:$0xff] %v1321_v46  ;;  %v1250_v49 = vadd.f32 %v1249_v47, %v10966_v43  ;;  %v1323_v52 = vadd.f32 %v1322_v48, %v10970_v41 }
 0x255   :  { %v1251_v53 = vpop.f32.mrf.mxu1  ;;  %v1324_v54 = vpop.f32.mrf.mxu0 }
 0x256   :  { %1511 = vst [vmem:[#allocation4 + $0x40] sm:$0xff] %v1250_v49  ;;  %1513 = vst [vmem:[#allocation4 + $0x50] sm:$0xff] %v1323_v52  ;;  %v1252_v55 = vadd.f32 %v1251_v53, %v10974_v10  ;;  %v1325_v56 = vadd.f32 %v1324_v54, %v10978_v4  ;;  %v11013_v54 = vsub.s32 4, %v10872_v32 }
 0x257   :  { %v1255_v57 = vpop.f32.mrf.mxu1  ;;  %v1328_v58 = vpop.f32.mrf.mxu0 }
 0x258   :  { %1512 = vst [vmem:[#allocation4 + $0x48] sm:$0xff] %v1252_v55  ;;  %1514 = vst [vmem:[#allocation4 + $0x58] sm:$0xff] %v1325_v56  ;;  %v1256_v59 = vadd.f32 %v1255_v57, %v10966_v43  ;;  %v1329_v60 = vadd.f32 %v1328_v58, %v10970_v41  ;;  %v11016_v55 = vsub.s32 6, %v10872_v32  ;;  %v11026_v56 = vrot.slane %v10959_v11, %v11013_v54 }
 0x259   :  { %v1257_v61 = vpop.f32.mrf.mxu1  ;;  %v1330_v62 = vpop.f32.mrf.mxu0 }
 0x25a   :  { %1519 = vst [vmem:[#allocation4 + $0x80] sm:$0xff] %v1256_v59  ;;  %1521 = vst [vmem:[#allocation4 + $0x90] sm:$0xff] %v1329_v60  ;;  %v1258_v63 = vadd.f32 %v1257_v61, %v10974_v10  ;;  %v1331_v2 = vadd.f32 %v1330_v62, %v10978_v4 }
 0x25b   :  { %v1259_v3 = vpop.f32.mrf.mxu1  ;;  %v1332_v5 = vpop.f32.mrf.mxu0 }
 0x25c   :  { %1520 = vst [vmem:[#allocation4 + $0x88] sm:$0xff] %v1258_v63  ;;  %1522 = vst [vmem:[#allocation4 + $0x98] sm:$0xff] %v1331_v2  ;;  %v1260_v6 = vadd.f32 %v1259_v3, %v10966_v43  ;;  %v1333_v7 = vadd.f32 %v1332_v5, %v10970_v41 }
 0x25d   :  { %v1261_v8 = vpop.f32.mrf.mxu1  ;;  %v1334_v9 = vpop.f32.mrf.mxu0 }
 0x25e   :  { %1527 = vst [vmem:[#allocation4 + $0xc0] sm:$0xff] %v1260_v6  ;;  %1529 = vst [vmem:[#allocation4 + $0xd0] sm:$0xff] %v1333_v7  ;;  %v1262_v12 = vadd.f32 %v1261_v8, %v10974_v10  ;;  %v1335_v15 = vadd.f32 %v1334_v9, %v10978_v4 }
 0x25f   :  { %v1265_v16 = vpop.f32.mrf.mxu1  ;;  %v1338_v17 = vpop.f32.mrf.mxu0 }
 0x260   :  { %1528 = vst [vmem:[#allocation4 + $0xc8] sm:$0xff] %v1262_v12  ;;  %1530 = vst [vmem:[#allocation4 + $0xd8] sm:$0xff] %v1335_v15  ;;  %v1266_v18 = vadd.f32 %v1265_v16, %v10966_v43  ;;  %v1339_v19 = vadd.f32 %v1338_v17, %v10970_v41 }
 0x261   :  { %v1267_v20 = vpop.f32.mrf.mxu1  ;;  %v1340_v21 = vpop.f32.mrf.mxu0 }
 0x262   :  { %1535 = vst [vmem:[#allocation4 + $0x100] sm:$0xff] %v1266_v18  ;;  %1537 = vst [vmem:[#allocation4 + $0x110] sm:$0xff] %v1339_v19  ;;  %v1268_v38 = vadd.f32 %v1267_v20, %v10974_v10  ;;  %v1341_v23 = vadd.f32 %v1340_v21, %v10978_v4 }
 0x263   :  { %v1269_v24 = vpop.f32.mrf.mxu1  ;;  %v1342_v25 = vpop.f32.mrf.mxu0 }
 0x264   :  { %1536 = vst [vmem:[#allocation4 + $0x108] sm:$0xff] %v1268_v38  ;;  %1538 = vst [vmem:[#allocation4 + $0x118] sm:$0xff] %v1341_v23  ;;  %v1270_v26 = vadd.f32 %v1269_v24, %v10966_v43  ;;  %v1343_v27 = vadd.f32 %v1342_v25, %v10970_v41 }
 0x265   :  { %v1271_v28 = vpop.f32.mrf.mxu1  ;;  %v1344_v1 = vpop.f32.mrf.mxu0 }
 0x266   :  { %1543 = vst [vmem:[#allocation4 + $0x140] sm:$0xff] %v1270_v26  ;;  %1545 = vst [vmem:[#allocation4 + $0x150] sm:$0xff] %v1343_v27  ;;  %v1272_v29 = vadd.f32 %v1271_v28, %v10974_v10  ;;  %v1345_v30 = vadd.f32 %v1344_v1, %v10978_v4 }
 0x267   :  { %v1275_v31 = vpop.f32.mrf.mxu1  ;;  %v1348_v35 = vpop.f32.mrf.mxu0 }
 0x268   :  { %1544 = vst [vmem:[#allocation4 + $0x148] sm:$0xff] %v1272_v29  ;;  %1546 = vst [vmem:[#allocation4 + $0x158] sm:$0xff] %v1345_v30  ;;  %v1276_v36 = vadd.f32 %v1275_v31, %v10966_v43  ;;  %v1349_v37 = vadd.f32 %v1348_v35, %v10970_v41 }
 0x269   :  { %v1277_v39 = vpop.f32.mrf.mxu1  ;;  %v1350_v40 = vpop.f32.mrf.mxu0 }
 0x26a   :  { %1551 = vst [vmem:[#allocation4 + $0x180] sm:$0xff] %v1276_v36  ;;  %1553 = vst [vmem:[#allocation4 + $0x190] sm:$0xff] %v1349_v37  ;;  %v1278_v50 = vadd.f32 %v1277_v39, %v10974_v10  ;;  %v1351_v42 = vadd.f32 %v1350_v40, %v10978_v4 }
 0x26b   :  { %v1279_v44 = vpop.f32.mrf.mxu1  ;;  %v1352_v45 = vpop.f32.mrf.mxu0 }
 0x26c   :  { %1552 = vst [vmem:[#allocation4 + $0x188] sm:$0xff] %v1278_v50  ;;  %1554 = vst [vmem:[#allocation4 + $0x198] sm:$0xff] %v1351_v42  ;;  %v1280_v46 = vadd.f32 %v1279_v44, %v10966_v43  ;;  %v1353_v47 = vadd.f32 %v1352_v45, %v10970_v41  ;;  %v11019_v43 = vsub.s32 5, %v10872_v32  ;;  %v11022_v41 = vsub.s32 7, %v10872_v32 }
 0x26d   :  { %v1281_v48 = vpop.f32.mrf.mxu1  ;;  %v1354_v49 = vpop.f32.mrf.mxu0 }
 0x26e   :  { %1559 = vst [vmem:[#allocation4 + $0x1c0] sm:$0xff] %v1280_v46  ;;  %1561 = vst [vmem:[#allocation4 + $0x1d0] sm:$0xff] %v1353_v47  ;;  %v1282_v52 = vadd.f32 %v1281_v48, %v10974_v10  ;;  %v1355_v53 = vadd.f32 %v1354_v49, %v10978_v4  ;;  %v11030_v10 = vrot.slane %v10959_v11, %v11016_v55 }
 0x26f   :  { %v11034_v4 = vrot.slane %v10959_v11, %v11019_v43  ;;  %v11038_v57 = vrot.slane %v10959_v11, %v11022_v41 }
 0x270   :  { %1560 = vst [vmem:[#allocation4 + $0x1c8] sm:$0xff] %v1282_v52  ;;  %1562 = vst [vmem:[#allocation4 + $0x1d8] sm:$0xff] %v1355_v53 }
 0x28f   :  { %v1391_v58 = vpop.f32.mrf.mxu1  ;;  %v1464_v59 = vpop.f32.mrf.mxu0 }
 0x290   :  { %v1392_v32 = vadd.f32 %v1391_v58, %v11026_v56  ;;  %v1465_v60 = vadd.f32 %v1464_v59, %v11030_v10 }
 0x291   :  { %v1393_v61 = vpop.f32.mrf.mxu1  ;;  %v1466_v62 = vpop.f32.mrf.mxu0 }
 0x292   :  { %1507 = vst [vmem:[#allocation4 + $0x20] sm:$0xff] %v1392_v32  ;;  %1509 = vst [vmem:[#allocation4 + $0x30] sm:$0xff] %v1465_v60  ;;  %v1394_v63 = vadd.f32 %v1393_v61, %v11034_v4  ;;  %v1467_v2 = vadd.f32 %v1466_v62, %v11038_v57 }
 0x293   :  { %v1395_v3 = vpop.f32.mrf.mxu1  ;;  %v1468_v5 = vpop.f32.mrf.mxu0 }
 0x294   :  { %1508 = vst [vmem:[#allocation4 + $0x28] sm:$0xff] %v1394_v63  ;;  %1510 = vst [vmem:[#allocation4 + $0x38] sm:$0xff] %v1467_v2  ;;  %v1396_v11 = vadd.f32 %v1395_v3, %v11026_v56  ;;  %v1469_v6 = vadd.f32 %v1468_v5, %v11030_v10 }
 0x295   :  { %v1397_v7 = vpop.f32.mrf.mxu1  ;;  %v1470_v8 = vpop.f32.mrf.mxu0 }
 0x296   :  { %1515 = vst [vmem:[#allocation4 + $0x60] sm:$0xff] %v1396_v11  ;;  %1517 = vst [vmem:[#allocation4 + $0x70] sm:$0xff] %v1469_v6  ;;  %v1398_v9 = vadd.f32 %v1397_v7, %v11034_v4  ;;  %v1471_v12 = vadd.f32 %v1470_v8, %v11038_v57 }
 0x297   :  { %v1401_v15 = vpop.f32.mrf.mxu1  ;;  %v1474_v16 = vpop.f32.mrf.mxu0 }
 0x298   :  { %1516 = vst [vmem:[#allocation4 + $0x68] sm:$0xff] %v1398_v9  ;;  %1518 = vst [vmem:[#allocation4 + $0x78] sm:$0xff] %v1471_v12  ;;  %v1402_v17 = vadd.f32 %v1401_v15, %v11026_v56  ;;  %v1475_v18 = vadd.f32 %v1474_v16, %v11030_v10 }
 0x299   :  { %v1403_v19 = vpop.f32.mrf.mxu1  ;;  %v1476_v20 = vpop.f32.mrf.mxu0 }
 0x29a   :  { %1523 = vst [vmem:[#allocation4 + $0xa0] sm:$0xff] %v1402_v17  ;;  %1525 = vst [vmem:[#allocation4 + $0xb0] sm:$0xff] %v1475_v18  ;;  %v1404_v21 = vadd.f32 %v1403_v19, %v11034_v4  ;;  %v1477_v38 = vadd.f32 %v1476_v20, %v11038_v57 }
 0x29b   :  { %v1405_v23 = vpop.f32.mrf.mxu1  ;;  %v1478_v24 = vpop.f32.mrf.mxu0 }
 0x29c   :  { %1524 = vst [vmem:[#allocation4 + $0xa8] sm:$0xff] %v1404_v21  ;;  %1526 = vst [vmem:[#allocation4 + $0xb8] sm:$0xff] %v1477_v38  ;;  %v1406_v25 = vadd.f32 %v1405_v23, %v11026_v56  ;;  %v1479_v26 = vadd.f32 %v1478_v24, %v11030_v10 }
 0x29d   :  { %v1407_v27 = vpop.f32.mrf.mxu1  ;;  %v1480_v28 = vpop.f32.mrf.mxu0 }
 0x29e   :  { %1531 = vst [vmem:[#allocation4 + $0xe0] sm:$0xff] %v1406_v25  ;;  %1533 = vst [vmem:[#allocation4 + $0xf0] sm:$0xff] %v1479_v26  ;;  %v1408_v1 = vadd.f32 %v1407_v27, %v11034_v4  ;;  %v1481_v29 = vadd.f32 %v1480_v28, %v11038_v57 }
 0x29f   :  { %v1411_v30 = vpop.f32.mrf.mxu1  ;;  %v1484_v31 = vpop.f32.mrf.mxu0 }
 0x2a0   :  { %1532 = vst [vmem:[#allocation4 + $0xe8] sm:$0xff] %v1408_v1  ;;  %1534 = vst [vmem:[#allocation4 + $0xf8] sm:$0xff] %v1481_v29  ;;  %v1412_v35 = vadd.f32 %v1411_v30, %v11026_v56  ;;  %v1485_v36 = vadd.f32 %v1484_v31, %v11030_v10 }
 0x2a1   :  { %v1413_v37 = vpop.f32.mrf.mxu1  ;;  %v1486_v39 = vpop.f32.mrf.mxu0 }
 0x2a2   :  { %1539 = vst [vmem:[#allocation4 + $0x120] sm:$0xff] %v1412_v35  ;;  %1541 = vst [vmem:[#allocation4 + $0x130] sm:$0xff] %v1485_v36  ;;  %v1414_v40 = vadd.f32 %v1413_v37, %v11034_v4  ;;  %v1487_v50 = vadd.f32 %v1486_v39, %v11038_v57 }
 0x2a3   :  { %v1415_v42 = vpop.f32.mrf.mxu1  ;;  %v1488_v44 = vpop.f32.mrf.mxu0 }
 0x2a4   :  { %1540 = vst [vmem:[#allocation4 + $0x128] sm:$0xff] %v1414_v40  ;;  %1542 = vst [vmem:[#allocation4 + $0x138] sm:$0xff] %v1487_v50  ;;  %v1416_v45 = vadd.f32 %v1415_v42, %v11026_v56  ;;  %v1489_v46 = vadd.f32 %v1488_v44, %v11030_v10 }
 0x2a5   :  { %v1417_v47 = vpop.f32.mrf.mxu1  ;;  %v1490_v48 = vpop.f32.mrf.mxu0 }
 0x2a6   :  { %1547 = vst [vmem:[#allocation4 + $0x160] sm:$0xff] %v1416_v45  ;;  %1549 = vst [vmem:[#allocation4 + $0x170] sm:$0xff] %v1489_v46  ;;  %v1418_v49 = vadd.f32 %v1417_v47, %v11034_v4  ;;  %v1491_v52 = vadd.f32 %v1490_v48, %v11038_v57 }
 0x2a7   :  { %v1421_v53 = vpop.f32.mrf.mxu1  ;;  %v1494_v58 = vpop.f32.mrf.mxu0 }
 0x2a8   :  { %1548 = vst [vmem:[#allocation4 + $0x168] sm:$0xff] %v1418_v49  ;;  %1550 = vst [vmem:[#allocation4 + $0x178] sm:$0xff] %v1491_v52  ;;  %v1422_v59 = vadd.f32 %v1421_v53, %v11026_v56  ;;  %v1495_v32 = vadd.f32 %v1494_v58, %v11030_v10 }
 0x2a9   :  { %v1423_v60 = vpop.f32.mrf.mxu1  ;;  %v1496_v61 = vpop.f32.mrf.mxu0 }
 0x2aa   :  { %1555 = vst [vmem:[#allocation4 + $0x1a0] sm:$0xff] %v1422_v59  ;;  %1557 = vst [vmem:[#allocation4 + $0x1b0] sm:$0xff] %v1495_v32  ;;  %v1424_v62 = vadd.f32 %v1423_v60, %v11034_v4  ;;  %v1497_v63 = vadd.f32 %v1496_v61, %v11038_v57 }
 0x2ab   :  { %v1425_v2 = vpop.f32.mrf.mxu1  ;;  %v1498_v3 = vpop.f32.mrf.mxu0 }
 0x2ac   :  { %1556 = vst [vmem:[#allocation4 + $0x1a8] sm:$0xff] %v1424_v62  ;;  %1558 = vst [vmem:[#allocation4 + $0x1b8] sm:$0xff] %v1497_v63  ;;  %v1426_v5 = vadd.f32 %v1425_v2, %v11026_v56  ;;  %v1499_v11 = vadd.f32 %v1498_v3, %v11030_v10 }
 0x2ad   :  { %v1427_v6 = vpop.f32.mrf.mxu1  ;;  %v1500_v7 = vpop.f32.mrf.mxu0 }
 0x2ae   :  { %1563 = vst [vmem:[#allocation4 + $0x1e0] sm:$0xff] %v1426_v5  ;;  %1565 = vst [vmem:[#allocation4 + $0x1f0] sm:$0xff] %v1499_v11  ;;  %v1428_v8 = vadd.f32 %v1427_v6, %v11034_v4  ;;  %v1501_v9 = vadd.f32 %v1500_v7, %v11038_v57 }
 0x2b0   :  { %1564 = vst [vmem:[#allocation4 + $0x1e8] sm:$0xff] %v1428_v8  ;;  %1566 = vst [vmem:[#allocation4 + $0x1f8] sm:$0xff] %v1501_v9 }
 0x2b1 LB: > { %v1655_v56 = vld [vmem:[#allocation11 + $0x1c0] sm:$0xff]  ;;  %v1656_v10 = vld [vmem:[#allocation11 + $0x1c8] sm:$0xff]  ;;  %s9065_s2 = sshll.u32 %s10652_s19, 3  ;;  %s1580_s19 = sadd.s32 1, %s10652_s19   ;;  %s10652_s19 = sphi %s11072_s19, %s1580_s19  }
 0x2b2   : > { %v1659_v12 = vld [vmem:[#allocation11 + $0x1e0] sm:$0xff]  ;;  %v1660_v16 = vld [vmem:[#allocation11 + $0x1e8] sm:$0xff]  ;;  %s1582_s9 = sshra.s32 %s9065_s2, 3  ;;  %p1577_p5 = scmp.ge.s32.totalorder %s1580_s19, 8  }
 0x2b3   : > { %v9125_v15 = vcombine.high %v1655_v56, %v1659_v12  ;;  %v9124_v17 = vcombine.low %v1655_v56, %v1659_v12  ;;  %v1647_v18 = vld [vmem:[#allocation11 + $0x180] sm:$0xff]  ;;  %v9127_v4 = vcombine.high %v1656_v10, %v1660_v16  ;;  %v9126_v20 = vcombine.low %v1656_v10, %v1660_v16  ;;  %v1648_v21 = vld [vmem:[#allocation11 + $0x188] sm:$0xff]  ;;  %s10024_s12 = sshll.u32 %s1582_s9, 6  ;;  %s10678_s20 = smov (%p1577_p5), [#allocation29]  }
 0x2b4   : > { %v1651_v19 = vld [vmem:[#allocation11 + $0x1a0] sm:$0xff]  ;;  %v1652_v38 = vld [vmem:[#allocation11 + $0x1a8] sm:$0xff]  ;;  %s11113_s6 = scalar_lea.vmem [#allocation4], %s10024_s12  ;;  %vm10677_vm1 = vmmov (%p1577_p5), 0   ;;  %s8905_s21 = sshll.u32 (%p1577_p5), %s10678_s20, 4  ;;  %s8906_s21 = int_to_ptr.vmem [resolvable:$true] %s8905_s21 }
 0x2b5   : > { %v9117_v57 = vcombine.high %v1647_v18, %v1651_v19  ;;  %v1639_v23 = vld [vmem:[#allocation11 + $0x140] sm:$0xff]  ;;  %2367 = vmatprep.subr.bf16.mxu0 %v9125_v15  ;;  %v9119_v24 = vcombine.high %v1648_v21, %v1652_v38  ;;  %v1640_v26 = vld [vmem:[#allocation11 + $0x148] sm:$0xff]  ;;  %2408 = vmatprep.subr.bf16.mxu1 %v9127_v4  ;;  %v9116_v28 = vcombine.low %v1647_v18, %v1651_v19  ;;  %s10608_s1 = scalar_lea.vmem (%p1577_p5), %s8906_s21, 128  ;;  %p10613_p7 = scmp.lt.s32.totalorder (%p1577_p5), %s8906_s21, %s8906_s21 }
 0x2b6   : > { %v1643_v25 = vld [vmem:[#allocation11 + $0x160] sm:$0xff]  ;;  %v1644_v27 = vld [vmem:[#allocation11 + $0x168] sm:$0xff]  ;;  %2368 = vmatpush1.bf16.msra.mxu0 %v9124_v17  ;;  %2409 = vmatpush1.bf16.msra.mxu1 %v9126_v20  ;;  %v9118_v1 = vcombine.low %v1648_v21, %v1652_v38  ;;  %p10609_p6 = scmp.ne.s32.totalorder (%p1577_p5), %s8906_s21, %s10608_s1  ;;  %p10614_p8 = scmp.lt.s32.totalorder (%p1577_p5), %s10608_s1, %s10608_s1 }
 0x2b7   : > { %2369 = vmatprep.subr.bf16.mxu0 %v9117_v57  ;;  %v9109_v29 = vcombine.high %v1639_v23, %v1643_v25  ;;  %2410 = vmatprep.subr.bf16.mxu1 %v9119_v24  ;;  %v9111_v30 = vcombine.high %v1640_v26, %v1644_v27  ;;  %v1631_v31 = vld [vmem:[#allocation11 + $0x100] sm:$0xff]  ;;  %v1632_v36 = vld [vmem:[#allocation11 + $0x108] sm:$0xff]  ;;  %v9108_v39 = vcombine.low %v1639_v23, %v1643_v25 }
 0x2b8   : > { %v1635_v35 = vld [vmem:[#allocation11 + $0x120] sm:$0xff]  ;;  %v1636_v37 = vld [vmem:[#allocation11 + $0x128] sm:$0xff]  ;;  %v9110_v40 = vcombine.low %v1640_v26, %v1644_v27  ;;  %p10615_p9 = por (%p1577_p5), %p10614_p8, %p10613_p7 }
 0x2b9   : > { %v9101_v50 = vcombine.high %v1631_v31, %v1635_v35  ;;  %v9103_v42 = vcombine.high %v1632_v36, %v1636_v37  ;;  %v1623_v44 = vld [vmem:[#allocation11 + $0xc0] sm:$0xff]  ;;  %v1624_v46 = vld [vmem:[#allocation11 + $0xc8] sm:$0xff]  ;;  %v9100_v48 = vcombine.low %v1631_v31, %v1635_v35  ;;  %v9102_v49 = vcombine.low %v1632_v36, %v1636_v37 }
 0x2ba   : > { %2370 = vmatpush1.bf16.msra.mxu0 %v9116_v28  ;;  %2411 = vmatpush1.bf16.msra.mxu1 %v9118_v1  ;;  %v1627_v45 = vld [vmem:[#allocation11 + $0xe0] sm:$0xff]  ;;  %v1628_v47 = vld [vmem:[#allocation11 + $0xe8] sm:$0xff]  ;;  %p10616_p10 = pnand (%p1577_p5), %p10615_p9, %p10609_p6 }
 0x2bb   : > { %2371 = vmatprep.subr.bf16.mxu0 %v9109_v29  ;;  %2412 = vmatprep.subr.bf16.mxu1 %v9111_v30  ;;  %v9093_v52 = vcombine.high %v1623_v44, %v1627_v45  ;;  %v9095_v53 = vcombine.high %v1624_v46, %v1628_v47  ;;  %v1615_v58 = vld [vmem:[#allocation11 + $0x80] sm:$0xff]  ;;  %v1616_v32 = vld [vmem:[#allocation11 + $0x88] sm:$0xff]  ;;  %v9092_v61 = vcombine.low %v1623_v44, %v1627_v45 }
 0x2bc   : > { %v1619_v59 = vld [vmem:[#allocation11 + $0xa0] sm:$0xff]  ;;  %v1620_v60 = vld [vmem:[#allocation11 + $0xa8] sm:$0xff]  ;;  %v9094_v62 = vcombine.low %v1624_v46, %v1628_v47 }
 0x2bd   : > { %v9085_v63 = vcombine.high %v1615_v58, %v1619_v59  ;;  %v9087_v2 = vcombine.high %v1616_v32, %v1620_v60  ;;  %v1607_v3 = vld [vmem:[#allocation11 + $0x40] sm:$0xff]  ;;  %v1608_v11 = vld [vmem:[#allocation11 + $0x48] sm:$0xff]  ;;  %v9084_v7 = vcombine.low %v1615_v58, %v1619_v59  ;;  %v9086_v8 = vcombine.low %v1616_v32, %v1620_v60 }
 0x2be   : > { %2372 = vmatpush1.bf16.msra.mxu0 %v9108_v39  ;;  %2413 = vmatpush1.bf16.msra.mxu1 %v9110_v40  ;;  %v1611_v5 = vld [vmem:[#allocation11 + $0x60] sm:$0xff]  ;;  %v1612_v6 = vld [vmem:[#allocation11 + $0x68] sm:$0xff] }
 0x2bf   : > { %2373 = vmatprep.subr.bf16.mxu0 %v9101_v50  ;;  %2414 = vmatprep.subr.bf16.mxu1 %v9103_v42  ;;  %v9077_v9 = vcombine.high %v1607_v3, %v1611_v5  ;;  %v1596_v56 = vld [vmem:[#allocation2] sm:$0xff]  ;;  %v9079_v12 = vcombine.high %v1608_v11, %v1612_v6  ;;  %v1600_v17 = vld [vmem:[#allocation11 + $0x8] sm:$0xff]  ;;  %v9076_v19 = vcombine.low %v1607_v3, %v1611_v5 }
 0x2c0   : > { %v1599_v10 = vld [vmem:[#allocation11] sm:$0xff]  ;;  %v11077_v16 = vpack.c.bf16 %v1596_v56, %v1596_v56  ;;  %v1604_v18 = vld [vmem:[#allocation11 + $0x28] sm:$0xff]  ;;  %v9078_v4 = vcombine.low %v1608_v11, %v1612_v6 }
 0x2c1   : > { %v1603_v15 = vld [vmem:[#allocation11 + $0x20] sm:$0xff]  ;;  %v9071_v57 = vcombine.high %v1600_v17, %v1604_v18  ;;  %v1720_v23 = vld [vmem:[#allocation11 + $0x3c8] sm:$0xff]  ;;  %v9070_v26 = vcombine.low %v1600_v17, %v1604_v18 }
 0x2c2   : > { %2374 = vmatpush1.bf16.msra.mxu0 %v9100_v48  ;;  %2415 = vmatpush1.bf16.msra.mxu1 %v9102_v49  ;;  %v9069_v20 = vcombine.high %v1599_v10, %v1603_v15  ;;  %v1719_v21 = vld [vmem:[#allocation11 + $0x3c0] sm:$0xff]  ;;  %v1724_v24 = vld [vmem:[#allocation11 + $0x3e8] sm:$0xff]  ;;  %v9068_v25 = vcombine.low %v1599_v10, %v1603_v15 }
 0x2c3   : > { %2375 = vmatprep.subr.bf16.mxu0 %v9093_v52  ;;  %2416 = vmatprep.subr.bf16.mxu1 %v9095_v53  ;;  %v1723_v38 = vld [vmem:[#allocation11 + $0x3e0] sm:$0xff]  ;;  %v9191_v28 = vcombine.high %v1720_v23, %v1724_v24  ;;  %v1712_v30 = vld [vmem:[#allocation11 + $0x388] sm:$0xff]  ;;  %v9190_v36 = vcombine.low %v1720_v23, %v1724_v24 }
 0x2c4   : > { %2399 = vmatprep.mubr.bf16.mxu0 %v11077_v16  ;;  %2440 = vmatprep.mubr.bf16.mxu1 %v11077_v16  ;;  %v9189_v27 = vcombine.high %v1719_v21, %v1723_v38  ;;  %v1711_v1 = vld [vmem:[#allocation11 + $0x380] sm:$0xff]  ;;  %v1716_v31 = vld [vmem:[#allocation11 + $0x3a8] sm:$0xff]  ;;  %v9188_v35 = vcombine.low %v1719_v21, %v1723_v38 }
 0x2c5   : > { %v1715_v29 = vld [vmem:[#allocation11 + $0x3a0] sm:$0xff]  ;;  %v9183_v39 = vcombine.high %v1712_v30, %v1716_v31  ;;  %v1704_v42 = vld [vmem:[#allocation11 + $0x348] sm:$0xff]  ;;  %v9182_v46 = vcombine.low %v1712_v30, %v1716_v31 }
 0x2c6   : > { %2376 = vmatpush1.bf16.msra.mxu0 %v9092_v61  ;;  %2417 = vmatpush1.bf16.msra.mxu1 %v9094_v62  ;;  %v9181_v37 = vcombine.high %v1711_v1, %v1715_v29  ;;  %v1703_v40 = vld [vmem:[#allocation11 + $0x340] sm:$0xff]  ;;  %v1708_v44 = vld [vmem:[#allocation11 + $0x368] sm:$0xff]  ;;  %v9180_v45 = vcombine.low %v1711_v1, %v1715_v29 }
 0x2c7   : > { %2377 = vmatprep.subr.bf16.mxu0 %v9085_v63  ;;  %2418 = vmatprep.subr.bf16.mxu1 %v9087_v2  ;;  %v1707_v50 = vld [vmem:[#allocation11 + $0x360] sm:$0xff]  ;;  %v9175_v48 = vcombine.high %v1704_v42, %v1708_v44  ;;  %v1696_v53 = vld [vmem:[#allocation11 + $0x308] sm:$0xff]  ;;  %v9174_v32 = vcombine.low %v1704_v42, %v1708_v44 }
 0x2c8   : > { %v9173_v47 = vcombine.high %v1703_v40, %v1707_v50  ;;  %v1695_v49 = vld [vmem:[#allocation11 + $0x300] sm:$0xff]  ;;  %v1700_v58 = vld [vmem:[#allocation11 + $0x328] sm:$0xff]  ;;  %v9172_v59 = vcombine.low %v1703_v40, %v1707_v50 }
 0x2c9   : > { %v1699_v52 = vld [vmem:[#allocation11 + $0x320] sm:$0xff]  ;;  %v9167_v61 = vcombine.high %v1696_v53, %v1700_v58  ;;  %v1688_v2 = vld [vmem:[#allocation11 + $0x2c8] sm:$0xff]  ;;  %v9166_v11 = vcombine.low %v1696_v53, %v1700_v58 }
 0x2ca   : > { %2378 = vmatpush1.bf16.msra.mxu0 %v9084_v7  ;;  %2419 = vmatpush1.bf16.msra.mxu1 %v9086_v8  ;;  %v9165_v60 = vcombine.high %v1695_v49, %v1699_v52  ;;  %v1687_v62 = vld [vmem:[#allocation11 + $0x2c0] sm:$0xff]  ;;  %v1692_v3 = vld [vmem:[#allocation11 + $0x2e8] sm:$0xff]  ;;  %v9164_v5 = vcombine.low %v1695_v49, %v1699_v52  ;;  %v1650_v49 = vld [vmem:[#allocation11 + $0x198] sm:$0xff] }
 0x2cb   : > { %2379 = vmatprep.subr.bf16.mxu0 %v9077_v9  ;;  %2420 = vmatprep.subr.bf16.mxu1 %v9079_v12  ;;  %v1691_v63 = vld [vmem:[#allocation11 + $0x2e0] sm:$0xff]  ;;  %v9159_v7 = vcombine.high %v1688_v2, %v1692_v3  ;;  %v1680_v56 = vld [vmem:[#allocation11 + $0x288] sm:$0xff]  ;;  %v9158_v15 = vcombine.low %v1688_v2, %v1692_v3  ;;  %v1654_v52 = vld [vmem:[#allocation11 + $0x1b8] sm:$0xff] }
 0x2cc   : > { %v9157_v6 = vcombine.high %v1687_v62, %v1691_v63  ;;  %v1679_v8 = vld [vmem:[#allocation11 + $0x280] sm:$0xff]  ;;  %v1684_v12 = vld [vmem:[#allocation11 + $0x2a8] sm:$0xff]  ;;  %v9156_v10 = vcombine.low %v1687_v62, %v1691_v63  ;;  %v1642_v62 = vld [vmem:[#allocation11 + $0x158] sm:$0xff]  ;;  %v9122_v3 = vcombine.low %v1650_v49, %v1654_v52 }
 0x2cd   : > { %v1683_v9 = vld [vmem:[#allocation11 + $0x2a0] sm:$0xff]  ;;  %v9151_v18 = vcombine.high %v1680_v56, %v1684_v12  ;;  %v9150_v38 = vcombine.low %v1680_v56, %v1684_v12  ;;  %v1595_v50 = vld [vmem:[#allocation2 + $0x10] sm:$0xff]  ;;  %v1646_v63 = vld [vmem:[#allocation11 + $0x178] sm:$0xff] }
 0x2ce   : > { %2380 = vmatpush1.bf16.msra.mxu0 %v9076_v19  ;;  %2421 = vmatpush1.bf16.msra.mxu1 %v9078_v4  ;;  %v9149_v17 = vcombine.high %v1679_v8, %v1683_v9  ;;  %v1671_v19 = vld [vmem:[#allocation11 + $0x240] sm:$0xff]  ;;  %v9148_v21 = vcombine.low %v1679_v8, %v1683_v9  ;;  %v1634_v8 = vld [vmem:[#allocation11 + $0x118] sm:$0xff]  ;;  %v9114_v12 = vcombine.low %v1642_v62, %v1646_v63 }
 0x2cf   : > { %2381 = vmatprep.subr.bf16.mxu0 %v9069_v20  ;;  %2422 = vmatprep.subr.bf16.mxu1 %v9071_v57  ;;  %v1675_v4 = vld [vmem:[#allocation11 + $0x260] sm:$0xff]  ;;  %v1672_v20 = vld [vmem:[#allocation11 + $0x248] sm:$0xff]  ;;  %v1638_v9 = vld [vmem:[#allocation11 + $0x138] sm:$0xff] }
 0x2d0   : > { %v1676_v57 = vld [vmem:[#allocation11 + $0x268] sm:$0xff]  ;;  %v9141_v23 = vcombine.high %v1671_v19, %v1675_v4  ;;  %v9140_v1 = vcombine.low %v1671_v19, %v1675_v4  ;;  %v1626_v19 = vld [vmem:[#allocation11 + $0xd8] sm:$0xff] }
 0x2d1   : > { %v9143_v24 = vcombine.high %v1672_v20, %v1676_v57  ;;  %v9142_v29 = vcombine.low %v1672_v20, %v1676_v57  ;;  %v1630_v4 = vld [vmem:[#allocation11 + $0xf8] sm:$0xff]  ;;  %v9106_v57 = vcombine.low %v1634_v8, %v1638_v9 }
 0x2d2   : > { %2382 = vmatpush1.bf16.msra.mxu0 %v9068_v25  ;;  %2423 = vmatpush1.bf16.msra.mxu1 %v9070_v26  ;;  %v1663_v25 = vld [vmem:[#allocation11 + $0x200] sm:$0xff] }
 0x2d3   : > { %2383 = vmatprep.subr.bf16.mxu0 %v9189_v27  ;;  %2424 = vmatprep.subr.bf16.mxu1 %v9191_v28  ;;  %v1667_v26 = vld [vmem:[#allocation11 + $0x220] sm:$0xff]  ;;  %v1664_v27 = vld [vmem:[#allocation11 + $0x208] sm:$0xff] }
 0x2d4   : > { %v1668_v28 = vld [vmem:[#allocation11 + $0x228] sm:$0xff]  ;;  %v9133_v30 = vcombine.high %v1663_v25, %v1667_v26  ;;  %v9132_v40 = vcombine.low %v1663_v25, %v1667_v26  ;;  %v1622_v25 = vld [vmem:[#allocation11 + $0xb8] sm:$0xff] }
 0x2d5   : > { %v9135_v31 = vcombine.high %v1664_v27, %v1668_v28  ;;  %v9134_v42 = vcombine.low %v1664_v27, %v1668_v28  ;;  %v9098_v27 = vcombine.low %v1626_v19, %v1630_v4 }
 0x2d6   : > { %2384 = vmatpush2.bf16.msra.mxu0 %v9188_v35  ;;  %2425 = vmatpush2.bf16.msra.mxu1 %v9190_v36  ;;  %v1657_v35 = vld [vmem:[#allocation11 + $0x1d0] sm:$0xff] }
 0x2d7   : > { %2385 = vmatprep.subr.bf16.mxu0 %v9181_v37  ;;  %2426 = vmatprep.subr.bf16.mxu1 %v9183_v39  ;;  %v1661_v36 = vld [vmem:[#allocation11 + $0x1f0] sm:$0xff]  ;;  %v1658_v37 = vld [vmem:[#allocation11 + $0x1d8] sm:$0xff] }
 0x2d8   : > { %v1662_v39 = vld [vmem:[#allocation11 + $0x1f8] sm:$0xff]  ;;  %v9129_v44 = vcombine.high %v1657_v35, %v1661_v36  ;;  %v9128_v53 = vcombine.low %v1657_v35, %v1661_v36 }
 0x2d9   : > { %v9130_v58 = vcombine.low %v1658_v37, %v1662_v39  ;;  %v1614_v35 = vld [vmem:[#allocation11 + $0x78] sm:$0xff] }
 0x2da   : > { %2386 = vmatpush2.bf16.msra.mxu0 %v9180_v45  ;;  %2427 = vmatpush2.bf16.msra.mxu1 %v9182_v46  ;;  %v9131_v45 = vcombine.high %v1658_v37, %v1662_v39  ;;  %v1649_v46 = vld [vmem:[#allocation11 + $0x190] sm:$0xff] }
 0x2db   : > { %2387 = vmatprep.subr.bf16.mxu0 %v9173_v47  ;;  %2428 = vmatprep.subr.bf16.mxu1 %v9175_v48  ;;  %v1653_v47 = vld [vmem:[#allocation11 + $0x1b0] sm:$0xff]  ;;  %v11081_v48 = vpack.c.bf16 %v1595_v50, %v1595_v50 }
 0x2dc   : > { %v9120_v2 = vcombine.low %v1649_v46, %v1653_v47  ;;  %v1601_v50 = vld [vmem:[#allocation11 + $0x10] sm:$0xff] }
 0x2de   : > { %2388 = vmatpush2.bf16.msra.mxu0 %v9172_v59  ;;  %2429 = vmatpush2.bf16.msra.mxu1 %v9174_v32  ;;  %v9121_v59 = vcombine.high %v1649_v46, %v1653_v47  ;;  %v9123_v32 = vcombine.high %v1650_v49, %v1654_v52 }
 0x2df   : > { %2389 = vmatprep.subr.bf16.mxu0 %v9165_v60  ;;  %2430 = vmatprep.subr.bf16.mxu1 %v9167_v61  ;;  %v1641_v60 = vld [vmem:[#allocation11 + $0x150] sm:$0xff] }
 0x2e0   : > { %v1645_v61 = vld [vmem:[#allocation11 + $0x170] sm:$0xff] }
 0x2e1   : > { %v9112_v56 = vcombine.low %v1641_v60, %v1645_v61 }
 0x2e2   : > { %2390 = vmatpush2.bf16.msra.mxu0 %v9164_v5  ;;  %2431 = vmatpush2.bf16.msra.mxu1 %v9166_v11  ;;  %v9113_v5 = vcombine.high %v1641_v60, %v1645_v61  ;;  %v9115_v11 = vcombine.high %v1642_v62, %v1646_v63 }
 0x2e3   : > { %2391 = vmatprep.subr.bf16.mxu0 %v9157_v6  ;;  %2432 = vmatprep.subr.bf16.mxu1 %v9159_v7  ;;  %v1633_v6 = vld [vmem:[#allocation11 + $0x110] sm:$0xff] }
 0x2e4   : > { %v1637_v7 = vld [vmem:[#allocation11 + $0x130] sm:$0xff] }
 0x2e5   : > { %v9104_v20 = vcombine.low %v1633_v6, %v1637_v7 }
 0x2e6   : > { %2392 = vmatpush2.bf16.msra.mxu0 %v9156_v10  ;;  %2433 = vmatpush2.bf16.msra.mxu1 %v9158_v15  ;;  %v9105_v10 = vcombine.high %v1633_v6, %v1637_v7  ;;  %v9107_v15 = vcombine.high %v1634_v8, %v1638_v9 }
 0x2e7   : > { %2393 = vmatprep.subr.bf16.mxu0 %v9149_v17  ;;  %2434 = vmatprep.subr.bf16.mxu1 %v9151_v18  ;;  %v1625_v17 = vld [vmem:[#allocation11 + $0xd0] sm:$0xff] }
 0x2e8   : > { %v1629_v18 = vld [vmem:[#allocation11 + $0xf0] sm:$0xff] }
 0x2e9   : > { %v9096_v26 = vcombine.low %v1625_v17, %v1629_v18 }
 0x2ea   : > { %2394 = vmatpush2.bf16.msra.mxu0 %v9148_v21  ;;  %2435 = vmatpush2.bf16.msra.mxu1 %v9150_v38  ;;  %v9097_v21 = vcombine.high %v1625_v17, %v1629_v18  ;;  %v1617_v38 = vld [vmem:[#allocation11 + $0x90] sm:$0xff] }
 0x2eb   : > { %2395 = vmatprep.subr.bf16.mxu0 %v9141_v23  ;;  %2436 = vmatprep.subr.bf16.mxu1 %v9143_v24  ;;  %v1621_v23 = vld [vmem:[#allocation11 + $0xb0] sm:$0xff]  ;;  %v1618_v24 = vld [vmem:[#allocation11 + $0x98] sm:$0xff] }
 0x2ec   : > { %v9089_v28 = vcombine.high %v1617_v38, %v1621_v23  ;;  %v9088_v36 = vcombine.low %v1617_v38, %v1621_v23  ;;  %v9090_v37 = vcombine.low %v1618_v24, %v1622_v25 }
 0x2ee   : > { %2396 = vmatpush2.bf16.msra.mxu0 %v9140_v1  ;;  %2437 = vmatpush2.bf16.msra.mxu1 %v9142_v29  ;;  %v9091_v1 = vcombine.high %v1618_v24, %v1622_v25  ;;  %v1609_v29 = vld [vmem:[#allocation11 + $0x50] sm:$0xff] }
 0x2ef   : > { %2397 = vmatprep.subr.bf16.mxu0 %v9133_v30  ;;  %2438 = vmatprep.subr.bf16.mxu1 %v9135_v31  ;;  %v1613_v30 = vld [vmem:[#allocation11 + $0x70] sm:$0xff]  ;;  %v1610_v31 = vld [vmem:[#allocation11 + $0x58] sm:$0xff] }
 0x2f0   : > { %v9081_v39 = vcombine.high %v1609_v29, %v1613_v30  ;;  %v9080_v46 = vcombine.low %v1609_v29, %v1613_v30  ;;  %v9082_v47 = vcombine.low %v1610_v31, %v1614_v35 }
 0x2f2   : > { %2398 = vmatpush2.bf16.msra.mxu0 %v9132_v40  ;;  %2439 = vmatpush2.bf16.msra.mxu1 %v9134_v42  ;;  %v9083_v40 = vcombine.high %v1610_v31, %v1614_v35  ;;  %v1605_v42 = vld [vmem:[#allocation11 + $0x30] sm:$0xff] }
 0x2f3   : > { %2449 = vmatprep.subr.bf16.mxu0 %v9129_v44  ;;  %2490 = vmatprep.subr.bf16.mxu1 %v9131_v45  ;;  %v1602_v44 = vld [vmem:[#allocation11 + $0x18] sm:$0xff]  ;;  %v9073_v49 = vcombine.high %v1601_v50, %v1605_v42  ;;  %v9072_v60 = vcombine.low %v1601_v50, %v1605_v42 }
 0x2f4   : > { %v1606_v45 = vld [vmem:[#allocation11 + $0x38] sm:$0xff] }
 0x2f5   : > { %2400 = vmatmul.mubr.bf16.vlgmr.msra.gmra.mxu0 %v11081_v48  ;;  %2441 = vmatmul.mubr.bf16.vlgmr.msra.gmra.mxu1 %v11081_v48  ;;  %v9075_v52 = vcombine.high %v1602_v44, %v1606_v45  ;;  %v9074_v61 = vcombine.low %v1602_v44, %v1606_v45 }
 0x2f6   : > { %2450 = vmatpush1.bf16.msra.mxu0 %v9128_v53  ;;  %2491 = vmatpush1.bf16.msra.mxu1 %v9130_v58  ;;  %v1721_v53 = vld [vmem:[#allocation11 + $0x3d0] sm:$0xff] }
 0x2f7   : > { %2451 = vmatprep.subr.bf16.mxu0 %v9121_v59  ;;  %2492 = vmatprep.subr.bf16.mxu1 %v9123_v32  ;;  %v1725_v58 = vld [vmem:[#allocation11 + $0x3f0] sm:$0xff]  ;;  %v1722_v59 = vld [vmem:[#allocation11 + $0x3d8] sm:$0xff] }
 0x2f8   : > { %2481 = vmatprep.mubr.bf16.mxu0 %v11077_v16  ;;  %2522 = vmatprep.mubr.bf16.mxu1 %v11077_v16  ;;  %v9099_v16 = vcombine.high %v1626_v19, %v1630_v4  ;;  %v1726_v32 = vld [vmem:[#allocation11 + $0x3f8] sm:$0xff]  ;;  %v9193_v62 = vcombine.high %v1721_v53, %v1725_v58  ;;  %v9192_v6 = vcombine.low %v1721_v53, %v1725_v58 }
 0x2f9   : > { %v9195_v63 = vcombine.high %v1722_v59, %v1726_v32  ;;  %v9194_v7 = vcombine.low %v1722_v59, %v1726_v32 }
 0x2fa   : > { %2452 = vmatpush1.bf16.msra.mxu0 %v9120_v2  ;;  %2493 = vmatpush1.bf16.msra.mxu1 %v9122_v3  ;;  %v1713_v2 = vld [vmem:[#allocation11 + $0x390] sm:$0xff] }
 0x2fb   : > { %2453 = vmatprep.subr.bf16.mxu0 %v9113_v5  ;;  %2494 = vmatprep.subr.bf16.mxu1 %v9115_v11  ;;  %v1717_v3 = vld [vmem:[#allocation11 + $0x3b0] sm:$0xff]  ;;  %v1714_v5 = vld [vmem:[#allocation11 + $0x398] sm:$0xff] }
 0x2fc   : > { %v1718_v11 = vld [vmem:[#allocation11 + $0x3b8] sm:$0xff]  ;;  %v9185_v8 = vcombine.high %v1713_v2, %v1717_v3  ;;  %v9184_v17 = vcombine.low %v1713_v2, %v1717_v3 }
 0x2fd   : > { %v9187_v9 = vcombine.high %v1714_v5, %v1718_v11  ;;  %v9186_v18 = vcombine.low %v1714_v5, %v1718_v11 }
 0x2fe   : > { %2454 = vmatpush1.bf16.msra.mxu0 %v9112_v56  ;;  %2495 = vmatpush1.bf16.msra.mxu1 %v9114_v12  ;;  %v1705_v56 = vld [vmem:[#allocation11 + $0x350] sm:$0xff] }
 0x2ff   : > { %2455 = vmatprep.subr.bf16.mxu0 %v9105_v10  ;;  %2496 = vmatprep.subr.bf16.mxu1 %v9107_v15  ;;  %v1709_v12 = vld [vmem:[#allocation11 + $0x370] sm:$0xff]  ;;  %v1706_v10 = vld [vmem:[#allocation11 + $0x358] sm:$0xff] }
 0x300   : > { %v1710_v15 = vld [vmem:[#allocation11 + $0x378] sm:$0xff]  ;;  %v9177_v19 = vcombine.high %v1705_v56, %v1709_v12  ;;  %v9176_v38 = vcombine.low %v1705_v56, %v1709_v12  ;;  %v2655_v56 = vld [vmem:[#allocation14 + $0x1c0] sm:$0xff] }
 0x301   : > { %v9179_v4 = vcombine.high %v1706_v10, %v1710_v15  ;;  %v9178_v23 = vcombine.low %v1706_v10, %v1710_v15  ;;  %v2659_v15 = vld [vmem:[#allocation14 + $0x1e0] sm:$0xff] }
 0x302   : > { %2456 = vmatpush1.bf16.msra.mxu0 %v9104_v20  ;;  %2497 = vmatpush1.bf16.msra.mxu1 %v9106_v57  ;;  %v1697_v20 = vld [vmem:[#allocation11 + $0x310] sm:$0xff] }
 0x303   : > { %2457 = vmatprep.subr.bf16.mxu0 %v9097_v21  ;;  %2498 = vmatprep.subr.bf16.mxu1 %v9099_v16  ;;  %v1701_v57 = vld [vmem:[#allocation11 + $0x330] sm:$0xff]  ;;  %v1698_v21 = vld [vmem:[#allocation11 + $0x318] sm:$0xff] }
 0x304   : > { %v1702_v16 = vld [vmem:[#allocation11 + $0x338] sm:$0xff]  ;;  %v9169_v24 = vcombine.high %v1697_v20, %v1701_v57  ;;  %v9168_v29 = vcombine.low %v1697_v20, %v1701_v57  ;;  %v2647_v57 = vld [vmem:[#allocation14 + $0x180] sm:$0xff] }
 0x305   : > { %v9171_v25 = vcombine.high %v1698_v21, %v1702_v16  ;;  %v9170_v30 = vcombine.low %v1698_v21, %v1702_v16  ;;  %v2651_v21 = vld [vmem:[#allocation14 + $0x1a0] sm:$0xff] }
 0x306   : > { %2458 = vmatpush1.bf16.msra.mxu0 %v9096_v26  ;;  %2499 = vmatpush1.bf16.msra.mxu1 %v9098_v27  ;;  %v1689_v26 = vld [vmem:[#allocation11 + $0x2d0] sm:$0xff]  ;;  %v2767_v16 = vld [vmem:[#allocation14 + $0x540] sm:$0xff] }
 0x307   : > { %2459 = vmatprep.subr.bf16.mxu0 %v9089_v28  ;;  %2500 = vmatprep.subr.bf16.mxu1 %v9091_v1  ;;  %v1693_v27 = vld [vmem:[#allocation11 + $0x2f0] sm:$0xff]  ;;  %v1690_v28 = vld [vmem:[#allocation11 + $0x2d8] sm:$0xff] }
 0x308   : > { %v1694_v1 = vld [vmem:[#allocation11 + $0x2f8] sm:$0xff]  ;;  %v9161_v31 = vcombine.high %v1689_v26, %v1693_v27  ;;  %v9160_v50 = vcombine.low %v1689_v26, %v1693_v27  ;;  %v9250_v26 = vcombine.low %v2647_v57, %v2651_v21 }
 0x309   : > { %v9163_v35 = vcombine.high %v1690_v28, %v1694_v1  ;;  %v9162_v42 = vcombine.low %v1690_v28, %v1694_v1  ;;  %v2759_v1 = vld [vmem:[#allocation14 + $0x500] sm:$0xff] }
 0x30a   : > { %2460 = vmatpush1.bf16.msra.mxu0 %v9088_v36  ;;  %2501 = vmatpush1.bf16.msra.mxu1 %v9090_v37  ;;  %v1681_v36 = vld [vmem:[#allocation11 + $0x290] sm:$0xff] }
 0x30b   : > { %2461 = vmatprep.subr.bf16.mxu0 %v9081_v39  ;;  %2502 = vmatprep.subr.bf16.mxu1 %v9083_v40  ;;  %v1685_v37 = vld [vmem:[#allocation11 + $0x2b0] sm:$0xff]  ;;  %v1682_v39 = vld [vmem:[#allocation11 + $0x298] sm:$0xff] }
 0x30c   : > { %v1686_v40 = vld [vmem:[#allocation11 + $0x2b8] sm:$0xff]  ;;  %v9153_v44 = vcombine.high %v1681_v36, %v1685_v37  ;;  %v9152_v53 = vcombine.low %v1681_v36, %v1685_v37 }
 0x30d   : > { %v9155_v45 = vcombine.high %v1682_v39, %v1686_v40  ;;  %v9154_v58 = vcombine.low %v1682_v39, %v1686_v40  ;;  %v2751_v40 = vld [vmem:[#allocation14 + $0x4c0] sm:$0xff] }
 0x30e   : > { %2462 = vmatpush1.bf16.msra.mxu0 %v9080_v46  ;;  %2503 = vmatpush1.bf16.msra.mxu1 %v9082_v47  ;;  %v1673_v46 = vld [vmem:[#allocation11 + $0x250] sm:$0xff] }
 0x30f   : > { %2463 = vmatprep.subr.bf16.mxu0 %v9073_v49  ;;  %2504 = vmatprep.subr.bf16.mxu1 %v9075_v52  ;;  %v1677_v47 = vld [vmem:[#allocation11 + $0x270] sm:$0xff]  ;;  %v1674_v49 = vld [vmem:[#allocation11 + $0x258] sm:$0xff] }
 0x310   : > { %v1678_v52 = vld [vmem:[#allocation11 + $0x278] sm:$0xff]  ;;  %v9145_v59 = vcombine.high %v1673_v46, %v1677_v47  ;;  %v9144_v2 = vcombine.low %v1673_v46, %v1677_v47 }
 0x311   : > { %v9147_v32 = vcombine.high %v1674_v49, %v1678_v52  ;;  %v9146_v3 = vcombine.low %v1674_v49, %v1678_v52  ;;  %v2743_v52 = vld [vmem:[#allocation14 + $0x480] sm:$0xff] }
 0x312   : > { %2464 = vmatpush1.bf16.msra.mxu0 %v9072_v60  ;;  %2505 = vmatpush1.bf16.msra.mxu1 %v9074_v61  ;;  %v1665_v60 = vld [vmem:[#allocation11 + $0x210] sm:$0xff] }
 0x313   : > { %2465 = vmatprep.subr.bf16.mxu0 %v9193_v62  ;;  %2506 = vmatprep.subr.bf16.mxu1 %v9195_v63  ;;  %v1669_v61 = vld [vmem:[#allocation11 + $0x230] sm:$0xff]  ;;  %v1666_v62 = vld [vmem:[#allocation11 + $0x218] sm:$0xff] }
 0x314   : > { %v1670_v63 = vld [vmem:[#allocation11 + $0x238] sm:$0xff]  ;;  %v9137_v5 = vcombine.high %v1665_v60, %v1669_v61 }
 0x315   : > { %v9139_v11 = vcombine.high %v1666_v62, %v1670_v63 }
 0x316   : > { %2466 = vmatpush2.bf16.msra.mxu0 %v9192_v6  ;;  %2507 = vmatpush2.bf16.msra.mxu1 %v9194_v7  ;;  %v9136_v6 = vcombine.low %v1665_v60, %v1669_v61  ;;  %v9138_v7 = vcombine.low %v1666_v62, %v1670_v63  ;;  %v2735_v63 = vld [vmem:[#allocation14 + $0x440] sm:$0xff] }
 0x317   : > { %2467 = vmatprep.subr.bf16.mxu0 %v9185_v8  ;;  %2508 = vmatprep.subr.bf16.mxu1 %v9187_v9  ;;  %v2783_v8 = vld [vmem:[#allocation14 + $0x5c0] sm:$0xff] }
 0x318   : > { %v2787_v9 = vld [vmem:[#allocation14 + $0x5e0] sm:$0xff] }
 0x319   : > { %v9386_v12 = vcombine.low %v2783_v8, %v2787_v9  ;;  %v9387_v10 = vcombine.high %v2783_v8, %v2787_v9  ;;  %v2611_v8 = vld [vmem:[#allocation14 + $0x60] sm:$0xff] }
 0x31a   : > { %2468 = vmatpush2.bf16.msra.mxu0 %v9184_v17  ;;  %2509 = vmatpush2.bf16.msra.mxu1 %v9186_v18  ;;  %v2775_v17 = vld [vmem:[#allocation14 + $0x580] sm:$0xff] }
 0x31b   : > { %2469 = vmatprep.subr.bf16.mxu0 %v9177_v19  ;;  %2510 = vmatprep.subr.bf16.mxu1 %v9179_v4  ;;  %v2779_v18 = vld [vmem:[#allocation14 + $0x5a0] sm:$0xff]  ;;  %v9258_v19 = vcombine.low %v2655_v56, %v2659_v15  ;;  %v9259_v4 = vcombine.high %v2655_v56, %v2659_v15 }
 0x31c   : > { %v9379_v20 = vcombine.high %v2775_v17, %v2779_v18  ;;  %v2727_v9 = vld [vmem:[#allocation14 + $0x400] sm:$0xff] }
 0x31e   : > { %2470 = vmatpush2.bf16.msra.mxu0 %v9176_v38  ;;  %2511 = vmatpush2.bf16.msra.mxu1 %v9178_v23  ;;  %v9251_v38 = vcombine.high %v2647_v57, %v2651_v21  ;;  %v2771_v23 = vld [vmem:[#allocation14 + $0x560] sm:$0xff] }
 0x31f   : > { %2471 = vmatprep.subr.bf16.mxu0 %v9169_v24  ;;  %2512 = vmatprep.subr.bf16.mxu1 %v9171_v25  ;;  %v2639_v24 = vld [vmem:[#allocation14 + $0x140] sm:$0xff]  ;;  %v9371_v27 = vcombine.high %v2767_v16, %v2771_v23 }
 0x320   : > { %v2643_v25 = vld [vmem:[#allocation14 + $0x160] sm:$0xff] }
 0x321   : > { %v9243_v28 = vcombine.high %v2639_v24, %v2643_v25  ;;  %v9242_v36 = vcombine.low %v2639_v24, %v2643_v25  ;;  %v2723_v24 = vld [vmem:[#allocation14 + $0x3e0] sm:$0xff] }
 0x322   : > { %2472 = vmatpush2.bf16.msra.mxu0 %v9168_v29  ;;  %2513 = vmatpush2.bf16.msra.mxu1 %v9170_v30  ;;  %v2763_v29 = vld [vmem:[#allocation14 + $0x520] sm:$0xff] }
 0x323   : > { %2473 = vmatprep.subr.bf16.mxu0 %v9161_v31  ;;  %2514 = vmatprep.subr.bf16.mxu1 %v9163_v35  ;;  %v2631_v30 = vld [vmem:[#allocation14 + $0x100] sm:$0xff]  ;;  %v9370_v35 = vcombine.low %v2767_v16, %v2771_v23  ;;  %v9363_v37 = vcombine.high %v2759_v1, %v2763_v29 }
 0x324   : > { %v2635_v31 = vld [vmem:[#allocation14 + $0x120] sm:$0xff] }
 0x325   : > { %v9235_v39 = vcombine.high %v2631_v30, %v2635_v31  ;;  %v9234_v46 = vcombine.low %v2631_v30, %v2635_v31  ;;  %v2719_v23 = vld [vmem:[#allocation14 + $0x3c0] sm:$0xff] }
 0x326   : > { %2474 = vmatpush2.bf16.msra.mxu0 %v9160_v50  ;;  %2515 = vmatpush2.bf16.msra.mxu1 %v9162_v42  ;;  %v2755_v50 = vld [vmem:[#allocation14 + $0x4e0] sm:$0xff] }
 0x327   : > { %2475 = vmatprep.subr.bf16.mxu0 %v9153_v44  ;;  %2516 = vmatprep.subr.bf16.mxu1 %v9155_v45  ;;  %v2623_v42 = vld [vmem:[#allocation14 + $0xc0] sm:$0xff]  ;;  %v9362_v45 = vcombine.low %v2759_v1, %v2763_v29  ;;  %v9355_v47 = vcombine.high %v2751_v40, %v2755_v50 }
 0x328   : > { %v2627_v44 = vld [vmem:[#allocation14 + $0xe0] sm:$0xff] }
 0x329   : > { %v9227_v49 = vcombine.high %v2623_v42, %v2627_v44  ;;  %v9226_v60 = vcombine.low %v2623_v42, %v2627_v44  ;;  %v2839_v25 = vld [vmem:[#allocation14 + $0x780] sm:$0xff] }
 0x32a   : > { %2476 = vmatpush2.bf16.msra.mxu0 %v9152_v53  ;;  %2517 = vmatpush2.bf16.msra.mxu1 %v9154_v58  ;;  %v2747_v53 = vld [vmem:[#allocation14 + $0x4a0] sm:$0xff] }
 0x32b   : > { %2477 = vmatprep.subr.bf16.mxu0 %v9145_v59  ;;  %2518 = vmatprep.subr.bf16.mxu1 %v9147_v32  ;;  %v2615_v58 = vld [vmem:[#allocation14 + $0x80] sm:$0xff]  ;;  %v9354_v32 = vcombine.low %v2751_v40, %v2755_v50  ;;  %v9347_v61 = vcombine.high %v2743_v52, %v2747_v53 }
 0x32c   : > { %v2619_v59 = vld [vmem:[#allocation14 + $0xa0] sm:$0xff] }
 0x32d   : > { %v9219_v62 = vcombine.high %v2615_v58, %v2619_v59  ;;  %v2711_v29 = vld [vmem:[#allocation14 + $0x380] sm:$0xff] }
 0x32e   : > { %2478 = vmatpush2.bf16.msra.mxu0 %v9144_v2  ;;  %2519 = vmatpush2.bf16.msra.mxu1 %v9146_v3  ;;  %v2739_v2 = vld [vmem:[#allocation14 + $0x460] sm:$0xff]  ;;  %v9346_v3 = vcombine.low %v2743_v52, %v2747_v53 }
 0x32f   : > { %2479 = vmatprep.subr.bf16.mxu0 %v9137_v5  ;;  %2520 = vmatprep.subr.bf16.mxu1 %v9139_v11  ;;  %v9218_v5 = vcombine.low %v2615_v58, %v2619_v59  ;;  %v9339_v11 = vcombine.high %v2735_v63, %v2739_v2  ;;  %v2715_v30 = vld [vmem:[#allocation14 + $0x3a0] sm:$0xff] }
 0x330   : > { %v2831_v31 = vld [vmem:[#allocation14 + $0x740] sm:$0xff] }
 0x331   : > { %v2703_v50 = vld [vmem:[#allocation14 + $0x340] sm:$0xff] }
 0x332   : > { %2480 = vmatpush2.bf16.msra.mxu0 %v9136_v6  ;;  %2521 = vmatpush2.bf16.msra.mxu1 %v9138_v7  ;;  %v9338_v6 = vcombine.low %v2735_v63, %v2739_v2  ;;  %v2607_v7 = vld [vmem:[#allocation14 + $0x40] sm:$0xff] }
 0x333   : > { %4222 = vmatprep.subr.bf16.mxu1 %v9387_v10  ;;  %4181 = vmatprep.subr.bf16.mxu0 %v9259_v4  ;;  %v9211_v56 = vcombine.high %v2607_v7, %v2611_v8  ;;  %v9210_v10 = vcombine.low %v2607_v7, %v2611_v8  ;;  %v2847_v4 = vld [vmem:[#allocation14 + $0x7c0] sm:$0xff] }
 0x334   : > { %v2707_v42 = vld [vmem:[#allocation14 + $0x360] sm:$0xff] }
 0x335   : > { %2482 = vmatmul.mubr.bf16.vlgmr.msra.gmra.mxu0 %v11081_v48  ;;  %2523 = vmatmul.mubr.bf16.vlgmr.msra.gmra.mxu1 %v11081_v48  ;;  %v9378_v48 = vcombine.low %v2775_v17, %v2779_v18  ;;  %v2599_v18 = vld [vmem:[#allocation14] sm:$0xff] }
 0x336   : > { %4223 = vmatpush1.bf16.msra.mxu1 %v9386_v12  ;;  %4182 = vmatpush1.bf16.msra.mxu0 %v9258_v19  ;;  %v2731_v12 = vld [vmem:[#allocation14 + $0x420] sm:$0xff] }
 0x337   : > { %4224 = vmatprep.subr.bf16.mxu1 %v9379_v20  ;;  %4183 = vmatprep.subr.bf16.mxu0 %v9251_v38  ;;  %v9330_v15 = vcombine.low %v2727_v9, %v2731_v12  ;;  %v9331_v17 = vcombine.high %v2727_v9, %v2731_v12  ;;  %v2603_v19 = vld [vmem:[#allocation14 + $0x20] sm:$0xff] }
 0x338   : > { %v2851_v20 = vld [vmem:[#allocation14 + $0x7e0] sm:$0xff]  ;;  %v9202_v57 = vcombine.low %v2599_v18, %v2603_v19  ;;  %v9203_v21 = vcombine.high %v2599_v18, %v2603_v19 }
 0x339   : > { %v9450_v16 = vcombine.low %v2847_v4, %v2851_v20  ;;  %v9451_v38 = vcombine.high %v2847_v4, %v2851_v20  ;;  %v2823_v44 = vld [vmem:[#allocation14 + $0x700] sm:$0xff] }
 0x33a   : > { %4225 = vmatpush1.bf16.msra.mxu1 %v9378_v48  ;;  %4184 = vmatpush1.bf16.msra.mxu0 %v9250_v26  ;;  %v9323_v48 = vcombine.high %v2719_v23, %v2723_v24  ;;  %v2843_v26 = vld [vmem:[#allocation14 + $0x7a0] sm:$0xff] }
 0x33b   : > { %4226 = vmatprep.subr.bf16.mxu1 %v9371_v27  ;;  %4185 = vmatprep.subr.bf16.mxu0 %v9243_v28  ;;  %v9322_v27 = vcombine.low %v2719_v23, %v2723_v24  ;;  %v9442_v28 = vcombine.low %v2839_v25, %v2843_v26  ;;  %v9443_v1 = vcombine.high %v2839_v25, %v2843_v26  ;;  %v2695_v53 = vld [vmem:[#allocation14 + $0x300] sm:$0xff] }
 0x33c   : > { %v2699_v58 = vld [vmem:[#allocation14 + $0x320] sm:$0xff] }
 0x33d   : > { %v2815_v59 = vld [vmem:[#allocation14 + $0x6c0] sm:$0xff] }
 0x33e   : > { %4227 = vmatpush1.bf16.msra.mxu1 %v9370_v35  ;;  %4186 = vmatpush1.bf16.msra.mxu0 %v9242_v36  ;;  %v9315_v35 = vcombine.high %v2711_v29, %v2715_v30  ;;  %v2835_v36 = vld [vmem:[#allocation14 + $0x760] sm:$0xff] }
 0x33f   : > { %4228 = vmatprep.subr.bf16.mxu1 %v9363_v37  ;;  %4187 = vmatprep.subr.bf16.mxu0 %v9235_v39  ;;  %v9314_v37 = vcombine.low %v2711_v29, %v2715_v30  ;;  %v9434_v39 = vcombine.low %v2831_v31, %v2835_v36  ;;  %v9435_v40 = vcombine.high %v2831_v31, %v2835_v36  ;;  %v2687_v2 = vld [vmem:[#allocation14 + $0x2c0] sm:$0xff]  ;;  %v2594_v30 = vld [vmem:[#allocation2 + $0x18] sm:$0xff] }
 0x340   : > { %v2811_v7 = vld [vmem:[#allocation14 + $0x6a0] sm:$0xff]  ;;  %v11092_v36 = vpack.c.bf16 %v2594_v30, %v2594_v30 }
 0x341   : > { %v2679_v8 = vld [vmem:[#allocation14 + $0x280] sm:$0xff] }
 0x342   : > { %4229 = vmatpush1.bf16.msra.mxu1 %v9362_v45  ;;  %4188 = vmatpush1.bf16.msra.mxu0 %v9234_v46  ;;  %v9307_v45 = vcombine.high %v2703_v50, %v2707_v42  ;;  %v2827_v46 = vld [vmem:[#allocation14 + $0x720] sm:$0xff] }
 0x343   : > { %4230 = vmatprep.subr.bf16.mxu1 %v9355_v47  ;;  %4189 = vmatprep.subr.bf16.mxu0 %v9227_v49  ;;  %v9306_v47 = vcombine.low %v2703_v50, %v2707_v42  ;;  %v9426_v49 = vcombine.low %v2823_v44, %v2827_v46  ;;  %v9427_v52 = vcombine.high %v2823_v44, %v2827_v46  ;;  %v2683_v9 = vld [vmem:[#allocation14 + $0x2a0] sm:$0xff]  ;;  %v11097_v50 = vld [vmem:[#allocation14 + $0x1e8] sm:$0xff] }
 0x344   : > { %v2671_v18 = vld [vmem:[#allocation14 + $0x240] sm:$0xff]  ;;  %v2776_v42 = vld [vmem:[#allocation14 + $0x588] sm:$0xff] }
 0x345   : > { %v2675_v4 = vld [vmem:[#allocation14 + $0x260] sm:$0xff] }
 0x346   : > { %4231 = vmatpush1.bf16.msra.mxu1 %v9354_v32  ;;  %4190 = vmatpush1.bf16.msra.mxu0 %v9226_v60  ;;  %v9299_v32 = vcombine.high %v2695_v53, %v2699_v58  ;;  %v2819_v60 = vld [vmem:[#allocation14 + $0x6e0] sm:$0xff]  ;;  %v9275_v24 = vcombine.high %v2671_v18, %v2675_v4 }
 0x347   : > { %4232 = vmatprep.subr.bf16.mxu1 %v9347_v61  ;;  %4191 = vmatprep.subr.bf16.mxu0 %v9219_v62  ;;  %v9298_v61 = vcombine.low %v2695_v53, %v2699_v58  ;;  %v9418_v62 = vcombine.low %v2815_v59, %v2819_v60  ;;  %v9419_v63 = vcombine.high %v2815_v59, %v2819_v60  ;;  %v2791_v20 = vld [vmem:[#allocation14 + $0x600] sm:$0xff]  ;;  %v2772_v53 = vld [vmem:[#allocation14 + $0x568] sm:$0xff] }
 0x348   : > { %v2667_v26 = vld [vmem:[#allocation14 + $0x220] sm:$0xff]  ;;  %v2764_v60 = vld [vmem:[#allocation14 + $0x528] sm:$0xff] }
 0x34a   : > { %4233 = vmatpush1.bf16.msra.mxu1 %v9346_v3  ;;  %4192 = vmatpush1.bf16.msra.mxu0 %v9218_v5  ;;  %v2691_v3 = vld [vmem:[#allocation14 + $0x2e0] sm:$0xff] }
 0x34b   : > { %4234 = vmatprep.subr.bf16.mxu1 %v9339_v11  ;;  %4193 = vmatprep.subr.bf16.mxu0 %v9211_v56  ;;  %v2807_v5 = vld [vmem:[#allocation14 + $0x680] sm:$0xff]  ;;  %v9290_v11 = vcombine.low %v2687_v2, %v2691_v3 }
 0x34c   : > { %v9410_v56 = vcombine.low %v2807_v5, %v2811_v7  ;;  %v9411_v12 = vcombine.high %v2807_v5, %v2811_v7 }
 0x34e   : > { %4235 = vmatpush1.bf16.msra.mxu1 %v9338_v6  ;;  %4194 = vmatpush1.bf16.msra.mxu0 %v9210_v10  ;;  %v9291_v6 = vcombine.high %v2687_v2, %v2691_v3  ;;  %v9283_v10 = vcombine.high %v2679_v8, %v2683_v9  ;;  %v2756_v2 = vld [vmem:[#allocation14 + $0x4e8] sm:$0xff] }
 0x34f   : > { %4236 = vmatprep.subr.bf16.mxu1 %v9331_v17  ;;  %4195 = vmatprep.subr.bf16.mxu0 %v9203_v21  ;;  %v2803_v17 = vld [vmem:[#allocation14 + $0x660] sm:$0xff] }
 0x350   : > { %v2595_v21 = vld [vmem:[#allocation2 + $0x8] sm:$0xff] }
 0x351   : > { %v11089_v23 = vpack.c.bf16 %v2595_v21, %v2595_v21 }
 0x352   : > { %4237 = vmatpush1.bf16.msra.mxu1 %v9330_v15  ;;  %4196 = vmatpush1.bf16.msra.mxu0 %v9202_v57  ;;  %v2799_v15 = vld [vmem:[#allocation14 + $0x640] sm:$0xff] }
 0x353   : > { %4238 = vmatprep.subr.bf16.mxu1 %v9451_v38  ;;  %4197 = vmatprep.subr.bf16.mxu0 %v9323_v48  ;;  %v9403_v19 = vcombine.high %v2799_v15, %v2803_v17  ;;  %v2795_v57 = vld [vmem:[#allocation14 + $0x620] sm:$0xff]  ;;  %v9402_v38 = vcombine.low %v2799_v15, %v2803_v17  ;;  %v2728_v17 = vld [vmem:[#allocation14 + $0x408] sm:$0xff] }
 0x354   : > { %v9395_v25 = vcombine.high %v2791_v20, %v2795_v57  ;;  %v2663_v48 = vld [vmem:[#allocation14 + $0x200] sm:$0xff]  ;;  %4254 = vmatprep.mubr.bf16.mxu1 %v11089_v23  ;;  %v9394_v29 = vcombine.low %v2791_v20, %v2795_v57 }
 0x355   : > { %v9267_v31 = vcombine.high %v2663_v48, %v2667_v26 }
 0x356   : > { %4239 = vmatpush2.bf16.msra.mxu1 %v9450_v16  ;;  %4198 = vmatpush2.bf16.msra.mxu0 %v9322_v27  ;;  %v9282_v16 = vcombine.low %v2679_v8, %v2683_v9  ;;  %v2784_v27 = vld [vmem:[#allocation14 + $0x5c8] sm:$0xff] }
 0x357   : > { %4240 = vmatprep.subr.bf16.mxu1 %v9443_v1  ;;  %4199 = vmatprep.subr.bf16.mxu0 %v9315_v35  ;;  %v9274_v1 = vcombine.low %v2671_v18, %v2675_v4  ;;  %v2736_v9 = vld [vmem:[#allocation14 + $0x448] sm:$0xff] }
 0x35a   : > { %4241 = vmatpush2.bf16.msra.mxu1 %v9442_v28  ;;  %4200 = vmatpush2.bf16.msra.mxu0 %v9314_v37  ;;  %v2788_v28 = vld [vmem:[#allocation14 + $0x5e8] sm:$0xff]  ;;  %v9266_v37 = vcombine.low %v2663_v48, %v2667_v26 }
 0x35b   : > { %4242 = vmatprep.subr.bf16.mxu1 %v9435_v40  ;;  %4201 = vmatprep.subr.bf16.mxu0 %v9307_v45  ;;  %v9389_v35 = vcombine.high %v2784_v27, %v2788_v28  ;;  %v11095_v40 = vld [vmem:[#allocation14 + $0x1c8] sm:$0xff] }
 0x35c   : > { %v9261_v44 = vcombine.high %v11095_v40, %v11097_v50  ;;  %v2780_v45 = vld [vmem:[#allocation14 + $0x5a8] sm:$0xff]  ;;  %v9260_v46 = vcombine.low %v11095_v40, %v11097_v50  ;;  %v2766_v50 = vld [vmem:[#allocation14 + $0x538] sm:$0xff] }
 0x35e   : > { %4243 = vmatpush2.bf16.msra.mxu1 %v9434_v39  ;;  %4202 = vmatpush2.bf16.msra.mxu0 %v9306_v47  ;;  %v9388_v39 = vcombine.low %v2784_v27, %v2788_v28  ;;  %v9380_v47 = vcombine.low %v2776_v42, %v2780_v45 }
 0x35f   : > { %4244 = vmatprep.subr.bf16.mxu1 %v9427_v52  ;;  %4203 = vmatprep.subr.bf16.mxu0 %v9299_v32  ;;  %v2768_v52 = vld [vmem:[#allocation14 + $0x548] sm:$0xff] }
 0x360   : > { %v9372_v58 = vcombine.low %v2768_v52, %v2772_v53  ;;  %v9373_v59 = vcombine.high %v2768_v52, %v2772_v53  ;;  %v2760_v32 = vld [vmem:[#allocation14 + $0x508] sm:$0xff] }
 0x361   : > { %v2816_v52 = vld [vmem:[#allocation14 + $0x6c8] sm:$0xff] }
 0x362   : > { %4245 = vmatpush2.bf16.msra.mxu1 %v9426_v49  ;;  %4204 = vmatpush2.bf16.msra.mxu0 %v9298_v61  ;;  %v9381_v49 = vcombine.high %v2776_v42, %v2780_v45  ;;  %v9364_v61 = vcombine.low %v2760_v32, %v2764_v60  ;;  %v2828_v45 = vld [vmem:[#allocation14 + $0x728] sm:$0xff] }
 0x363   : > { %4246 = vmatprep.subr.bf16.mxu1 %v9419_v63  ;;  %4205 = vmatprep.subr.bf16.mxu0 %v9291_v6  ;;  %v2752_v63 = vld [vmem:[#allocation14 + $0x4c8] sm:$0xff] }
 0x364   : > { %v9356_v3 = vcombine.low %v2752_v63, %v2756_v2  ;;  %v9357_v5 = vcombine.high %v2752_v63, %v2756_v2  ;;  %v2748_v6 = vld [vmem:[#allocation14 + $0x4a8] sm:$0xff] }
 0x365   : > { %v2820_v53 = vld [vmem:[#allocation14 + $0x6e8] sm:$0xff] }
 0x366   : > { %4247 = vmatpush2.bf16.msra.mxu1 %v9418_v62  ;;  %4206 = vmatpush2.bf16.msra.mxu0 %v9290_v11  ;;  %v9365_v62 = vcombine.high %v2760_v32, %v2764_v60  ;;  %v2744_v11 = vld [vmem:[#allocation14 + $0x488] sm:$0xff] }
 0x367   : > { %4248 = vmatprep.subr.bf16.mxu1 %v9411_v12  ;;  %4207 = vmatprep.subr.bf16.mxu0 %v9283_v10  ;;  %v9348_v7 = vcombine.low %v2744_v11, %v2748_v6  ;;  %v9349_v8 = vcombine.high %v2744_v11, %v2748_v6  ;;  %v2808_v32 = vld [vmem:[#allocation14 + $0x688] sm:$0xff]  ;;  %v1587_v6 = vld [vmem:[%s11113_s6] sm:$0xff] }
 0x368   : > { %v2812_v60 = vld [vmem:[#allocation14 + $0x6a8] sm:$0xff] }
 0x369   : > { %v2800_v63 = vld [vmem:[#allocation14 + $0x648] sm:$0xff] }
 0x36a   : > { %4249 = vmatpush2.bf16.msra.mxu1 %v9410_v56  ;;  %4208 = vmatpush2.bf16.msra.mxu0 %v9282_v16  ;;  %v2740_v56 = vld [vmem:[#allocation14 + $0x468] sm:$0xff] }
 0x36b   : > { %4250 = vmatprep.subr.bf16.mxu1 %v9403_v19  ;;  %4209 = vmatprep.subr.bf16.mxu0 %v9275_v24  ;;  %v9340_v12 = vcombine.low %v2736_v9, %v2740_v56  ;;  %v9341_v10 = vcombine.high %v2736_v9, %v2740_v56  ;;  %v2732_v19 = vld [vmem:[#allocation14 + $0x428] sm:$0xff] }
 0x36c   : > { %v9332_v20 = vcombine.low %v2728_v17, %v2732_v19  ;;  %v9333_v57 = vcombine.high %v2728_v17, %v2732_v19  ;;  %v2804_v2 = vld [vmem:[#allocation14 + $0x668] sm:$0xff]  ;;  %v2785_v17 = vld [vmem:[#allocation14 + $0x5d0] sm:$0xff] }
 0x36d   : > { %v2792_v11 = vld [vmem:[#allocation14 + $0x608] sm:$0xff] }
 0x36e   : > { %4251 = vmatpush2.bf16.msra.mxu1 %v9402_v38  ;;  %4210 = vmatpush2.bf16.msra.mxu0 %v9274_v1  ;;  %v2848_v38 = vld [vmem:[#allocation14 + $0x7c8] sm:$0xff] }
 0x36f   : > { %4252 = vmatprep.subr.bf16.mxu1 %v9395_v25  ;;  %4211 = vmatprep.subr.bf16.mxu0 %v9267_v31  ;;  %v2852_v25 = vld [vmem:[#allocation14 + $0x7e8] sm:$0xff] }
 0x370   : > { %v9452_v26 = vcombine.low %v2848_v38, %v2852_v25  ;;  %v9453_v27 = vcombine.high %v2848_v38, %v2852_v25  ;;  %v2840_v1 = vld [vmem:[#allocation14 + $0x788] sm:$0xff] }
 0x372   : > { %4253 = vmatpush2.bf16.msra.mxu1 %v9394_v29  ;;  %4212 = vmatpush2.bf16.msra.mxu0 %v9266_v37  ;;  %v2844_v29 = vld [vmem:[#allocation14 + $0x7a8] sm:$0xff] }
 0x373   : > { %4304 = vmatprep.subr.bf16.mxu1 %v9389_v35  ;;  %4263 = vmatprep.subr.bf16.mxu0 %v9261_v44  ;;  %v9444_v30 = vcombine.low %v2840_v1, %v2844_v29  ;;  %v9445_v31 = vcombine.high %v2840_v1, %v2844_v29  ;;  %v2832_v35 = vld [vmem:[#allocation14 + $0x748] sm:$0xff] }
 0x374   : > { %v2836_v37 = vld [vmem:[#allocation14 + $0x768] sm:$0xff] }
 0x375   : > { %4255 = vmatmul.mubr.bf16.vlgmr.msra.gmra.mxu1 %v11092_v36  ;;  %v9437_v42 = vcombine.high %v2832_v35, %v2836_v37  ;;  %v2824_v44 = vld [vmem:[#allocation14 + $0x708] sm:$0xff] }
 0x376   : > { %4305 = vmatpush1.bf16.msra.mxu1 %v9388_v39  ;;  %4336 = vmatprep.mubr.bf16.mxu1 %v11089_v23  ;;  %v9436_v39 = vcombine.low %v2832_v35, %v2836_v37  ;;  %v2761_v35 = vld [vmem:[#allocation14 + $0x510] sm:$0xff] }
 0x377   : > { %4306 = vmatprep.subr.bf16.mxu1 %v9381_v49  ;;  %v9429_v49 = vcombine.high %v2824_v44, %v2828_v45  ;;  %v2765_v37 = vld [vmem:[#allocation14 + $0x530] sm:$0xff] }
 0x37a   : > { %4307 = vmatpush1.bf16.msra.mxu1 %v9380_v47  ;;  %v9428_v47 = vcombine.low %v2824_v44, %v2828_v45  ;;  %v2753_v44 = vld [vmem:[#allocation14 + $0x4d0] sm:$0xff] }
 0x37b   : > { %4308 = vmatprep.subr.bf16.mxu1 %v9373_v59  ;;  %v9421_v59 = vcombine.high %v2816_v52, %v2820_v53  ;;  %v2757_v45 = vld [vmem:[#allocation14 + $0x4f0] sm:$0xff] }
 0x37e   : > { %4309 = vmatpush1.bf16.msra.mxu1 %v9372_v58  ;;  %v9420_v58 = vcombine.low %v2816_v52, %v2820_v53  ;;  %v2745_v52 = vld [vmem:[#allocation14 + $0x490] sm:$0xff] }
 0x37f   : > { %4310 = vmatprep.subr.bf16.mxu1 %v9365_v62  ;;  %v9413_v62 = vcombine.high %v2808_v32, %v2812_v60 }
 0x382   : > { %4311 = vmatpush1.bf16.msra.mxu1 %v9364_v61  ;;  %v9412_v61 = vcombine.low %v2808_v32, %v2812_v60 }
 0x383   : > { %4312 = vmatprep.subr.bf16.mxu1 %v9357_v5  ;;  %v9405_v5 = vcombine.high %v2800_v63, %v2804_v2 }
 0x386   : > { %4313 = vmatpush1.bf16.msra.mxu1 %v9356_v3  ;;  %v9404_v3 = vcombine.low %v2800_v63, %v2804_v2  ;;  %v2737_v63 = vld [vmem:[#allocation14 + $0x450] sm:$0xff] }
 0x387   : > { %4314 = vmatprep.subr.bf16.mxu1 %v9349_v8  ;;  %v1589_v8 = vld [vmem:[%s11113_s6 + $0x10] sm:$0xff] }
 0x38a   : > { %4315 = vmatpush1.bf16.msra.mxu1 %v9348_v7  ;;  %v2796_v7 = vld [vmem:[#allocation14 + $0x628] sm:$0xff] }
 0x38b   : > { %4316 = vmatprep.subr.bf16.mxu1 %v9341_v10  ;;  %v9396_v9 = vcombine.low %v2792_v11, %v2796_v7  ;;  %v9397_v56 = vcombine.high %v2792_v11, %v2796_v7 }
 0x38e   : > { %4317 = vmatpush1.bf16.msra.mxu1 %v9340_v12  ;;  %v1590_v12 = vld [vmem:[%s11113_s6 + $0x18] sm:$0xff] }
 0x38f   : > { %4318 = vmatprep.subr.bf16.mxu1 %v9333_v57  ;;  %v2789_v57 = vld [vmem:[#allocation14 + $0x5f0] sm:$0xff] }
 0x390   : > { %v9390_v38 = vcombine.low %v2785_v17, %v2789_v57 }
 0x392   : > { %4319 = vmatpush1.bf16.msra.mxu1 %v9332_v20  ;;  %v1588_v20 = vld [vmem:[%s11113_s6 + $0x8] sm:$0xff] }
 0x393   : > { %4320 = vmatprep.subr.bf16.mxu1 %v9453_v27 }
 0x396   : > { %4321 = vmatpush2.bf16.msra.mxu1 %v9452_v26  ;;  %v2777_v26 = vld [vmem:[#allocation14 + $0x590] sm:$0xff] }
 0x397   : > { %4322 = vmatprep.subr.bf16.mxu1 %v9445_v31 }
 0x39a   : > { %4323 = vmatpush2.bf16.msra.mxu1 %v9444_v30  ;;  %v2773_v30 = vld [vmem:[#allocation14 + $0x570] sm:$0xff] }
 0x39b   : > { %4324 = vmatprep.subr.bf16.mxu1 %v9437_v42  ;;  %v9367_v42 = vcombine.high %v2761_v35, %v2765_v37 }
 0x39e   : > { %4325 = vmatpush2.bf16.msra.mxu1 %v9436_v39  ;;  %v9366_v39 = vcombine.low %v2761_v35, %v2765_v37 }
 0x39f   : > { %4326 = vmatprep.subr.bf16.mxu1 %v9429_v49  ;;  %v9359_v49 = vcombine.high %v2753_v44, %v2757_v45 }
 0x3a2   : > { %4327 = vmatpush2.bf16.msra.mxu1 %v9428_v47  ;;  %v9358_v47 = vcombine.low %v2753_v44, %v2757_v45 }
 0x3a3   : > { %4328 = vmatprep.subr.bf16.mxu1 %v9421_v59 }
 0x3a6   : > { %4329 = vmatpush2.bf16.msra.mxu1 %v9420_v58  ;;  %v2749_v58 = vld [vmem:[#allocation14 + $0x4b0] sm:$0xff] }
 0x3a7   : > { %4330 = vmatprep.subr.bf16.mxu1 %v9413_v62  ;;  %v9350_v32 = vcombine.low %v2745_v52, %v2749_v58  ;;  %v9351_v60 = vcombine.high %v2745_v52, %v2749_v58  ;;  %v2837_v52 = vld [vmem:[#allocation14 + $0x770] sm:$0xff] }
 0x3a8   : > { %v2539_v58 = vld [vmem:[#allocation3] sm:$0xff] }
 0x3aa   : > { %4331 = vmatpush2.bf16.msra.mxu1 %v9412_v61 }
 0x3ab   : > { %4332 = vmatprep.subr.bf16.mxu1 %v9405_v5  ;;  %v2741_v5 = vld [vmem:[#allocation14 + $0x470] sm:$0xff] }
 0x3ac   : > { %v9342_v7 = vcombine.low %v2737_v63, %v2741_v5 }
 0x3ae   : > { %4333 = vmatpush2.bf16.msra.mxu1 %v9404_v3 }
 0x3af   : > { %4334 = vmatprep.subr.bf16.mxu1 %v9397_v56 }
 0x3b2   : > { %4335 = vmatpush2.bf16.msra.mxu1 %v9396_v9  ;;  %v1593_v9 = vld [vmem:[%s11113_s6 + $0x30] sm:$0xff] }
 0x3b5   : > { %v11104_v15 = vpop.f32.mrf.mxu0  ;;  %v11106_v18 = vpop.f32.mrf.mxu1  ;;  %4337 = vmatmul.mubr.bf16.vlgmr.msra.gmra.mxu1 %v11092_v36 }
 0x3b6   : > { %v2531_v10 = vadd.f32 %v11104_v15, %v1587_v6  ;;  %v2533_v19 = vadd.f32 %v11106_v18, %v1589_v8  ;;  %v2781_v15 = vld [vmem:[#allocation14 + $0x5b0] sm:$0xff]  ;;  %4418 = vmatprep.mubr.bf16.mxu1 %v11089_v23  ;;  %v9343_v8 = vcombine.high %v2737_v63, %v2741_v5 }
 0x3b7   : > { %v11108_v4 = vpop.f32.mrf.mxu0  ;;  %v11110_v21 = vpop.f32.mrf.mxu1  ;;  %v9383_v1 = vcombine.high %v2777_v26, %v2781_v15  ;;  %v1591_v6 = vld [vmem:[%s11113_s6 + $0x20] sm:$0xff] }
 0x3b8   : > { %v9196_v25 = vmul.f32 -1.442695, %v2531_v10  ;;  %v9198_v27 = vmul.f32 -1.442695, %v2533_v19  ;;  %v1592_v10 = vld [vmem:[%s11113_s6 + $0x28] sm:$0xff]  ;;  %v2825_v63 = vld [vmem:[#allocation14 + $0x710] sm:$0xff] }
 0x3b9   : > { %v2405_v16 = vpop.f32.mrf.mxu0  ;;  %v2446_v24 = vpop.f32.mrf.mxu1 }
 0x3ba   : > { %v2534_v16 = vadd.f32 %v11110_v21, %v1590_v12  ;;  %v9391_v24 = vcombine.high %v2785_v17, %v2789_v57  ;;  %10144 = vpow2.f32 %v9196_v25  ;;  %v2769_v21 = vld [vmem:[#allocation14 + $0x550] sm:$0xff] }
 0x3bb   : > { %v2406_v48 = vpop.f32.mrf.mxu0  ;;  %v2447_v28 = vpop.f32.mrf.mxu1  ;;  %10146 = vpow2.f32 %v9198_v27  ;;  %v9375_v31 = vcombine.high %v2769_v21, %v2773_v30  ;;  %v2729_v17 = vld [vmem:[#allocation14 + $0x410] sm:$0xff] }
 0x3bc   : > { %v2532_v48 = vadd.f32 %v11108_v4, %v1588_v20  ;;  %4386 = vmatprep.subr.bf16.mxu1 %v9391_v24  ;;  %v9199_v18 = vmul.f32 -1.442695, %v2534_v16  ;;  %v9382_v28 = vcombine.low %v2777_v26, %v2781_v15  ;;  %v9374_v4 = vcombine.low %v2769_v21, %v2773_v30  ;;  %v1594_v57 = vld [vmem:[%s11113_s6 + $0x38] sm:$0xff] }
 0x3bd   : > { %4387 = vmatpush1.bf16.msra.mxu1 %v9390_v38  ;;  %v2733_v16 = vld [vmem:[#allocation14 + $0x430] sm:$0xff] }
 0x3be   : > { %v9197_v29 = vmul.f32 -1.442695, %v2532_v48  ;;  %4388 = vmatprep.subr.bf16.mxu1 %v9383_v1  ;;  %10148 = vpow2.f32 %v9199_v18  ;;  %v9334_v25 = vcombine.low %v2729_v17, %v2733_v16  ;;  %v9335_v48 = vcombine.high %v2729_v17, %v2733_v16  ;;  %v2849_v1 = vld [vmem:[#allocation14 + $0x7d0] sm:$0xff] }
 0x3bf   : > { %v2853_v21 = vld [vmem:[#allocation14 + $0x7f0] sm:$0xff] }
 0x3c0   : > { %10150 = vpow2.f32 %v9197_v29  ;;  %v9455_v35 = vcombine.high %v2849_v1, %v2853_v21  ;;  %v2821_v16 = vld [vmem:[#allocation14 + $0x6f0] sm:$0xff] }
 0x3c1   : > { %4389 = vmatpush1.bf16.msra.mxu1 %v9382_v28 }
 0x3c2   : > { %4390 = vmatprep.subr.bf16.mxu1 %v9375_v31  ;;  %v9454_v31 = vcombine.low %v2849_v1, %v2853_v21  ;;  %v2793_v21 = vld [vmem:[#allocation14 + $0x610] sm:$0xff] }
 0x3c5   : > { %4391 = vmatpush1.bf16.msra.mxu1 %v9374_v4 }
 0x3c6   : > { %4392 = vmatprep.subr.bf16.mxu1 %v9367_v42  ;;  %v2845_v42 = vld [vmem:[#allocation14 + $0x7b0] sm:$0xff] }
 0x3c7   : > { %v10145_v53 = vpop.eup %10144 }
 0x3c8   : > { %v10147_v59 = vpop.eup %10146  ;;  %v2547_v62 = vadd.f32 1.0, %v10145_v53 }
 0x3c9   : > { %4393 = vmatpush1.bf16.msra.mxu1 %v9366_v39  ;;  %v2559_v3 = vadd.f32 1.0, %v10147_v59  ;;  %v2841_v39 = vld [vmem:[#allocation14 + $0x790] sm:$0xff] }
 0x3ca   : > { %4394 = vmatprep.subr.bf16.mxu1 %v9359_v49  ;;  %10152 = vrcp.f32 %v2547_v62  ;;  %v9446_v44 = vcombine.low %v2841_v39, %v2845_v42  ;;  %v9447_v45 = vcombine.high %v2841_v39, %v2845_v42  ;;  %v2540_v62 = vld [vmem:[#allocation3 + $0x18] sm:$0xff] }
 0x3cb   : > { %v10149_v61 = vpop.eup %10148  ;;  %10154 = vrcp.f32 %v2559_v3 }
 0x3cc   : > { %v2560_v11 = vadd.f32 1.0, %v10149_v61 }
 0x3cd   : > { %4395 = vmatpush1.bf16.msra.mxu1 %v9358_v47  ;;  %v10151_v2 = vpop.eup %10150  ;;  %v2833_v47 = vld [vmem:[#allocation14 + $0x750] sm:$0xff] }
 0x3ce   : > { %4396 = vmatprep.subr.bf16.mxu1 %v9351_v60  ;;  %v2548_v56 = vadd.f32 1.0, %v10151_v2  ;;  %10156 = vrcp.f32 %v2560_v11  ;;  %v9438_v59 = vcombine.low %v2833_v47, %v2837_v52  ;;  %v2829_v11 = vld [vmem:[#allocation14 + $0x730] sm:$0xff] }
 0x3d1   : > { %4397 = vmatpush1.bf16.msra.mxu1 %v9350_v32  ;;  %v9439_v32 = vcombine.high %v2833_v47, %v2837_v52  ;;  %v2790_v47 = vld [vmem:[#allocation14 + $0x5f8] sm:$0xff]  ;;  %v2648_v52 = vld [vmem:[#allocation14 + $0x188] sm:$0xff] }
 0x3d2   : > { %4398 = vmatprep.subr.bf16.mxu1 %v9343_v8  ;;  %v9431_v8 = vcombine.high %v2825_v63, %v2829_v11 }
 0x3d5   : > { %4399 = vmatpush1.bf16.msra.mxu1 %v9342_v7  ;;  %v9430_v7 = vcombine.low %v2825_v63, %v2829_v11  ;;  %v2782_v63 = vld [vmem:[#allocation14 + $0x5b8] sm:$0xff] }
 0x3d6   : > { %4400 = vmatprep.subr.bf16.mxu1 %v9335_v48  ;;  %v2809_v48 = vld [vmem:[#allocation14 + $0x690] sm:$0xff] }
 0x3d7   : > { %v10153_v49 = vpop.eup %10152 }
 0x3d8   : > { %v10155_v53 = vpop.eup %10154 }
 0x3d9   : > { %4401 = vmatpush1.bf16.msra.mxu1 %v9334_v25  ;;  %v2579_v3 = vmul.f32 %v10155_v53, %v2539_v58  ;;  %v2652_v53 = vld [vmem:[#allocation14 + $0x1a8] sm:$0xff] }
 0x3da   : > { %4402 = vmatprep.subr.bf16.mxu1 %v9455_v35 }
 0x3db   : > { %v10157_v60 = vpop.eup %10156 }
 0x3dd   : > { %4403 = vmatpush2.bf16.msra.mxu1 %v9454_v31 }
 0x3de   : > { %4404 = vmatprep.subr.bf16.mxu1 %v9447_v45 }
 0x3e1   : > { %4405 = vmatpush2.bf16.msra.mxu1 %v9446_v44  ;;  %v2786_v44 = vld [vmem:[#allocation14 + $0x5d8] sm:$0xff] }
 0x3e2   : > { %4406 = vmatprep.subr.bf16.mxu1 %v9439_v32  ;;  %v9392_v58 = vcombine.low %v2786_v44, %v2790_v47 }
 0x3e5   : > { %4407 = vmatpush2.bf16.msra.mxu1 %v9438_v59  ;;  %v9393_v59 = vcombine.high %v2786_v44, %v2790_v47  ;;  %v2742_v44 = vld [vmem:[#allocation14 + $0x478] sm:$0xff]  ;;  %v2604_v47 = vld [vmem:[#allocation14 + $0x28] sm:$0xff] }
 0x3e6   : > { %4408 = vmatprep.subr.bf16.mxu1 %v9431_v8 }
 0x3e9   : > { %4409 = vmatpush2.bf16.msra.mxu1 %v9430_v7  ;;  %v2770_v7 = vld [vmem:[#allocation14 + $0x558] sm:$0xff] }
 0x3f5   : > { %v2483_v12 = vpop.f32.mrf.mxu0  ;;  %v2524_v20 = vpop.f32.mrf.mxu1 }
 0x3f6   : > { %v2535_v19 = vadd.f32 %v2483_v12, %v1591_v6  ;;  %v2537_v38 = vadd.f32 %v2524_v20, %v1593_v9  ;;  %v2580_v12 = vmul.f32 %v10157_v60, %v2540_v62  ;;  %v2778_v60 = vld [vmem:[#allocation14 + $0x598] sm:$0xff]  ;;  %v9253_v62 = vcombine.high %v2648_v52, %v2652_v53 }
 0x3f7   : > { %v2485_v24 = vpop.f32.mrf.mxu0  ;;  %v2526_v27 = vpop.f32.mrf.mxu1  ;;  %v9385_v11 = vcombine.high %v2778_v60, %v2782_v63 }
 0x3f8   : > { %10158 = vtanh.f32 %v2535_v19  ;;  %v2536_v26 = vadd.f32 %v2485_v24, %v1592_v10  ;;  %v9200_v15 = vmul.f32 -1.442695, %v2537_v38  ;;  %v2538_v18 = vadd.f32 %v2526_v27, %v1594_v57  ;;  %v2817_v19 = vld [vmem:[#allocation14 + $0x6d0] sm:$0xff] }
 0x3f9   : > { %10160 = vrcp.f32 %v2548_v56  ;;  %v2487_v28 = vpop.f32.mrf.mxu0  ;;  %v2528_v29 = vpop.f32.mrf.mxu1  ;;  %v9422_v24 = vcombine.low %v2817_v19, %v2821_v16  ;;  %v9423_v25 = vcombine.high %v2817_v19, %v2821_v16  ;;  %v2762_v19 = vld [vmem:[#allocation14 + $0x518] sm:$0xff] }
 0x3fa   : > { %10162 = vtanh.f32 %v2536_v26  ;;  %v9201_v30 = vmul.f32 -1.442695, %v2538_v18  ;;  %v2813_v26 = vld [vmem:[#allocation14 + $0x6b0] sm:$0xff]  ;;  %v9369_v16 = vcombine.high %v2762_v19, %v2766_v50 }
 0x3fb   : > { %10164 = vpow2.f32 %v9200_v15  ;;  %v2488_v4 = vpop.f32.mrf.mxu0  ;;  %v2529_v37 = vpop.f32.mrf.mxu1  ;;  %4410 = vmatprep.subr.bf16.mxu1 %v9423_v25  ;;  %v9414_v27 = vcombine.low %v2809_v48, %v2813_v26  ;;  %v9415_v15 = vcombine.high %v2809_v48, %v2813_v26  ;;  %v2801_v18 = vld [vmem:[#allocation14 + $0x650] sm:$0xff]  ;;  %v2758_v48 = vld [vmem:[#allocation14 + $0x4f8] sm:$0xff]  ;;  %v2616_v26 = vld [vmem:[#allocation14 + $0x88] sm:$0xff] }
 0x3fc   : > { %10166 = vpow2.f32 %v9201_v30  ;;  %4411 = vmatpush2.bf16.msra.mxu1 %v9422_v24  ;;  %v2805_v28 = vld [vmem:[#allocation14 + $0x670] sm:$0xff]  ;;  %v2754_v24 = vld [vmem:[#allocation14 + $0x4d8] sm:$0xff] }
 0x3fd   : > { %4412 = vmatprep.subr.bf16.mxu1 %v9415_v15  ;;  %v9406_v1 = vcombine.low %v2801_v18, %v2805_v28  ;;  %v9407_v29 = vcombine.high %v2801_v18, %v2805_v28  ;;  %v2797_v30 = vld [vmem:[#allocation14 + $0x630] sm:$0xff]  ;;  %v9360_v15 = vcombine.low %v2754_v24, %v2758_v48  ;;  %v9361_v18 = vcombine.high %v2754_v24, %v2758_v48  ;;  %v2838_v24 = vld [vmem:[#allocation14 + $0x778] sm:$0xff]  ;;  %v2700_v48 = vld [vmem:[#allocation14 + $0x328] sm:$0xff] }
 0x3fe   : > { %v9398_v31 = vcombine.low %v2793_v21, %v2797_v30  ;;  %v9399_v35 = vcombine.high %v2793_v21, %v2797_v30  ;;  %v2750_v21 = vld [vmem:[#allocation14 + $0x4b8] sm:$0xff]  ;;  %v2608_v30 = vld [vmem:[#allocation14 + $0x48] sm:$0xff] }
 0x400   : > { %4413 = vmatpush2.bf16.msra.mxu1 %v9414_v27  ;;  %v2620_v27 = vld [vmem:[#allocation14 + $0xa8] sm:$0xff] }
 0x401   : > { %4414 = vmatprep.subr.bf16.mxu1 %v9407_v29  ;;  %v9221_v29 = vcombine.high %v2616_v26, %v2620_v27 }
 0x404   : > { %4415 = vmatpush2.bf16.msra.mxu1 %v9406_v1  ;;  %v2746_v1 = vld [vmem:[#allocation14 + $0x498] sm:$0xff] }
 0x405   : > { %v10159_v61 = vpop.eup %10158  ;;  %4416 = vmatprep.subr.bf16.mxu1 %v9399_v35  ;;  %v9353_v35 = vcombine.high %v2746_v1, %v2750_v21 }
 0x406   : > { %v10161_v2 = vpop.eup %10160  ;;  %v2581_v5 = vmul.f32 %v10159_v61, %v10153_v49 }
 0x407   : > { %v10163_v6 = vpop.eup %10162 }
 0x408   : > { %v10165_v9 = vpop.eup %10164  ;;  %v2583_v56 = vadd.f32 %v2581_v5, %v2579_v3  ;;  %v2582_v10 = vmul.f32 %v10163_v6, %v10161_v2  ;;  %4417 = vmatpush2.bf16.msra.mxu1 %v9398_v31  ;;  %v2640_v2 = vld [vmem:[#allocation14 + $0x148] sm:$0xff]  ;;  %v9384_v5 = vcombine.low %v2778_v60, %v2782_v63  ;;  %v9252_v6 = vcombine.low %v2648_v52, %v2652_v53  ;;  %v2734_v60 = vld [vmem:[#allocation14 + $0x438] sm:$0xff] }
 0x409   : > { %v2573_v17 = vadd.f32 1.0, %v10165_v9  ;;  %v10167_v20 = vpop.eup %10166  ;;  %4468 = vmatprep.subr.bf16.mxu1 %v9393_v59  ;;  %v2644_v3 = vld [vmem:[#allocation14 + $0x168] sm:$0xff]  ;;  %v9352_v31 = vcombine.low %v2746_v1, %v2750_v21  ;;  %v2830_v1 = vld [vmem:[#allocation14 + $0x738] sm:$0xff] }
 0x40a   : > { %10168 = vtanh.f32 %v2583_v56  ;;  %2591 = vst [vmem:[#allocation3] sm:$0xff] %v2583_v56  ;;  %v2584_v57 = vadd.f32 %v2582_v10, %v2580_v12  ;;  %v2574_v38 = vadd.f32 1.0, %v10167_v20  ;;  %v9245_v8 = vcombine.high %v2640_v2, %v2644_v3  ;;  %v2632_v9 = vld [vmem:[#allocation14 + $0x108] sm:$0xff] }
 0x40b   : > { %10170 = vrcp.f32 %v2573_v17  ;;  %4419 = vmatmul.mubr.bf16.vlgmr.msra.gmra.mxu1 %v11092_v36  ;;  %v2636_v56 = vld [vmem:[#allocation14 + $0x128] sm:$0xff]  ;;  %v9244_v17 = vcombine.low %v2640_v2, %v2644_v3 }
 0x40c   : > { %10172 = vtanh.f32 %v2584_v57  ;;  %2592 = vst [vmem:[#allocation3 + $0x18] sm:$0xff] %v2584_v57  ;;  %4469 = vmatpush1.bf16.msra.mxu1 %v9392_v58  ;;  %4500 = vmatprep.mubr.bf16.mxu1 %v11089_v23  ;;  %v2774_v23 = vld [vmem:[#allocation14 + $0x578] sm:$0xff]  ;;  %v9237_v40 = vcombine.high %v2632_v9, %v2636_v56  ;;  %v2628_v20 = vld [vmem:[#allocation14 + $0xe8] sm:$0xff]  ;;  %v9368_v57 = vcombine.low %v2762_v19, %v2766_v50 }
 0x40d   : > { %10174 = vrcp.f32 %v2574_v38  ;;  %4470 = vmatprep.subr.bf16.mxu1 %v9385_v11  ;;  %v9376_v12 = vcombine.low %v2770_v7, %v2774_v23  ;;  %v9377_v10 = vcombine.high %v2770_v7, %v2774_v23  ;;  %v9236_v38 = vcombine.low %v2632_v9, %v2636_v56  ;;  %v2730_v58 = vld [vmem:[#allocation14 + $0x418] sm:$0xff]  ;;  %v2724_v63 = vld [vmem:[#allocation14 + $0x3e8] sm:$0xff] }
 0x40e   : > { %v9336_v2 = vcombine.low %v2730_v58, %v2734_v60  ;;  %v9337_v3 = vcombine.high %v2730_v58, %v2734_v60  ;;  %v2850_v11 = vld [vmem:[#allocation14 + $0x7d8] sm:$0xff]  ;;  %v2716_v23 = vld [vmem:[#allocation14 + $0x3a8] sm:$0xff] }
 0x40f   : > { %v2854_v7 = vld [vmem:[#allocation14 + $0x7f8] sm:$0xff]  ;;  %v2708_v50 = vld [vmem:[#allocation14 + $0x368] sm:$0xff] }
 0x410   : > { %4471 = vmatpush1.bf16.msra.mxu1 %v9384_v5  ;;  %v9456_v9 = vcombine.low %v2850_v11, %v2854_v7  ;;  %v9457_v56 = vcombine.high %v2850_v11, %v2854_v7  ;;  %v2846_v19 = vld [vmem:[#allocation14 + $0x7b8] sm:$0xff]  ;;  %v2692_v21 = vld [vmem:[#allocation14 + $0x2e8] sm:$0xff] }
 0x411   : > { %4472 = vmatprep.subr.bf16.mxu1 %v9377_v10  ;;  %v2842_v10 = vld [vmem:[#allocation14 + $0x798] sm:$0xff]  ;;  %v2676_v60 = vld [vmem:[#allocation14 + $0x268] sm:$0xff] }
 0x412   : > { %v2814_v58 = vld [vmem:[#allocation14 + $0x6b8] sm:$0xff]  ;;  %v2668_v7 = vld [vmem:[#allocation14 + $0x228] sm:$0xff] }
 0x413   : > { %v2806_v11 = vld [vmem:[#allocation14 + $0x678] sm:$0xff] }
 0x414   : > { %4473 = vmatpush1.bf16.msra.mxu1 %v9376_v12 }
 0x415   : > { %4474 = vmatprep.subr.bf16.mxu1 %v9369_v16  ;;  %v2834_v16 = vld [vmem:[#allocation14 + $0x758] sm:$0xff] }
 0x417   : > { %v10169_v4 = vpop.eup %10168 }
 0x418   : > { %v10171_v37 = vpop.eup %10170  ;;  %4475 = vmatpush1.bf16.msra.mxu1 %v9368_v57 }
 0x419   : > { %v10173_v39 = vpop.eup %10172  ;;  %v2587_v42 = vmul.f32 %v10171_v37, %v10169_v4  ;;  %4476 = vmatprep.subr.bf16.mxu1 %v9361_v18  ;;  %v2612_v4 = vld [vmem:[#allocation14 + $0x68] sm:$0xff]  ;;  %v9220_v37 = vcombine.low %v2616_v26, %v2620_v27  ;;  %v9440_v26 = vcombine.low %v2834_v16, %v2838_v24  ;;  %v9441_v27 = vcombine.high %v2834_v16, %v2838_v24  ;;  %v2826_v18 = vld [vmem:[#allocation14 + $0x718] sm:$0xff]  ;;  %v2653_v16 = vld [vmem:[#allocation14 + $0x1b0] sm:$0xff] }
 0x41a   : > { %v10175_v45 = vpop.eup %10174  ;;  %v9212_v53 = vcombine.low %v2608_v30, %v2612_v4 }
 0x41b   : > { %v2588_v49 = vmul.f32 %v10175_v45, %v10173_v39  ;;  %2589 = vst [vmem:[#allocation2 + $0x10] sm:$0xff] %v2587_v42  ;;  %v11132_v61 = vpack.c.bf16 %v2587_v42, %v2587_v42  ;;  %v2738_v39 = vld [vmem:[#allocation14 + $0x458] sm:$0xff]  ;;  %v9213_v42 = vcombine.high %v2608_v30, %v2612_v4  ;;  %v2600_v45 = vld [vmem:[#allocation14 + $0x8] sm:$0xff]  ;;  %v9432_v30 = vcombine.low %v2826_v18, %v2830_v1 }
 0x41c   : > { %4477 = vmatpush1.bf16.msra.mxu1 %v9360_v15  ;;  %v9345_v52 = vcombine.high %v2738_v39, %v2742_v44  ;;  %v9205_v59 = vcombine.high %v2600_v45, %v2604_v47  ;;  %v9204_v5 = vcombine.low %v2600_v45, %v2604_v47  ;;  %v9433_v4 = vcombine.high %v2826_v18, %v2830_v1 }
 0x41d   : > { %2590 = vst [vmem:[#allocation2] sm:$0xff] %v2588_v49  ;;  %v11129_v32 = vpack.c.bf16 %v2588_v49, %v2588_v49  ;;  %4478 = vmatprep.subr.bf16.mxu1 %v9353_v35  ;;  %v9344_v49 = vcombine.low %v2738_v39, %v2742_v44  ;;  %v2818_v35 = vld [vmem:[#allocation14 + $0x6d8] sm:$0xff]  ;;  %v2684_v44 = vld [vmem:[#allocation14 + $0x2a8] sm:$0xff] }
 0x41e   : > { %v2822_v39 = vld [vmem:[#allocation14 + $0x6f8] sm:$0xff] }
 0x41f   : > { %4213 = vmatprep.mubr.bf16.mxu0 %v11129_v32  ;;  %v9424_v45 = vcombine.low %v2818_v35, %v2822_v39  ;;  %v9425_v47 = vcombine.high %v2818_v35, %v2822_v39  ;;  %v2617_v39 = vld [vmem:[#allocation14 + $0x90] sm:$0xff] }
 0x420   : > { %4214 = vmatmul.mubr.bf16.vlgmr.msra.gmra.mxu0 %v11132_v61  ;;  %4479 = vmatpush1.bf16.msra.mxu1 %v9352_v31 }
 0x421   : > { %4264 = vmatpush1.bf16.msra.mxu0 %v9260_v46  ;;  %4295 = vmatprep.mubr.bf16.mxu0 %v11129_v32  ;;  %v2624_v46 = vld [vmem:[#allocation14 + $0xc8] sm:$0xff] }
 0x422   : > { %4265 = vmatprep.subr.bf16.mxu0 %v9253_v62  ;;  %v9229_v25 = vcombine.high %v2624_v46, %v2628_v20  ;;  %v9228_v28 = vcombine.low %v2624_v46, %v2628_v20  ;;  %4480 = vmatprep.subr.bf16.mxu1 %v9345_v52  ;;  %v2720_v62 = vld [vmem:[#allocation14 + $0x3c8] sm:$0xff]  ;;  %v9448_v46 = vcombine.low %v2842_v10, %v2846_v19  ;;  %v2810_v52 = vld [vmem:[#allocation14 + $0x698] sm:$0xff] }
 0x423   : > { %v9324_v12 = vcombine.low %v2720_v62, %v2724_v63  ;;  %v9449_v20 = vcombine.high %v2842_v10, %v2846_v19  ;;  %v2798_v10 = vld [vmem:[#allocation14 + $0x638] sm:$0xff]  ;;  %v2661_v19 = vld [vmem:[#allocation14 + $0x1f0] sm:$0xff] }
 0x424   : > { %4481 = vmatpush1.bf16.msra.mxu1 %v9344_v49 }
 0x425   : > { %4266 = vmatpush1.bf16.msra.mxu0 %v9252_v6  ;;  %4482 = vmatprep.subr.bf16.mxu1 %v9337_v3  ;;  %v9325_v6 = vcombine.high %v2720_v62, %v2724_v63  ;;  %v9416_v62 = vcombine.low %v2810_v52, %v2814_v58  ;;  %v9417_v63 = vcombine.high %v2810_v52, %v2814_v58  ;;  %v2802_v3 = vld [vmem:[#allocation14 + $0x658] sm:$0xff]  ;;  %v2601_v58 = vld [vmem:[#allocation14 + $0x10] sm:$0xff] }
 0x426   : > { %4267 = vmatprep.subr.bf16.mxu0 %v9245_v8  ;;  %v2712_v8 = vld [vmem:[#allocation14 + $0x388] sm:$0xff] }
 0x427   : > { %v9316_v57 = vcombine.low %v2712_v8, %v2716_v23 }
 0x428   : > { %4483 = vmatpush1.bf16.msra.mxu1 %v9336_v2 }
 0x429   : > { %4268 = vmatpush1.bf16.msra.mxu0 %v9244_v17  ;;  %4484 = vmatprep.subr.bf16.mxu1 %v9457_v56  ;;  %v9317_v17 = vcombine.high %v2712_v8, %v2716_v23  ;;  %v9408_v8 = vcombine.low %v2802_v3, %v2806_v11  ;;  %v9409_v23 = vcombine.high %v2802_v3, %v2806_v11  ;;  %v2794_v56 = vld [vmem:[#allocation14 + $0x618] sm:$0xff]  ;;  %v2713_v11 = vld [vmem:[#allocation14 + $0x390] sm:$0xff] }
 0x42a   : > { %4269 = vmatprep.subr.bf16.mxu0 %v9237_v40  ;;  %v2704_v40 = vld [vmem:[#allocation14 + $0x348] sm:$0xff] }
 0x42b   : > { %v9308_v15 = vcombine.low %v2704_v40, %v2708_v50 }
 0x42c   : > { %4485 = vmatpush2.bf16.msra.mxu1 %v9456_v9 }
 0x42d   : > { %4270 = vmatpush1.bf16.msra.mxu0 %v9236_v38  ;;  %4486 = vmatprep.subr.bf16.mxu1 %v9449_v20  ;;  %v9309_v38 = vcombine.high %v2704_v40, %v2708_v50  ;;  %v9400_v40 = vcombine.low %v2794_v56, %v2798_v10  ;;  %v9401_v50 = vcombine.high %v2794_v56, %v2798_v10  ;;  %v2697_v10 = vld [vmem:[#allocation14 + $0x310] sm:$0xff] }
 0x42e   : > { %4271 = vmatprep.subr.bf16.mxu0 %v9229_v25  ;;  %v2696_v25 = vld [vmem:[#allocation14 + $0x308] sm:$0xff] }
 0x42f   : > { %v9300_v31 = vcombine.low %v2696_v25, %v2700_v48 }
 0x430   : > { %4487 = vmatpush2.bf16.msra.mxu1 %v9448_v46 }
 0x431   : > { %4272 = vmatpush1.bf16.msra.mxu0 %v9228_v28  ;;  %4488 = vmatprep.subr.bf16.mxu1 %v9441_v27  ;;  %v9301_v28 = vcombine.high %v2696_v25, %v2700_v48  ;;  %v2645_v27 = vld [vmem:[#allocation14 + $0x170] sm:$0xff] }
 0x432   : > { %4273 = vmatprep.subr.bf16.mxu0 %v9221_v29  ;;  %v2688_v29 = vld [vmem:[#allocation14 + $0x2c8] sm:$0xff] }
 0x433   : > { %v9292_v49 = vcombine.low %v2688_v29, %v2692_v21 }
 0x434   : > { %4489 = vmatpush2.bf16.msra.mxu1 %v9440_v26  ;;  %v2641_v26 = vld [vmem:[#allocation14 + $0x150] sm:$0xff] }
 0x435   : > { %4274 = vmatpush1.bf16.msra.mxu0 %v9220_v37  ;;  %4490 = vmatprep.subr.bf16.mxu1 %v9433_v4  ;;  %v9293_v37 = vcombine.high %v2688_v29, %v2692_v21  ;;  %v2633_v29 = vld [vmem:[#allocation14 + $0x110] sm:$0xff] }
 0x436   : > { %4275 = vmatprep.subr.bf16.mxu0 %v9213_v42  ;;  %v2680_v42 = vld [vmem:[#allocation14 + $0x288] sm:$0xff]  ;;  %v2637_v21 = vld [vmem:[#allocation14 + $0x130] sm:$0xff] }
 0x437   : > { %v9284_v2 = vcombine.low %v2680_v42, %v2684_v44  ;;  %v2625_v4 = vld [vmem:[#allocation14 + $0xd0] sm:$0xff]  ;;  %v9238_v35 = vcombine.low %v2633_v29, %v2637_v21 }
 0x438   : > { %4491 = vmatpush2.bf16.msra.mxu1 %v9432_v30  ;;  %v9246_v30 = vcombine.low %v2641_v26, %v2645_v27 }
 0x439   : > { %4276 = vmatpush1.bf16.msra.mxu0 %v9212_v53  ;;  %4492 = vmatprep.subr.bf16.mxu1 %v9425_v47  ;;  %v9285_v53 = vcombine.high %v2680_v42, %v2684_v44  ;;  %v2621_v42 = vld [vmem:[#allocation14 + $0xb0] sm:$0xff] }
 0x43a   : > { %4277 = vmatprep.subr.bf16.mxu0 %v9205_v59  ;;  %v2672_v59 = vld [vmem:[#allocation14 + $0x248] sm:$0xff]  ;;  %v2609_v47 = vld [vmem:[#allocation14 + $0x50] sm:$0xff]  ;;  %v9222_v52 = vcombine.low %v2617_v39, %v2621_v42 }
 0x43b   : > { %v9276_v9 = vcombine.low %v2672_v59, %v2676_v60 }
 0x43c   : > { %4493 = vmatpush2.bf16.msra.mxu1 %v9424_v45  ;;  %v9223_v45 = vcombine.high %v2617_v39, %v2621_v42  ;;  %v2654_v39 = vld [vmem:[#allocation14 + $0x1b8] sm:$0xff] }
 0x43d   : > { %4278 = vmatpush1.bf16.msra.mxu0 %v9204_v5  ;;  %4494 = vmatprep.subr.bf16.mxu1 %v9417_v63  ;;  %v9277_v5 = vcombine.high %v2672_v59, %v2676_v60  ;;  %v2605_v59 = vld [vmem:[#allocation14 + $0x30] sm:$0xff] }
 0x43e   : > { %4279 = vmatprep.subr.bf16.mxu0 %v9325_v6  ;;  %v2664_v6 = vld [vmem:[#allocation14 + $0x208] sm:$0xff]  ;;  %v2721_v63 = vld [vmem:[#allocation14 + $0x3d0] sm:$0xff]  ;;  %v9206_v3 = vcombine.low %v2601_v58, %v2605_v59 }
 0x43f   : > { %v9268_v46 = vcombine.low %v2664_v6, %v2668_v7 }
 0x440   : > { %4495 = vmatpush2.bf16.msra.mxu1 %v9416_v62  ;;  %v9207_v62 = vcombine.high %v2601_v58, %v2605_v59 }
 0x441   : > { %4280 = vmatpush2.bf16.msra.mxu0 %v9324_v12  ;;  %4496 = vmatprep.subr.bf16.mxu1 %v9409_v23  ;;  %v9269_v12 = vcombine.high %v2664_v6, %v2668_v7  ;;  %v2717_v6 = vld [vmem:[#allocation14 + $0x3b0] sm:$0xff] }
 0x442   : > { %4281 = vmatprep.subr.bf16.mxu0 %v9317_v17  ;;  %v2657_v17 = vld [vmem:[#allocation14 + $0x1d0] sm:$0xff]  ;;  %v9318_v56 = vcombine.low %v2713_v11, %v2717_v6 }
 0x443   : > { %v9263_v20 = vcombine.high %v2657_v17, %v2661_v19  ;;  %v9262_v24 = vcombine.low %v2657_v17, %v2661_v19  ;;  %v2705_v23 = vld [vmem:[#allocation14 + $0x350] sm:$0xff] }
 0x444   : > { %4497 = vmatpush2.bf16.msra.mxu1 %v9408_v8  ;;  %v9319_v8 = vcombine.high %v2713_v11, %v2717_v6  ;;  %v2701_v17 = vld [vmem:[#allocation14 + $0x330] sm:$0xff]  ;;  %v2630_v11 = vld [vmem:[#allocation14 + $0xf8] sm:$0xff] }
 0x445   : > { %4282 = vmatpush2.bf16.msra.mxu0 %v9316_v57  ;;  %4498 = vmatprep.subr.bf16.mxu1 %v9401_v50  ;;  %v2649_v57 = vld [vmem:[#allocation14 + $0x190] sm:$0xff] }
 0x446   : > { %4283 = vmatprep.subr.bf16.mxu0 %v9309_v38  ;;  %v11141_v38 = vpop.f32.mrf.mxu1  ;;  %v9255_v25 = vcombine.high %v2649_v57, %v2653_v16  ;;  %v9254_v18 = vcombine.low %v2649_v57, %v2653_v16  ;;  %v2689_v50 = vld [vmem:[#allocation14 + $0x2d0] sm:$0xff] }
 0x447   : > { %v2681_v16 = vld [vmem:[#allocation14 + $0x290] sm:$0xff] }
 0x448   : > { %4499 = vmatpush2.bf16.msra.mxu1 %v9400_v40  ;;  %v11144_v48 = vpop.f32.mrf.mxu1  ;;  %v9303_v40 = vcombine.high %v2697_v10, %v2701_v17 }
 0x449   : > { %4284 = vmatpush2.bf16.msra.mxu0 %v9308_v15 }
 0x44a   : > { %4285 = vmatprep.subr.bf16.mxu0 %v9301_v28  ;;  %v4260_v15 = vpop.f32.mrf.mxu1  ;;  %v9247_v28 = vcombine.high %v2641_v26, %v2645_v27  ;;  %v2673_v27 = vld [vmem:[#allocation14 + $0x250] sm:$0xff] }
 0x44b   : > { %4501 = vmatmul.mubr.bf16.vlgmr.msra.gmra.mxu1 %v11092_v36  ;;  %v9239_v36 = vcombine.high %v2633_v29, %v2637_v21  ;;  %v2677_v15 = vld [vmem:[#allocation14 + $0x270] sm:$0xff] }
 0x44c   : > { %v4261_v1 = vpop.f32.mrf.mxu1  ;;  %v2669_v29 = vld [vmem:[#allocation14 + $0x230] sm:$0xff]  ;;  %v9278_v21 = vcombine.low %v2673_v27, %v2677_v15 }
 0x44d   : > { %4286 = vmatpush2.bf16.msra.mxu0 %v9300_v31  ;;  %v2629_v31 = vld [vmem:[#allocation14 + $0xf0] sm:$0xff] }
 0x44e   : > { %4287 = vmatprep.subr.bf16.mxu0 %v9293_v37  ;;  %v9231_v37 = vcombine.high %v2625_v4, %v2629_v31  ;;  %v9230_v44 = vcombine.low %v2625_v4, %v2629_v31  ;;  %v2665_v1 = vld [vmem:[#allocation14 + $0x210] sm:$0xff]  ;;  %v2662_v4 = vld [vmem:[#allocation14 + $0x1f8] sm:$0xff] }
 0x44f   : > { %v9270_v31 = vcombine.low %v2665_v1, %v2669_v29 }
 0x451   : > { %4288 = vmatpush2.bf16.msra.mxu0 %v9292_v49  ;;  %v2613_v49 = vld [vmem:[#allocation14 + $0x70] sm:$0xff] }
 0x452   : > { %4289 = vmatprep.subr.bf16.mxu0 %v9285_v53  ;;  %v9215_v53 = vcombine.high %v2609_v47, %v2613_v49  ;;  %v9214_v60 = vcombine.low %v2609_v47, %v2613_v49  ;;  %v2642_v47 = vld [vmem:[#allocation14 + $0x158] sm:$0xff] }
 0x453   : > { %v2646_v49 = vld [vmem:[#allocation14 + $0x178] sm:$0xff] }
 0x454   : > { %v9249_v59 = vcombine.high %v2642_v47, %v2646_v49 }
 0x455   : > { %4290 = vmatpush2.bf16.msra.mxu0 %v9284_v2  ;;  %v2725_v2 = vld [vmem:[#allocation14 + $0x3f0] sm:$0xff] }
 0x456   : > { %4291 = vmatprep.subr.bf16.mxu0 %v9277_v5  ;;  %v9327_v5 = vcombine.high %v2721_v63, %v2725_v2  ;;  %v9326_v7 = vcombine.low %v2721_v63, %v2725_v2  ;;  %v9248_v2 = vcombine.low %v2642_v47, %v2646_v49 }
 0x459   : > { %4292 = vmatpush2.bf16.msra.mxu0 %v9276_v9  ;;  %v2709_v9 = vld [vmem:[#allocation14 + $0x370] sm:$0xff] }
 0x45a   : > { %4293 = vmatprep.subr.bf16.mxu0 %v9269_v12  ;;  %v9311_v12 = vcombine.high %v2705_v23, %v2709_v9  ;;  %v9310_v19 = vcombine.low %v2705_v23, %v2709_v9  ;;  %v2622_v23 = vld [vmem:[#allocation14 + $0xb8] sm:$0xff] }
 0x45d   : > { %4294 = vmatpush2.bf16.msra.mxu0 %v9268_v46  ;;  %v2693_v46 = vld [vmem:[#allocation14 + $0x2f0] sm:$0xff] }
 0x45e   : > { %4345 = vmatprep.subr.bf16.mxu0 %v9263_v20  ;;  %v9302_v20 = vcombine.low %v2697_v10, %v2701_v17  ;;  %v9295_v57 = vcombine.high %v2689_v50, %v2693_v46 }
 0x460   : > { %4296 = vmatmul.mubr.bf16.vlgmr.msra.gmra.mxu0 %v11132_v61 }
 0x461   : > { %4346 = vmatpush1.bf16.msra.mxu0 %v9262_v24  ;;  %4377 = vmatprep.mubr.bf16.mxu0 %v11129_v32  ;;  %v2685_v24 = vld [vmem:[#allocation14 + $0x2b0] sm:$0xff] }
 0x462   : > { %4347 = vmatprep.subr.bf16.mxu0 %v9255_v25  ;;  %v9294_v25 = vcombine.low %v2689_v50, %v2693_v46  ;;  %v9287_v26 = vcombine.high %v2681_v16, %v2685_v24 }
 0x465   : > { %4348 = vmatpush1.bf16.msra.mxu0 %v9254_v18  ;;  %v9286_v18 = vcombine.low %v2681_v16, %v2685_v24 }
 0x466   : > { %4349 = vmatprep.subr.bf16.mxu0 %v9247_v28  ;;  %v9279_v28 = vcombine.high %v2673_v27, %v2677_v15 }
 0x469   : > { %4350 = vmatpush1.bf16.msra.mxu0 %v9246_v30  ;;  %v9271_v30 = vcombine.high %v2665_v1, %v2669_v29 }
 0x46a   : > { %4351 = vmatprep.subr.bf16.mxu0 %v9239_v36  ;;  %v2658_v36 = vld [vmem:[#allocation14 + $0x1d8] sm:$0xff] }
 0x46b   : > { %v9264_v42 = vcombine.low %v2658_v36, %v2662_v4 }
 0x46d   : > { %4352 = vmatpush1.bf16.msra.mxu0 %v9238_v35  ;;  %v9265_v35 = vcombine.high %v2658_v36, %v2662_v4 }
 0x46e   : > { %4353 = vmatprep.subr.bf16.mxu0 %v9231_v37  ;;  %v2650_v37 = vld [vmem:[#allocation14 + $0x198] sm:$0xff] }
 0x471   : > { %4354 = vmatpush1.bf16.msra.mxu0 %v9230_v44 }
 0x472   : > { %4355 = vmatprep.subr.bf16.mxu0 %v9223_v45  ;;  %v9257_v45 = vcombine.high %v2650_v37, %v2654_v39 }
 0x475   : > { %4356 = vmatpush1.bf16.msra.mxu0 %v9222_v52  ;;  %v11148_v44 = vpop.f32.mrf.mxu1 }
 0x476   : > { %4357 = vmatprep.subr.bf16.mxu0 %v9215_v53  ;;  %v9256_v53 = vcombine.low %v2650_v37, %v2654_v39 }
 0x477   : > { %v11150_v52 = vpop.f32.mrf.mxu1 }
 0x479   : > { %4358 = vmatpush1.bf16.msra.mxu0 %v9214_v60  ;;  %v4342_v58 = vpop.f32.mrf.mxu1  ;;  %v2634_v60 = vld [vmem:[#allocation14 + $0x118] sm:$0xff] }
 0x47a   : > { %4359 = vmatprep.subr.bf16.mxu0 %v9207_v62  ;;  %v2638_v62 = vld [vmem:[#allocation14 + $0x138] sm:$0xff] }
 0x47b   : > { %v4343_v63 = vpop.f32.mrf.mxu1  ;;  %v9240_v6 = vcombine.low %v2634_v60, %v2638_v62  ;;  %v2678_v58 = vld [vmem:[#allocation14 + $0x278] sm:$0xff] }
 0x47c   : > { %v2670_v63 = vld [vmem:[#allocation14 + $0x238] sm:$0xff] }
 0x47d   : > { %4360 = vmatpush1.bf16.msra.mxu0 %v9206_v3  ;;  %v9241_v3 = vcombine.high %v2634_v60, %v2638_v62  ;;  %v2666_v62 = vld [vmem:[#allocation14 + $0x218] sm:$0xff] }
 0x47e   : > { %4361 = vmatprep.subr.bf16.mxu0 %v9327_v5  ;;  %v2626_v5 = vld [vmem:[#allocation14 + $0xd8] sm:$0xff] }
 0x481   : > { %4362 = vmatpush2.bf16.msra.mxu0 %v9326_v7  ;;  %v9233_v7 = vcombine.high %v2626_v5, %v2630_v11 }
 0x482   : > { %4363 = vmatprep.subr.bf16.mxu0 %v9319_v8  ;;  %v2618_v8 = vld [vmem:[#allocation14 + $0x98] sm:$0xff] }
 0x483   : > { %v9225_v9 = vcombine.high %v2618_v8, %v2622_v23  ;;  %v9224_v10 = vcombine.low %v2618_v8, %v2622_v23 }
 0x485   : > { %4364 = vmatpush2.bf16.msra.mxu0 %v9318_v56  ;;  %v2610_v56 = vld [vmem:[#allocation14 + $0x58] sm:$0xff] }
 0x486   : > { %4365 = vmatprep.subr.bf16.mxu0 %v9311_v12  ;;  %v2614_v12 = vld [vmem:[#allocation14 + $0x78] sm:$0xff] }
 0x487   : > { %v9217_v17 = vcombine.high %v2610_v56, %v2614_v12  ;;  %v9216_v50 = vcombine.low %v2610_v56, %v2614_v12 }
 0x489   : > { %4366 = vmatpush2.bf16.msra.mxu0 %v9310_v19  ;;  %v2602_v19 = vld [vmem:[#allocation14 + $0x18] sm:$0xff] }
 0x48a   : > { %4367 = vmatprep.subr.bf16.mxu0 %v9303_v40  ;;  %v2606_v40 = vld [vmem:[#allocation14 + $0x38] sm:$0xff] }
 0x48b   : > { %v9209_v46 = vcombine.high %v2602_v19, %v2606_v40  ;;  %v9208_v16 = vcombine.low %v2602_v19, %v2606_v40 }
 0x48d   : > { %4368 = vmatpush2.bf16.msra.mxu0 %v9302_v20  ;;  %v2722_v20 = vld [vmem:[#allocation14 + $0x3d8] sm:$0xff] }
 0x48e   : > { %4369 = vmatprep.subr.bf16.mxu0 %v9295_v57  ;;  %v2726_v57 = vld [vmem:[#allocation14 + $0x3f8] sm:$0xff] }
 0x48f   : > { %v9329_v24 = vcombine.high %v2722_v20, %v2726_v57  ;;  %v9328_v27 = vcombine.low %v2722_v20, %v2726_v57  ;;  %v11159_v57 = vld [vmem:[#allocation16] sm:$0xff] }
 0x491   : > { %4370 = vmatpush2.bf16.msra.mxu0 %v9294_v25  ;;  %v2714_v25 = vld [vmem:[#allocation14 + $0x398] sm:$0xff] }
 0x492   : > { %4371 = vmatprep.subr.bf16.mxu0 %v9287_v26  ;;  %v2718_v26 = vld [vmem:[#allocation14 + $0x3b8] sm:$0xff] }
 0x493   : > { %v9321_v15 = vcombine.high %v2714_v25, %v2718_v26  ;;  %v9320_v1 = vcombine.low %v2714_v25, %v2718_v26  ;;  %v2868_v26 = vrot.slane %v11159_v57, %v10875_v33 }
 0x495   : > { %4372 = vmatpush2.bf16.msra.mxu0 %v9286_v18  ;;  %v2706_v18 = vld [vmem:[#allocation14 + $0x358] sm:$0xff] }
 0x496   : > { %4373 = vmatprep.subr.bf16.mxu0 %v9279_v28  ;;  %v2710_v28 = vld [vmem:[#allocation14 + $0x378] sm:$0xff] }
 0x497   : > { %v9313_v29 = vcombine.high %v2706_v18, %v2710_v28  ;;  %v9312_v36 = vcombine.low %v2706_v18, %v2710_v28 }
 0x499   : > { %4374 = vmatpush2.bf16.msra.mxu0 %v9278_v21  ;;  %v2698_v21 = vld [vmem:[#allocation14 + $0x318] sm:$0xff] }
 0x49a   : > { %4375 = vmatprep.subr.bf16.mxu0 %v9271_v30  ;;  %v2702_v30 = vld [vmem:[#allocation14 + $0x338] sm:$0xff] }
 0x49b   : > { %v9305_v4 = vcombine.high %v2698_v21, %v2702_v30  ;;  %v9304_v37 = vcombine.low %v2698_v21, %v2702_v30 }
 0x49d   : > { %4376 = vmatpush2.bf16.msra.mxu0 %v9270_v31  ;;  %v2690_v31 = vld [vmem:[#allocation14 + $0x2d8] sm:$0xff] }
 0x49e   : > { %4427 = vmatprep.subr.bf16.mxu0 %v9265_v35  ;;  %v2694_v35 = vld [vmem:[#allocation14 + $0x2f8] sm:$0xff] }
 0x49f   : > { %v9297_v39 = vcombine.high %v2690_v31, %v2694_v35  ;;  %v9296_v47 = vcombine.low %v2690_v31, %v2694_v35 }
 0x4a0   : > { %4378 = vmatmul.mubr.bf16.vlgmr.msra.gmra.mxu0 %v11132_v61 }
 0x4a1   : > { %4428 = vmatpush1.bf16.msra.mxu0 %v9264_v42  ;;  %4459 = vmatprep.mubr.bf16.mxu0 %v11129_v32  ;;  %v9232_v32 = vcombine.low %v2626_v5, %v2630_v11  ;;  %v2682_v42 = vld [vmem:[#allocation14 + $0x298] sm:$0xff]  ;;  %v9272_v5 = vcombine.low %v2666_v62, %v2670_v63 }
 0x4a2   : > { %4429 = vmatprep.subr.bf16.mxu0 %v9257_v45  ;;  %v2686_v45 = vld [vmem:[#allocation14 + $0x2b8] sm:$0xff] }
 0x4a3   : > { %v9289_v49 = vcombine.high %v2682_v42, %v2686_v45 }
 0x4a5   : > { %4430 = vmatpush1.bf16.msra.mxu0 %v9256_v53  ;;  %v2674_v53 = vld [vmem:[#allocation14 + $0x258] sm:$0xff] }
 0x4a6   : > { %4431 = vmatprep.subr.bf16.mxu0 %v9249_v59  ;;  %v9288_v59 = vcombine.low %v2682_v42, %v2686_v45  ;;  %v9281_v60 = vcombine.high %v2674_v53, %v2678_v58 }
 0x4a9   : > { %4432 = vmatpush1.bf16.msra.mxu0 %v9248_v2  ;;  %v9280_v2 = vcombine.low %v2674_v53, %v2678_v58 }
 0x4aa   : > { %4433 = vmatprep.subr.bf16.mxu0 %v9241_v3  ;;  %v9273_v3 = vcombine.high %v2666_v62, %v2670_v63 }
 0x4ad   : > { %4434 = vmatpush1.bf16.msra.mxu0 %v9240_v6 }
 0x4ae   : > { %4435 = vmatprep.subr.bf16.mxu0 %v9233_v7 }
 0x4b1   : > { %4436 = vmatpush1.bf16.msra.mxu0 %v9232_v32 }
 0x4b2   : > { %4437 = vmatprep.subr.bf16.mxu0 %v9225_v9 }
 0x4b5   : > { %4438 = vmatpush1.bf16.msra.mxu0 %v9224_v10 }
 0x4b6   : > { %4439 = vmatprep.subr.bf16.mxu0 %v9217_v17 }
 0x4b9   : > { %4440 = vmatpush1.bf16.msra.mxu0 %v9216_v50 }
 0x4ba   : > { %4441 = vmatprep.subr.bf16.mxu0 %v9209_v46 }
 0x4bd   : > { %4442 = vmatpush1.bf16.msra.mxu0 %v9208_v16  ;;  %v2872_v16 = vrot.slane %v11159_v57, %v10957_v51 }
 0x4be   : > { %4443 = vmatprep.subr.bf16.mxu0 %v9329_v24  ;;  %v2876_v24 = vrot.slane %v11159_v57, %v10962_v13 }
 0x4c1   : > { %4444 = vmatpush2.bf16.msra.mxu0 %v9328_v27 }
 0x4c2   : > { %4445 = vmatprep.subr.bf16.mxu0 %v9321_v15 }
 0x4c5   : > { %4446 = vmatpush2.bf16.msra.mxu0 %v9320_v1 }
 0x4c6   : > { %4447 = vmatprep.subr.bf16.mxu0 %v9313_v29 }
 0x4c9   : > { %4448 = vmatpush2.bf16.msra.mxu0 %v9312_v36 }
 0x4ca   : > { %4449 = vmatprep.subr.bf16.mxu0 %v9305_v4 }
 0x4cb   : > { %v4420_v11 = vpop.f32.mrf.mxu1 }
 0x4cd   : > { %4450 = vmatpush2.bf16.msra.mxu0 %v9304_v37  ;;  %v4422_v6 = vpop.f32.mrf.mxu1 }
 0x4ce   : > { %4451 = vmatprep.subr.bf16.mxu0 %v9297_v39 }
 0x4cf   : > { %v4424_v8 = vpop.f32.mrf.mxu1 }
 0x4d1   : > { %4452 = vmatpush2.bf16.msra.mxu0 %v9296_v47  ;;  %v4425_v32 = vpop.f32.mrf.mxu1 }
 0x4d2   : > { %4453 = vmatprep.subr.bf16.mxu0 %v9289_v49  ;;  %v2598_v32 = vld [vmem:[#allocation3 + $0x10] sm:$0xff] }
 0x4d5   : > { %4454 = vmatpush2.bf16.msra.mxu0 %v9288_v59 }
 0x4d6   : > { %4455 = vmatprep.subr.bf16.mxu0 %v9281_v60 }
 0x4d9   : > { %4456 = vmatpush2.bf16.msra.mxu0 %v9280_v2 }
 0x4da   : > { %4457 = vmatprep.subr.bf16.mxu0 %v9273_v3 }
 0x4dd   : > { %4458 = vmatpush2.bf16.msra.mxu0 %v9272_v5 }
 0x4e0   : > { %4460 = vmatmul.mubr.bf16.vlgmr.msra.gmra.mxu0 %v11132_v61  ;;  %v4215_v7 = vpop.f32.mrf.mxu0  ;;  %v2864_v61 = vrot.slane %v11159_v57, %v10878_v34 }
 0x4e2   : > { %v4217_v23 = vpop.f32.mrf.mxu0  ;;  %v4216_v25 = vadd.f32 %v4215_v7, %v2864_v61  ;;  %v2597_v7 = vld [vmem:[#allocation3 + $0x8] sm:$0xff] }
 0x4e3   : > { %v4218_v28 = vadd.f32 %v4217_v23, %v2868_v26 }
 0x4e4   : > { %v4219_v9 = vpop.f32.mrf.mxu0  ;;  %v4257_v18 = vadd.f32 %v11141_v38, %v4216_v25  ;;  %v2880_v38 = vrot.slane %v11159_v57, %v11013_v54 }
 0x4e5   : > { %v4259_v30 = vadd.f32 %v11144_v48, %v4218_v28 }
 0x4e6   : > { %v4220_v56 = vpop.f32.mrf.mxu0  ;;  %v9458_v21 = vmul.f32 -1.442695, %v4257_v18 }
 0x4e7   : > { %v9459_v31 = vmul.f32 -1.442695, %v4259_v30 }
 0x4e8   : > { %10176 = vpow2.f32 %v9458_v21 }
 0x4f5   : > { %v10177_v35 = vpop.eup %10176 }
 0x4f6   : > { %v4515_v42 = vadd.f32 1.0, %v10177_v35 }
 0x50b   : > { %v11155_v12 = vpop.f32.mrf.mxu1 }
 0x50d   : > { %v11157_v17 = vpop.f32.mrf.mxu1 }
 0x50f   : > { %v4506_v40 = vpop.f32.mrf.mxu1 }
 0x511   : > { %v4507_v46 = vpop.f32.mrf.mxu1 }
 0x520   : > { %v4297_v10 = vpop.f32.mrf.mxu0 }
 0x521   : > { %v4298_v27 = vadd.f32 %v4297_v10, %v2872_v16 }
 0x522   : > { %v4299_v19 = vpop.f32.mrf.mxu0 }
 0x523   : > { %v4300_v15 = vadd.f32 %v4299_v19, %v2876_v24  ;;  %v4339_v1 = vadd.f32 %v11148_v44, %v4298_v27 }
 0x524   : > { %v4301_v50 = vpop.f32.mrf.mxu0 }
 0x525   : > { %v4341_v29 = vadd.f32 %v11150_v52, %v4300_v15  ;;  %v9460_v36 = vmul.f32 -1.442695, %v4339_v1  ;;  %v2884_v52 = vrot.slane %v11159_v57, %v11019_v43 }
 0x526   : > { %v4302_v20 = vpop.f32.mrf.mxu0 }
 0x527   : > { %v9461_v4 = vmul.f32 -1.442695, %v4341_v29  ;;  %10178 = vpow2.f32 %v9460_v36  ;;  %v2892_v20 = vrot.slane %v11159_v57, %v11022_v41 }
 0x529   : > { %10180 = vpow2.f32 %v9461_v4 }
 0x52a   : > { %10182 = vpow2.f32 %v9459_v31 }
 0x52b   : > { %10184 = vrcp.f32 %v4515_v42  ;;  %v11188_v42 = vpack.c.bf16 (%p1577_p5), %v10936_v22, %v10936_v22 }
 0x52d   :  { %6179 = vmatprep.mubr.bf16.mxu0 (%p1577_p5), %v11188_v42 }
 0x534   : > { %v10179_v37 = vpop.eup %10178 }
 0x535   : > { %v4527_v45 = vadd.f32 1.0, %v10179_v37 }
 0x536   : > { %v10181_v39 = vpop.eup %10180 }
 0x537   : > { %v10183_v44 = vpop.eup %10182  ;;  %v4528_v48 = vadd.f32 1.0, %v10181_v39  ;;  %10186 = vrcp.f32 %v4527_v45  ;;  %v4625_v39 = vld [vmem:[#allocation17 + $0x1e0] sm:$0xff] (%p1577_p5) }
 0x538   : > { %v4516_v53 = vadd.f32 1.0, %v10183_v44  ;;  %v10185_v3 = vpop.eup %10184  ;;  %v4753_v45 = vld [vmem:[#allocation17 + $0x5e0] sm:$0xff] (%p1577_p5) }
 0x539   : > { %10188 = vrcp.f32 %v4528_v48  ;;  %v4613_v48 = vld [vmem:[#allocation17 + $0x180] sm:$0xff] (%p1577_p5) }
 0x544   : > { %v10187_v5 = vpop.eup %10186 }
 0x545   : > { %v4547_v56 = vmul.f32 %v10187_v5, %v2597_v7  ;;  %v4737_v5 = vld [vmem:[#allocation17 + $0x560] sm:$0xff] (%p1577_p5) }
 0x546   : > { %v10189_v8 = vpop.eup %10188 }
 0x560   : > { %v4379_v47 = vpop.f32.mrf.mxu0 }
 0x561   : > { %v4380_v49 = vadd.f32 %v4379_v47, %v2880_v38  ;;  %v4749_v38 = vld [vmem:[#allocation17 + $0x5c0] sm:$0xff] (%p1577_p5) }
 0x562   : > { %v4381_v58 = vpop.f32.mrf.mxu0  ;;  %v4617_v47 = vld [vmem:[#allocation17 + $0x1a0] sm:$0xff] (%p1577_p5) }
 0x563   : > { %v4421_v59 = vadd.f32 %v4420_v11, %v4380_v49  ;;  %v4382_v60 = vadd.f32 %v4381_v58, %v2884_v52  ;;  %v4548_v11 = vmul.f32 %v10189_v8, %v2598_v32  ;;  %v9649_v49 = vcombine.high (%p1577_p5), %v4749_v38, %v4753_v45  ;;  %v4597_v32 = vld [vmem:[#allocation17 + $0x100] sm:$0xff] (%p1577_p5) }
 0x564   : > { %v4383_v62 = vpop.f32.mrf.mxu0  ;;  %v9513_v58 = vcombine.high (%p1577_p5), %v4613_v48, %v4617_v47  ;;  %v9512_v22 = vcombine.low (%p1577_p5), %v4613_v48, %v4617_v47  ;;  %v4697_v48 = vld [vmem:[#allocation17 + $0x420] sm:$0xff] (%p1577_p5) }
 0x565   : > { %10190 = vtanh.f32 %v4421_v59  ;;  %v4423_v63 = vadd.f32 %v4422_v6, %v4382_v60  ;;  %v2888_v6 = vrot.slane %v11159_v57, %v11016_v55  ;;  %v4741_v59 = vld [vmem:[#allocation17 + $0x580] sm:$0xff] (%p1577_p5)  ;;  %6188 = vmatprep.subr.bf16.mxu1 (%p1577_p5), %v9649_v49 }
 0x566   : > { %10192 = vrcp.f32 %v4516_v53  ;;  %v4384_v2 = vpop.f32.mrf.mxu0  ;;  %v9648_v53 = vcombine.low (%p1577_p5), %v4749_v38, %v4753_v45  ;;  %v4745_v60 = vld [vmem:[#allocation17 + $0x5a0] sm:$0xff] (%p1577_p5) }
 0x567   : > { %10194 = vtanh.f32 %v4423_v63  ;;  %v4605_v62 = vld [vmem:[#allocation17 + $0x140] sm:$0xff] (%p1577_p5)  ;;  %v9641_v63 = vcombine.high (%p1577_p5), %v4741_v59, %v4745_v60  ;;  %v9640_v7 = vcombine.low (%p1577_p5), %v4741_v59, %v4745_v60 }
 0x568   :  { %v4609_v2 = vld [vmem:[#allocation17 + $0x160] sm:$0xff] (%p1577_p5)  ;;  %6189 = vmatpush1.bf16.msra.mxu1 (%p1577_p5), %v9648_v53 }
 0x569   :  { %v9505_v8 = vcombine.high (%p1577_p5), %v4605_v62, %v4609_v2  ;;  %6190 = vmatprep.subr.bf16.mxu1 (%p1577_p5), %v9641_v63  ;;  %v4565_v38 = vld [vmem:[#allocation17] sm:$0xff] (%p1577_p5) }
 0x56a   :  { %v4685_v59 = vld [vmem:[#allocation17 + $0x3c0] sm:$0xff] (%p1577_p5) }
 0x56b   :  { %v4689_v60 = vld [vmem:[#allocation17 + $0x3e0] sm:$0xff] (%p1577_p5) }
 0x56c   :  { %6191 = vmatpush1.bf16.msra.mxu1 (%p1577_p5), %v9640_v7  ;;  %v4817_v63 = vld [vmem:[#allocation17 + $0x7e0] sm:$0xff] (%p1577_p5) }
 0x56d   :  { %v4677_v7 = vld [vmem:[#allocation17 + $0x380] sm:$0xff] (%p1577_p5) }
 0x572   : > { %v10191_v23 = vpop.eup %10190 }
 0x573   : > { %v10193_v9 = vpop.eup %10192  ;;  %v4549_v10 = vmul.f32 %v10191_v23, %v10185_v3  ;;  %v4733_v3 = vld [vmem:[#allocation17 + $0x540] sm:$0xff] (%p1577_p5) }
 0x574   : > { %v10195_v19 = vpop.eup %10194  ;;  %v9633_v23 = vcombine.high (%p1577_p5), %v4733_v3, %v4737_v5 }
 0x575   : > { %v4551_v40 = vadd.f32 %v4549_v10, %v4547_v56  ;;  %v4550_v50 = vmul.f32 %v10195_v19, %v10193_v9  ;;  %v4601_v9 = vld [vmem:[#allocation17 + $0x120] sm:$0xff] (%p1577_p5)  ;;  %v9504_v19 = vcombine.low (%p1577_p5), %v4605_v62, %v4609_v2 }
 0x576   :  { %v4725_v56 = vld [vmem:[#allocation17 + $0x500] sm:$0xff] (%p1577_p5)  ;;  %6192 = vmatprep.subr.bf16.mxu1 (%p1577_p5), %v9633_v23 }
 0x577   : > { %4559 = vst [vmem:[#allocation3 + $0x8] sm:$0xff] %v4551_v40  ;;  %v4552_v46 = vadd.f32 %v4550_v50, %v4548_v11  ;;  %v4729_v10 = vld [vmem:[#allocation17 + $0x520] sm:$0xff] (%p1577_p5)  ;;  %v9497_v11 = vcombine.high (%p1577_p5), %v4597_v32, %v4601_v9 }
 0x578   :  { %v9625_v50 = vcombine.high (%p1577_p5), %v4725_v56, %v4729_v10  ;;  %v4813_v62 = vld [vmem:[#allocation17 + $0x7c0] sm:$0xff] (%p1577_p5) }
 0x579   : > { %4560 = vst [vmem:[#allocation3 + $0x10] sm:$0xff] %v4552_v46  ;;  %v4805_v23 = vld [vmem:[#allocation17 + $0x780] sm:$0xff] (%p1577_p5) }
 0x5a0   : > { %v4461_v61 = vpop.f32.mrf.mxu0 }
 0x5a1   : > { %v4462_v16 = vadd.f32 %v4461_v61, %v2888_v6  ;;  %v4593_v6 = vld [vmem:[#allocation17 + $0xe0] sm:$0xff] (%p1577_p5) }
 0x5a2   : > { %v4463_v24 = vpop.f32.mrf.mxu0  ;;  %v4721_v61 = vld [vmem:[#allocation17 + $0x4e0] sm:$0xff] (%p1577_p5) }
 0x5a3   : > { %v4503_v25 = vadd.f32 %v11155_v12, %v4462_v16  ;;  %v4464_v26 = vadd.f32 %v4463_v24, %v2892_v20  ;;  %v4717_v20 = vld [vmem:[#allocation17 + $0x4c0] sm:$0xff] (%p1577_p5)  ;;  %v9496_v16 = vcombine.low (%p1577_p5), %v4597_v32, %v4601_v9  ;;  %v9624_v24 = vcombine.low (%p1577_p5), %v4725_v56, %v4729_v10 }
 0x5a4   : > { %v4465_v27 = vpop.f32.mrf.mxu0  ;;  %v4809_v32 = vld [vmem:[#allocation17 + $0x7a0] sm:$0xff] (%p1577_p5)  ;;  %v9584_v9 = vcombine.low (%p1577_p5), %v4685_v59, %v4689_v60  ;;  %v9712_v56 = vcombine.low (%p1577_p5), %v4813_v62, %v4817_v63 }
 0x5a5   : > { %v9462_v15 = vmul.f32 -1.442695, %v4503_v25  ;;  %v4505_v18 = vadd.f32 %v11157_v17, %v4464_v26  ;;  %v4621_v17 = vld [vmem:[#allocation17 + $0x1c0] sm:$0xff] (%p1577_p5)  ;;  %v9617_v26 = vcombine.high (%p1577_p5), %v4717_v20, %v4721_v61 }
 0x5a6   : > { %v4466_v28 = vpop.f32.mrf.mxu0  ;;  %v9521_v44 = vcombine.high (%p1577_p5), %v4621_v17, %v4625_v39  ;;  %v9520_v52 = vcombine.low (%p1577_p5), %v4621_v17, %v4625_v39  ;;  %v4581_v27 = vld [vmem:[#allocation17 + $0x80] sm:$0xff] (%p1577_p5)  ;;  %v4562_v17 = vld [vmem:[#allocation2] sm:$0xff] (%p1577_p5) }
 0x5a7   : > { %10196 = vpow2.f32 %v9462_v15  ;;  %v9463_v1 = vmul.f32 -1.442695, %v4505_v18  ;;  %v4585_v15 = vld [vmem:[#allocation17 + $0xa0] sm:$0xff] (%p1577_p5)  ;;  %v11191_v45 = vpack.c.bf16 (%p1577_p5), %v4562_v17, %v4562_v17 }
 0x5a8   :  { %6147 = vmatprep.subr.bf16.mxu0 (%p1577_p5), %v9521_v44  ;;  %v4709_v18 = vld [vmem:[#allocation17 + $0x480] sm:$0xff] (%p1577_p5) }
 0x5a9   : > { %10198 = vpow2.f32 %v9463_v1  ;;  %6148 = vmatpush1.bf16.msra.mxu0 (%p1577_p5), %v9520_v52  ;;  %v4713_v28 = vld [vmem:[#allocation17 + $0x4a0] sm:$0xff] (%p1577_p5)  ;;  %6220 = vmatprep.mubr.bf16.mxu1 (%p1577_p5), %v11191_v45 }
 0x5aa   : > { %10200 = vtanh.f32 %v4551_v40  ;;  %6149 = vmatprep.subr.bf16.mxu0 (%p1577_p5), %v9513_v58  ;;  %v9632_v40 = vcombine.low (%p1577_p5), %v4733_v3, %v4737_v5  ;;  %v4569_v44 = vld [vmem:[#allocation17 + $0x20] sm:$0xff] (%p1577_p5)  ;;  %v9585_v5 = vcombine.high (%p1577_p5), %v4685_v59, %v4689_v60 }
 0x5ab   :  { %v4693_v52 = vld [vmem:[#allocation17 + $0x400] sm:$0xff] (%p1577_p5)  ;;  %v9465_v53 = vcombine.high (%p1577_p5), %v4565_v38, %v4569_v44  ;;  %v9464_v2 = vcombine.low (%p1577_p5), %v4565_v38, %v4569_v44 }
 0x5ac   :  { %6193 = vmatpush1.bf16.msra.mxu1 (%p1577_p5), %v9632_v40  ;;  %v9593_v58 = vcombine.high (%p1577_p5), %v4693_v52, %v4697_v48  ;;  %v9592_v3 = vcombine.low (%p1577_p5), %v4693_v52, %v4697_v48  ;;  %v4669_v40 = vld [vmem:[#allocation17 + $0x340] sm:$0xff] (%p1577_p5) }
 0x5ad   :  { %6150 = vmatpush1.bf16.msra.mxu0 (%p1577_p5), %v9512_v22  ;;  %6194 = vmatprep.subr.bf16.mxu1 (%p1577_p5), %v9625_v50  ;;  %v9713_v22 = vcombine.high (%p1577_p5), %v4813_v62, %v4817_v63  ;;  %v4797_v50 = vld [vmem:[#allocation17 + $0x740] sm:$0xff] (%p1577_p5) }
 0x5ae   :  { %6151 = vmatprep.subr.bf16.mxu0 (%p1577_p5), %v9505_v8  ;;  %v4681_v8 = vld [vmem:[#allocation17 + $0x3a0] sm:$0xff] (%p1577_p5) }
 0x5af   :  { %v9577_v10 = vcombine.high (%p1577_p5), %v4677_v7, %v4681_v8  ;;  %v4773_v17 = vld [vmem:[#allocation17 + $0x680] sm:$0xff] (%p1577_p5) }
 0x5b0   :  { %6195 = vmatpush1.bf16.msra.mxu1 (%p1577_p5), %v9624_v24  ;;  %v4661_v24 = vld [vmem:[#allocation17 + $0x300] sm:$0xff] (%p1577_p5) }
 0x5b1   :  { %6152 = vmatpush1.bf16.msra.mxu0 (%p1577_p5), %v9504_v19  ;;  %6196 = vmatprep.subr.bf16.mxu1 (%p1577_p5), %v9617_v26  ;;  %v9705_v19 = vcombine.high (%p1577_p5), %v4805_v23, %v4809_v32  ;;  %v4789_v26 = vld [vmem:[#allocation17 + $0x700] sm:$0xff] (%p1577_p5) }
 0x5b2   :  { %6153 = vmatprep.subr.bf16.mxu0 (%p1577_p5), %v9497_v11  ;;  %v4673_v11 = vld [vmem:[#allocation17 + $0x360] sm:$0xff] (%p1577_p5) }
 0x5b4   : > { %v10197_v29 = vpop.eup %10196 }
 0x5b5   : > { %v4541_v21 = vadd.f32 1.0, %v10197_v29  ;;  %6154 = vmatpush1.bf16.msra.mxu0 (%p1577_p5), %v9496_v16  ;;  %v9616_v29 = vcombine.low (%p1577_p5), %v4717_v20, %v4721_v61  ;;  %v9704_v20 = vcombine.low (%p1577_p5), %v4805_v23, %v4809_v32  ;;  %v9569_v61 = vcombine.high (%p1577_p5), %v4669_v40, %v4673_v11 }
 0x5b6   : > { %v10199_v30 = vpop.eup %10198 }
 0x5b7   : > { %10202 = vrcp.f32 %v4541_v21  ;;  %v4542_v57 = vadd.f32 1.0, %v10199_v30  ;;  %v10201_v36 = vpop.eup %10200  ;;  %v9481_v21 = vcombine.high (%p1577_p5), %v4581_v27, %v4585_v15  ;;  %v9609_v30 = vcombine.high (%p1577_p5), %v4709_v18, %v4713_v28  ;;  %6197 = vmatpush1.bf16.msra.mxu1 (%p1577_p5), %v9616_v29  ;;  %v4653_v29 = vld [vmem:[#allocation17 + $0x2c0] sm:$0xff] (%p1577_p5) }
 0x5b8   : > { %10204 = vtanh.f32 %v4552_v46  ;;  %v4589_v46 = vld [vmem:[#allocation17 + $0xc0] sm:$0xff] (%p1577_p5) }
 0x5b9   : > { %10206 = vrcp.f32 %v4542_v57  ;;  %v9489_v25 = vcombine.high (%p1577_p5), %v4589_v46, %v4593_v6  ;;  %v9488_v1 = vcombine.low (%p1577_p5), %v4589_v46, %v4593_v6  ;;  %v4573_v57 = vld [vmem:[#allocation17 + $0x40] sm:$0xff] (%p1577_p5)  ;;  %6198 = vmatprep.subr.bf16.mxu1 (%p1577_p5), %v9609_v30  ;;  %v9576_v6 = vcombine.low (%p1577_p5), %v4677_v7, %v4681_v8 }
 0x5ba   :  { %v4801_v46 = vld [vmem:[#allocation17 + $0x760] sm:$0xff] (%p1577_p5) }
 0x5bb   :  { %6155 = vmatprep.subr.bf16.mxu0 (%p1577_p5), %v9489_v25  ;;  %v9697_v16 = vcombine.high (%p1577_p5), %v4797_v50, %v4801_v46  ;;  %v4665_v25 = vld [vmem:[#allocation17 + $0x320] sm:$0xff] (%p1577_p5) }
 0x5bc   :  { %6156 = vmatpush1.bf16.msra.mxu0 (%p1577_p5), %v9488_v1  ;;  %v4781_v30 = vld [vmem:[#allocation17 + $0x6c0] sm:$0xff] (%p1577_p5) }
 0x5bd   :  { %6157 = vmatprep.subr.bf16.mxu0 (%p1577_p5), %v9481_v21  ;;  %v4657_v21 = vld [vmem:[#allocation17 + $0x2e0] sm:$0xff] (%p1577_p5) }
 0x5be   :  { %v9552_v38 = vcombine.low (%p1577_p5), %v4653_v29, %v4657_v21 }
 0x5c4   : > { %v10203_v4 = vpop.eup %10202 }
 0x5c5   : > { %v10205_v12 = vpop.eup %10204  ;;  %v4555_v31 = vmul.f32 %v10203_v4, %v10201_v36  ;;  %1579 = sbr.rel (!%p1577_p5) target bundleno = 689 (0x2b1), region = 158  ;;  %v4577_v36 = vld [vmem:[#allocation17 + $0x60] sm:$0xff] (%p1577_p5) }
 0x5c6   : > { %v10207_v35 = vpop.eup %10206  ;;  %v4701_v4 = vld [vmem:[#allocation17 + $0x440] sm:$0xff] (%p1577_p5)  ;;  %v9472_v47 = vcombine.low (%p1577_p5), %v4573_v57, %v4577_v36 }
 0x5c7   : > { %4557 = vst [vmem:[#allocation2 + $0x18] sm:$0xff] %v4555_v31  ;;  %v4556_v37 = vmul.f32 %v10207_v35, %v10205_v12  ;;  %v4705_v12 = vld [vmem:[#allocation17 + $0x460] sm:$0xff] (%p1577_p5)  ;;  %v9480_v31 = vcombine.low (%p1577_p5), %v4581_v27, %v4585_v15  ;;  %v9608_v35 = vcombine.low (%p1577_p5), %v4709_v18, %v4713_v28  ;;  %v9568_v15 = vcombine.low (%p1577_p5), %v4669_v40, %v4673_v11 }
 0x5c8   :  { %v9601_v39 = vcombine.high (%p1577_p5), %v4701_v4, %v4705_v12  ;;  %v9600_v49 = vcombine.low (%p1577_p5), %v4701_v4, %v4705_v12  ;;  %v4793_v27 = vld [vmem:[#allocation17 + $0x720] sm:$0xff] (%p1577_p5)  ;;  %v9696_v18 = vcombine.low (%p1577_p5), %v4797_v50, %v4801_v46  ;;  %v9561_v28 = vcombine.high (%p1577_p5), %v4661_v24, %v4665_v25 }
 0x5c9   : > { %4558 = vst [vmem:[#allocation2 + $0x8] sm:$0xff] %v4556_v37  ;;  %v9473_v37 = vcombine.high (%p1577_p5), %v4573_v57, %v4577_v36  ;;  %6158 = vmatpush1.bf16.msra.mxu0 (%p1577_p5), %v9480_v31  ;;  %6199 = vmatpush1.bf16.msra.mxu1 (%p1577_p5), %v9608_v35  ;;  %v9689_v1 = vcombine.high (%p1577_p5), %v4789_v26, %v4793_v27  ;;  %v4785_v57 = vld [vmem:[#allocation17 + $0x6e0] sm:$0xff] (%p1577_p5) }
 0x5ca   :  { %6200 = vmatprep.subr.bf16.mxu1 %v9601_v39  ;;  %v9560_v36 = vcombine.low %v4661_v24, %v4665_v25  ;;  %v9688_v4 = vcombine.low %v4789_v26, %v4793_v27  ;;  %v9553_v12 = vcombine.high %v4653_v29, %v4657_v21  ;;  %v9681_v31 = vcombine.high %v4781_v30, %v4785_v57  ;;  %v4645_v35 = vld [vmem:[#allocation17 + $0x280] sm:$0xff]  ;;  %v4742_v24 = vld [vmem:[#allocation17 + $0x588] sm:$0xff] }
 0x5cb   :  { %6159 = vmatprep.subr.bf16.mxu0 %v9473_v37  ;;  %v4649_v37 = vld [vmem:[#allocation17 + $0x2a0] sm:$0xff]  ;;  %v9680_v44 = vcombine.low %v4781_v30, %v4785_v57  ;;  %v4746_v25 = vld [vmem:[#allocation17 + $0x5a8] sm:$0xff] }
 0x5cc   :  { %v4777_v39 = vld [vmem:[#allocation17 + $0x6a0] sm:$0xff]  ;;  %v9545_v52 = vcombine.high %v4645_v35, %v4649_v37  ;;  %v9544_v59 = vcombine.low %v4645_v35, %v4649_v37  ;;  %v4734_v29 = vld [vmem:[#allocation17 + $0x548] sm:$0xff]  ;;  %v9643_v21 = vcombine.high %v4742_v24, %v4746_v25  ;;  %v9642_v57 = vcombine.low %v4742_v24, %v4746_v25 }
 0x5cd   :  { %6160 = vmatpush1.bf16.msra.mxu0 %v9472_v47  ;;  %6201 = vmatpush1.bf16.msra.mxu1 %v9600_v49  ;;  %v9673_v48 = vcombine.high %v4773_v17, %v4777_v39  ;;  %v4637_v47 = vld [vmem:[#allocation17 + $0x240] sm:$0xff]  ;;  %v9672_v60 = vcombine.low %v4773_v17, %v4777_v39  ;;  %v4738_v30 = vld [vmem:[#allocation17 + $0x568] sm:$0xff] }
 0x5ce   :  { %6161 = vmatprep.subr.bf16.mxu0 %v9465_v53  ;;  %6202 = vmatprep.subr.bf16.mxu1 %v9593_v58  ;;  %v4641_v49 = vld [vmem:[#allocation17 + $0x260] sm:$0xff]  ;;  %v9635_v35 = vcombine.high %v4734_v29, %v4738_v30  ;;  %v4730_v37 = vld [vmem:[#allocation17 + $0x528] sm:$0xff]  ;;  %v9634_v39 = vcombine.low %v4734_v29, %v4738_v30 }
 0x5cf   :  { %v4765_v53 = vld [vmem:[#allocation17 + $0x640] sm:$0xff]  ;;  %v9537_v62 = vcombine.high %v4637_v47, %v4641_v49  ;;  %v9536_v7 = vcombine.low %v4637_v47, %v4641_v49  ;;  %v4722_v49 = vld [vmem:[#allocation17 + $0x4e8] sm:$0xff] }
 0x5d0   :  { %v4769_v58 = vld [vmem:[#allocation17 + $0x660] sm:$0xff] }
 0x5d1   :  { %6162 = vmatpush1.bf16.msra.mxu0 %v9464_v2  ;;  %6203 = vmatpush1.bf16.msra.mxu1 %v9592_v3  ;;  %v9665_v63 = vcombine.high %v4765_v53, %v4769_v58  ;;  %v4629_v2 = vld [vmem:[#allocation17 + $0x200] sm:$0xff]  ;;  %v9664_v8 = vcombine.low %v4765_v53, %v4769_v58 }
 0x5d2   :  { %6163 = vmatprep.subr.bf16.mxu0 %v9585_v5  ;;  %6204 = vmatprep.subr.bf16.mxu1 %v9713_v22  ;;  %v4633_v3 = vld [vmem:[#allocation17 + $0x220] sm:$0xff] }
 0x5d3   :  { %v4757_v5 = vld [vmem:[#allocation17 + $0x600] sm:$0xff]  ;;  %v9529_v23 = vcombine.high %v4629_v2, %v4633_v3  ;;  %v9528_v40 = vcombine.low %v4629_v2, %v4633_v3  ;;  %v4714_v3 = vld [vmem:[#allocation17 + $0x4a8] sm:$0xff] }
 0x5d4   :  { %v4761_v22 = vld [vmem:[#allocation17 + $0x620] sm:$0xff] }
 0x5d5   :  { %6164 = vmatpush2.bf16.msra.mxu0 %v9584_v9  ;;  %6205 = vmatpush2.bf16.msra.mxu1 %v9712_v56  ;;  %v9657_v32 = vcombine.high %v4757_v5, %v4761_v22  ;;  %v4622_v9 = vld [vmem:[#allocation17 + $0x1c8] sm:$0xff]  ;;  %v9656_v11 = vcombine.low %v4757_v5, %v4761_v22  ;;  %v4561_v50 = vld [vmem:[#allocation2 + $0x10] sm:$0xff] }
 0x5d6   :  { %6165 = vmatprep.subr.bf16.mxu0 %v9577_v10  ;;  %6206 = vmatprep.subr.bf16.mxu1 %v9705_v19  ;;  %v4626_v56 = vld [vmem:[#allocation17 + $0x1e8] sm:$0xff]  ;;  %v11198_v26 = vpack.c.bf16 %v4561_v50, %v4561_v50 }
 0x5d7   :  { %v4750_v10 = vld [vmem:[#allocation17 + $0x5c8] sm:$0xff]  ;;  %v9523_v46 = vcombine.high %v4622_v9, %v4626_v56  ;;  %v9522_v27 = vcombine.low %v4622_v9, %v4626_v56 }
 0x5d8   :  { %v4754_v19 = vld [vmem:[#allocation17 + $0x5e8] sm:$0xff] }
 0x5d9   :  { %6166 = vmatpush2.bf16.msra.mxu0 %v9576_v6  ;;  %6207 = vmatpush2.bf16.msra.mxu1 %v9704_v20  ;;  %v9651_v6 = vcombine.high %v4750_v10, %v4754_v19  ;;  %v4614_v20 = vld [vmem:[#allocation17 + $0x188] sm:$0xff] }
 0x5da   :  { %6167 = vmatprep.subr.bf16.mxu0 %v9569_v61  ;;  %6208 = vmatprep.subr.bf16.mxu1 %v9697_v16  ;;  %v4618_v61 = vld [vmem:[#allocation17 + $0x1a8] sm:$0xff]  ;;  %v11196_v16 = vpack.c.bf16 %v10931_v14, %v10931_v14 }
 0x5db   :  { %v9514_v14 = vcombine.low %v4614_v20, %v4618_v61  ;;  %v4706_v56 = vld [vmem:[#allocation17 + $0x468] sm:$0xff] }
 0x5dc   :  { %v4570_v50 = vld [vmem:[#allocation17 + $0x28] sm:$0xff] }
 0x5dd   :  { %6168 = vmatpush2.bf16.msra.mxu0 %v9568_v15  ;;  %6209 = vmatpush2.bf16.msra.mxu1 %v9696_v18  ;;  %v9650_v15 = vcombine.low %v4750_v10, %v4754_v19  ;;  %v9515_v18 = vcombine.high %v4614_v20, %v4618_v61  ;;  %v4698_v20 = vld [vmem:[#allocation17 + $0x428] sm:$0xff] }
 0x5de   :  { %6169 = vmatprep.subr.bf16.mxu0 %v9561_v28  ;;  %6210 = vmatprep.subr.bf16.mxu1 %v9689_v1  ;;  %v4606_v28 = vld [vmem:[#allocation17 + $0x148] sm:$0xff] }
 0x5df   :  { %v4610_v1 = vld [vmem:[#allocation17 + $0x168] sm:$0xff] }
 0x5e0   :  { %v9506_v17 = vcombine.low %v4606_v28, %v4610_v1 }
 0x5e1   :  { %6170 = vmatpush2.bf16.msra.mxu0 %v9560_v36  ;;  %6211 = vmatpush2.bf16.msra.mxu1 %v9688_v4  ;;  %v9507_v36 = vcombine.high %v4606_v28, %v4610_v1  ;;  %v4598_v4 = vld [vmem:[#allocation17 + $0x108] sm:$0xff] }
 0x5e2   :  { %6171 = vmatprep.subr.bf16.mxu0 %v9553_v12  ;;  %6212 = vmatprep.subr.bf16.mxu1 %v9681_v31  ;;  %v4602_v12 = vld [vmem:[#allocation17 + $0x128] sm:$0xff] }
 0x5e3   :  { %v4726_v31 = vld [vmem:[#allocation17 + $0x508] sm:$0xff]  ;;  %v9498_v53 = vcombine.low %v4598_v4, %v4602_v12 }
 0x5e4   :  { %v9627_v47 = vcombine.high %v4726_v31, %v4730_v37  ;;  %v9626_v58 = vcombine.low %v4726_v31, %v4730_v37  ;;  %v4818_v1 = vld [vmem:[#allocation17 + $0x7e8] sm:$0xff] }
 0x5e5   :  { %6172 = vmatpush2.bf16.msra.mxu0 %v9552_v38  ;;  %6213 = vmatpush2.bf16.msra.mxu1 %v9680_v44  ;;  %v9499_v38 = vcombine.high %v4598_v4, %v4602_v12  ;;  %v4590_v44 = vld [vmem:[#allocation17 + $0xc8] sm:$0xff] }
 0x5e6   :  { %6173 = vmatprep.subr.bf16.mxu0 %v9545_v52  ;;  %6214 = vmatprep.subr.bf16.mxu1 %v9673_v48  ;;  %v4594_v52 = vld [vmem:[#allocation17 + $0xe8] sm:$0xff] }
 0x5e7   :  { %v4718_v48 = vld [vmem:[#allocation17 + $0x4c8] sm:$0xff]  ;;  %v9490_v5 = vcombine.low %v4590_v44, %v4594_v52 }
 0x5e8   :  { %v9619_v2 = vcombine.high %v4718_v48, %v4722_v49  ;;  %v9618_v22 = vcombine.low %v4718_v48, %v4722_v49  ;;  %v4810_v12 = vld [vmem:[#allocation17 + $0x7a8] sm:$0xff] }
 0x5e9   :  { %6174 = vmatpush2.bf16.msra.mxu0 %v9544_v59  ;;  %6215 = vmatpush2.bf16.msra.mxu1 %v9672_v60  ;;  %v9491_v59 = vcombine.high %v4590_v44, %v4594_v52  ;;  %v4582_v60 = vld [vmem:[#allocation17 + $0x88] sm:$0xff] }
 0x5ea   :  { %6175 = vmatprep.subr.bf16.mxu0 %v9537_v62  ;;  %6216 = vmatprep.subr.bf16.mxu1 %v9665_v63  ;;  %v4586_v62 = vld [vmem:[#allocation17 + $0xa8] sm:$0xff] }
 0x5eb   :  { %v4710_v63 = vld [vmem:[#allocation17 + $0x488] sm:$0xff]  ;;  %v9482_v10 = vcombine.low %v4582_v60, %v4586_v62 }
 0x5ec   :  { %v9611_v9 = vcombine.high %v4710_v63, %v4714_v3  ;;  %v9610_v19 = vcombine.low %v4710_v63, %v4714_v3  ;;  %v4798_v44 = vld [vmem:[#allocation17 + $0x748] sm:$0xff] }
 0x5ed   :  { %6176 = vmatpush2.bf16.msra.mxu0 %v9536_v7  ;;  %6217 = vmatpush2.bf16.msra.mxu1 %v9664_v8  ;;  %v9483_v7 = vcombine.high %v4582_v60, %v4586_v62  ;;  %v4574_v8 = vld [vmem:[#allocation17 + $0x48] sm:$0xff] }
 0x5ee   :  { %6177 = vmatprep.subr.bf16.mxu0 %v9529_v23  ;;  %6218 = vmatprep.subr.bf16.mxu1 %v9657_v32  ;;  %v4578_v23 = vld [vmem:[#allocation17 + $0x68] sm:$0xff] }
 0x5ef   :  { %v4702_v32 = vld [vmem:[#allocation17 + $0x448] sm:$0xff]  ;;  %v9474_v61 = vcombine.low %v4574_v8, %v4578_v23 }
 0x5f0   :  { %v9602_v24 = vcombine.low %v4702_v32, %v4706_v56  ;;  %v4802_v52 = vld [vmem:[#allocation17 + $0x768] sm:$0xff] }
 0x5f1   :  { %6178 = vmatpush2.bf16.msra.mxu0 %v9528_v40  ;;  %6219 = vmatpush2.bf16.msra.mxu1 %v9656_v11  ;;  %v9475_v40 = vcombine.high %v4574_v8, %v4578_v23  ;;  %v4566_v11 = vld [vmem:[#allocation17 + $0x8] sm:$0xff] }
 0x5f2   :  { %6229 = vmatprep.subr.bf16.mxu0 %v9523_v46  ;;  %6270 = vmatprep.subr.bf16.mxu1 %v9651_v6  ;;  %v4694_v46 = vld [vmem:[#allocation17 + $0x408] sm:$0xff]  ;;  %v9603_v6 = vcombine.high %v4702_v32, %v4706_v56  ;;  %v9467_v25 = vcombine.high %v4566_v11, %v4570_v50  ;;  %v9466_v29 = vcombine.low %v4566_v11, %v4570_v50 }
 0x5f3   :  { %v9595_v28 = vcombine.high %v4694_v46, %v4698_v20  ;;  %v4790_v60 = vld [vmem:[#allocation17 + $0x708] sm:$0xff] }
 0x5f4   :  { %6180 = vmatmul.mubr.bf16.vlgmr.msra.gmra.mxu0 %v11196_v16  ;;  %6221 = vmatmul.mubr.bf16.vlgmr.msra.gmra.mxu1 %v11198_v26  ;;  %v4794_v62 = vld [vmem:[#allocation17 + $0x728] sm:$0xff] }
 0x5f5   :  { %6230 = vmatpush1.bf16.msra.mxu0 %v9522_v27  ;;  %6271 = vmatpush1.bf16.msra.mxu1 %v9650_v15  ;;  %v4686_v27 = vld [vmem:[#allocation17 + $0x3c8] sm:$0xff] }
 0x5f6   :  { %6231 = vmatprep.subr.bf16.mxu0 %v9515_v18  ;;  %6272 = vmatprep.subr.bf16.mxu1 %v9643_v21  ;;  %v4690_v15 = vld [vmem:[#allocation17 + $0x3e8] sm:$0xff]  ;;  %v9594_v21 = vcombine.low %v4694_v46, %v4698_v20 }
 0x5f7   :  { %6261 = vmatprep.mubr.bf16.mxu0 %v11188_v42  ;;  %6302 = vmatprep.mubr.bf16.mxu1 %v11191_v45  ;;  %v4814_v18 = vld [vmem:[#allocation17 + $0x7c8] sm:$0xff]  ;;  %v9587_v30 = vcombine.high %v4686_v27, %v4690_v15  ;;  %v9586_v31 = vcombine.low %v4686_v27, %v4690_v15 }
 0x5f8   :  { %v9715_v4 = vcombine.high %v4814_v18, %v4818_v1  ;;  %v4782_v8 = vld [vmem:[#allocation17 + $0x6c8] sm:$0xff] }
 0x5f9   :  { %6232 = vmatpush1.bf16.msra.mxu0 %v9514_v14  ;;  %6273 = vmatpush1.bf16.msra.mxu1 %v9642_v57  ;;  %v4678_v14 = vld [vmem:[#allocation17 + $0x388] sm:$0xff] }
 0x5fa   :  { %6233 = vmatprep.subr.bf16.mxu0 %v9507_v36  ;;  %6274 = vmatprep.subr.bf16.mxu1 %v9635_v35  ;;  %v4682_v57 = vld [vmem:[#allocation17 + $0x3a8] sm:$0xff]  ;;  %v9714_v35 = vcombine.low %v4814_v18, %v4818_v1 }
 0x5fb   :  { %v4806_v36 = vld [vmem:[#allocation17 + $0x788] sm:$0xff]  ;;  %v9579_v37 = vcombine.high %v4678_v14, %v4682_v57  ;;  %v9578_v48 = vcombine.low %v4678_v14, %v4682_v57 }
 0x5fc   :  { %v4786_v23 = vld [vmem:[#allocation17 + $0x6e8] sm:$0xff] }
 0x5fd   :  { %6234 = vmatpush1.bf16.msra.mxu0 %v9506_v17  ;;  %6275 = vmatpush1.bf16.msra.mxu1 %v9634_v39  ;;  %v9707_v17 = vcombine.high %v4806_v36, %v4810_v12  ;;  %v4670_v39 = vld [vmem:[#allocation17 + $0x348] sm:$0xff] }
 0x5fe   :  { %6235 = vmatprep.subr.bf16.mxu0 %v9499_v38  ;;  %6276 = vmatprep.subr.bf16.mxu1 %v9627_v47  ;;  %v4674_v38 = vld [vmem:[#allocation17 + $0x368] sm:$0xff]  ;;  %v9706_v47 = vcombine.low %v4806_v36, %v4810_v12 }
 0x5ff   :  { %v9571_v49 = vcombine.high %v4670_v39, %v4674_v38  ;;  %v9570_v63 = vcombine.low %v4670_v39, %v4674_v38  ;;  %v4774_v11 = vld [vmem:[#allocation17 + $0x688] sm:$0xff]  ;;  %v4755_v39 = vld [vmem:[#allocation17 + $0x5f0] sm:$0xff] }
 0x600   :  { %v4778_v50 = vld [vmem:[#allocation17 + $0x6a8] sm:$0xff] }
 0x601   :  { %6236 = vmatpush1.bf16.msra.mxu0 %v9498_v53  ;;  %6277 = vmatpush1.bf16.msra.mxu1 %v9626_v58  ;;  %v9699_v53 = vcombine.high %v4798_v44, %v4802_v52  ;;  %v4662_v58 = vld [vmem:[#allocation17 + $0x308] sm:$0xff] }
 0x602   :  { %6237 = vmatprep.subr.bf16.mxu0 %v9491_v59  ;;  %6278 = vmatprep.subr.bf16.mxu1 %v9619_v2  ;;  %v4666_v59 = vld [vmem:[#allocation17 + $0x328] sm:$0xff]  ;;  %v9698_v2 = vcombine.low %v4798_v44, %v4802_v52 }
 0x603   :  { %v9563_v3 = vcombine.high %v4662_v58, %v4666_v59  ;;  %v9562_v32 = vcombine.low %v4662_v58, %v4666_v59  ;;  %v4766_v27 = vld [vmem:[#allocation17 + $0x648] sm:$0xff]  ;;  %v4747_v58 = vld [vmem:[#allocation17 + $0x5b0] sm:$0xff] }
 0x604   :  { %v4770_v15 = vld [vmem:[#allocation17 + $0x668] sm:$0xff] }
 0x605   :  { %6238 = vmatpush1.bf16.msra.mxu0 %v9490_v5  ;;  %6279 = vmatpush1.bf16.msra.mxu1 %v9618_v22  ;;  %v9691_v5 = vcombine.high %v4790_v60, %v4794_v62  ;;  %v4654_v22 = vld [vmem:[#allocation17 + $0x2c8] sm:$0xff] }
 0x606   :  { %6239 = vmatprep.subr.bf16.mxu0 %v9483_v7  ;;  %6280 = vmatprep.subr.bf16.mxu1 %v9611_v9  ;;  %v4658_v7 = vld [vmem:[#allocation17 + $0x2e8] sm:$0xff]  ;;  %v9690_v9 = vcombine.low %v4790_v60, %v4794_v62 }
 0x607   :  { %v9555_v56 = vcombine.high %v4654_v22, %v4658_v7  ;;  %v9554_v46 = vcombine.low %v4654_v22, %v4658_v7  ;;  %v4758_v14 = vld [vmem:[#allocation17 + $0x608] sm:$0xff]  ;;  %v4739_v22 = vld [vmem:[#allocation17 + $0x570] sm:$0xff] }
 0x608   :  { %v4762_v57 = vld [vmem:[#allocation17 + $0x628] sm:$0xff] }
 0x609   :  { %6240 = vmatpush1.bf16.msra.mxu0 %v9482_v10  ;;  %6281 = vmatpush1.bf16.msra.mxu1 %v9610_v19  ;;  %v9683_v10 = vcombine.high %v4782_v8, %v4786_v23  ;;  %v4646_v19 = vld [vmem:[#allocation17 + $0x288] sm:$0xff]  ;;  %v9658_v44 = vcombine.low %v4758_v14, %v4762_v57 }
 0x60a   :  { %6241 = vmatprep.subr.bf16.mxu0 %v9475_v40  ;;  %6282 = vmatprep.subr.bf16.mxu1 %v9603_v6  ;;  %v4650_v40 = vld [vmem:[#allocation17 + $0x2a8] sm:$0xff]  ;;  %v9682_v6 = vcombine.low %v4782_v8, %v4786_v23 }
 0x60b   :  { %v9547_v20 = vcombine.high %v4646_v19, %v4650_v40  ;;  %v9546_v18 = vcombine.low %v4646_v19, %v4650_v40  ;;  %v4731_v19 = vld [vmem:[#allocation17 + $0x530] sm:$0xff] }
 0x60d   :  { %6242 = vmatpush1.bf16.msra.mxu0 %v9474_v61  ;;  %6283 = vmatpush1.bf16.msra.mxu1 %v9602_v24  ;;  %v9675_v61 = vcombine.high %v4774_v11, %v4778_v50  ;;  %v4638_v24 = vld [vmem:[#allocation17 + $0x248] sm:$0xff] }
 0x60e   :  { %6243 = vmatprep.subr.bf16.mxu0 %v9467_v25  ;;  %6284 = vmatprep.subr.bf16.mxu1 %v9595_v28  ;;  %v4642_v25 = vld [vmem:[#allocation17 + $0x268] sm:$0xff]  ;;  %v9674_v28 = vcombine.low %v4774_v11, %v4778_v50 }
 0x60f   :  { %v9539_v1 = vcombine.high %v4638_v24, %v4642_v25  ;;  %v9538_v36 = vcombine.low %v4638_v24, %v4642_v25  ;;  %v4723_v24 = vld [vmem:[#allocation17 + $0x4f0] sm:$0xff] }
 0x611   :  { %6244 = vmatpush1.bf16.msra.mxu0 %v9466_v29  ;;  %6285 = vmatpush1.bf16.msra.mxu1 %v9594_v21  ;;  %v9667_v29 = vcombine.high %v4766_v27, %v4770_v15  ;;  %v4630_v21 = vld [vmem:[#allocation17 + $0x208] sm:$0xff] }
 0x612   :  { %6245 = vmatprep.subr.bf16.mxu0 %v9587_v30  ;;  %6286 = vmatprep.subr.bf16.mxu1 %v9715_v4  ;;  %v4634_v30 = vld [vmem:[#allocation17 + $0x228] sm:$0xff]  ;;  %v9666_v4 = vcombine.low %v4766_v27, %v4770_v15 }
 0x613   :  { %v9531_v12 = vcombine.high %v4630_v21, %v4634_v30  ;;  %v9530_v38 = vcombine.low %v4630_v21, %v4634_v30  ;;  %v4715_v21 = vld [vmem:[#allocation17 + $0x4b0] sm:$0xff] }
 0x615   :  { %6246 = vmatpush2.bf16.msra.mxu0 %v9586_v31  ;;  %6287 = vmatpush2.bf16.msra.mxu1 %v9714_v35  ;;  %v9659_v31 = vcombine.high %v4758_v14, %v4762_v57  ;;  %v4623_v35 = vld [vmem:[#allocation17 + $0x1d0] sm:$0xff] }
 0x616   :  { %6247 = vmatprep.subr.bf16.mxu0 %v9579_v37  ;;  %6288 = vmatprep.subr.bf16.mxu1 %v9707_v17  ;;  %v4627_v37 = vld [vmem:[#allocation17 + $0x1f0] sm:$0xff] }
 0x617   :  { %v4751_v17 = vld [vmem:[#allocation17 + $0x5d0] sm:$0xff]  ;;  %v9525_v52 = vcombine.high %v4623_v35, %v4627_v37  ;;  %v9524_v59 = vcombine.low %v4623_v35, %v4627_v37 }
 0x618   :  { %v9652_v60 = vcombine.low %v4751_v17, %v4755_v39  ;;  %v4707_v35 = vld [vmem:[#allocation17 + $0x470] sm:$0xff] }
 0x619   :  { %6248 = vmatpush2.bf16.msra.mxu0 %v9578_v48  ;;  %6289 = vmatpush2.bf16.msra.mxu1 %v9706_v47  ;;  %v9653_v48 = vcombine.high %v4751_v17, %v4755_v39  ;;  %v4615_v47 = vld [vmem:[#allocation17 + $0x190] sm:$0xff] }
 0x61a   :  { %6249 = vmatprep.subr.bf16.mxu0 %v9571_v49  ;;  %6290 = vmatprep.subr.bf16.mxu1 %v9699_v53  ;;  %v4619_v49 = vld [vmem:[#allocation17 + $0x1b0] sm:$0xff] }
 0x61b   :  { %v4743_v53 = vld [vmem:[#allocation17 + $0x590] sm:$0xff]  ;;  %v9517_v62 = vcombine.high %v4615_v47, %v4619_v49  ;;  %v9516_v7 = vcombine.low %v4615_v47, %v4619_v49 }
 0x61c   :  { %v9644_v8 = vcombine.low %v4743_v53, %v4747_v58  ;;  %v4699_v47 = vld [vmem:[#allocation17 + $0x430] sm:$0xff] }
 0x61d   :  { %6250 = vmatpush2.bf16.msra.mxu0 %v9570_v63  ;;  %6291 = vmatpush2.bf16.msra.mxu1 %v9698_v2  ;;  %v9645_v63 = vcombine.high %v4743_v53, %v4747_v58  ;;  %v4607_v2 = vld [vmem:[#allocation17 + $0x150] sm:$0xff] }
 0x61e   :  { %6251 = vmatprep.subr.bf16.mxu0 %v9563_v3  ;;  %6292 = vmatprep.subr.bf16.mxu1 %v9691_v5  ;;  %v4611_v3 = vld [vmem:[#allocation17 + $0x170] sm:$0xff] }
 0x61f   :  { %v4735_v5 = vld [vmem:[#allocation17 + $0x550] sm:$0xff]  ;;  %v9509_v23 = vcombine.high %v4607_v2, %v4611_v3  ;;  %v9508_v40 = vcombine.low %v4607_v2, %v4611_v3 }
 0x620   :  { %v9636_v11 = vcombine.low %v4735_v5, %v4739_v22  ;;  %v4819_v2 = vld [vmem:[#allocation17 + $0x7f0] sm:$0xff] }
 0x621   :  { %6252 = vmatpush2.bf16.msra.mxu0 %v9562_v32  ;;  %6293 = vmatpush2.bf16.msra.mxu1 %v9690_v9  ;;  %v9637_v32 = vcombine.high %v4735_v5, %v4739_v22  ;;  %v4599_v9 = vld [vmem:[#allocation17 + $0x110] sm:$0xff] }
 0x622   :  { %6253 = vmatprep.subr.bf16.mxu0 %v9555_v56  ;;  %6294 = vmatprep.subr.bf16.mxu1 %v9683_v10  ;;  %v4603_v56 = vld [vmem:[#allocation17 + $0x130] sm:$0xff] }
 0x623   :  { %v4727_v10 = vld [vmem:[#allocation17 + $0x510] sm:$0xff]  ;;  %v9501_v50 = vcombine.high %v4599_v9, %v4603_v56  ;;  %v9500_v25 = vcombine.low %v4599_v9, %v4603_v56 }
 0x624   :  { %v9628_v27 = vcombine.low %v4727_v10, %v4731_v19  ;;  %v4811_v9 = vld [vmem:[#allocation17 + $0x7b0] sm:$0xff] }
 0x625   :  { %6254 = vmatpush2.bf16.msra.mxu0 %v9554_v46  ;;  %6295 = vmatpush2.bf16.msra.mxu1 %v9682_v6  ;;  %v9629_v46 = vcombine.high %v4727_v10, %v4731_v19  ;;  %v4591_v6 = vld [vmem:[#allocation17 + $0xd0] sm:$0xff] }
 0x626   :  { %6255 = vmatprep.subr.bf16.mxu0 %v9547_v20  ;;  %6296 = vmatprep.subr.bf16.mxu1 %v9675_v61  ;;  %v4595_v20 = vld [vmem:[#allocation17 + $0xf0] sm:$0xff] }
 0x627   :  { %v4719_v61 = vld [vmem:[#allocation17 + $0x4d0] sm:$0xff]  ;;  %v9493_v15 = vcombine.high %v4591_v6, %v4595_v20  ;;  %v9492_v30 = vcombine.low %v4591_v6, %v4595_v20 }
 0x628   :  { %v9620_v14 = vcombine.low %v4719_v61, %v4723_v24  ;;  %v4803_v6 = vld [vmem:[#allocation17 + $0x770] sm:$0xff] }
 0x629   :  { %6256 = vmatpush2.bf16.msra.mxu0 %v9546_v18  ;;  %6297 = vmatpush2.bf16.msra.mxu1 %v9674_v28  ;;  %v9621_v18 = vcombine.high %v4719_v61, %v4723_v24  ;;  %v4583_v28 = vld [vmem:[#allocation17 + $0x90] sm:$0xff] }
 0x62a   :  { %6257 = vmatprep.subr.bf16.mxu0 %v9539_v1  ;;  %6298 = vmatprep.subr.bf16.mxu1 %v9667_v29  ;;  %v4587_v1 = vld [vmem:[#allocation17 + $0xb0] sm:$0xff] }
 0x62b   :  { %v4711_v29 = vld [vmem:[#allocation17 + $0x490] sm:$0xff]  ;;  %v9485_v57 = vcombine.high %v4583_v28, %v4587_v1  ;;  %v9484_v37 = vcombine.low %v4583_v28, %v4587_v1 }
 0x62c   :  { %v9612_v17 = vcombine.low %v4711_v29, %v4715_v21  ;;  %v4795_v28 = vld [vmem:[#allocation17 + $0x730] sm:$0xff] }
 0x62d   :  { %6258 = vmatpush2.bf16.msra.mxu0 %v9538_v36  ;;  %6299 = vmatpush2.bf16.msra.mxu1 %v9666_v4  ;;  %v9613_v36 = vcombine.high %v4711_v29, %v4715_v21  ;;  %v4575_v4 = vld [vmem:[#allocation17 + $0x50] sm:$0xff] }
 0x62e   :  { %6259 = vmatprep.subr.bf16.mxu0 %v9531_v12  ;;  %6300 = vmatprep.subr.bf16.mxu1 %v9659_v31  ;;  %v4579_v12 = vld [vmem:[#allocation17 + $0x70] sm:$0xff] }
 0x62f   :  { %v4703_v31 = vld [vmem:[#allocation17 + $0x450] sm:$0xff]  ;;  %v9477_v39 = vcombine.high %v4575_v4, %v4579_v12  ;;  %v9476_v49 = vcombine.low %v4575_v4, %v4579_v12 }
 0x630   :  { %v9604_v53 = vcombine.low %v4703_v31, %v4707_v35  ;;  %v4787_v4 = vld [vmem:[#allocation17 + $0x6f0] sm:$0xff] }
 0x631   :  { %6260 = vmatpush2.bf16.msra.mxu0 %v9530_v38  ;;  %6301 = vmatpush2.bf16.msra.mxu1 %v9658_v44  ;;  %v9605_v38 = vcombine.high %v4703_v31, %v4707_v35  ;;  %v4567_v44 = vld [vmem:[#allocation17 + $0x10] sm:$0xff] }
 0x632   :  { %6311 = vmatprep.subr.bf16.mxu0 %v9525_v52  ;;  %6352 = vmatprep.subr.bf16.mxu1 %v9653_v48  ;;  %v4571_v52 = vld [vmem:[#allocation17 + $0x30] sm:$0xff] }
 0x633   :  { %v4695_v48 = vld [vmem:[#allocation17 + $0x410] sm:$0xff]  ;;  %v9469_v58 = vcombine.high %v4567_v44, %v4571_v52  ;;  %v9468_v3 = vcombine.low %v4567_v44, %v4571_v52 }
 0x634   :  { %6262 = vmatmul.mubr.bf16.vlgmr.msra.gmra.mxu0 %v11196_v16  ;;  %6303 = vmatmul.mubr.bf16.vlgmr.msra.gmra.mxu1 %v11198_v26  ;;  %v9596_v5 = vcombine.low %v4695_v48, %v4699_v47  ;;  %v4779_v44 = vld [vmem:[#allocation17 + $0x6b0] sm:$0xff] }
 0x635   :  { %6312 = vmatpush1.bf16.msra.mxu0 %v9524_v59  ;;  %6353 = vmatpush1.bf16.msra.mxu1 %v9652_v60  ;;  %v9597_v59 = vcombine.high %v4695_v48, %v4699_v47  ;;  %v4687_v60 = vld [vmem:[#allocation17 + $0x3d0] sm:$0xff] }
 0x636   :  { %6313 = vmatprep.subr.bf16.mxu0 %v9517_v62  ;;  %6354 = vmatprep.subr.bf16.mxu1 %v9645_v63  ;;  %v4691_v62 = vld [vmem:[#allocation17 + $0x3f0] sm:$0xff] }
 0x637   :  { %6343 = vmatprep.mubr.bf16.mxu0 %v11188_v42  ;;  %6384 = vmatprep.mubr.bf16.mxu1 %v11191_v45  ;;  %v4815_v63 = vld [vmem:[#allocation17 + $0x7d0] sm:$0xff]  ;;  %v9589_v22 = vcombine.high %v4687_v60, %v4691_v62  ;;  %v9588_v56 = vcombine.low %v4687_v60, %v4691_v62 }
 0x638   :  { %v9716_v10 = vcombine.low %v4815_v63, %v4819_v2  ;;  %v4771_v60 = vld [vmem:[#allocation17 + $0x670] sm:$0xff] }
 0x639   :  { %6314 = vmatpush1.bf16.msra.mxu0 %v9516_v7  ;;  %6355 = vmatpush1.bf16.msra.mxu1 %v9644_v8  ;;  %v9717_v7 = vcombine.high %v4815_v63, %v4819_v2  ;;  %v4679_v8 = vld [vmem:[#allocation17 + $0x390] sm:$0xff] }
 0x63a   :  { %6315 = vmatprep.subr.bf16.mxu0 %v9509_v23  ;;  %6356 = vmatprep.subr.bf16.mxu1 %v9637_v32  ;;  %v4683_v23 = vld [vmem:[#allocation17 + $0x3b0] sm:$0xff] }
 0x63b   :  { %v4807_v32 = vld [vmem:[#allocation17 + $0x790] sm:$0xff]  ;;  %v9581_v19 = vcombine.high %v4679_v8, %v4683_v23  ;;  %v9580_v20 = vcombine.low %v4679_v8, %v4683_v23 }
 0x63c   :  { %v9708_v61 = vcombine.low %v4807_v32, %v4811_v9  ;;  %v4763_v8 = vld [vmem:[#allocation17 + $0x630] sm:$0xff] }
 0x63d   :  { %6316 = vmatpush1.bf16.msra.mxu0 %v9508_v40  ;;  %6357 = vmatpush1.bf16.msra.mxu1 %v9636_v11  ;;  %v9709_v40 = vcombine.high %v4807_v32, %v4811_v9  ;;  %v4671_v11 = vld [vmem:[#allocation17 + $0x350] sm:$0xff] }
 0x63e   :  { %6317 = vmatprep.subr.bf16.mxu0 %v9501_v50  ;;  %6358 = vmatprep.subr.bf16.mxu1 %v9629_v46  ;;  %v4675_v50 = vld [vmem:[#allocation17 + $0x370] sm:$0xff] }
 0x63f   :  { %v4799_v46 = vld [vmem:[#allocation17 + $0x750] sm:$0xff]  ;;  %v9573_v24 = vcombine.high %v4671_v11, %v4675_v50  ;;  %v9572_v1 = vcombine.low %v4671_v11, %v4675_v50  ;;  %v4756_v11 = vld [vmem:[#allocation17 + $0x5f8] sm:$0xff] }
 0x640   :  { %v9700_v29 = vcombine.low %v4799_v46, %v4803_v6 }
 0x641   :  { %6318 = vmatpush1.bf16.msra.mxu0 %v9500_v25  ;;  %6359 = vmatpush1.bf16.msra.mxu1 %v9628_v27  ;;  %v9701_v25 = vcombine.high %v4799_v46, %v4803_v6  ;;  %v4663_v27 = vld [vmem:[#allocation17 + $0x310] sm:$0xff] }
 0x642   :  { %6319 = vmatprep.subr.bf16.mxu0 %v9493_v15  ;;  %6360 = vmatprep.subr.bf16.mxu1 %v9621_v18  ;;  %v4667_v15 = vld [vmem:[#allocation17 + $0x330] sm:$0xff] }
 0x643   :  { %v4791_v18 = vld [vmem:[#allocation17 + $0x710] sm:$0xff]  ;;  %v9565_v21 = vcombine.high %v4663_v27, %v4667_v15  ;;  %v9564_v12 = vcombine.low %v4663_v27, %v4667_v15  ;;  %v4748_v27 = vld [vmem:[#allocation17 + $0x5b8] sm:$0xff] }
 0x644   :  { %v9692_v31 = vcombine.low %v4791_v18, %v4795_v28 }
 0x645   :  { %6320 = vmatpush1.bf16.msra.mxu0 %v9492_v30  ;;  %6361 = vmatpush1.bf16.msra.mxu1 %v9620_v14  ;;  %v9693_v30 = vcombine.high %v4791_v18, %v4795_v28  ;;  %v4655_v14 = vld [vmem:[#allocation17 + $0x2d0] sm:$0xff] }
 0x646   :  { %6321 = vmatprep.subr.bf16.mxu0 %v9485_v57  ;;  %6362 = vmatprep.subr.bf16.mxu1 %v9613_v36  ;;  %v4659_v57 = vld [vmem:[#allocation17 + $0x2f0] sm:$0xff] }
 0x647   :  { %v4783_v36 = vld [vmem:[#allocation17 + $0x6d0] sm:$0xff]  ;;  %v9557_v35 = vcombine.high %v4655_v14, %v4659_v57  ;;  %v9556_v52 = vcombine.low %v4655_v14, %v4659_v57  ;;  %v4740_v14 = vld [vmem:[#allocation17 + $0x578] sm:$0xff] }
 0x648   :  { %v9684_v48 = vcombine.low %v4783_v36, %v4787_v4 }
 0x649   :  { %6322 = vmatpush1.bf16.msra.mxu0 %v9484_v37  ;;  %6363 = vmatpush1.bf16.msra.mxu1 %v9612_v17  ;;  %v9685_v37 = vcombine.high %v4783_v36, %v4787_v4  ;;  %v4647_v17 = vld [vmem:[#allocation17 + $0x290] sm:$0xff] }
 0x64a   :  { %6323 = vmatprep.subr.bf16.mxu0 %v9477_v39  ;;  %6364 = vmatprep.subr.bf16.mxu1 %v9605_v38  ;;  %v4651_v39 = vld [vmem:[#allocation17 + $0x2b0] sm:$0xff] }
 0x64b   :  { %v4775_v38 = vld [vmem:[#allocation17 + $0x690] sm:$0xff]  ;;  %v9549_v47 = vcombine.high %v4647_v17, %v4651_v39  ;;  %v9548_v62 = vcombine.low %v4647_v17, %v4651_v39  ;;  %v4732_v17 = vld [vmem:[#allocation17 + $0x538] sm:$0xff] }
 0x64c   :  { %v9676_v63 = vcombine.low %v4775_v38, %v4779_v44 }
 0x64d   :  { %6324 = vmatpush1.bf16.msra.mxu0 %v9476_v49  ;;  %6365 = vmatpush1.bf16.msra.mxu1 %v9604_v53  ;;  %v9677_v49 = vcombine.high %v4775_v38, %v4779_v44  ;;  %v4639_v53 = vld [vmem:[#allocation17 + $0x250] sm:$0xff] }
 0x64e   :  { %6325 = vmatprep.subr.bf16.mxu0 %v9469_v58  ;;  %6366 = vmatprep.subr.bf16.mxu1 %v9597_v59  ;;  %v4643_v58 = vld [vmem:[#allocation17 + $0x270] sm:$0xff] }
 0x64f   :  { %v4767_v59 = vld [vmem:[#allocation17 + $0x650] sm:$0xff]  ;;  %v9541_v2 = vcombine.high %v4639_v53, %v4643_v58  ;;  %v9540_v23 = vcombine.low %v4639_v53, %v4643_v58  ;;  %v4724_v53 = vld [vmem:[#allocation17 + $0x4f8] sm:$0xff] }
 0x650   :  { %v9668_v32 = vcombine.low %v4767_v59, %v4771_v60 }
 0x651   :  { %6326 = vmatpush1.bf16.msra.mxu0 %v9468_v3  ;;  %6367 = vmatpush1.bf16.msra.mxu1 %v9596_v5  ;;  %v9669_v3 = vcombine.high %v4767_v59, %v4771_v60  ;;  %v4631_v5 = vld [vmem:[#allocation17 + $0x210] sm:$0xff]  ;;  %v4584_v60 = vld [vmem:[#allocation17 + $0x98] sm:$0xff] }
 0x652   :  { %6327 = vmatprep.subr.bf16.mxu0 %v9589_v22  ;;  %6368 = vmatprep.subr.bf16.mxu1 %v9717_v7  ;;  %v4635_v22 = vld [vmem:[#allocation17 + $0x230] sm:$0xff] }
 0x653   :  { %v4759_v7 = vld [vmem:[#allocation17 + $0x610] sm:$0xff]  ;;  %v9533_v9 = vcombine.high %v4631_v5, %v4635_v22  ;;  %v9532_v50 = vcombine.low %v4631_v5, %v4635_v22 }
 0x654   :  { %v9660_v46 = vcombine.low %v4759_v7, %v4763_v8 }
 0x655   :  { %6328 = vmatpush2.bf16.msra.mxu0 %v9588_v56  ;;  %6369 = vmatpush2.bf16.msra.mxu1 %v9716_v10  ;;  %v9661_v56 = vcombine.high %v4759_v7, %v4763_v8  ;;  %v4624_v10 = vld [vmem:[#allocation17 + $0x1d8] sm:$0xff] }
 0x656   :  { %6329 = vmatprep.subr.bf16.mxu0 %v9581_v19  ;;  %6370 = vmatprep.subr.bf16.mxu1 %v9709_v40  ;;  %v4628_v19 = vld [vmem:[#allocation17 + $0x1f8] sm:$0xff] }
 0x657   :  { %v4752_v40 = vld [vmem:[#allocation17 + $0x5d8] sm:$0xff]  ;;  %v9527_v6 = vcombine.high %v4624_v10, %v4628_v19  ;;  %v9526_v15 = vcombine.low %v4624_v10, %v4628_v19 }
 0x658   :  { %v9654_v18 = vcombine.low %v4752_v40, %v4756_v11  ;;  %v4576_v8 = vld [vmem:[#allocation17 + $0x58] sm:$0xff] }
 0x659   :  { %6330 = vmatpush2.bf16.msra.mxu0 %v9580_v20  ;;  %6371 = vmatpush2.bf16.msra.mxu1 %v9708_v61  ;;  %v9655_v20 = vcombine.high %v4752_v40, %v4756_v11  ;;  %v4616_v61 = vld [vmem:[#allocation17 + $0x198] sm:$0xff] }
 0x65a   :  { %6331 = vmatprep.subr.bf16.mxu0 %v9573_v24  ;;  %6372 = vmatprep.subr.bf16.mxu1 %v9701_v25  ;;  %v4620_v24 = vld [vmem:[#allocation17 + $0x1b8] sm:$0xff] }
 0x65b   :  { %v4744_v25 = vld [vmem:[#allocation17 + $0x598] sm:$0xff]  ;;  %v9519_v28 = vcombine.high %v4616_v61, %v4620_v24  ;;  %v9518_v57 = vcombine.low %v4616_v61, %v4620_v24 }
 0x65c   :  { %v9646_v36 = vcombine.low %v4744_v25, %v4748_v27  ;;  %v4568_v11 = vld [vmem:[#allocation17 + $0x18] sm:$0xff] }
 0x65d   :  { %6332 = vmatpush2.bf16.msra.mxu0 %v9572_v1  ;;  %6373 = vmatpush2.bf16.msra.mxu1 %v9700_v29  ;;  %v9647_v1 = vcombine.high %v4744_v25, %v4748_v27  ;;  %v4608_v29 = vld [vmem:[#allocation17 + $0x158] sm:$0xff] }
 0x65e   :  { %6333 = vmatprep.subr.bf16.mxu0 %v9565_v21  ;;  %6374 = vmatprep.subr.bf16.mxu1 %v9693_v30  ;;  %v4612_v21 = vld [vmem:[#allocation17 + $0x178] sm:$0xff] }
 0x65f   :  { %v4736_v30 = vld [vmem:[#allocation17 + $0x558] sm:$0xff]  ;;  %v9511_v4 = vcombine.high %v4608_v29, %v4612_v21  ;;  %v9510_v39 = vcombine.low %v4608_v29, %v4612_v21 }
 0x660   :  { %v9638_v38 = vcombine.low %v4736_v30, %v4740_v14  ;;  %v4688_v27 = vld [vmem:[#allocation17 + $0x3d8] sm:$0xff] }
 0x661   :  { %6334 = vmatpush2.bf16.msra.mxu0 %v9564_v12  ;;  %6375 = vmatpush2.bf16.msra.mxu1 %v9692_v31  ;;  %v9639_v12 = vcombine.high %v4736_v30, %v4740_v14  ;;  %v4600_v31 = vld [vmem:[#allocation17 + $0x118] sm:$0xff] }
 0x662   :  { %6335 = vmatprep.subr.bf16.mxu0 %v9557_v35  ;;  %6376 = vmatprep.subr.bf16.mxu1 %v9685_v37  ;;  %v4604_v35 = vld [vmem:[#allocation17 + $0x138] sm:$0xff] }
 0x663   :  { %v4728_v37 = vld [vmem:[#allocation17 + $0x518] sm:$0xff]  ;;  %v9503_v44 = vcombine.high %v4600_v31, %v4604_v35  ;;  %v9502_v58 = vcombine.low %v4600_v31, %v4604_v35 }
 0x664   :  { %v4680_v14 = vld [vmem:[#allocation17 + $0x398] sm:$0xff] }
 0x665   :  { %6336 = vmatpush2.bf16.msra.mxu0 %v9556_v52  ;;  %6377 = vmatpush2.bf16.msra.mxu1 %v9684_v48  ;;  %v9631_v52 = vcombine.high %v4728_v37, %v4732_v17  ;;  %v4592_v48 = vld [vmem:[#allocation17 + $0xd8] sm:$0xff] }
 0x666   :  { %6337 = vmatprep.subr.bf16.mxu0 %v9549_v47  ;;  %6378 = vmatprep.subr.bf16.mxu1 %v9677_v49  ;;  %v4596_v47 = vld [vmem:[#allocation17 + $0xf8] sm:$0xff] }
 0x667   :  { %v4720_v49 = vld [vmem:[#allocation17 + $0x4d8] sm:$0xff]  ;;  %v9495_v59 = vcombine.high %v4592_v48, %v4596_v47 }
 0x668   :  { %v9622_v5 = vcombine.low %v4720_v49, %v4724_v53 }
 0x669   :  { %6338 = vmatpush2.bf16.msra.mxu0 %v9548_v62  ;;  %6379 = vmatpush2.bf16.msra.mxu1 %v9676_v63  ;;  %v4588_v62 = vld [vmem:[#allocation17 + $0xb8] sm:$0xff] }
 0x66a   :  { %6339 = vmatprep.subr.bf16.mxu0 %v9541_v2  ;;  %6380 = vmatprep.subr.bf16.mxu1 %v9669_v3  ;;  %v4712_v63 = vld [vmem:[#allocation17 + $0x498] sm:$0xff]  ;;  %v9494_v3 = vcombine.low %v4592_v48, %v4596_v47  ;;  %v9487_v22 = vcombine.high %v4584_v60, %v4588_v62 }
 0x66b   :  { %v4716_v2 = vld [vmem:[#allocation17 + $0x4b8] sm:$0xff] }
 0x66c   :  { %v9615_v7 = vcombine.high %v4712_v63, %v4716_v2  ;;  %v9614_v10 = vcombine.low %v4712_v63, %v4716_v2  ;;  %v4656_v2 = vld [vmem:[#allocation17 + $0x2d8] sm:$0xff] }
 0x66d   :  { %6340 = vmatpush2.bf16.msra.mxu0 %v9540_v23  ;;  %6381 = vmatpush2.bf16.msra.mxu1 %v9668_v32  ;;  %v4580_v23 = vld [vmem:[#allocation17 + $0x78] sm:$0xff] }
 0x66e   :  { %6341 = vmatprep.subr.bf16.mxu0 %v9533_v9  ;;  %6382 = vmatprep.subr.bf16.mxu1 %v9661_v56  ;;  %v4704_v32 = vld [vmem:[#allocation17 + $0x458] sm:$0xff]  ;;  %v9486_v56 = vcombine.low %v4584_v60, %v4588_v62  ;;  %v9479_v19 = vcombine.high %v4576_v8, %v4580_v23 }
 0x66f   :  { %v4708_v9 = vld [vmem:[#allocation17 + $0x478] sm:$0xff] }
 0x670   :  { %v9607_v40 = vcombine.high %v4704_v32, %v4708_v9  ;;  %v9606_v61 = vcombine.low %v4704_v32, %v4708_v9  ;;  %v4648_v9 = vld [vmem:[#allocation17 + $0x298] sm:$0xff] }
 0x671   :  { %6342 = vmatpush2.bf16.msra.mxu0 %v9532_v50  ;;  %6383 = vmatpush2.bf16.msra.mxu1 %v9660_v46  ;;  %v4572_v50 = vld [vmem:[#allocation17 + $0x38] sm:$0xff] }
 0x672   :  { %6393 = vmatprep.subr.bf16.mxu0 %v9527_v6  ;;  %6434 = vmatprep.subr.bf16.mxu1 %v9655_v20  ;;  %v4696_v46 = vld [vmem:[#allocation17 + $0x418] sm:$0xff]  ;;  %v9478_v20 = vcombine.low %v4576_v8, %v4580_v23  ;;  %v9471_v24 = vcombine.high %v4568_v11, %v4572_v50 }
 0x673   :  { %v4700_v6 = vld [vmem:[#allocation17 + $0x438] sm:$0xff] }
 0x674   :  { %6344 = vmatmul.mubr.bf16.vlgmr.msra.gmra.mxu0 %v11196_v16  ;;  %6385 = vmatmul.mubr.bf16.vlgmr.msra.gmra.mxu1 %v11198_v26  ;;  %v9599_v25 = vcombine.high %v4696_v46, %v4700_v6  ;;  %v9598_v29 = vcombine.low %v4696_v46, %v4700_v6  ;;  %v4640_v6 = vld [vmem:[#allocation17 + $0x258] sm:$0xff] }
 0x675   :  { %6394 = vmatpush1.bf16.msra.mxu0 %v9526_v15  ;;  %6435 = vmatpush1.bf16.msra.mxu1 %v9654_v18  ;;  %v4692_v15 = vld [vmem:[#allocation17 + $0x3f8] sm:$0xff] }
 0x676   :  { %6395 = vmatprep.subr.bf16.mxu0 %v9519_v28  ;;  %6436 = vmatprep.subr.bf16.mxu1 %v9647_v1  ;;  %v4816_v18 = vld [vmem:[#allocation17 + $0x7d8] sm:$0xff]  ;;  %v9470_v1 = vcombine.low %v4568_v11, %v4572_v50  ;;  %v9591_v21 = vcombine.high %v4688_v27, %v4692_v15 }
 0x677   :  { %6425 = vmatprep.mubr.bf16.mxu0 %v11188_v42  ;;  %6466 = vmatprep.mubr.bf16.mxu1 %v11191_v45  ;;  %v9630_v42 = vcombine.low %v4728_v37, %v4732_v17  ;;  %v9623_v45 = vcombine.high %v4720_v49, %v4724_v53  ;;  %v4820_v28 = vld [vmem:[#allocation17 + $0x7f8] sm:$0xff] }
 0x678   :  { %v9719_v30 = vcombine.high %v4816_v18, %v4820_v28  ;;  %v9718_v31 = vcombine.low %v4816_v18, %v4820_v28  ;;  %v4672_v17 = vld [vmem:[#allocation17 + $0x358] sm:$0xff] }
 0x679   :  { %6396 = vmatpush1.bf16.msra.mxu0 %v9518_v57  ;;  %6437 = vmatpush1.bf16.msra.mxu1 %v9646_v36  ;;  %v4684_v57 = vld [vmem:[#allocation17 + $0x3b8] sm:$0xff] }
 0x67a   :  { %6397 = vmatprep.subr.bf16.mxu0 %v9511_v4  ;;  %6438 = vmatprep.subr.bf16.mxu1 %v9639_v12  ;;  %v4808_v36 = vld [vmem:[#allocation17 + $0x798] sm:$0xff]  ;;  %v9590_v12 = vcombine.low %v4688_v27, %v4692_v15  ;;  %v9583_v35 = vcombine.high %v4680_v14, %v4684_v57 }
 0x67b   :  { %v4812_v4 = vld [vmem:[#allocation17 + $0x7b8] sm:$0xff] }
 0x67c   :  { %v9711_v37 = vcombine.high %v4808_v36, %v4812_v4  ;;  %v9710_v48 = vcombine.low %v4808_v36, %v4812_v4  ;;  %v4664_v53 = vld [vmem:[#allocation17 + $0x318] sm:$0xff] }
 0x67d   :  { %6398 = vmatpush1.bf16.msra.mxu0 %v9510_v39  ;;  %6439 = vmatpush1.bf16.msra.mxu1 %v9638_v38  ;;  %v4676_v39 = vld [vmem:[#allocation17 + $0x378] sm:$0xff] }
 0x67e   :  { %6399 = vmatprep.subr.bf16.mxu0 %v9503_v44  ;;  %6440 = vmatprep.subr.bf16.mxu1 %v9631_v52  ;;  %v4800_v38 = vld [vmem:[#allocation17 + $0x758] sm:$0xff]  ;;  %v9582_v52 = vcombine.low %v4680_v14, %v4684_v57  ;;  %v9575_v47 = vcombine.high %v4672_v17, %v4676_v39 }
 0x67f   :  { %v4804_v44 = vld [vmem:[#allocation17 + $0x778] sm:$0xff] }
 0x680   :  { %v9703_v49 = vcombine.high %v4800_v38, %v4804_v44  ;;  %v9702_v60 = vcombine.low %v4800_v38, %v4804_v44  ;;  %v4632_v28 = vld [vmem:[#allocation17 + $0x218] sm:$0xff] }
 0x681   :  { %6400 = vmatpush1.bf16.msra.mxu0 %v9502_v58  ;;  %6441 = vmatpush1.bf16.msra.mxu1 %v9630_v42  ;;  %v4668_v58 = vld [vmem:[#allocation17 + $0x338] sm:$0xff] }
 0x682   :  { %6401 = vmatprep.subr.bf16.mxu0 %v9495_v59  ;;  %6442 = vmatprep.subr.bf16.mxu1 %v9623_v45  ;;  %v4792_v42 = vld [vmem:[#allocation17 + $0x718] sm:$0xff]  ;;  %v9574_v45 = vcombine.low %v4672_v17, %v4676_v39  ;;  %v9567_v62 = vcombine.high %v4664_v53, %v4668_v58 }
 0x683   :  { %v4796_v59 = vld [vmem:[#allocation17 + $0x738] sm:$0xff] }
 0x684   :  { %v9695_v63 = vcombine.high %v4792_v42, %v4796_v59  ;;  %v9694_v8 = vcombine.low %v4792_v42, %v4796_v59 }
 0x685   :  { %6402 = vmatpush1.bf16.msra.mxu0 %v9494_v3  ;;  %6443 = vmatpush1.bf16.msra.mxu1 %v9622_v5  ;;  %v4660_v3 = vld [vmem:[#allocation17 + $0x2f8] sm:$0xff] }
 0x686   :  { %6403 = vmatprep.subr.bf16.mxu0 %v9487_v22  ;;  %6444 = vmatprep.subr.bf16.mxu1 %v9615_v7  ;;  %v4784_v5 = vld [vmem:[#allocation17 + $0x6d8] sm:$0xff]  ;;  %v9566_v7 = vcombine.low %v4664_v53, %v4668_v58  ;;  %v9559_v23 = vcombine.high %v4656_v2, %v4660_v3 }
 0x687   :  { %v4788_v22 = vld [vmem:[#allocation17 + $0x6f8] sm:$0xff] }
 0x688   :  { %v9687_v32 = vcombine.high %v4784_v5, %v4788_v22  ;;  %v9686_v11 = vcombine.low %v4784_v5, %v4788_v22  ;;  %v6710_v5 = vld [vmem:[#allocation17 + $0xda0] sm:$0xff] }
 0x689   :  { %6404 = vmatpush1.bf16.msra.mxu0 %v9486_v56  ;;  %6445 = vmatpush1.bf16.msra.mxu1 %v9614_v10  ;;  %v4652_v56 = vld [vmem:[#allocation17 + $0x2b8] sm:$0xff] }
 0x68a   :  { %6405 = vmatprep.subr.bf16.mxu0 %v9479_v19  ;;  %6446 = vmatprep.subr.bf16.mxu1 %v9607_v40  ;;  %v4776_v10 = vld [vmem:[#allocation17 + $0x698] sm:$0xff]  ;;  %v9558_v40 = vcombine.low %v4656_v2, %v4660_v3  ;;  %v9551_v50 = vcombine.high %v4648_v9, %v4652_v56  ;;  %v6590_v2 = vld [vmem:[#allocation17 + $0x9e0] sm:$0xff] }
 0x68b   :  { %v4780_v19 = vld [vmem:[#allocation17 + $0x6b8] sm:$0xff]  ;;  %v6706_v3 = vld [vmem:[#allocation17 + $0xd80] sm:$0xff] }
 0x68c   :  { %v9679_v46 = vcombine.high %v4776_v10, %v4780_v19  ;;  %v9678_v27 = vcombine.low %v4776_v10, %v4780_v19  ;;  %v6570_v10 = vld [vmem:[#allocation17 + $0x940] sm:$0xff] }
 0x68d   :  { %6406 = vmatpush1.bf16.msra.mxu0 %v9478_v20  ;;  %6447 = vmatpush1.bf16.msra.mxu1 %v9606_v61  ;;  %v4644_v20 = vld [vmem:[#allocation17 + $0x278] sm:$0xff]  ;;  %v6574_v19 = vld [vmem:[#allocation17 + $0x960] sm:$0xff] }
 0x68e   :  { %6407 = vmatprep.subr.bf16.mxu0 %v9471_v24  ;;  %6448 = vmatprep.subr.bf16.mxu1 %v9599_v25  ;;  %v4768_v61 = vld [vmem:[#allocation17 + $0x658] sm:$0xff]  ;;  %v9550_v25 = vcombine.low %v4648_v9, %v4652_v56  ;;  %v9543_v15 = vcombine.high %v4640_v6, %v4644_v20  ;;  %v6702_v56 = vld [vmem:[#allocation17 + $0xd60] sm:$0xff] }
 0x68f   :  { %v4772_v24 = vld [vmem:[#allocation17 + $0x678] sm:$0xff] }
 0x690   :  { %v9671_v18 = vcombine.high %v4768_v61, %v4772_v24  ;;  %v9670_v14 = vcombine.low %v4768_v61, %v4772_v24  ;;  %v6562_v61 = vld [vmem:[#allocation17 + $0x900] sm:$0xff] }
 0x691   :  { %6408 = vmatpush1.bf16.msra.mxu0 %v9470_v1  ;;  %6449 = vmatpush1.bf16.msra.mxu1 %v9598_v29  ;;  %v4636_v1 = vld [vmem:[#allocation17 + $0x238] sm:$0xff]  ;;  %v6566_v24 = vld [vmem:[#allocation17 + $0x920] sm:$0xff] }
 0x692   :  { %6409 = vmatprep.subr.bf16.mxu0 %v9591_v21  ;;  %6450 = vmatprep.subr.bf16.mxu1 %v9719_v30  ;;  %v4760_v29 = vld [vmem:[#allocation17 + $0x618] sm:$0xff]  ;;  %v9542_v30 = vcombine.low %v4640_v6, %v4644_v20  ;;  %v9535_v57 = vcombine.high %v4632_v28, %v4636_v1  ;;  %v9534_v4 = vcombine.low %v4632_v28, %v4636_v1  ;;  %v6690_v6 = vld [vmem:[#allocation17 + $0xd00] sm:$0xff] }
 0x693   :  { %v4764_v21 = vld [vmem:[#allocation17 + $0x638] sm:$0xff]  ;;  %v6694_v20 = vld [vmem:[#allocation17 + $0xd20] sm:$0xff] }
 0x694   :  { %v9663_v36 = vcombine.high %v4760_v29, %v4764_v21  ;;  %v6682_v28 = vld [vmem:[#allocation17 + $0xcc0] sm:$0xff] }
 0x695   :  { %6410 = vmatpush2.bf16.msra.mxu0 %v9590_v12  ;;  %6451 = vmatpush2.bf16.msra.mxu1 %v9718_v31  ;;  %v9662_v12 = vcombine.low %v4760_v29, %v4764_v21  ;;  %v11212_v31 = vld [vmem:[#allocation19] sm:$0xff] }
 0x696   :  { %6411 = vmatprep.subr.bf16.mxu0 %v9583_v35  ;;  %6452 = vmatprep.subr.bf16.mxu1 %v9711_v37  ;;  %v4830_v35 = vrot.slane %v11212_v31, %v10878_v34  ;;  %v4834_v37 = vrot.slane %v11212_v31, %v10875_v33  ;;  %v6686_v1 = vld [vmem:[#allocation17 + $0xce0] sm:$0xff] }
 0x697   :  { %v6554_v29 = vld [vmem:[#allocation17 + $0x8c0] sm:$0xff] }
 0x698   :  { %v6558_v21 = vld [vmem:[#allocation17 + $0x8e0] sm:$0xff] }
 0x699   :  { %6412 = vmatpush2.bf16.msra.mxu0 %v9582_v52  ;;  %6453 = vmatpush2.bf16.msra.mxu1 %v9710_v48 }
 0x69a   :  { %6413 = vmatprep.subr.bf16.mxu0 %v9575_v47  ;;  %6454 = vmatprep.subr.bf16.mxu1 %v9703_v49 }
 0x69d   :  { %6414 = vmatpush2.bf16.msra.mxu0 %v9574_v45  ;;  %6455 = vmatpush2.bf16.msra.mxu1 %v9702_v60  ;;  %v6714_v45 = vld [vmem:[#allocation17 + $0xdc0] sm:$0xff] }
 0x69e   :  { %6415 = vmatprep.subr.bf16.mxu0 %v9567_v62  ;;  %6456 = vmatprep.subr.bf16.mxu1 %v9695_v63  ;;  %v6718_v60 = vld [vmem:[#allocation17 + $0xde0] sm:$0xff] }
 0x69f   :  { %v6586_v62 = vld [vmem:[#allocation17 + $0x9c0] sm:$0xff]  ;;  %v9910_v63 = vcombine.low %v6714_v45, %v6718_v60 }
 0x6a0   :  { %v9783_v22 = vcombine.high %v6586_v62, %v6590_v2 }
 0x6a1   :  { %6416 = vmatpush2.bf16.msra.mxu0 %v9566_v7  ;;  %6457 = vmatpush2.bf16.msra.mxu1 %v9694_v8  ;;  %v9903_v7 = vcombine.high %v6706_v3, %v6710_v5  ;;  %v6578_v8 = vld [vmem:[#allocation17 + $0x980] sm:$0xff] }
 0x6a2   :  { %6417 = vmatprep.subr.bf16.mxu0 %v9559_v23  ;;  %6458 = vmatprep.subr.bf16.mxu1 %v9687_v32  ;;  %v6582_v23 = vld [vmem:[#allocation17 + $0x9a0] sm:$0xff] }
 0x6a3   :  { %v6698_v32 = vld [vmem:[#allocation17 + $0xd40] sm:$0xff]  ;;  %v9775_v9 = vcombine.high %v6578_v8, %v6582_v23 }
 0x6a5   :  { %6418 = vmatpush2.bf16.msra.mxu0 %v9558_v40  ;;  %6459 = vmatpush2.bf16.msra.mxu1 %v9686_v11  ;;  %v9902_v40 = vcombine.low %v6706_v3, %v6710_v5  ;;  %v9774_v11 = vcombine.low %v6578_v8, %v6582_v23  ;;  %v6542_v3 = vld [vmem:[#allocation17 + $0x860] sm:$0xff] }
 0x6a6   :  { %6419 = vmatprep.subr.bf16.mxu0 %v9551_v50  ;;  %6460 = vmatprep.subr.bf16.mxu1 %v9679_v46  ;;  %v9895_v50 = vcombine.high %v6698_v32, %v6702_v56  ;;  %v9767_v46 = vcombine.high %v6570_v10, %v6574_v19  ;;  %v6658_v5 = vld [vmem:[#allocation17 + $0xc00] sm:$0xff] }
 0x6a9   :  { %6420 = vmatpush2.bf16.msra.mxu0 %v9550_v25  ;;  %6461 = vmatpush2.bf16.msra.mxu1 %v9678_v27  ;;  %v9894_v25 = vcombine.low %v6698_v32, %v6702_v56  ;;  %v9766_v27 = vcombine.low %v6570_v10, %v6574_v19 }
 0x6aa   :  { %6421 = vmatprep.subr.bf16.mxu0 %v9543_v15  ;;  %6462 = vmatprep.subr.bf16.mxu1 %v9671_v18  ;;  %v9887_v15 = vcombine.high %v6690_v6, %v6694_v20  ;;  %v9759_v18 = vcombine.high %v6562_v61, %v6566_v24 }
 0x6ad   :  { %6422 = vmatpush2.bf16.msra.mxu0 %v9542_v30  ;;  %6463 = vmatpush2.bf16.msra.mxu1 %v9670_v14  ;;  %v9886_v30 = vcombine.low %v6690_v6, %v6694_v20  ;;  %v9758_v14 = vcombine.low %v6562_v61, %v6566_v24  ;;  %v6778_v6 = vld [vmem:[#allocation17 + $0xfc0] sm:$0xff] }
 0x6ae   :  { %6423 = vmatprep.subr.bf16.mxu0 %v9535_v57  ;;  %6464 = vmatprep.subr.bf16.mxu1 %v9663_v36  ;;  %v9879_v57 = vcombine.high %v6682_v28, %v6686_v1  ;;  %v9751_v36 = vcombine.high %v6554_v29, %v6558_v21  ;;  %v6782_v24 = vld [vmem:[#allocation17 + $0xfe0] sm:$0xff] }
 0x6b1   :  { %6424 = vmatpush2.bf16.msra.mxu0 %v9534_v4  ;;  %6465 = vmatpush2.bf16.msra.mxu1 %v9662_v12  ;;  %v6674_v4 = vld [vmem:[#allocation17 + $0xc80] sm:$0xff] }
 0x6b2   :  { %8113 = vmatprep.subr.bf16.mxu0 %v9783_v22  ;;  %v6678_v12 = vld [vmem:[#allocation17 + $0xca0] sm:$0xff] }
 0x6b4   :  { %v6181_v17 = vpop.f32.mrf.mxu0  ;;  %6426 = vmatmul.mubr.bf16.vlgmr.msra.gmra.mxu0 %v11196_v16  ;;  %v6222_v38 = vpop.f32.mrf.mxu1  ;;  %6467 = vmatmul.mubr.bf16.vlgmr.msra.gmra.mxu1 %v11198_v26  ;;  %v9911_v16 = vcombine.high %v6714_v45, %v6718_v60  ;;  %v9782_v26 = vcombine.low %v6586_v62, %v6590_v2  ;;  %v4838_v45 = vrot.slane %v11212_v31, %v10957_v51  ;;  %v6538_v2 = vld [vmem:[#allocation17 + $0x840] sm:$0xff] }
 0x6b5   :  { %v6182_v39 = vadd.f32 %v6181_v17, %v4830_v35  ;;  %v6546_v35 = vld [vmem:[#allocation17 + $0x880] sm:$0xff]  ;;  %v9878_v17 = vcombine.low %v6682_v28, %v6686_v1  ;;  %v4842_v60 = vrot.slane %v11212_v31, %v10962_v13  ;;  %v9735_v22 = vcombine.high %v6538_v2, %v6542_v3 }
 0x6b6   :  { %v6183_v44 = vpop.f32.mrf.mxu0  ;;  %v6224_v47 = vpop.f32.mrf.mxu1  ;;  %8154 = vmatprep.subr.bf16.mxu1 %v9911_v16  ;;  %8114 = vmatpush1.bf16.msra.mxu0 %v9782_v26  ;;  %v6650_v28 = vld [vmem:[#allocation17 + $0xbc0] sm:$0xff] }
 0x6b7   :  { %v11220_v52 = vadd.f32 %v6222_v38, %v6182_v39  ;;  %v6184_v48 = vadd.f32 %v6183_v44, %v4834_v37  ;;  %8155 = vmatpush1.bf16.msra.mxu1 %v9910_v63  ;;  %8115 = vmatprep.subr.bf16.mxu0 %v9775_v9  ;;  %v6550_v37 = vld [vmem:[#allocation17 + $0x8a0] sm:$0xff]  ;;  %v9750_v39 = vcombine.low %v6554_v29, %v6558_v21 }
 0x6b8   :  { %v6185_v49 = vpop.f32.mrf.mxu0  ;;  %v6226_v58 = vpop.f32.mrf.mxu1  ;;  %8156 = vmatprep.subr.bf16.mxu1 %v9903_v7  ;;  %v9871_v38 = vcombine.high %v6674_v4, %v6678_v12  ;;  %v9743_v44 = vcombine.high %v6546_v35, %v6550_v37  ;;  %v6662_v7 = vld [vmem:[#allocation17 + $0xc20] sm:$0xff]  ;;  %v9734_v9 = vcombine.low %v6538_v2, %v6542_v3 }
 0x6b9   :  { %v11222_v53 = vadd.f32 %v6224_v47, %v6184_v48  ;;  %v6666_v48 = vld [vmem:[#allocation17 + $0xc40] sm:$0xff]  ;;  %v9870_v49 = vcombine.low %v6674_v4, %v6678_v12  ;;  %v9742_v58 = vcombine.low %v6546_v35, %v6550_v37  ;;  %v9854_v56 = vcombine.low %v6658_v5, %v6662_v7 }
 0x6ba   :  { %v6186_v42 = vpop.f32.mrf.mxu0  ;;  %v6227_v59 = vpop.f32.mrf.mxu1  ;;  %8116 = vmatpush1.bf16.msra.mxu0 %v9774_v11  ;;  %v6670_v47 = vld [vmem:[#allocation17 + $0xc60] sm:$0xff]  ;;  %v9855_v19 = vcombine.high %v6658_v5, %v6662_v7 }
 0x6bb   :  { %8157 = vmatpush1.bf16.msra.mxu1 %v9902_v40  ;;  %8117 = vmatprep.subr.bf16.mxu0 %v9767_v46  ;;  %v9863_v42 = vcombine.high %v6666_v48, %v6670_v47  ;;  %v9862_v59 = vcombine.low %v6666_v48, %v6670_v47  ;;  %v6534_v46 = vld [vmem:[#allocation17 + $0x820] sm:$0xff] }
 0x6bc   :  { %8158 = vmatprep.subr.bf16.mxu1 %v9895_v50  ;;  %v6530_v50 = vld [vmem:[#allocation17 + $0x800] sm:$0xff] }
 0x6bd   :  { %v9727_v61 = vcombine.high %v6530_v50, %v6534_v46  ;;  %v6654_v1 = vld [vmem:[#allocation17 + $0xbe0] sm:$0xff] }
 0x6be   :  { %8118 = vmatpush1.bf16.msra.mxu0 %v9766_v27  ;;  %v9726_v27 = vcombine.low %v6530_v50, %v6534_v46  ;;  %v6770_v29 = vld [vmem:[#allocation17 + $0xf80] sm:$0xff]  ;;  %v9847_v21 = vcombine.high %v6650_v28, %v6654_v1 }
 0x6bf   :  { %8159 = vmatpush1.bf16.msra.mxu1 %v9894_v25  ;;  %8119 = vmatprep.subr.bf16.mxu0 %v9759_v18  ;;  %v9975_v18 = vcombine.high %v6778_v6, %v6782_v24  ;;  %v6642_v4 = vld [vmem:[#allocation17 + $0xb80] sm:$0xff] }
 0x6c0   :  { %8160 = vmatprep.subr.bf16.mxu1 %v9887_v15  ;;  %v9974_v15 = vcombine.low %v6778_v6, %v6782_v24  ;;  %v6646_v12 = vld [vmem:[#allocation17 + $0xba0] sm:$0xff] }
 0x6c1   :  { %v6762_v35 = vld [vmem:[#allocation17 + $0xf40] sm:$0xff]  ;;  %v9839_v37 = vcombine.high %v6642_v4, %v6646_v12 }
 0x6c2   :  { %8120 = vmatpush1.bf16.msra.mxu0 %v9758_v14  ;;  %v9846_v14 = vcombine.low %v6650_v28, %v6654_v1  ;;  %v6634_v48 = vld [vmem:[#allocation17 + $0xb40] sm:$0xff]  ;;  %v6525_v1 = vld [vmem:[#allocation2 + $0x8] sm:$0xff] }
 0x6c3   :  { %8161 = vmatpush1.bf16.msra.mxu1 %v9886_v30  ;;  %8121 = vmatprep.subr.bf16.mxu0 %v9751_v36  ;;  %v6774_v30 = vld [vmem:[#allocation17 + $0xfa0] sm:$0xff] }
 0x6c4   :  { %8162 = vmatprep.subr.bf16.mxu1 %v9879_v57  ;;  %v9966_v57 = vcombine.low %v6770_v29, %v6774_v30  ;;  %v9967_v36 = vcombine.high %v6770_v29, %v6774_v30  ;;  %v6638_v47 = vld [vmem:[#allocation17 + $0xb60] sm:$0xff] }
 0x6c5   :  { %v6750_v3 = vld [vmem:[#allocation17 + $0xee0] sm:$0xff] }
 0x6c6   :  { %8122 = vmatpush1.bf16.msra.mxu0 %v9750_v39  ;;  %v9838_v39 = vcombine.low %v6642_v4, %v6646_v12  ;;  %v6618_v7 = vld [vmem:[#allocation17 + $0xac0] sm:$0xff]  ;;  %v6715_v12 = vld [vmem:[#allocation17 + $0xdc8] sm:$0xff] }
 0x6c7   :  { %8163 = vmatpush1.bf16.msra.mxu1 %v9878_v17  ;;  %8123 = vmatprep.subr.bf16.mxu0 %v9743_v44  ;;  %v6766_v17 = vld [vmem:[#allocation17 + $0xf60] sm:$0xff] }
 0x6c8   :  { %8164 = vmatprep.subr.bf16.mxu1 %v9871_v38  ;;  %v9958_v38 = vcombine.low %v6762_v35, %v6766_v17  ;;  %v9959_v44 = vcombine.high %v6762_v35, %v6766_v17  ;;  %v6602_v24 = vld [vmem:[#allocation17 + $0xa40] sm:$0xff]  ;;  %v6719_v35 = vld [vmem:[#allocation17 + $0xde8] sm:$0xff] }
 0x6c9   :  { %v6726_v28 = vld [vmem:[#allocation17 + $0xe20] sm:$0xff] }
 0x6ca   :  { %8124 = vmatpush1.bf16.msra.mxu0 %v9742_v58  ;;  %v9831_v58 = vcombine.high %v6634_v48, %v6638_v47 }
 0x6cb   :  { %8165 = vmatpush1.bf16.msra.mxu1 %v9870_v49  ;;  %8125 = vmatprep.subr.bf16.mxu0 %v9735_v22  ;;  %v6754_v49 = vld [vmem:[#allocation17 + $0xf00] sm:$0xff] }
 0x6cc   :  { %8166 = vmatprep.subr.bf16.mxu1 %v9863_v42  ;;  %v6758_v42 = vld [vmem:[#allocation17 + $0xf20] sm:$0xff] }
 0x6ce   :  { %8126 = vmatpush1.bf16.msra.mxu0 %v9734_v9 }
 0x6cf   :  { %8167 = vmatpush1.bf16.msra.mxu1 %v9862_v59  ;;  %8127 = vmatprep.subr.bf16.mxu0 %v9727_v61  ;;  %v9830_v59 = vcombine.low %v6634_v48, %v6638_v47  ;;  %v6734_v61 = vld [vmem:[#allocation17 + $0xe60] sm:$0xff]  ;;  %v9912_v47 = vcombine.low %v6715_v12, %v6719_v35 }
 0x6d0   :  { %8168 = vmatprep.subr.bf16.mxu1 %v9855_v19  ;;  %v6610_v19 = vld [vmem:[#allocation17 + $0xa80] sm:$0xff] }
 0x6d2   :  { %8128 = vmatpush1.bf16.msra.mxu0 %v9726_v27  ;;  %v6606_v27 = vld [vmem:[#allocation17 + $0xa60] sm:$0xff] }
 0x6d3   :  { %8169 = vmatpush1.bf16.msra.mxu1 %v9854_v56  ;;  %8129 = vmatprep.subr.bf16.mxu0 %v9847_v21  ;;  %v9799_v29 = vcombine.high %v6602_v24, %v6606_v27  ;;  %v11232_v21 = vpack.c.bf16 %v6525_v1, %v6525_v1  ;;  %v9798_v4 = vcombine.low %v6602_v24, %v6606_v27  ;;  %v6667_v27 = vld [vmem:[#allocation17 + $0xc48] sm:$0xff] }
 0x6d4   :  { %8170 = vmatprep.subr.bf16.mxu1 %v9975_v18  ;;  %v6722_v18 = vld [vmem:[#allocation17 + $0xe00] sm:$0xff]  ;;  %v4850_v1 = vrot.slane %v11212_v31, %v11019_v43 }
 0x6d5   :  { %8186 = vmatprep.mubr.bf16.mxu1 %v11232_v21  ;;  %v9918_v17 = vcombine.low %v6722_v18, %v6726_v28 }
 0x6d6   :  { %8130 = vmatpush2.bf16.msra.mxu0 %v9846_v14  ;;  %v6594_v14 = vld [vmem:[#allocation17 + $0xa00] sm:$0xff] }
 0x6d7   :  { %8171 = vmatpush2.bf16.msra.mxu1 %v9974_v15  ;;  %8131 = vmatprep.subr.bf16.mxu0 %v9839_v37 }
 0x6d8   :  { %8172 = vmatprep.subr.bf16.mxu1 %v9967_v36  ;;  %v9919_v36 = vcombine.high %v6722_v18, %v6726_v28  ;;  %v6671_v18 = vld [vmem:[#allocation17 + $0xc68] sm:$0xff] }
 0x6da   :  { %8132 = vmatpush2.bf16.msra.mxu0 %v9838_v39  ;;  %v6524_v39 = vld [vmem:[#allocation2 + $0x18] sm:$0xff] }
 0x6db   :  { %8173 = vmatpush2.bf16.msra.mxu1 %v9966_v57  ;;  %8133 = vmatprep.subr.bf16.mxu0 %v9831_v58  ;;  %v6598_v57 = vld [vmem:[#allocation17 + $0xa20] sm:$0xff]  ;;  %v11235_v48 = vpack.c.bf16 %v6524_v39, %v6524_v39  ;;  %v11238_v58 = vld [vmem:[#allocation17 + $0x9c8] sm:$0xff] }
 0x6dc   :  { %8174 = vmatprep.subr.bf16.mxu1 %v9959_v44  ;;  %v9791_v37 = vcombine.high %v6594_v14, %v6598_v57  ;;  %v9790_v44 = vcombine.low %v6594_v14, %v6598_v57 }
 0x6de   :  { %8134 = vmatpush2.bf16.msra.mxu0 %v9830_v59  ;;  %v6707_v59 = vld [vmem:[#allocation17 + $0xd88] sm:$0xff] }
 0x6df   :  { %8175 = vmatpush2.bf16.msra.mxu1 %v9958_v38  ;;  %v9913_v38 = vcombine.high %v6715_v12, %v6719_v35  ;;  %v6659_v12 = vld [vmem:[#allocation17 + $0xc08] sm:$0xff] }
 0x6f4   :  { %v6263_v62 = vpop.f32.mrf.mxu0  ;;  %v6304_v16 = vpop.f32.mrf.mxu1 }
 0x6f5   :  { %v6264_v63 = vadd.f32 %v6263_v62, %v4838_v45  ;;  %v9950_v45 = vcombine.low %v6754_v49, %v6758_v42  ;;  %v6626_v62 = vld [vmem:[#allocation17 + $0xb00] sm:$0xff] }
 0x6f6   :  { %v6265_v26 = vpop.f32.mrf.mxu0  ;;  %v6306_v32 = vpop.f32.mrf.mxu1 }
 0x6f7   :  { %v11228_v8 = vadd.f32 %v6304_v16, %v6264_v63  ;;  %v6266_v23 = vadd.f32 %v6265_v26, %v4842_v60  ;;  %v9951_v60 = vcombine.high %v6754_v49, %v6758_v42  ;;  %v6630_v63 = vld [vmem:[#allocation17 + $0xb20] sm:$0xff]  ;;  %v9720_v49 = vmul.f32 -1.442695, %v11220_v52  ;;  %v11240_v42 = vld [vmem:[#allocation17 + $0x9e8] sm:$0xff] }
 0x6f8   :  { %v6267_v10 = vpop.f32.mrf.mxu0  ;;  %v6308_v11 = vpop.f32.mrf.mxu1  ;;  %v6746_v16 = vld [vmem:[#allocation17 + $0xec0] sm:$0xff]  ;;  %v9823_v2 = vcombine.high %v6626_v62, %v6630_v63  ;;  %v9822_v5 = vcombine.low %v6626_v62, %v6630_v63  ;;  %v6711_v62 = vld [vmem:[#allocation17 + $0xda8] sm:$0xff]  ;;  %v9784_v63 = vcombine.low %v11238_v58, %v11240_v42 }
 0x6f9   :  { %v11230_v40 = vadd.f32 %v6306_v32, %v6266_v23  ;;  %8176 = vmatprep.subr.bf16.mxu1 %v9951_v60  ;;  %v9942_v26 = vcombine.low %v6746_v16, %v6750_v3  ;;  %v9943_v22 = vcombine.high %v6746_v16, %v6750_v3  ;;  %v6622_v23 = vld [vmem:[#allocation17 + $0xae0] sm:$0xff]  ;;  %v9785_v60 = vcombine.high %v11238_v58, %v11240_v42  ;;  %v6697_v42 = vld [vmem:[#allocation17 + $0xd38] sm:$0xff] }
 0x6fa   :  { %v6268_v20 = vpop.f32.mrf.mxu0  ;;  %v6309_v25 = vpop.f32.mrf.mxu1  ;;  %8177 = vmatpush2.bf16.msra.mxu1 %v9950_v45  ;;  %8135 = vmatprep.subr.bf16.mxu0 %v9823_v2  ;;  %v6738_v32 = vld [vmem:[#allocation17 + $0xe80] sm:$0xff]  ;;  %v9814_v9 = vcombine.low %v6618_v7, %v6622_v23  ;;  %v9815_v56 = vcombine.high %v6618_v7, %v6622_v23  ;;  %v9722_v45 = vmul.f32 -1.442695, %v11228_v8  ;;  %v9904_v16 = vcombine.low %v6707_v59, %v6711_v62  ;;  %v6699_v8 = vld [vmem:[#allocation17 + $0xd48] sm:$0xff] }
 0x6fb   :  { %8136 = vmatpush2.bf16.msra.mxu0 %v9822_v5  ;;  %8178 = vmatprep.subr.bf16.mxu1 %v9943_v22  ;;  %v6742_v10 = vld [vmem:[#allocation17 + $0xea0] sm:$0xff]  ;;  %v9905_v52 = vcombine.high %v6707_v59, %v6711_v62  ;;  %v9723_v2 = vmul.f32 -1.442695, %v11230_v40  ;;  %10240 = vpow2.f32 %v9720_v49  ;;  %v9721_v3 = vmul.f32 -1.442695, %v11222_v53  ;;  %v6703_v5 = vld [vmem:[#allocation17 + $0xd68] sm:$0xff] }
 0x6fc   :  { %v6614_v11 = vld [vmem:[#allocation17 + $0xaa0] sm:$0xff]  ;;  %v9934_v50 = vcombine.low %v6738_v32, %v6742_v10  ;;  %v9935_v46 = vcombine.high %v6738_v32, %v6742_v10  ;;  %8137 = vmatprep.subr.bf16.mxu0 %v9815_v56  ;;  %10242 = vpow2.f32 %v9722_v45  ;;  %v9897_v22 = vcombine.high %v6699_v8, %v6703_v5  ;;  %v6691_v7 = vld [vmem:[#allocation17 + $0xd08] sm:$0xff] }
 0x6fd   :  { %v9807_v6 = vcombine.high %v6610_v19, %v6614_v11  ;;  %v6730_v20 = vld [vmem:[#allocation17 + $0xe40] sm:$0xff]  ;;  %v9806_v15 = vcombine.low %v6610_v19, %v6614_v11  ;;  %10244 = vpow2.f32 %v9723_v2  ;;  %v6695_v23 = vld [vmem:[#allocation17 + $0xd28] sm:$0xff] }
 0x6fe   :  { %8179 = vmatpush2.bf16.msra.mxu1 %v9942_v26  ;;  %v9927_v25 = vcombine.high %v6730_v20, %v6734_v61  ;;  %v9926_v30 = vcombine.low %v6730_v20, %v6734_v61  ;;  %v9896_v26 = vcombine.low %v6699_v8, %v6703_v5  ;;  %10246 = vpow2.f32 %v9721_v3  ;;  %v6683_v40 = vld [vmem:[#allocation17 + $0xcc8] sm:$0xff] }
 0x6ff   :  { %8180 = vmatprep.subr.bf16.mxu1 %v9935_v46  ;;  %8138 = vmatpush2.bf16.msra.mxu0 %v9814_v9  ;;  %v9888_v32 = vcombine.low %v6691_v7, %v6695_v23  ;;  %v9889_v9 = vcombine.high %v6691_v7, %v6695_v23  ;;  %v6687_v56 = vld [vmem:[#allocation17 + $0xce8] sm:$0xff] }
 0x700   :  { %8139 = vmatprep.subr.bf16.mxu0 %v9807_v6  ;;  %v9880_v10 = vcombine.low %v6683_v40, %v6687_v56  ;;  %v9881_v19 = vcombine.high %v6683_v40, %v6687_v56  ;;  %v6675_v53 = vld [vmem:[#allocation17 + $0xc88] sm:$0xff] }
 0x701   :  { %v6779_v62 = vld [vmem:[#allocation17 + $0xfc8] sm:$0xff] }
 0x702   :  { %8181 = vmatpush2.bf16.msra.mxu1 %v9934_v50  ;;  %v6679_v50 = vld [vmem:[#allocation17 + $0xca8] sm:$0xff] }
 0x703   :  { %8182 = vmatprep.subr.bf16.mxu1 %v9927_v25  ;;  %8140 = vmatpush2.bf16.msra.mxu0 %v9806_v15  ;;  %v9872_v6 = vcombine.low %v6675_v53, %v6679_v50  ;;  %v9873_v20 = vcombine.high %v6675_v53, %v6679_v50  ;;  %v4846_v25 = vrot.slane %v11212_v31, %v11013_v54  ;;  %v6771_v5 = vld [vmem:[#allocation17 + $0xf88] sm:$0xff] }
 0x704   :  { %8141 = vmatprep.subr.bf16.mxu0 %v9799_v29  ;;  %v9864_v29 = vcombine.low %v6667_v27, %v6671_v18  ;;  %v6763_v23 = vld [vmem:[#allocation17 + $0xf48] sm:$0xff] }
 0x706   :  { %8183 = vmatpush2.bf16.msra.mxu1 %v9926_v30  ;;  %v9865_v30 = vcombine.high %v6667_v27, %v6671_v18 }
 0x707   :  { %8184 = vmatprep.subr.bf16.mxu1 %v9919_v36  ;;  %8142 = vmatpush2.bf16.msra.mxu0 %v9798_v4 }
 0x708   :  { %8143 = vmatprep.subr.bf16.mxu0 %v9791_v37  ;;  %v10241_v11 = vpop.eup %10240 }
 0x709   :  { %v10243_v46 = vpop.eup %10242  ;;  %v6481_v24 = vadd.f32 1.0, %v10241_v11  ;;  %v6755_v11 = vld [vmem:[#allocation17 + $0xf08] sm:$0xff] }
 0x70a   :  { %8185 = vmatpush2.bf16.msra.mxu1 %v9918_v17  ;;  %v10245_v61 = vpop.eup %10244  ;;  %v6493_v15 = vadd.f32 1.0, %v10243_v46  ;;  %v6663_v17 = vld [vmem:[#allocation17 + $0xc28] sm:$0xff] }
 0x70b   :  { %8236 = vmatprep.subr.bf16.mxu1 %v9913_v38  ;;  %8144 = vmatpush2.bf16.msra.mxu0 %v9790_v44  ;;  %v10247_v28 = vpop.eup %10246  ;;  %v6494_v14 = vadd.f32 1.0, %v10245_v61  ;;  %10248 = vrcp.f32 %v6481_v24  ;;  %v9857_v49 = vcombine.high %v6659_v12, %v6663_v17  ;;  %v4564_v46 = vld [vmem:[#allocation3 + $0x18] sm:$0xff] }
 0x70c   :  { %8195 = vmatprep.subr.bf16.mxu0 %v9785_v60  ;;  %v6482_v35 = vadd.f32 1.0, %v10247_v28  ;;  %10250 = vrcp.f32 %v6493_v15 }
 0x70d   :  { %8187 = vmatmul.mubr.bf16.vlgmr.msra.gmra.mxu1 %v11235_v48  ;;  %10252 = vrcp.f32 %v6494_v14 }
 0x70e   :  { %8237 = vmatpush1.bf16.msra.mxu1 %v9912_v47  ;;  %8268 = vmatprep.mubr.bf16.mxu1 %v11232_v21  ;;  %v9856_v47 = vcombine.low %v6659_v12, %v6663_v17  ;;  %v6743_v12 = vld [vmem:[#allocation17 + $0xea8] sm:$0xff] }
 0x70f   :  { %8238 = vmatprep.subr.bf16.mxu1 %v9905_v52  ;;  %v6783_v52 = vld [vmem:[#allocation17 + $0xfe8] sm:$0xff] }
 0x710   :  { %v9976_v8 = vcombine.low %v6779_v62, %v6783_v52  ;;  %v9977_v3 = vcombine.high %v6779_v62, %v6783_v52  ;;  %v6731_v17 = vld [vmem:[#allocation17 + $0xe48] sm:$0xff]  ;;  %v6720_v62 = vld [vmem:[#allocation17 + $0xdf0] sm:$0xff] }
 0x712   :  { %8239 = vmatpush1.bf16.msra.mxu1 %v9904_v16 }
 0x713   :  { %8240 = vmatprep.subr.bf16.mxu1 %v9897_v22 }
 0x716   :  { %8241 = vmatpush1.bf16.msra.mxu1 %v9896_v26  ;;  %v6775_v26 = vld [vmem:[#allocation17 + $0xfa8] sm:$0xff] }
 0x717   :  { %8242 = vmatprep.subr.bf16.mxu1 %v9889_v9  ;;  %v9968_v22 = vcombine.low %v6771_v5, %v6775_v26  ;;  %v9969_v7 = vcombine.high %v6771_v5, %v6775_v26  ;;  %v6767_v9 = vld [vmem:[#allocation17 + $0xf68] sm:$0xff]  ;;  %v6700_v26 = vld [vmem:[#allocation17 + $0xd50] sm:$0xff] }
 0x718   :  { %v9960_v56 = vcombine.low %v6763_v23, %v6767_v9 }
 0x71a   :  { %8243 = vmatpush1.bf16.msra.mxu1 %v9888_v32  ;;  %v10249_v32 = vpop.eup %10248 }
 0x71b   :  { %8244 = vmatprep.subr.bf16.mxu1 %v9881_v19  ;;  %v10251_v40 = vpop.eup %10250  ;;  %v4563_v19 = vld [vmem:[#allocation3] sm:$0xff] }
 0x71c   :  { %v10253_v53 = vpop.eup %10252  ;;  %v6513_v61 = vmul.f32 %v10251_v40, %v4563_v19  ;;  %v6688_v19 = vld [vmem:[#allocation17 + $0xcf0] sm:$0xff] }
 0x71d   :  { %v6514_v28 = vmul.f32 %v10253_v53, %v4564_v46  ;;  %v6680_v46 = vld [vmem:[#allocation17 + $0xcb0] sm:$0xff] }
 0x71e   :  { %8245 = vmatpush1.bf16.msra.mxu1 %v9880_v10  ;;  %v9961_v10 = vcombine.high %v6763_v23, %v6767_v9  ;;  %v6696_v9 = vld [vmem:[#allocation17 + $0xd30] sm:$0xff] }
 0x71f   :  { %8246 = vmatprep.subr.bf16.mxu1 %v9873_v20 }
 0x722   :  { %8247 = vmatpush1.bf16.msra.mxu1 %v9872_v6  ;;  %v6759_v6 = vld [vmem:[#allocation17 + $0xf28] sm:$0xff] }
 0x723   :  { %8248 = vmatprep.subr.bf16.mxu1 %v9865_v30  ;;  %v9953_v27 = vcombine.high %v6755_v11, %v6759_v6  ;;  %v6751_v30 = vld [vmem:[#allocation17 + $0xee8] sm:$0xff] }
 0x726   :  { %8249 = vmatpush1.bf16.msra.mxu1 %v9864_v29  ;;  %v6747_v29 = vld [vmem:[#allocation17 + $0xec8] sm:$0xff] }
 0x727   :  { %8250 = vmatprep.subr.bf16.mxu1 %v9857_v49  ;;  %v6727_v49 = vld [vmem:[#allocation17 + $0xe28] sm:$0xff] }
 0x72a   :  { %8251 = vmatpush1.bf16.msra.mxu1 %v9856_v47  ;;  %v6723_v47 = vld [vmem:[#allocation17 + $0xe08] sm:$0xff] }
 0x72b   :  { %8252 = vmatprep.subr.bf16.mxu1 %v9977_v3 }
 0x72e   :  { %8253 = vmatpush2.bf16.msra.mxu1 %v9976_v8  ;;  %v6712_v8 = vld [vmem:[#allocation17 + $0xdb0] sm:$0xff] }
 0x72f   :  { %8254 = vmatprep.subr.bf16.mxu1 %v9969_v7 }
 0x732   :  { %8255 = vmatpush2.bf16.msra.mxu1 %v9968_v22  ;;  %v6704_v22 = vld [vmem:[#allocation17 + $0xd70] sm:$0xff] }
 0x733   :  { %8256 = vmatprep.subr.bf16.mxu1 %v9961_v10  ;;  %v9898_v7 = vcombine.low %v6700_v26, %v6704_v22  ;;  %v9899_v23 = vcombine.high %v6700_v26, %v6704_v22  ;;  %v6684_v10 = vld [vmem:[#allocation17 + $0xcd0] sm:$0xff] }
 0x734   :  { %v6345_v57 = vpop.f32.mrf.mxu0  ;;  %v6386_v4 = vpop.f32.mrf.mxu1  ;;  %v9882_v53 = vcombine.low %v6684_v10, %v6688_v19  ;;  %v6764_v26 = vld [vmem:[#allocation17 + $0xf50] sm:$0xff] }
 0x735   :  { %v6346_v36 = vadd.f32 %v6345_v57, %v4846_v25  ;;  %v9952_v25 = vcombine.low %v6755_v11, %v6759_v6  ;;  %v9944_v57 = vcombine.low %v6747_v29, %v6751_v30  ;;  %v9883_v11 = vcombine.high %v6684_v10, %v6688_v19  ;;  %v6768_v22 = vld [vmem:[#allocation17 + $0xf70] sm:$0xff] }
 0x736   :  { %v6347_v37 = vpop.f32.mrf.mxu0  ;;  %v6388_v44 = vpop.f32.mrf.mxu1  ;;  %8257 = vmatpush2.bf16.msra.mxu1 %v9960_v56 }
 0x737   :  { %v6387_v39 = vadd.f32 %v6386_v4, %v6346_v36  ;;  %v6348_v38 = vadd.f32 %v6347_v37, %v4850_v1  ;;  %8258 = vmatprep.subr.bf16.mxu1 %v9953_v27  ;;  %v9945_v36 = vcombine.high %v6747_v29, %v6751_v30  ;;  %v6739_v4 = vld [vmem:[#allocation17 + $0xe88] sm:$0xff]  ;;  %v4858_v27 = vrot.slane %v11212_v31, %v11022_v41 }
 0x738   :  { %v6349_v59 = vpop.f32.mrf.mxu0  ;;  %v6390_v60 = vpop.f32.mrf.mxu1  ;;  %v9937_v37 = vcombine.high %v6739_v4, %v6743_v12 }
 0x739   :  { %10254 = vtanh.f32 %v6387_v39  ;;  %v6389_v45 = vadd.f32 %v6388_v44, %v6348_v38  ;;  %v6735_v39 = vld [vmem:[#allocation17 + $0xe68] sm:$0xff]  ;;  %v9920_v59 = vcombine.low %v6723_v47, %v6727_v49  ;;  %v6716_v60 = vld [vmem:[#allocation17 + $0xdd0] sm:$0xff] }
 0x73a   :  { %10256 = vrcp.f32 %v6482_v35  ;;  %v6350_v16 = vpop.f32.mrf.mxu0  ;;  %v6391_v2 = vpop.f32.mrf.mxu1  ;;  %8259 = vmatpush2.bf16.msra.mxu1 %v9952_v25  ;;  %v9936_v35 = vcombine.low %v6739_v4, %v6743_v12  ;;  %v9928_v38 = vcombine.low %v6731_v17, %v6735_v39  ;;  %v9929_v44 = vcombine.high %v6731_v17, %v6735_v39  ;;  %v6672_v25 = vld [vmem:[#allocation17 + $0xc70] sm:$0xff] }
 0x73b   :  { %10258 = vtanh.f32 %v6389_v45  ;;  %8260 = vmatprep.subr.bf16.mxu1 %v9945_v36  ;;  %v9921_v45 = vcombine.high %v6723_v47, %v6727_v49  ;;  %v9914_v16 = vcombine.low %v6716_v60, %v6720_v62  ;;  %v9915_v52 = vcombine.high %v6716_v60, %v6720_v62  ;;  %v6708_v2 = vld [vmem:[#allocation17 + $0xd90] sm:$0xff] }
 0x73c   :  { %v9906_v3 = vcombine.low %v6708_v2, %v6712_v8  ;;  %v9907_v5 = vcombine.high %v6708_v2, %v6712_v8  ;;  %v6664_v4 = vld [vmem:[#allocation17 + $0xc30] sm:$0xff] }
 0x73d   :  { %v6780_v49 = vld [vmem:[#allocation17 + $0xfd0] sm:$0xff] }
 0x73e   :  { %8261 = vmatpush2.bf16.msra.mxu1 %v9944_v57  ;;  %v6660_v57 = vld [vmem:[#allocation17 + $0xc10] sm:$0xff] }
 0x73f   :  { %8262 = vmatprep.subr.bf16.mxu1 %v9937_v37  ;;  %v9858_v17 = vcombine.low %v6660_v57, %v6664_v4  ;;  %v9859_v39 = vcombine.high %v6660_v57, %v6664_v4  ;;  %v6772_v2 = vld [vmem:[#allocation17 + $0xf90] sm:$0xff] }
 0x740   :  { %v6776_v8 = vld [vmem:[#allocation17 + $0xfb0] sm:$0xff] }
 0x742   :  { %8263 = vmatpush2.bf16.msra.mxu1 %v9936_v35 }
 0x743   :  { %8264 = vmatprep.subr.bf16.mxu1 %v9929_v44 }
 0x746   :  { %v10255_v50 = vpop.eup %10254  ;;  %8265 = vmatpush2.bf16.msra.mxu1 %v9928_v38 }
 0x747   :  { %v10257_v20 = vpop.eup %10256  ;;  %v6515_v24 = vmul.f32 %v10255_v50, %v10249_v32  ;;  %8266 = vmatprep.subr.bf16.mxu1 %v9921_v45  ;;  %v6692_v32 = vld [vmem:[#allocation17 + $0xd10] sm:$0xff] }
 0x748   :  { %v10259_v15 = vpop.eup %10258  ;;  %v9890_v40 = vcombine.low %v6692_v32, %v6696_v9  ;;  %v9891_v56 = vcombine.high %v6692_v32, %v6696_v9  ;;  %v6676_v50 = vld [vmem:[#allocation17 + $0xc90] sm:$0xff] }
 0x749   :  { %v11255_v18 = vadd.f32 %v6515_v24, %v6513_v61  ;;  %v6516_v1 = vmul.f32 %v10259_v15, %v10257_v20  ;;  %v9874_v6 = vcombine.low %v6676_v50, %v6680_v46  ;;  %v9875_v20 = vcombine.high %v6676_v50, %v6680_v46  ;;  %v6668_v24 = vld [vmem:[#allocation17 + $0xc50] sm:$0xff] }
 0x74a   :  { %8267 = vmatpush2.bf16.msra.mxu1 %v9920_v59  ;;  %v4854_v61 = vrot.slane %v11212_v31, %v11016_v55  ;;  %v9866_v15 = vcombine.low %v6668_v24, %v6672_v25  ;;  %v6784_v45 = vld [vmem:[#allocation17 + $0xff0] sm:$0xff] }
 0x74b   :  { %v11257_v14 = vadd.f32 %v6516_v1, %v6514_v28  ;;  %8318 = vmatprep.subr.bf16.mxu1 %v9915_v52  ;;  %v9867_v28 = vcombine.high %v6668_v24, %v6672_v25  ;;  %v9979_v52 = vcombine.high %v6780_v49, %v6784_v45  ;;  %v6756_v32 = vld [vmem:[#allocation17 + $0xf10] sm:$0xff] }
 0x74c   :  { %v6760_v9 = vld [vmem:[#allocation17 + $0xf30] sm:$0xff] }
 0x74d   :  { %8269 = vmatmul.mubr.bf16.vlgmr.msra.gmra.mxu1 %v11235_v48  ;;  %v6752_v50 = vld [vmem:[#allocation17 + $0xef0] sm:$0xff] }
 0x74e   :  { %8319 = vmatpush1.bf16.msra.mxu1 %v9914_v16  ;;  %8350 = vmatprep.mubr.bf16.mxu1 %v11232_v21  ;;  %v9978_v16 = vcombine.low %v6780_v49, %v6784_v45  ;;  %v6744_v24 = vld [vmem:[#allocation17 + $0xeb0] sm:$0xff]  ;;  %v6709_v45 = vld [vmem:[#allocation17 + $0xd98] sm:$0xff] }
 0x74f   :  { %8320 = vmatprep.subr.bf16.mxu1 %v9907_v5  ;;  %v9971_v5 = vcombine.high %v6772_v2, %v6776_v8 }
 0x752   :  { %8321 = vmatpush1.bf16.msra.mxu1 %v9906_v3  ;;  %v9970_v3 = vcombine.low %v6772_v2, %v6776_v8  ;;  %v6575_v2 = vld [vmem:[#allocation17 + $0x968] sm:$0xff] }
 0x753   :  { %8322 = vmatprep.subr.bf16.mxu1 %v9899_v23  ;;  %v9963_v23 = vcombine.high %v6764_v26, %v6768_v22 }
 0x756   :  { %8323 = vmatpush1.bf16.msra.mxu1 %v9898_v7  ;;  %v9962_v7 = vcombine.low %v6764_v26, %v6768_v22  ;;  %v6701_v26 = vld [vmem:[#allocation17 + $0xd58] sm:$0xff] }
 0x757   :  { %8324 = vmatprep.subr.bf16.mxu1 %v9891_v56  ;;  %v9955_v56 = vcombine.high %v6756_v32, %v6760_v9 }
 0x75a   :  { %8325 = vmatpush1.bf16.msra.mxu1 %v9890_v40  ;;  %v9954_v40 = vcombine.low %v6756_v32, %v6760_v9  ;;  %v6567_v32 = vld [vmem:[#allocation17 + $0x928] sm:$0xff] }
 0x75b   :  { %8326 = vmatprep.subr.bf16.mxu1 %v9883_v11 }
 0x75e   :  { %8327 = vmatpush1.bf16.msra.mxu1 %v9882_v53  ;;  %v6748_v53 = vld [vmem:[#allocation17 + $0xed0] sm:$0xff] }
 0x75f   :  { %8328 = vmatprep.subr.bf16.mxu1 %v9875_v20  ;;  %v9947_v20 = vcombine.high %v6748_v53, %v6752_v50 }
 0x762   :  { %8329 = vmatpush1.bf16.msra.mxu1 %v9874_v6  ;;  %v9946_v6 = vcombine.low %v6748_v53, %v6752_v50  ;;  %v6685_v50 = vld [vmem:[#allocation17 + $0xcd8] sm:$0xff] }
 0x763   :  { %8330 = vmatprep.subr.bf16.mxu1 %v9867_v28  ;;  %v6736_v28 = vld [vmem:[#allocation17 + $0xe70] sm:$0xff] }
 0x766   :  { %8331 = vmatpush1.bf16.msra.mxu1 %v9866_v15  ;;  %v6732_v15 = vld [vmem:[#allocation17 + $0xe50] sm:$0xff] }
 0x767   :  { %8332 = vmatprep.subr.bf16.mxu1 %v9859_v39  ;;  %v6721_v39 = vld [vmem:[#allocation17 + $0xdf8] sm:$0xff] }
 0x76a   :  { %8333 = vmatpush1.bf16.msra.mxu1 %v9858_v17 }
 0x76b   :  { %8334 = vmatprep.subr.bf16.mxu1 %v9979_v52  ;;  %v6571_v52 = vld [vmem:[#allocation17 + $0x948] sm:$0xff] }
 0x76c   :  { %v9769_v22 = vcombine.high %v6571_v52, %v6575_v2 }
 0x76e   :  { %8335 = vmatpush2.bf16.msra.mxu1 %v9978_v16  ;;  %v6713_v16 = vld [vmem:[#allocation17 + $0xdb8] sm:$0xff] }
 0x76f   :  { %8336 = vmatprep.subr.bf16.mxu1 %v9971_v5  ;;  %v9908_v8 = vcombine.low %v6709_v45, %v6713_v16 }
 0x772   :  { %8337 = vmatpush2.bf16.msra.mxu1 %v9970_v3  ;;  %v9909_v3 = vcombine.high %v6709_v45, %v6713_v16  ;;  %v6655_v45 = vld [vmem:[#allocation17 + $0xbe8] sm:$0xff] }
 0x773   :  { %8338 = vmatprep.subr.bf16.mxu1 %v9963_v23  ;;  %v6563_v23 = vld [vmem:[#allocation17 + $0x908] sm:$0xff] }
 0x774   :  { %v6427_v1 = vpop.f32.mrf.mxu0  ;;  %v6468_v30 = vpop.f32.mrf.mxu1  ;;  %v9761_v58 = vcombine.high %v6563_v23, %v6567_v32 }
 0x775   :  { %v6428_v29 = vadd.f32 %v6427_v1, %v4854_v61  ;;  %v6740_v61 = vld [vmem:[#allocation17 + $0xe90] sm:$0xff]  ;;  %v9931_v1 = vcombine.high %v6732_v15, %v6736_v28 }
 0x776   :  { %v6429_v36 = vpop.f32.mrf.mxu0  ;;  %v6470_v37 = vpop.f32.mrf.mxu1  ;;  %8339 = vmatpush2.bf16.msra.mxu1 %v9962_v7  ;;  %v9938_v25 = vcombine.low %v6740_v61, %v6744_v24  ;;  %v6705_v7 = vld [vmem:[#allocation17 + $0xd78] sm:$0xff] }
 0x777   :  { %v6469_v12 = vadd.f32 %v6468_v30, %v6428_v29  ;;  %v6430_v35 = vadd.f32 %v6429_v36, %v4858_v27  ;;  %8340 = vmatprep.subr.bf16.mxu1 %v9955_v56  ;;  %v9939_v27 = vcombine.high %v6740_v61, %v6744_v24  ;;  %v6724_v29 = vld [vmem:[#allocation17 + $0xe10] sm:$0xff]  ;;  %v9900_v9 = vcombine.low %v6701_v26, %v6705_v7  ;;  %v6551_v61 = vld [vmem:[#allocation17 + $0x8a8] sm:$0xff] }
 0x778   :  { %v6431_v38 = vpop.f32.mrf.mxu0  ;;  %v6472_v31 = vpop.f32.mrf.mxu1  ;;  %v6728_v30 = vld [vmem:[#allocation17 + $0xe30] sm:$0xff]  ;;  %v9768_v56 = vcombine.low %v6571_v52, %v6575_v2  ;;  %v6781_v2 = vld [vmem:[#allocation17 + $0xfd8] sm:$0xff] }
 0x779   :  { %v9724_v44 = vmul.f32 -1.442695, %v6469_v12  ;;  %v6471_v47 = vadd.f32 %v6470_v37, %v6430_v35  ;;  %v9922_v36 = vcombine.low %v6724_v29, %v6728_v30  ;;  %v6717_v35 = vld [vmem:[#allocation17 + $0xdd8] sm:$0xff] }
 0x77a   :  { %v6432_v59 = vpop.f32.mrf.mxu0  ;;  %v6473_v62 = vpop.f32.mrf.mxu1  ;;  %8341 = vmatpush2.bf16.msra.mxu1 %v9954_v40  ;;  %v9916_v31 = vcombine.low %v6717_v35, %v6721_v39  ;;  %v9917_v49 = vcombine.high %v6717_v35, %v6721_v39  ;;  %v9901_v40 = vcombine.high %v6701_v26, %v6705_v7  ;;  %v6531_v35 = vld [vmem:[#allocation17 + $0x808] sm:$0xff] }
 0x77b   :  { %10260 = vpow2.f32 %v9724_v44  ;;  %v9725_v60 = vmul.f32 -1.442695, %v6471_v47  ;;  %8342 = vmatprep.subr.bf16.mxu1 %v9947_v20  ;;  %v6579_v44 = vld [vmem:[#allocation17 + $0x988] sm:$0xff] }
 0x77c   :  { %v6583_v47 = vld [vmem:[#allocation17 + $0x9a8] sm:$0xff] }
 0x77d   :  { %10262 = vpow2.f32 %v9725_v60  ;;  %v9777_v62 = vcombine.high %v6579_v44, %v6583_v47  ;;  %v9776_v5 = vcombine.low %v6579_v44, %v6583_v47  ;;  %v6547_v20 = vld [vmem:[#allocation17 + $0x888] sm:$0xff]  ;;  %v6661_v44 = vld [vmem:[#allocation17 + $0xc18] sm:$0xff] }
 0x77e   :  { %10264 = vtanh.f32 %v11255_v18  ;;  %8343 = vmatpush2.bf16.msra.mxu1 %v9946_v6  ;;  %v9930_v18 = vcombine.low %v6732_v15, %v6736_v28  ;;  %v6689_v6 = vld [vmem:[#allocation17 + $0xcf8] sm:$0xff]  ;;  %v9745_v28 = vcombine.high %v6547_v20, %v6551_v61  ;;  %v6647_v26 = vld [vmem:[#allocation17 + $0xba8] sm:$0xff] }
 0x77f   :  { %8344 = vmatprep.subr.bf16.mxu1 %v9939_v27  ;;  %v9884_v24 = vcombine.low %v6685_v50, %v6689_v6  ;;  %v6677_v15 = vld [vmem:[#allocation17 + $0xc98] sm:$0xff] }
 0x782   :  { %8345 = vmatpush2.bf16.msra.mxu1 %v9938_v25  ;;  %v9885_v25 = vcombine.high %v6685_v50, %v6689_v6  ;;  %v6631_v50 = vld [vmem:[#allocation17 + $0xb28] sm:$0xff] }
 0x783   :  { %8346 = vmatprep.subr.bf16.mxu1 %v9931_v1  ;;  %v6539_v1 = vld [vmem:[#allocation17 + $0x848] sm:$0xff] }
 0x786   :  { %8347 = vmatpush2.bf16.msra.mxu1 %v9930_v18  ;;  %v6681_v18 = vld [vmem:[#allocation17 + $0xcb8] sm:$0xff] }
 0x788   :  { %v10261_v10 = vpop.eup %10260 }
 0x789   :  { %v6507_v19 = vadd.f32 1.0, %v10261_v10  ;;  %v6559_v10 = vld [vmem:[#allocation17 + $0x8e8] sm:$0xff] }
 0x78a   :  { %v10263_v11 = vpop.eup %10262 }
 0x78b   :  { %10266 = vrcp.f32 %v6507_v19  ;;  %v6508_v46 = vadd.f32 1.0, %v10263_v11  ;;  %v10265_v57 = vpop.eup %10264  ;;  %v9760_v11 = vcombine.low %v6563_v23, %v6567_v32  ;;  %v6773_v32 = vld [vmem:[#allocation17 + $0xf98] sm:$0xff] }
 0x78c   :  { %10268 = vtanh.f32 %v11257_v14  ;;  %v9923_v14 = vcombine.high %v6724_v29, %v6728_v30  ;;  %v6543_v29 = vld [vmem:[#allocation17 + $0x868] sm:$0xff]  ;;  %v9876_v30 = vcombine.low %v6677_v15, %v6681_v18 }
 0x78d   :  { %10270 = vrcp.f32 %v6508_v46 }
 0x78e   :  { %8348 = vmatprep.subr.bf16.mxu1 %v9923_v14  ;;  %v6669_v14 = vld [vmem:[#allocation17 + $0xc58] sm:$0xff] }
 0x78f   :  { %8349 = vmatpush2.bf16.msra.mxu1 %v9922_v36  ;;  %v9744_v36 = vcombine.low %v6547_v20, %v6551_v61  ;;  %v6757_v61 = vld [vmem:[#allocation17 + $0xf18] sm:$0xff] }
 0x790   :  { %8400 = vmatprep.subr.bf16.mxu1 %v9917_v49  ;;  %v6651_v49 = vld [vmem:[#allocation17 + $0xbc8] sm:$0xff] }
 0x791   :  { %v9848_v23 = vcombine.low %v6651_v49, %v6655_v45 }
 0x792   :  { %8351 = vmatmul.mubr.bf16.vlgmr.msra.gmra.mxu1 %v11235_v48 }
 0x793   :  { %8401 = vmatpush1.bf16.msra.mxu1 %v9916_v31  ;;  %8432 = vmatprep.mubr.bf16.mxu1 %v11232_v21  ;;  %v6693_v21 = vld [vmem:[#allocation17 + $0xd18] sm:$0xff] }
 0x794   :  { %8402 = vmatprep.subr.bf16.mxu1 %v9909_v3  ;;  %v9892_v19 = vcombine.low %v6693_v21, %v6697_v42  ;;  %v9893_v53 = vcombine.high %v6693_v21, %v6697_v42  ;;  %v6665_v31 = vld [vmem:[#allocation17 + $0xc38] sm:$0xff]  ;;  %v6639_v21 = vld [vmem:[#allocation17 + $0xb68] sm:$0xff] }
 0x795   :  { %v9861_v16 = vcombine.high %v6661_v44, %v6665_v31  ;;  %v6785_v3 = vld [vmem:[#allocation17 + $0xff8] sm:$0xff] }
 0x796   :  { %v9981_v7 = vcombine.high %v6781_v2, %v6785_v3 }
 0x797   :  { %8403 = vmatpush1.bf16.msra.mxu1 %v9908_v8  ;;  %v9849_v8 = vcombine.high %v6651_v49, %v6655_v45  ;;  %v6733_v45 = vld [vmem:[#allocation17 + $0xe58] sm:$0xff] }
 0x798   :  { %v10267_v4 = vpop.eup %10266  ;;  %8404 = vmatprep.subr.bf16.mxu1 %v9901_v40  ;;  %v6777_v40 = vld [vmem:[#allocation17 + $0xfb8] sm:$0xff] }
 0x799   :  { %v10269_v12 = vpop.eup %10268  ;;  %v6521_v17 = vmul.f32 %v10267_v4, %v10265_v57  ;;  %v9877_v57 = vcombine.high %v6677_v15, %v6681_v18  ;;  %v9737_v4 = vcombine.high %v6539_v1, %v6543_v29  ;;  %v9973_v42 = vcombine.high %v6773_v32, %v6777_v40  ;;  %v6623_v15 = vld [vmem:[#allocation17 + $0xae8] sm:$0xff] }
 0x79a   :  { %v10271_v37 = vpop.eup %10270 }
 0x79b   :  { %v6522_v38 = vmul.f32 %v10271_v37, %v10269_v12  ;;  %v11269_v60 = vpack.c.bf16 %v6521_v17, %v6521_v17  ;;  %8405 = vmatpush1.bf16.msra.mxu1 %v9900_v9  ;;  %v6673_v12 = vld [vmem:[#allocation17 + $0xc78] sm:$0xff]  ;;  %v6535_v37 = vld [vmem:[#allocation17 + $0x828] sm:$0xff] }
 0x79c   :  { %8406 = vmatprep.subr.bf16.mxu1 %v9893_v53  ;;  %v9868_v17 = vcombine.low %v6669_v14, %v6673_v12  ;;  %v9869_v39 = vcombine.high %v6669_v14, %v6673_v12  ;;  %v9729_v47 = vcombine.high %v6531_v35, %v6535_v37  ;;  %v9728_v52 = vcombine.low %v6531_v35, %v6535_v37  ;;  %v6769_v53 = vld [vmem:[#allocation17 + $0xf78] sm:$0xff]  ;;  %v6615_v14 = vld [vmem:[#allocation17 + $0xaa8] sm:$0xff] }
 0x79d   :  { %v11267_v59 = vpack.c.bf16 %v6522_v38, %v6522_v38  ;;  %v9736_v38 = vcombine.low %v6539_v1, %v6543_v29  ;;  %v6749_v29 = vld [vmem:[#allocation17 + $0xed8] sm:$0xff] }
 0x79e   :  { %v6741_v37 = vld [vmem:[#allocation17 + $0xe98] sm:$0xff] }
 0x79f   :  { %8145 = vmatprep.mubr.bf16.mxu0 %v11267_v59  ;;  %8407 = vmatpush1.bf16.msra.mxu1 %v9892_v19 }
 0x7a0   :  { %8146 = vmatmul.mubr.bf16.vlgmr.msra.gmra.mxu0 %v11269_v60  ;;  %8408 = vmatprep.subr.bf16.mxu1 %v9885_v25  ;;  %v6761_v25 = vld [vmem:[#allocation17 + $0xf38] sm:$0xff] }
 0x7a1   :  { %8196 = vmatpush1.bf16.msra.mxu0 %v9784_v63  ;;  %8227 = vmatprep.mubr.bf16.mxu0 %v11267_v59  ;;  %v6555_v63 = vld [vmem:[#allocation17 + $0x8c8] sm:$0xff]  ;;  %v9957_v18 = vcombine.high %v6757_v61, %v6761_v25 }
 0x7a2   :  { %8197 = vmatprep.subr.bf16.mxu0 %v9777_v62  ;;  %v9753_v46 = vcombine.high %v6555_v63, %v6559_v10  ;;  %v9752_v27 = vcombine.low %v6555_v63, %v6559_v10  ;;  %v9860_v62 = vcombine.low %v6661_v44, %v6665_v31  ;;  %v6765_v10 = vld [vmem:[#allocation17 + $0xf58] sm:$0xff]  ;;  %v6607_v44 = vld [vmem:[#allocation17 + $0xa68] sm:$0xff] }
 0x7a3   :  { %8409 = vmatpush1.bf16.msra.mxu1 %v9884_v24  ;;  %v9965_v6 = vcombine.high %v6765_v10, %v6769_v53 }
 0x7a4   :  { %8410 = vmatprep.subr.bf16.mxu1 %v9877_v57  ;;  %v6753_v57 = vld [vmem:[#allocation17 + $0xef8] sm:$0xff] }
 0x7a5   :  { %8198 = vmatpush1.bf16.msra.mxu0 %v9776_v5  ;;  %v6643_v5 = vld [vmem:[#allocation17 + $0xb88] sm:$0xff]  ;;  %v9949_v12 = vcombine.high %v6749_v29, %v6753_v57 }
 0x7a6   :  { %8199 = vmatprep.subr.bf16.mxu0 %v9769_v22  ;;  %v9980_v22 = vcombine.low %v6781_v2, %v6785_v3  ;;  %v9841_v9 = vcombine.high %v6643_v5, %v6647_v26  ;;  %v9840_v63 = vcombine.low %v6643_v5, %v6647_v26  ;;  %v6599_v2 = vld [vmem:[#allocation17 + $0xa28] sm:$0xff]  ;;  %v6725_v26 = vld [vmem:[#allocation17 + $0xe18] sm:$0xff] }
 0x7a7   :  { %8411 = vmatpush1.bf16.msra.mxu1 %v9876_v30 }
 0x7a8   :  { %8412 = vmatprep.subr.bf16.mxu1 %v9869_v39  ;;  %v6745_v39 = vld [vmem:[#allocation17 + $0xeb8] sm:$0xff] }
 0x7a9   :  { %8200 = vmatpush1.bf16.msra.mxu0 %v9768_v56  ;;  %v6635_v56 = vld [vmem:[#allocation17 + $0xb48] sm:$0xff]  ;;  %v9941_v31 = vcombine.high %v6741_v37, %v6745_v39 }
 0x7aa   :  { %8201 = vmatprep.subr.bf16.mxu0 %v9761_v58  ;;  %v9972_v58 = vcombine.low %v6773_v32, %v6777_v40  ;;  %v9833_v19 = vcombine.high %v6635_v56, %v6639_v21  ;;  %v9832_v20 = vcombine.low %v6635_v56, %v6639_v21  ;;  %v6592_v32 = vld [vmem:[#allocation17 + $0x9f0] sm:$0xff] }
 0x7ab   :  { %8413 = vmatpush1.bf16.msra.mxu1 %v9868_v17 }
 0x7ac   :  { %8414 = vmatprep.subr.bf16.mxu1 %v9861_v16  ;;  %v6737_v16 = vld [vmem:[#allocation17 + $0xe78] sm:$0xff] }
 0x7ad   :  { %8202 = vmatpush1.bf16.msra.mxu0 %v9760_v11  ;;  %v6627_v11 = vld [vmem:[#allocation17 + $0xb08] sm:$0xff]  ;;  %v9933_v3 = vcombine.high %v6733_v45, %v6737_v16 }
 0x7ae   :  { %8203 = vmatprep.subr.bf16.mxu0 %v9753_v46  ;;  %v9964_v46 = vcombine.low %v6765_v10, %v6769_v53  ;;  %v9825_v24 = vcombine.high %v6627_v11, %v6631_v50  ;;  %v9824_v1 = vcombine.low %v6627_v11, %v6631_v50  ;;  %v6572_v53 = vld [vmem:[#allocation17 + $0x950] sm:$0xff] }
 0x7af   :  { %8415 = vmatpush1.bf16.msra.mxu1 %v9860_v62  ;;  %v6576_v11 = vld [vmem:[#allocation17 + $0x970] sm:$0xff] }
 0x7b0   :  { %8416 = vmatprep.subr.bf16.mxu1 %v9981_v7  ;;  %v6729_v7 = vld [vmem:[#allocation17 + $0xe38] sm:$0xff] }
 0x7b1   :  { %8204 = vmatpush1.bf16.msra.mxu0 %v9752_v27  ;;  %v6619_v27 = vld [vmem:[#allocation17 + $0xac8] sm:$0xff]  ;;  %v9925_v40 = vcombine.high %v6725_v26, %v6729_v7 }
 0x7b2   :  { %8205 = vmatprep.subr.bf16.mxu0 %v9745_v28  ;;  %v9956_v28 = vcombine.low %v6757_v61, %v6761_v25  ;;  %v9817_v30 = vcombine.high %v6619_v27, %v6623_v15  ;;  %v9816_v35 = vcombine.low %v6619_v27, %v6623_v15  ;;  %v6564_v61 = vld [vmem:[#allocation17 + $0x910] sm:$0xff] }
 0x7b3   :  { %8417 = vmatpush2.bf16.msra.mxu1 %v9980_v22  ;;  %v6556_v15 = vld [vmem:[#allocation17 + $0x8d0] sm:$0xff] }
 0x7b4   :  { %8418 = vmatprep.subr.bf16.mxu1 %v9973_v42  ;;  %v6584_v42 = vld [vmem:[#allocation17 + $0x9b0] sm:$0xff] }
 0x7b5   :  { %8206 = vmatpush1.bf16.msra.mxu0 %v9744_v36  ;;  %v6611_v36 = vld [vmem:[#allocation17 + $0xa88] sm:$0xff] }
 0x7b6   :  { %8207 = vmatprep.subr.bf16.mxu0 %v9737_v4  ;;  %v9948_v4 = vcombine.low %v6749_v29, %v6753_v57  ;;  %v9809_v17 = vcombine.high %v6611_v36, %v6615_v14  ;;  %v9808_v49 = vcombine.low %v6611_v36, %v6615_v14  ;;  %v6548_v29 = vld [vmem:[#allocation17 + $0x890] sm:$0xff] }
 0x7b7   :  { %8419 = vmatpush2.bf16.msra.mxu1 %v9972_v58  ;;  %v6580_v58 = vld [vmem:[#allocation17 + $0x990] sm:$0xff] }
 0x7b8   :  { %8420 = vmatprep.subr.bf16.mxu1 %v9965_v6  ;;  %v9779_v10 = vcombine.high %v6580_v58, %v6584_v42  ;;  %v9771_v6 = vcombine.high %v6572_v53, %v6576_v11  ;;  %v6540_v14 = vld [vmem:[#allocation17 + $0x850] sm:$0xff] }
 0x7b9   :  { %8208 = vmatpush1.bf16.msra.mxu0 %v9736_v38  ;;  %v6603_v38 = vld [vmem:[#allocation17 + $0xa48] sm:$0xff] }
 0x7ba   :  { %8209 = vmatprep.subr.bf16.mxu0 %v9729_v47  ;;  %v9940_v47 = vcombine.low %v6741_v37, %v6745_v39  ;;  %v9801_v62 = vcombine.high %v6603_v38, %v6607_v44  ;;  %v9800_v5 = vcombine.low %v6603_v38, %v6607_v44  ;;  %v6532_v37 = vld [vmem:[#allocation17 + $0x810] sm:$0xff] }
 0x7bb   :  { %8421 = vmatpush2.bf16.msra.mxu1 %v9964_v46  ;;  %v9778_v46 = vcombine.low %v6580_v58, %v6584_v42  ;;  %v6652_v44 = vld [vmem:[#allocation17 + $0xbd0] sm:$0xff] }
 0x7bc   :  { %8422 = vmatprep.subr.bf16.mxu1 %v9957_v18  ;;  %v6616_v58 = vld [vmem:[#allocation17 + $0xab0] sm:$0xff] }
 0x7bd   :  { %8210 = vmatpush1.bf16.msra.mxu0 %v9728_v52  ;;  %v6595_v52 = vld [vmem:[#allocation17 + $0xa08] sm:$0xff] }
 0x7be   :  { %8211 = vmatprep.subr.bf16.mxu0 %v9849_v8  ;;  %v9932_v8 = vcombine.low %v6733_v45, %v6737_v16  ;;  %v9793_v22 = vcombine.high %v6595_v52, %v6599_v2  ;;  %v9792_v56 = vcombine.low %v6595_v52, %v6599_v2  ;;  %v6644_v45 = vld [vmem:[#allocation17 + $0xb90] sm:$0xff] }
 0x7bf   :  { %8423 = vmatpush2.bf16.msra.mxu1 %v9956_v28  ;;  %v6560_v28 = vld [vmem:[#allocation17 + $0x8f0] sm:$0xff] }
 0x7c0   :  { %8424 = vmatprep.subr.bf16.mxu1 %v9949_v12  ;;  %v9754_v57 = vcombine.low %v6556_v15, %v6560_v28  ;;  %v6636_v2 = vld [vmem:[#allocation17 + $0xb50] sm:$0xff] }
 0x7c1   :  { %8212 = vmatpush2.bf16.msra.mxu0 %v9848_v23  ;;  %v6588_v23 = vld [vmem:[#allocation17 + $0x9d0] sm:$0xff] }
 0x7c2   :  { %8213 = vmatprep.subr.bf16.mxu0 %v9841_v9  ;;  %v9924_v9 = vcombine.low %v6725_v26, %v6729_v7  ;;  %v9787_v21 = vcombine.high %v6588_v23, %v6592_v32  ;;  %v6628_v26 = vld [vmem:[#allocation17 + $0xb10] sm:$0xff] }
 0x7c3   :  { %8425 = vmatpush2.bf16.msra.mxu1 %v9948_v4  ;;  %v6544_v4 = vld [vmem:[#allocation17 + $0x870] sm:$0xff] }
 0x7c4   :  { %8426 = vmatprep.subr.bf16.mxu1 %v9941_v31  ;;  %v9738_v39 = vcombine.low %v6540_v14, %v6544_v4 }
 0x7c5   :  { %8214 = vmatpush2.bf16.msra.mxu0 %v9840_v63  ;;  %v9786_v63 = vcombine.low %v6588_v23, %v6592_v32  ;;  %v6620_v32 = vld [vmem:[#allocation17 + $0xad0] sm:$0xff] }
 0x7c6   :  { %8215 = vmatprep.subr.bf16.mxu0 %v9833_v19 }
 0x7c7   :  { %8427 = vmatpush2.bf16.msra.mxu1 %v9940_v47  ;;  %v6656_v47 = vld [vmem:[#allocation17 + $0xbf0] sm:$0xff] }
 0x7c8   :  { %8428 = vmatprep.subr.bf16.mxu1 %v9933_v3  ;;  %v9850_v16 = vcombine.low %v6652_v44, %v6656_v47 }
 0x7c9   :  { %8216 = vmatpush2.bf16.msra.mxu0 %v9832_v20 }
 0x7ca   :  { %8217 = vmatprep.subr.bf16.mxu0 %v9825_v24  ;;  %v6568_v24 = vld [vmem:[#allocation17 + $0x930] sm:$0xff] }
 0x7cb   :  { %8429 = vmatpush2.bf16.msra.mxu1 %v9932_v8  ;;  %v9763_v27 = vcombine.high %v6564_v61, %v6568_v24  ;;  %v9762_v18 = vcombine.low %v6564_v61, %v6568_v24  ;;  %v6640_v8 = vld [vmem:[#allocation17 + $0xb70] sm:$0xff] }
 0x7cc   :  { %8430 = vmatprep.subr.bf16.mxu1 %v9925_v40  ;;  %v9834_v7 = vcombine.low %v6636_v2, %v6640_v8 }
 0x7cd   :  { %8218 = vmatpush2.bf16.msra.mxu0 %v9824_v1  ;;  %v11281_v19 = vpop.f32.mrf.mxu1  ;;  %v9755_v1 = vcombine.high %v6556_v15, %v6560_v28  ;;  %v6581_v28 = vld [vmem:[#allocation17 + $0x998] sm:$0xff] }
 0x7ce   :  { %8219 = vmatprep.subr.bf16.mxu0 %v9817_v30  ;;  %v6552_v30 = vld [vmem:[#allocation17 + $0x8b0] sm:$0xff] }
 0x7cf   :  { %8431 = vmatpush2.bf16.msra.mxu1 %v9924_v9  ;;  %v11284_v50 = vpop.f32.mrf.mxu1  ;;  %v9747_v36 = vcombine.high %v6548_v29, %v6552_v30  ;;  %v9746_v12 = vcombine.low %v6548_v29, %v6552_v30  ;;  %v6624_v9 = vld [vmem:[#allocation17 + $0xaf0] sm:$0xff] }
 0x7d0   :  { %10065 = vmatprep.subr.bf16.mxu1 %v10675_v0  ;;  %v9818_v42 = vcombine.low %v6620_v32, %v6624_v9 }
 0x7d1   :  { %8220 = vmatpush2.bf16.msra.mxu0 %v9816_v35  ;;  %v8192_v20 = vpop.f32.mrf.mxu1  ;;  %v9739_v35 = vcombine.high %v6540_v14, %v6544_v4 }
 0x7d2   :  { %8221 = vmatprep.subr.bf16.mxu0 %v9809_v17  ;;  %8433 = vmatmul.mubr.bf16.vlgmr.msra.gmra.mxu1 %v11235_v48  ;;  %v9770_v48 = vcombine.low %v6572_v53, %v6576_v11  ;;  %v6536_v17 = vld [vmem:[#allocation17 + $0x830] sm:$0xff] }
 0x7d3   :  { %v8193_v25 = vpop.f32.mrf.mxu1  ;;  %v9731_v38 = vcombine.high %v6532_v37, %v6536_v17  ;;  %v9730_v31 = vcombine.low %v6532_v37, %v6536_v17  ;;  %v6608_v53 = vld [vmem:[#allocation17 + $0xa70] sm:$0xff]  ;;  %v6565_v37 = vld [vmem:[#allocation17 + $0x918] sm:$0xff]  ;;  %10081 = vmatprep.mubr.msk.bf16.mxu1 %vm10677_vm1, %v10675_v0 }
 0x7d4   :  { %v6600_v20 = vld [vmem:[#allocation17 + $0xa30] sm:$0xff]  ;;  %v6589_v25 = vld [vmem:[#allocation17 + $0x9d8] sm:$0xff] }
 0x7d5   :  { %8222 = vmatpush2.bf16.msra.mxu0 %v9808_v49  ;;  %v9851_v49 = vcombine.high %v6652_v44, %v6656_v47  ;;  %v6569_v17 = vld [vmem:[#allocation17 + $0x938] sm:$0xff] }
 0x7d6   :  { %8223 = vmatprep.subr.bf16.mxu0 %v9801_v62  ;;  %v6648_v62 = vld [vmem:[#allocation17 + $0xbb0] sm:$0xff]  ;;  %v9765_v44 = vcombine.high %v6565_v37, %v6569_v17  ;;  %v6557_v47 = vld [vmem:[#allocation17 + $0x8d8] sm:$0xff] }
 0x7d7   :  { %v9843_v52 = vcombine.high %v6644_v45, %v6648_v62  ;;  %v9842_v3 = vcombine.low %v6644_v45, %v6648_v62  ;;  %v6549_v62 = vld [vmem:[#allocation17 + $0x898] sm:$0xff] }
 0x7d9   :  { %8224 = vmatpush2.bf16.msra.mxu0 %v9800_v5  ;;  %v9835_v5 = vcombine.high %v6636_v2, %v6640_v8  ;;  %v6541_v2 = vld [vmem:[#allocation17 + $0x858] sm:$0xff] }
 0x7da   :  { %8225 = vmatprep.subr.bf16.mxu0 %v9793_v22  ;;  %v6632_v22 = vld [vmem:[#allocation17 + $0xb30] sm:$0xff]  ;;  %v6545_v8 = vld [vmem:[#allocation17 + $0x878] sm:$0xff] }
 0x7db   :  { %v9827_v23 = vcombine.high %v6628_v26, %v6632_v22  ;;  %v9826_v40 = vcombine.low %v6628_v26, %v6632_v22  ;;  %v6533_v26 = vld [vmem:[#allocation17 + $0x818] sm:$0xff] }
 0x7dc   :  { %v6537_v22 = vld [vmem:[#allocation17 + $0x838] sm:$0xff] }
 0x7dd   :  { %8226 = vmatpush2.bf16.msra.mxu0 %v9792_v56  ;;  %v9819_v56 = vcombine.high %v6620_v32, %v6624_v9  ;;  %v6653_v32 = vld [vmem:[#allocation17 + $0xbd8] sm:$0xff] }
 0x7de   :  { %8277 = vmatprep.subr.bf16.mxu0 %v9787_v21  ;;  %v6612_v21 = vld [vmem:[#allocation17 + $0xa90] sm:$0xff]  ;;  %v6657_v9 = vld [vmem:[#allocation17 + $0xbf8] sm:$0xff] }
 0x7df   :  { %v9810_v11 = vcombine.low %v6612_v21, %v6616_v58 }
 0x7e0   :  { %8228 = vmatmul.mubr.bf16.vlgmr.msra.gmra.mxu0 %v11269_v60 }
 0x7e1   :  { %8278 = vmatpush1.bf16.msra.mxu0 %v9786_v63  ;;  %8309 = vmatprep.mubr.bf16.mxu0 %v11267_v59  ;;  %v9811_v63 = vcombine.high %v6612_v21, %v6616_v58  ;;  %v6645_v21 = vld [vmem:[#allocation17 + $0xb98] sm:$0xff] }
 0x7e2   :  { %8279 = vmatprep.subr.bf16.mxu0 %v9779_v10  ;;  %v6604_v10 = vld [vmem:[#allocation17 + $0xa50] sm:$0xff]  ;;  %v6649_v58 = vld [vmem:[#allocation17 + $0xbb8] sm:$0xff] }
 0x7e3   :  { %v9802_v61 = vcombine.low %v6604_v10, %v6608_v53 }
 0x7e5   :  { %8280 = vmatpush1.bf16.msra.mxu0 %v9778_v46  ;;  %v9803_v46 = vcombine.high %v6604_v10, %v6608_v53  ;;  %v6637_v10 = vld [vmem:[#allocation17 + $0xb58] sm:$0xff] }
 0x7e6   :  { %8281 = vmatprep.subr.bf16.mxu0 %v9771_v6  ;;  %v6596_v6 = vld [vmem:[#allocation17 + $0xa10] sm:$0xff]  ;;  %v6641_v53 = vld [vmem:[#allocation17 + $0xb78] sm:$0xff] }
 0x7e7   :  { %v9795_v24 = vcombine.high %v6596_v6, %v6600_v20 }
 0x7e9   :  { %8282 = vmatpush1.bf16.msra.mxu0 %v9770_v48  ;;  %v6593_v48 = vld [vmem:[#allocation17 + $0x9f8] sm:$0xff] }
 0x7ea   :  { %8283 = vmatprep.subr.bf16.mxu0 %v9763_v27  ;;  %v9794_v27 = vcombine.low %v6596_v6, %v6600_v20  ;;  %v9789_v15 = vcombine.high %v6589_v25, %v6593_v48  ;;  %v6629_v6 = vld [vmem:[#allocation17 + $0xb18] sm:$0xff] }
 0x7eb   :  { %v6633_v20 = vld [vmem:[#allocation17 + $0xb38] sm:$0xff] }
 0x7ed   :  { %8284 = vmatpush1.bf16.msra.mxu0 %v9762_v18  ;;  %v6585_v18 = vld [vmem:[#allocation17 + $0x9b8] sm:$0xff] }
 0x7ee   :  { %8285 = vmatprep.subr.bf16.mxu0 %v9755_v1  ;;  %v9788_v1 = vcombine.low %v6589_v25, %v6593_v48  ;;  %v9781_v29 = vcombine.high %v6581_v28, %v6585_v18  ;;  %v9780_v4 = vcombine.low %v6581_v28, %v6585_v18  ;;  %v6621_v25 = vld [vmem:[#allocation17 + $0xad8] sm:$0xff] }
 0x7ef   :  { %v6625_v48 = vld [vmem:[#allocation17 + $0xaf8] sm:$0xff] }
 0x7f0   :  { %v6613_v28 = vld [vmem:[#allocation17 + $0xa98] sm:$0xff] }
 0x7f1   :  { %8286 = vmatpush1.bf16.msra.mxu0 %v9754_v57  ;;  %v6573_v57 = vld [vmem:[#allocation17 + $0x958] sm:$0xff] }
 0x7f2   :  { %8287 = vmatprep.subr.bf16.mxu0 %v9747_v36  ;;  %v6577_v36 = vld [vmem:[#allocation17 + $0x978] sm:$0xff] }
 0x7f3   :  { %v6617_v18 = vld [vmem:[#allocation17 + $0xab8] sm:$0xff] }
 0x7f5   :  { %8288 = vmatpush1.bf16.msra.mxu0 %v9746_v12  ;;  %v9773_v12 = vcombine.high %v6573_v57, %v6577_v36 }
 0x7f6   :  { %8289 = vmatprep.subr.bf16.mxu0 %v9739_v35 }
 0x7f9   :  { %8290 = vmatpush1.bf16.msra.mxu0 %v9738_v39 }
 0x7fa   :  { %8291 = vmatprep.subr.bf16.mxu0 %v9731_v38  ;;  %v9772_v38 = vcombine.low %v6573_v57, %v6577_v36  ;;  %v6605_v57 = vld [vmem:[#allocation17 + $0xa58] sm:$0xff] }
 0x7fb   :  { %v6609_v36 = vld [vmem:[#allocation17 + $0xa78] sm:$0xff] }
 0x7fd   :  { %8292 = vmatpush1.bf16.msra.mxu0 %v9730_v31  ;;  %v6561_v31 = vld [vmem:[#allocation17 + $0x8f8] sm:$0xff] }
 0x7fe   :  { %8293 = vmatprep.subr.bf16.mxu0 %v9851_v49  ;;  %v9764_v49 = vcombine.low %v6565_v37, %v6569_v17  ;;  %v9757_v45 = vcombine.high %v6557_v47, %v6561_v31  ;;  %v6601_v37 = vld [vmem:[#allocation17 + $0xa38] sm:$0xff]  ;;  %v9804_v17 = vcombine.low %v6605_v57, %v6609_v36 }
 0x801   :  { %8294 = vmatpush2.bf16.msra.mxu0 %v9850_v16  ;;  %v6553_v16 = vld [vmem:[#allocation17 + $0x8b8] sm:$0xff] }
 0x802   :  { %8295 = vmatprep.subr.bf16.mxu0 %v9843_v52  ;;  %v9749_v52 = vcombine.high %v6549_v62, %v6553_v16 }
 0x805   :  { %8296 = vmatpush2.bf16.msra.mxu0 %v9842_v3  ;;  %v9748_v3 = vcombine.low %v6549_v62, %v6553_v16 }
 0x806   :  { %8297 = vmatprep.subr.bf16.mxu0 %v9835_v5  ;;  %v9741_v5 = vcombine.high %v6541_v2, %v6545_v8 }
 0x809   :  { %8298 = vmatpush2.bf16.msra.mxu0 %v9834_v7  ;;  %v9740_v7 = vcombine.low %v6541_v2, %v6545_v8 }
 0x80a   :  { %8299 = vmatprep.subr.bf16.mxu0 %v9827_v23  ;;  %v9733_v23 = vcombine.high %v6533_v26, %v6537_v22 }
 0x80d   :  { %8300 = vmatpush2.bf16.msra.mxu0 %v9826_v40  ;;  %v11287_v30 = vpop.f32.mrf.mxu1  ;;  %v9732_v40 = vcombine.low %v6533_v26, %v6537_v22 }
 0x80e   :  { %8301 = vmatprep.subr.bf16.mxu0 %v9819_v56  ;;  %v9853_v56 = vcombine.high %v6653_v32, %v6657_v9 }
 0x80f   :  { %v11290_v14 = vpop.f32.mrf.mxu1 }
 0x811   :  { %8302 = vmatpush2.bf16.msra.mxu0 %v9818_v42  ;;  %v8274_v35 = vpop.f32.mrf.mxu1  ;;  %v9852_v42 = vcombine.low %v6653_v32, %v6657_v9  ;;  %v10210_v32 = vld [vmem:[#allocation20 + $0x70] sm:$0xff]  }
 0x812   :  { %8303 = vmatprep.subr.bf16.mxu0 %v9811_v63  ;;  %v9845_v63 = vcombine.high %v6645_v21, %v6649_v58  ;;  %v6597_v35 = vld [vmem:[#allocation17 + $0xa18] sm:$0xff]  ;;  %v10211_v9 = vld [vmem:[#allocation20 + $0x30] sm:$0xff]  }
 0x813   :  { %v8275_v39 = vpop.f32.mrf.mxu1 }
 0x814   :  { %v9797_v39 = vcombine.high %v6597_v35, %v6601_v37 }
 0x815   :  { %8304 = vmatpush2.bf16.msra.mxu0 %v9810_v11  ;;  %v9844_v11 = vcombine.low %v6645_v21, %v6649_v58  ;;  %v10214_v21 = vld [vmem:[#allocation20 + $0x60] sm:$0xff]  }
 0x816   :  { %8305 = vmatprep.subr.bf16.mxu0 %v9803_v46  ;;  %v9837_v46 = vcombine.high %v6637_v10, %v6641_v53  ;;  %v10215_v58 = vld [vmem:[#allocation20 + $0x20] sm:$0xff]  }
 0x819   :  { %8306 = vmatpush2.bf16.msra.mxu0 %v9802_v61  ;;  %v9836_v61 = vcombine.low %v6637_v10, %v6641_v53  ;;  %v10218_v10 = vld [vmem:[#allocation20 + $0x50] sm:$0xff]   ;;  %v11302_v53 = vld [vmem:[#allocation19 + $0x8] sm:$0xff] }
 0x81a   :  { %8307 = vmatprep.subr.bf16.mxu0 %v9795_v24  ;;  %v9829_v24 = vcombine.high %v6629_v6, %v6633_v20 }
 0x81d   :  { %8308 = vmatpush2.bf16.msra.mxu0 %v9794_v27  ;;  %v9828_v27 = vcombine.low %v6629_v6, %v6633_v20  ;;  %v10220_v6 = vld [vmem:[#allocation20 + $0x48] sm:$0xff]   ;;  %v6804_v20 = vrot.slane %v11302_v53, %v10957_v51 }
 0x81e   :  { %8359 = vmatprep.subr.bf16.mxu0 %v9789_v15  ;;  %v9821_v15 = vcombine.high %v6621_v25, %v6625_v48 }
 0x820   :  { %8310 = vmatmul.mubr.bf16.vlgmr.msra.gmra.mxu0 %v11269_v60 }
 0x821   :  { %8360 = vmatpush1.bf16.msra.mxu0 %v9788_v1  ;;  %8391 = vmatprep.mubr.bf16.mxu0 %v11267_v59  ;;  %v9756_v59 = vcombine.low %v6557_v47, %v6561_v31  ;;  %v9820_v1 = vcombine.low %v6621_v25, %v6625_v48  ;;  %v6800_v48 = vrot.slane %v11302_v53, %v10875_v33 }
 0x822   :  { %8361 = vmatprep.subr.bf16.mxu0 %v9781_v29  ;;  %v9813_v29 = vcombine.high %v6613_v28, %v6617_v18 }
 0x825   :  { %8362 = vmatpush1.bf16.msra.mxu0 %v9780_v4  ;;  %v9812_v4 = vcombine.low %v6613_v28, %v6617_v18 }
 0x826   :  { %8363 = vmatprep.subr.bf16.mxu0 %v9773_v12  ;;  %v9805_v12 = vcombine.high %v6605_v57, %v6609_v36 }
 0x829   :  { %8364 = vmatpush1.bf16.msra.mxu0 %v9772_v38  ;;  %v9796_v38 = vcombine.low %v6597_v35, %v6601_v37  ;;  %v10225_v35 = vld [vmem:[#allocation23 + $0x30] sm:$0xff]  }
 0x82a   :  { %8365 = vmatprep.subr.bf16.mxu0 %v9765_v44 }
 0x82d   :  { %8366 = vmatpush1.bf16.msra.mxu0 %v9764_v49 }
 0x82e   :  { %8367 = vmatprep.subr.bf16.mxu0 %v9757_v45 }
 0x831   :  { %8368 = vmatpush1.bf16.msra.mxu0 %v9756_v59 }
 0x832   :  { %8369 = vmatprep.subr.bf16.mxu0 %v9749_v52 }
 0x835   :  { %8370 = vmatpush1.bf16.msra.mxu0 %v9748_v3 }
 0x836   :  { %8371 = vmatprep.subr.bf16.mxu0 %v9741_v5 }
 0x839   :  { %8372 = vmatpush1.bf16.msra.mxu0 %v9740_v7 }
 0x83a   :  { %8373 = vmatprep.subr.bf16.mxu0 %v9733_v23  ;;  %v10208_v23 = vld [vmem:[#allocation20 + $0x78] sm:$0xff]  }
 0x83d   :  { %8374 = vmatpush1.bf16.msra.mxu0 %v9732_v40  ;;  %v10212_v40 = vld [vmem:[#allocation20 + $0x68] sm:$0xff]  }
 0x83e   :  { %8375 = vmatprep.subr.bf16.mxu0 %v9853_v56  ;;  %v10213_v56 = vld [vmem:[#allocation20 + $0x28] sm:$0xff]  }
 0x841   :  { %8376 = vmatpush2.bf16.msra.mxu0 %v9852_v42  ;;  %v10216_v42 = vld [vmem:[#allocation20 + $0x58] sm:$0xff]  }
 0x842   :  { %8377 = vmatprep.subr.bf16.mxu0 %v9845_v63  ;;  %v10217_v63 = vld [vmem:[#allocation20 + $0x18] sm:$0xff]  }
 0x845   :  { %8378 = vmatpush2.bf16.msra.mxu0 %v9844_v11  ;;  %v10219_v11 = vld [vmem:[#allocation20 + $0x10] sm:$0xff]  }
 0x846   :  { %8379 = vmatprep.subr.bf16.mxu0 %v9837_v46  ;;  %v6796_v46 = vrot.slane %v11302_v53, %v10878_v34  ;;  %v10223_v34 = vld [vmem:[#allocation20] sm:$0xff]  }
 0x849   :  { %8380 = vmatpush2.bf16.msra.mxu0 %v9836_v61  ;;  %v6808_v61 = vrot.slane %v11302_v53, %v10962_v13 }
 0x84a   :  { %8381 = vmatprep.subr.bf16.mxu0 %v9829_v24  ;;  %v10221_v24 = vld [vmem:[#allocation20 + $0x8] sm:$0xff]  }
 0x84d   :  { %8382 = vmatpush2.bf16.msra.mxu0 %v9828_v27  ;;  %v10222_v27 = vld [vmem:[#allocation20 + $0x40] sm:$0xff]  }
 0x84e   :  { %8383 = vmatprep.subr.bf16.mxu0 %v9821_v15 }
 0x851   :  { %8384 = vmatpush2.bf16.msra.mxu0 %v9820_v1 }
 0x852   :  { %8385 = vmatprep.subr.bf16.mxu0 %v9813_v29  ;;  %v11293_v44 = vpop.f32.mrf.mxu1 }
 0x854   :  { %v11296_v31 = vpop.f32.mrf.mxu1 }
 0x855   :  { %8386 = vmatpush2.bf16.msra.mxu0 %v9812_v4  ;;  %v10224_v4 = vld [vmem:[#allocation23 + $0x38] sm:$0xff]  }
 0x856   :  { %8387 = vmatprep.subr.bf16.mxu0 %v9805_v12  ;;  %v8356_v45 = vpop.f32.mrf.mxu1  ;;  %10066 = vmatpush3.bf16.msra.mxu1 %v10224_v4  ;;  %v10230_v4 = vld [vmem:[#allocation23 + $0x8] sm:$0xff]  }
 0x857   :  { %10067 = vmatprep.subr.bf16.mxu1 %v10675_v0  ;;  %v6816_v45 = vrot.slane %v11302_v53, %v11019_v43 }
 0x858   :  { %v8357_v16 = vpop.f32.mrf.mxu1 }
 0x859   :  { %8388 = vmatpush2.bf16.msra.mxu0 %v9804_v17 }
 0x85a   :  { %8389 = vmatprep.subr.bf16.mxu0 %v9797_v39  ;;  %10068 = vmatpush3.bf16.msra.mxu1 %v10225_v35  ;;  %v6812_v39 = vrot.slane %v11302_v53, %v11013_v54  ;;  %v10232_v35 = vld [vmem:[#allocation26 + $0x38] sm:$0xff]  }
 0x85b   :  { %10069 = vmatprep.subr.bf16.mxu1 %v10675_v0 }
 0x85d   :  { %8390 = vmatpush2.bf16.msra.mxu0 %v9796_v38 }
 0x85e   :  { %10025 = vmatprep.subr.bf16.mxu0 %v10208_v23 }
 0x860   :  { %8392 = vmatmul.mubr.bf16.vlgmr.msra.gmra.mxu0 %v11269_v60  ;;  %v8147_v47 = vpop.f32.mrf.mxu0  ;;  %v10209_v60 = vld [vmem:[#allocation20 + $0x38] sm:$0xff]  }
 0x861   :  { %10026 = vmatpush3.bf16.msra.mxu0 %v10209_v60  ;;  %v8148_v25 = vadd.f32 %v8147_v47, %v6796_v46  ;;  %v6527_v60 = vld [vmem:[#allocation3 + $0x8] sm:$0xff]  ;;  %v6824_v46 = vrot.slane %v11302_v53, %v11022_v41 }
 0x862   :  { %v8149_v49 = vpop.f32.mrf.mxu0  ;;  %10027 = vmatprep.subr.bf16.mxu0 %v10210_v32 }
 0x863   :  { %v8189_v18 = vadd.f32 %v11281_v19, %v8148_v25  ;;  %v8150_v1 = vadd.f32 %v8149_v49, %v6800_v48  ;;  %v10226_v19 = vld [vmem:[#allocation23 + $0x28] sm:$0xff]  }
 0x864   :  { %v8151_v62 = vpop.f32.mrf.mxu0  ;;  %10070 = vmatpush3.bf16.msra.mxu1 %v10226_v19  ;;  %v10233_v19 = vld [vmem:[#allocation26 + $0x30] sm:$0xff]  }
 0x865   :  { %10028 = vmatpush3.bf16.msra.mxu0 %v10211_v9  ;;  %v9982_v29 = vmul.f32 -1.442695, %v8189_v18  ;;  %v8191_v57 = vadd.f32 %v11284_v50, %v8150_v1  ;;  %v10227_v50 = vld [vmem:[#allocation23 + $0x20] sm:$0xff]   ;;  %10071 = vmatprep.subr.bf16.mxu1 %v10675_v0 }
 0x866   :  { %v8152_v59 = vpop.f32.mrf.mxu0  ;;  %10029 = vmatprep.subr.bf16.mxu0 %v10212_v40  ;;  %v6528_v40 = vld [vmem:[#allocation3 + $0x10] sm:$0xff] }
 0x867   :  { %10272 = vpow2.f32 %v9982_v29  ;;  %v9983_v12 = vmul.f32 -1.442695, %v8191_v57 }
 0x868   :  { %10072 = vmatpush3.bf16.msra.mxu1 %v10227_v50  ;;  %v10234_v50 = vld [vmem:[#allocation26 + $0x28] sm:$0xff]  }
 0x869   :  { %10030 = vmatpush3.bf16.msra.mxu0 %v10213_v56  ;;  %10073 = vmatprep.subr.bf16.mxu1 %v10675_v0 }
 0x86a   :  { %10031 = vmatprep.subr.bf16.mxu0 %v10214_v21 }
 0x86d   :  { %10032 = vmatpush3.bf16.msra.mxu0 %v10215_v58 }
 0x86e   :  { %10033 = vmatprep.subr.bf16.mxu0 %v10216_v42 }
 0x871   :  { %10034 = vmatpush3.bf16.msra.mxu0 %v10217_v63 }
 0x872   :  { %10035 = vmatprep.subr.bf16.mxu0 %v10218_v10 }
 0x875   :  { %10036 = vmatpush3.bf16.msra.mxu0 %v10219_v11 }
 0x876   :  { %10037 = vmatprep.subr.bf16.mxu0 %v10220_v6 }
 0x879   :  { %10038 = vmatpush3.bf16.msra.mxu0 %v10221_v24 }
 0x87a   :  { %10039 = vmatprep.subr.bf16.mxu0 %v10222_v27 }
 0x87d   :  { %10040 = vmatpush3.bf16.msra.mxu0 %v10223_v34 }
 0x87e   :  { %10085 = vmatprep.subr.bf16.mxu0 %v10675_v0 }
 0x892   :  { %v11298_v52 = vpop.f32.mrf.mxu1 }
 0x894   :  { %v11300_v8 = vpop.f32.mrf.mxu1 }
 0x896   :  { %v8438_v5 = vpop.f32.mrf.mxu1 }
 0x898   :  { %v8439_v22 = vpop.f32.mrf.mxu1 }
 0x8a0   :  { %v8229_v2 = vpop.f32.mrf.mxu0 }
 0x8a1   :  { %v8230_v15 = vadd.f32 %v8229_v2, %v6804_v20 }
 0x8a2   :  { %v8231_v3 = vpop.f32.mrf.mxu0 }
 0x8a3   :  { %v8232_v28 = vadd.f32 %v8231_v3, %v6808_v61  ;;  %v8271_v51 = vadd.f32 %v11287_v30, %v8230_v15  ;;  %v10228_v30 = vld [vmem:[#allocation23 + $0x18] sm:$0xff]  }
 0x8a4   :  { %v8233_v26 = vpop.f32.mrf.mxu0  ;;  %10074 = vmatpush3.bf16.msra.mxu1 %v10228_v30  ;;  %v10235_v30 = vld [vmem:[#allocation26 + $0x20] sm:$0xff]  }
 0x8a5   :  { %v8273_v13 = vadd.f32 %v11290_v14, %v8232_v28  ;;  %v9984_v33 = vmul.f32 -1.442695, %v8271_v51  ;;  %v10273_v14 = vpop.eup %10272  ;;  %10075 = vmatprep.subr.bf16.mxu1 %v10675_v0 }
 0x8a6   :  { %v8234_v7 = vpop.f32.mrf.mxu0  ;;  %v8447_v38 = vadd.f32 1.0, %v10273_v14  ;;  %v10236_v14 = vld [vmem:[#allocation26 + $0x18] sm:$0xff]  }
 0x8a7   :  { %v9985_v36 = vmul.f32 -1.442695, %v8273_v13  ;;  %10274 = vpow2.f32 %v9984_v33 }
 0x8a9   :  { %10276 = vpow2.f32 %v9985_v36  ;;  %v10229_v36 = vld [vmem:[#allocation23 + $0x10] sm:$0xff]  }
 0x8aa   :  { %10278 = vpow2.f32 %v9983_v12  ;;  %10076 = vmatpush3.bf16.msra.mxu1 %v10229_v36  ;;  %v10231_v12 = vld [vmem:[#allocation23] sm:$0xff]  }
 0x8ab   :  { %10280 = vrcp.f32 %v8447_v38  ;;  %10077 = vmatprep.subr.bf16.mxu1 %v10675_v0 }
 0x8ae   :  { %10078 = vmatpush3.bf16.msra.mxu1 %v10230_v4 }
 0x8af   :  { %10079 = vmatprep.subr.bf16.mxu1 %v10675_v0 }
 0x8b2   :  { %10080 = vmatpush3.bf16.msra.mxu1 %v10231_v12 }
 0x8b4   :  { %v10275_v37 = vpop.eup %10274 }
 0x8b5   :  { %v8459_v49 = vadd.f32 1.0, %v10275_v37  ;;  %v10237_v37 = vld [vmem:[#allocation26 + $0x10] sm:$0xff]  }
 0x8b6   :  { %v10277_v17 = vpop.eup %10276 }
 0x8b7   :  { %v10279_v47 = vpop.eup %10278  ;;  %v8460_v62 = vadd.f32 1.0, %v10277_v17  ;;  %10282 = vrcp.f32 %v8459_v49 }
 0x8b8   :  { %v8448_v2 = vadd.f32 1.0, %v10279_v47  ;;  %v10281_v43 = vpop.eup %10280 }
 0x8b9   :  { %10284 = vrcp.f32 %v8460_v62 }
 0x8c4   :  { %v10283_v23 = vpop.eup %10282 }
 0x8c5   :  { %v8479_v21 = vmul.f32 %v10283_v23, %v6527_v60 }
 0x8c6   :  { %v10285_v32 = vpop.eup %10284 }
 0x8c7   :  { %v8480_v10 = vmul.f32 %v10285_v32, %v6528_v40  ;;  %v10014_v32 = vld [vmem:[#allocation28] ss:$0 sm:$0xff] }
 0x8e0   :  { %v8311_v16 = vpop.f32.mrf.mxu0 }
 0x8e1   :  { %v8312_v59 = vadd.f32 %v8311_v16, %v6812_v39  ;;  %v9988_v39 = vld [vmem:[#allocation22] ss:$0 sm:$0xff] }
 0x8e2   :  { %v8313_v3 = vpop.f32.mrf.mxu0 }
 0x8e3   :  { %v8353_v5 = vadd.f32 %v11293_v44, %v8312_v59  ;;  %v8314_v26 = vadd.f32 %v8313_v3, %v6816_v45  ;;  %v10239_v3 = vld [vmem:[#allocation26] sm:$0xff]  }
 0x8e4   :  { %v8315_v54 = vpop.f32.mrf.mxu0 }
 0x8e5   :  { %10286 = vtanh.f32 %v8353_v5  ;;  %v8355_v22 = vadd.f32 %v11296_v31, %v8314_v26  ;;  %v6820_v31 = vrot.slane %v11302_v53, %v11016_v55  ;;  %v10005_v5 = vld [vmem:[#allocation25] ss:$0 sm:$0xff] }
 0x8e6   :  { %10288 = vrcp.f32 %v8448_v2  ;;  %v8316_v7 = vpop.f32.mrf.mxu0  ;;  %v10238_v2 = vld [vmem:[#allocation26 + $0x8] sm:$0xff]  }
 0x8e7   :  { %10290 = vtanh.f32 %v8355_v22 }
 0x8f2   :  { %v10287_v9 = vpop.eup %10286 }
 0x8f3   :  { %v10289_v56 = vpop.eup %10288  ;;  %v8481_v58 = vmul.f32 %v10287_v9, %v10281_v43 }
 0x8f4   :  { %v10291_v42 = vpop.eup %10290 }
 0x8f5   :  { %v8483_v44 = vadd.f32 %v8481_v58, %v8479_v21  ;;  %v8482_v63 = vmul.f32 %v10291_v42, %v10289_v56 }
 0x8f7   :  { %v8484_v11 = vadd.f32 %v8482_v63, %v8480_v10 }
 0x920   :  { %v8393_v6 = vpop.f32.mrf.mxu0 }
 0x921   :  { %v8394_v20 = vadd.f32 %v8393_v6, %v6820_v31 }
 0x922   :  { %v8395_v61 = vpop.f32.mrf.mxu0 }
 0x923   :  { %v8435_v24 = vadd.f32 %v11298_v52, %v8394_v20  ;;  %v8396_v25 = vadd.f32 %v8395_v61, %v6824_v46 }
 0x924   :  { %v8397_v48 = vpop.f32.mrf.mxu0 }
 0x925   :  { %v9986_v27 = vmul.f32 -1.442695, %v8435_v24  ;;  %v8437_v15 = vadd.f32 %v11300_v8, %v8396_v25 }
 0x926   :  { %v8398_v28 = vpop.f32.mrf.mxu0 }
 0x927   :  { %10292 = vpow2.f32 %v9986_v27  ;;  %v9987_v34 = vmul.f32 -1.442695, %v8437_v15 }
 0x929   :  { %10294 = vpow2.f32 %v9987_v34 }
 0x92a   :  { %10296 = vtanh.f32 %v8483_v44 }
 0x934   :  { %v10293_v18 = vpop.eup %10292 }
 0x935   :  { %v8473_v1 = vadd.f32 1.0, %v10293_v18 }
 0x936   :  { %v10295_v55 = vpop.eup %10294 }
 0x937   :  { %10298 = vrcp.f32 %v8473_v1  ;;  %v8474_v41 = vadd.f32 1.0, %v10295_v55  ;;  %v10297_v53 = vpop.eup %10296 }
 0x938   :  { %10300 = vtanh.f32 %v8484_v11 }
 0x939   :  { %10302 = vrcp.f32 %v8474_v41 }
 0x944   :  { %v10299_v51 = vpop.eup %10298 }
 0x945   :  { %v10301_v52 = vpop.eup %10300  ;;  %v8487_v29 = vmul.f32 %v10299_v51, %v10297_v53 }
 0x946   :  { %v10303_v13 = vpop.eup %10302 }
 0x947   :  { %v8488_v57 = vmul.f32 %v10303_v13, %v10301_v52  ;;  %v8489_v8 = vpack.c.bf16 %v8487_v29, %v8487_v29 }
 0x949   :  { %v8490_v33 = vpack.c.bf16 %v8488_v57, %v8488_v57 }
 0x94b   :  { %8658 = vmatprep.mubr.bf16.mxu0 %v8490_v33 }
 0x94c   :  { %8659 = vmatmul.mubr.bf16.vlgmr.msra.gmra.mxu0 %v8489_v8 }
 0x94d   :  { %10101 = vmatprep.mubr.msk.bf16.mxu0 %vm10677_vm1, %v10675_v0  ;;  %10086 = vmatpush3.bf16.msra.mxu0 %v10232_v35 }
 0x94e   :  { %10087 = vmatprep.subr.bf16.mxu0 %v10675_v0 }
 0x951   :  { %10088 = vmatpush3.bf16.msra.mxu0 %v10233_v19 }
 0x952   :  { %10089 = vmatprep.subr.bf16.mxu0 %v10675_v0 }
 0x955   :  { %10090 = vmatpush3.bf16.msra.mxu0 %v10234_v50 }
 0x956   :  { %10091 = vmatprep.subr.bf16.mxu0 %v10675_v0 }
 0x959   :  { %10092 = vmatpush3.bf16.msra.mxu0 %v10235_v30 }
 0x95a   :  { %10093 = vmatprep.subr.bf16.mxu0 %v10675_v0 }
 0x95d   :  { %10094 = vmatpush3.bf16.msra.mxu0 %v10236_v14 }
 0x95e   :  { %10095 = vmatprep.subr.bf16.mxu0 %v10675_v0 }
 0x961   :  { %10096 = vmatpush3.bf16.msra.mxu0 %v10237_v37 }
 0x962   :  { %10097 = vmatprep.subr.bf16.mxu0 %v10675_v0 }
 0x965   :  { %10098 = vmatpush3.bf16.msra.mxu0 %v10238_v2 }
 0x966   :  { %10099 = vmatprep.subr.bf16.mxu0 %v10675_v0 }
 0x969   :  { %10100 = vmatpush3.bf16.msra.mxu0 %v10239_v3 }
 0xa0c   :  { %v10041_v17 = vpop.f32.mrf.mxu0 }
 0xa0e   :  { %v10042_v38 = vpop.f32.mrf.mxu0 }
 0xa0f   :  { %v10043_v47 = vadd.f32 %v10042_v38, %v10041_v17 }
 0xa10   :  { %v10044_v49 = vpop.f32.mrf.mxu0 }
 0xa11   :  { %v8661_v45 = vadd.f32 %v10043_v47, %v9988_v39 }
 0xa12   :  { %v10045_v62 = vpop.f32.mrf.mxu0 }
 0xa13   :  { %v8666_v16 = vmax.f32 %v8661_v45, 0.0 }
 0xa15   :  { %v8667_v59 = vpack.c.bf16 %v8666_v16, %v8666_v16 }
 0xa17   :  { %10082 = vmatmul.mubr.bf16.vlgmr.msra.gmra.mxu1 %v8667_v59 }
 0xad7   :  { %v8773_v26 = vpop.f32.mrf.mxu1 }
 0xad8   :  { %v8774_v54 = vadd.f32 %v10005_v5, %v8773_v26 }
 0xad9   :  { %v10083_v22 = vpop.f32.mrf.mxu1 }
 0xada   :  { %v8779_v7 = vmax.f32 %v8774_v54, 0.0 }
 0xadb   :  { %v8776_v43 = vpop.f32.mrf.mxu1 }
 0xadc   :  { %v8780_v23 = vpack.c.bf16 %v8779_v7, %v8779_v7 }
 0xadd   :  { %v10084_v60 = vpop.f32.mrf.mxu1 }
 0xade   :  { %10102 = vmatmul.mubr.bf16.vlgmr.msra.gmra.mxu0 %v8780_v23 }
 0xb9e   :  { %v8886_v9 = vpop.f32.mrf.mxu0 }
 0xb9f   :  { %v8887_v40 = vadd.f32 %v10014_v32, %v8886_v9 }
 0xba0   :  { %v10103_v56 = vpop.f32.mrf.mxu0 }
 0xba1   :  { %v10023_v21 = vmul.f32 -1.442695, %v8887_v40 }
 0xba2   :  { %v8889_v58 = vpop.f32.mrf.mxu0 }
 0xba3   :  { %10304 = vpow2.f32 %v10023_v21 }
 0xba4   :  { %v10104_v42 = vpop.f32.mrf.mxu0 }
 0xbb0   :  { %v10305_v0 = vpop.eup %10304 }
 0xbb1   :  { %v8895_v44 = vadd.f32 1.0, %v10305_v0 }
 0xbb3   :  { %10306 = vrcp.f32 %v8895_v44 }
 0xbc0   :  { %v10307_v63 = vpop.eup %10306 }
 0xbc1   :  { %8898 = vst [vmem:[#allocation29] sm:$0xff] %v10307_v63 }
 0xbc2   :  { %10619 = shalt.err (!%p10616_p10)
}
 0xbc3   :  { %8908 = dma.vmem_to_hbm [thread:$0]  %s8906_s21, 128, %s11364_s16, [#allocation7]  }
 0xbc4   :  { %10648 = dma.done.wait [#allocation7], 128  }
 0xbc5   :  { %10649 = vsyncadd [#allocation7], 4294967168 }
 0xbc6   :  { %8912 = vsyncpa [#allocation6], 1 }
 0xbc7   :  { %8913 = vsyncpa [#allocation9], 1 }
 0xbc8   :  { %8914 = vsyncpa [#allocation12], 1 }
 0xbc9   :  { %8915 = vsyncpa [#allocation15], 1 }
 0xbca   :  { %8916 = vsyncpa [#allocation18], 1 }
 0xbcb   :  { %8917 = vsyncpa [#allocation21], 1 }
 0xbcc   :  { %8918 = vsyncpa [#allocation24], 1 }
 0xbcd   :  { %8919 = vsyncpa [#allocation27], 1 }
 0xbce   :  { %8920 = vsyncpa [#allocation7], 1 }

</bundles_post_ra>
